<compile_context>
chip_gen: v7x
topology: tpu7x:2x2x1
jax: 0.10.0
libtpu: 0.0.40
codegen_flags: <defaults>
</compile_context>

<pallas_src>
import functools

import jax
import jax.numpy as jnp
from jax.experimental import pallas as pl
from jax.experimental.pallas import tpu as pltpu

LANE = 128
ROW_TILE = 256           # 256–512 row tiles: ~85% of HBM roofline vs ~29% at 128
_BN_EPS = 1e-5
_SLOPE = 0.1             # module explicitly uses LeakyReLU(0.1)

_VMEM_LIMIT_CACHE = None


def _vmem_limit_bytes():
    """Generation-aware scoped-VMEM limit (~7/8 of physical, capped)."""
    global _VMEM_LIMIT_CACHE
    if _VMEM_LIMIT_CACHE is None:
        cap = 64 * 1024 * 1024                      # conservative (v7x physical)
        try:
            info = pltpu.get_tpu_info()
            cap = int(getattr(info, "vmem_capacity_bytes", cap) or cap)
        except Exception:
            pass
        _VMEM_LIMIT_CACHE = max(32 * 1024 * 1024,
                                min((cap * 7) // 8, 112 * 1024 * 1024))
    return _VMEM_LIMIT_CACHE


def _mosaic_params(dimension_semantics):
    return pltpu.CompilerParams(dimension_semantics=dimension_semantics,
                                vmem_limit_bytes=_vmem_limit_bytes())


def _leaky(x):
    return jnp.where(x > 0, x, _SLOPE * x)


def _pad_to(n, m):
    return ((n + m - 1) // m) * m


# ----------------------------- Pallas kernels -----------------------------

def _head_kernel(seg_ref, x_ref, w_ref, b_ref, id_ref, ds_ref, acc_ref):
    """Fused layer_in (Linear+LeakyReLU) + scatter_mean over one x stream."""
    t = pl.program_id(0)

    @pl.when(t == 0)
    def _():
        acc_ref[...] = jnp.zeros_like(acc_ref)
        ds_ref[...] = jnp.zeros_like(ds_ref)

    x = x_ref[...]                                     # bf16; count lane is last
    id_ref[...] = _leaky(jnp.dot(x, w_ref[...],
                                 preferred_element_type=jnp.float32)
                         + b_ref[...]).astype(id_ref.dtype)

    n_out = acc_ref.shape[0]
    tile = x.shape[0]
    seg = seg_ref[...]                                 # [1, tile] int32
    onehot = (jax.lax.broadcasted_iota(jnp.int32, (n_out, tile), 0)
              == seg).astype(jnp.bfloat16)
    acc_ref[...] += jnp.dot(onehot, x, preferred_element_type=jnp.float32)

    @pl.when(t == pl.num_programs(0) - 1)
    def _():
        a = acc_ref[...]
        cnt = jnp.maximum(a[:, -1:], 1.0)              # counts rode in last lane
        ds_ref[...] = (a / cnt).astype(ds_ref.dtype)   # exact divide


def _pp1_kernel(nu_ref, x_ref, w_ref, b_ref, h_ref, stats_ref):
    t = pl.program_id(0)

    @pl.when(t == 0)
    def _():
        stats_ref[...] = jnp.zeros_like(stats_ref)

    tile = x_ref.shape[0]
    nu = nu_ref[0]

    @pl.when(t * tile < nu)            # skip tiles holding only empty buckets
    def _():
        h = _leaky(jnp.dot(x_ref[...], w_ref[...],
                           preferred_element_type=jnp.float32) + b_ref[...])
        h_ref[...] = h.astype(h_ref.dtype)
        rows = t * tile + jax.lax.broadcasted_iota(jnp.int32, (tile, 1), 0)
        hm = h * (rows < nu).astype(jnp.float32)
        s1 = jnp.sum(hm, axis=0, keepdims=True)
        s2 = jnp.sum(hm * h, axis=0, keepdims=True)
        rid = jax.lax.broadcasted_iota(jnp.int32, stats_ref.shape, 0)
        stats_ref[...] += jnp.where(rid == 0, s1, jnp.where(rid == 1, s2, 0.0))

    @pl.when(t * tile >= nu)
    def _():
        h_ref[...] = jnp.zeros_like(h_ref)


def _pp2_kernel(nu_ref, h_ref, st_ref, g_ref, be_ref, w_ref, b_ref,
                o_ref, stats_ref):
    t = pl.program_id(0)

    @pl.when(t == 0)
    def _():
        stats_ref[...] = jnp.zeros_like(stats_ref)

    tile = h_ref.shape[0]
    nu = nu_ref[0]

    @pl.when(t * tile < nu)
    def _():
        nu_f = jnp.maximum(nu.astype(jnp.float32), 1.0)
        mu = st_ref[0:1, :] / nu_f
        var = jnp.maximum(st_ref[1:2, :] / nu_f - mu * mu, 0.0)
        xn = ((h_ref[...].astype(jnp.float32) - mu)
              * jax.lax.rsqrt(var + _BN_EPS) * g_ref[...] + be_ref[...])
        h2 = _leaky(jnp.dot(xn.astype(jnp.bfloat16), w_ref[...],
                            preferred_element_type=jnp.float32) + b_ref[...])
        o_ref[...] = h2.astype(o_ref.dtype)
        rows = t * tile + jax.lax.broadcasted_iota(jnp.int32, (tile, 1), 0)
        hm = h2 * (rows < nu).astype(jnp.float32)
        s1 = jnp.sum(hm, axis=0, keepdims=True)
        s2 = jnp.sum(hm * h2, axis=0, keepdims=True)
        rid = jax.lax.broadcasted_iota(jnp.int32, stats_ref.shape, 0)
        stats_ref[...] += jnp.where(rid == 0, s1, jnp.where(rid == 1, s2, 0.0))

    @pl.when(t * tile >= nu)
    def _():
        o_ref[...] = jnp.zeros_like(o_ref)


def _pp3_kernel(nu_ref, h_ref, st_ref, g_ref, be_ref, w_ref, b_ref, o_ref):
    t = pl.program_id(0)
    tile = h_ref.shape[0]
    nu = nu_ref[0]

    @pl.when(t * tile < nu)
    def _():
        nu_f = jnp.maximum(nu.astype(jnp.float32), 1.0)
        mu = st_ref[0:1, :] / nu_f
        var = jnp.maximum(st_ref[1:2, :] / nu_f - mu * mu, 0.0)
        xn = ((h_ref[...].astype(jnp.float32) - mu)
              * jax.lax.rsqrt(var + _BN_EPS) * g_ref[...] + be_ref[...])
        o_ref[...] = _leaky(jnp.dot(xn.astype(jnp.bfloat16), w_ref[...],
                                    preferred_element_type=jnp.float32)
                            + b_ref[...]).astype(o_ref.dtype)

    @pl.when(t * tile >= nu)
    def _():
        o_ref[...] = jnp.zeros_like(o_ref)


def _tail_kernel(seg_ref, idpp_ref, vg_ref, w1_ref, b1_ref, w2_ref, b2_ref,
                 acc_ref):
    """layer_out on [identity|pp] (single K=2*cp matmul) + fused dual scatter."""
    t = pl.program_id(0)

    @pl.when(t == 0)
    def _():
        acc_ref[...] = jnp.zeros_like(acc_ref)

    h = _leaky(jnp.dot(idpp_ref[...], w1_ref[...],
                       preferred_element_type=jnp.float32) + b1_ref[...])
    lo = jnp.dot(h.astype(jnp.bfloat16), w2_ref[...],
                 preferred_element_type=jnp.float32) + b2_ref[...]

    m_acc = acc_ref.shape[0]
    tile = lo.shape[0]
    seg = seg_ref[...]                                  # [1, tile] int32
    onehot = (jax.lax.broadcasted_iota(jnp.int32, (m_acc, tile), 0)
              == seg).astype(jnp.bfloat16)
    payload = jnp.concatenate([lo.astype(jnp.bfloat16), vg_ref[...]], axis=1)
    acc_ref[...] += jnp.dot(onehot, payload, preferred_element_type=jnp.float32)

    @pl.when(t == pl.num_programs(0) - 1)
    def _():
        a = acc_ref[...]
        cnt = jnp.maximum(a[:, -1:], 1.0)               # counts rode in v_g lane
        acc_ref[...] = a / cnt                          # exact divide


# ----------------------------- kernel wrappers -----------------------------

def head_layer_in_scatter(feat_in, seg_ds, layer_in_params):
    n_pad, cp_ = feat_in.shape
    w, b = layer_in_params
    identity, ds = pl.pallas_call(
        _head_kernel,
        out_shape=(jax.ShapeDtypeStruct((n_pad, cp_), jnp.bfloat16),
                   jax.ShapeDtypeStruct((n_pad, cp_), jnp.bfloat16)),
        grid=(n_pad // ROW_TILE,),
        in_specs=[pl.BlockSpec((1, ROW_TILE), lambda i: (0, i)),
                  pl.BlockSpec((ROW_TILE, cp_), lambda i: (i, 0)),
                  pl.BlockSpec((cp_, cp_), lambda i: (0, 0)),
                  pl.BlockSpec((1, cp_), lambda i: (0, 0))],
        out_specs=(pl.BlockSpec((ROW_TILE, cp_), lambda i: (i, 0)),
                   pl.BlockSpec((n_pad, cp_), lambda i: (0, 0))),  # resident acc
        scratch_shapes=[pltpu.VMEM((n_pad, cp_), jnp.float32)],
        compiler_params=_mosaic_params(("arbitrary",)),
    )(seg_ds, feat_in, w, b)
    return ds, identity


def ppmodel(x, nu, prm):
    n_pad, cin = x.shape
    w1, b1 = prm["pp1"]
    g1, be1 = prm["bn1"]
    w2, b2 = prm["pp2"]
    g2, be2 = prm["bn2"]
    w3, b3 = prm["pp3"]
    hdim = w1.shape[1]
    cout = w3.shape[1]
    grid = (n_pad // ROW_TILE,)

    smem = pl.BlockSpec(memory_space=pltpu.MemorySpace.SMEM)
    const2 = lambda shape: pl.BlockSpec(shape, lambda i: (0, 0))
    rowspec = lambda shape: pl.BlockSpec(shape, lambda i: (i, 0))

    h1, st1 = pl.pallas_call(
        _pp1_kernel,
        out_shape=(jax.ShapeDtypeStruct((n_pad, hdim), jnp.bfloat16),
                   jax.ShapeDtypeStruct((8, hdim), jnp.float32)),
        grid=grid,
        in_specs=[smem, rowspec((ROW_TILE, cin)),
                  const2((cin, hdim)), const2((1, hdim))],
        out_specs=(rowspec((ROW_TILE, hdim)), const2((8, hdim))),
        compiler_params=_mosaic_params(("arbitrary",)),
    )(nu, x, w1, b1)

    h2, st2 = pl.pallas_call(
        _pp2_kernel,
        out_shape=(jax.ShapeDtypeStruct((n_pad, hdim), jnp.bfloat16),
                   jax.ShapeDtypeStruct((8, hdim), jnp.float32)),
        grid=grid,
        in_specs=[smem, rowspec((ROW_TILE, hdim)), const2((8, hdim)),
                  const2((1, hdim)), const2((1, hdim)),
                  const2((hdim, hdim)), const2((1, hdim))],
        out_specs=(rowspec((ROW_TILE, hdim)), const2((8, hdim))),
        compiler_params=_mosaic_params(("arbitrary",)),
    )(nu, h1, st1, g1, be1, w2, b2)

    pp = pl.pallas_call(
        _pp3_kernel,
        out_shape=jax.ShapeDtypeStruct((n_pad, cout), jnp.bfloat16),
        grid=grid,
        in_specs=[smem, rowspec((ROW_TILE, hdim)), const2((8, hdim)),
                  const2((1, hdim)), const2((1, hdim)),
                  const2((hdim, cout)), const2((1, cout))],
        out_specs=rowspec((ROW_TILE, cout)),
        compiler_params=_mosaic_params(("parallel",)),
    )(nu, h2, st2, g2, be2, w3, b3)
    return pp


def tail_layer_out_scatter(idpp_g, v_g, seg_t, m_acc, prm):
    p_pad = idpp_g.shape[0]
    cp_ = v_g.shape[1]
    w1, b1 = prm["lo1"]
    w2, b2 = prm["lo2"]
    const2 = lambda shape: pl.BlockSpec(shape, lambda i: (0, 0))
    rowspec = lambda shape: pl.BlockSpec(shape, lambda i: (i, 0))
    return pl.pallas_call(
        _tail_kernel,
        out_shape=jax.ShapeDtypeStruct((m_acc, 2 * cp_), jnp.float32),
        grid=(p_pad // ROW_TILE,),
        in_specs=[pl.BlockSpec((1, ROW_TILE), lambda i: (0, i)),
                  rowspec((ROW_TILE, 2 * cp_)),
                  rowspec((ROW_TILE, cp_)),
                  const2((2 * cp_, cp_)), const2((1, cp_)),
                  const2((cp_, cp_)), const2((1, cp_))],
        out_specs=const2((m_acc, 2 * cp_)),                 # resident accumulator
        compiler_params=_mosaic_params(("arbitrary",)),
    )(seg_t, idpp_g, v_g, w1, b1, w2, b2)


# ----------------------------- parameters -----------------------------

def init_params(key, c):
    half = c // 2

    def lin(k, cin, cout):
        kw, kb = jax.random.split(k)
        w = jax.random.normal(kw, (cin, cout), jnp.float32) / jnp.sqrt(float(cin))
        b = jax.random.normal(kb, (1, cout), jnp.float32) * 0.01
        return w, b

    ks = jax.random.split(key, 6)
    return {
        "layer_in": lin(ks[0], c, c),
        "pp1": lin(ks[1], c, half),
        "bn1": (jnp.ones((1, half), jnp.float32), jnp.zeros((1, half), jnp.float32)),
        "pp2": lin(ks[2], half, half),
        "bn2": (jnp.ones((1, half), jnp.float32), jnp.zeros((1, half), jnp.float32)),
        "pp3": lin(ks[3], half, c),
        "lo1": lin(ks[4], 2 * c, c),
        "lo2": lin(ks[5], c, c),
    }


def pad_params(p, c):
    """Zero-pad channel dims to LANE multiples (inert); weights pre-cast to bf16."""
    cp_ = _pad_to(c, LANE)
    hp_ = _pad_to(max(c // 2, 1), LANE)

    def pw(w, r, col):                                   # bf16 weight, zero padded
        out = jnp.zeros((r, col), jnp.float32).at[: w.shape[0], : w.shape[1]].set(w)
        return out.astype(jnp.bfloat16)

    def pb(b, col, fill=0.0):                            # f32 bias / BN row
        return jnp.full((1, col), fill, jnp.float32).at[:, : b.shape[1]].set(b)

    w_li, b_li = p["layer_in"]
    w1, b1 = p["pp1"]
    g1, be1 = p["bn1"]
    w2, b2 = p["pp2"]
    g2, be2 = p["bn2"]
    w3, b3 = p["pp3"]
    wl1, bl1 = p["lo1"]
    wl2, bl2 = p["lo2"]

    # merged layer_out W1 matching the [identity | pp] lane-concat (K = 2*cp)
    lo1 = jnp.zeros((2 * cp_, cp_), jnp.float32)
    lo1 = lo1.at[:c, :c].set(wl1[:c])
    lo1 = lo1.at[cp_: cp_ + c, :c].set(wl1[c:])

    return {
        "layer_in": (pw(w_li, cp_, cp_), pb(b_li, cp_)),
        "pp1": (pw(w1, cp_, hp_), pb(b1, hp_)),
        "bn1": (pb(g1, hp_, 1.0), pb(be1, hp_)),
        "pp2": (pw(w2, hp_, hp_), pb(b2, hp_)),
        "bn2": (pb(g2, hp_, 1.0), pb(be2, hp_)),
        "pp3": (pw(w3, hp_, cp_), pb(b3, cp_)),
        "lo1": (lo1.astype(jnp.bfloat16), pb(bl1, cp_)),
        "lo2": (pw(wl2, cp_, cp_), pb(bl2, cp_)),
    }


# ----------------------------- SPVBlock forward ----------------------------

def spvblock_forward(params_padded, features, coors, coors_inv_cur,
                     coors_inv_last, coors_inv_scale, num_scale_voxels, scale=2):
    """SPVBlock.forward, spconv_points path (sample_points=False)."""
    n, c = features.shape
    p = coors_inv_cur.shape[0]
    m = num_scale_voxels
    cp_ = params_padded["layer_in"][0].shape[0]

    n_pad = _pad_to(n, ROW_TILE)
    p_pad = _pad_to(p, ROW_TILE)
    m_acc = _pad_to(m + 1, 8)        # guarantees >=1 junk bucket for padded rows

    # TODO(synk): v_enc (spconv base_block + SparseAttenBlock) is not defined in
    # the reference snippet; substituted with identity on the sparse features.
    pts_feat = features                                   # layer_{id}.pts_feat

    # lane-dense layout; bucket counts ride for free in the last padded lane
    count_col = jnp.zeros((n_pad, 1), jnp.float32).at[:n, :].set(1.0)
    feats_p = jnp.zeros((n_pad, cp_), jnp.float32).at[:n, :c].set(features)
    vfea_core = feats_p                                   # identity v_enc (padded)
    vfea_p = vfea_core.at[:, cp_ - 1:cp_].set(count_col).astype(jnp.bfloat16)
    feat_in = (feats_p + vfea_core).at[:, cp_ - 1:cp_].set(count_col)
    feat_in = feat_in.astype(jnp.bfloat16)                # features + v_fea

    # downsample: unique((batch, coors // scale)) -> inverse ids (XLA glue)
    down = jnp.concatenate([coors[:, :1], coors[:, 1:] // scale], axis=1)
    _, inv = jnp.unique(down, axis=0, return_inverse=True, size=n, fill_value=0)
    inv = inv.reshape(-1).astype(jnp.int32)
    nu = (jnp.max(inv) + 1).astype(jnp.int32).reshape(1)  # valid bucket count
    seg_ds = jnp.zeros((1, n_pad), jnp.int32).at[0, :n].set(inv)

    # fused: layer_in + scatter_mean over the same feat_in row stream
    ds_feat, identity = head_layer_in_scatter(feat_in, seg_ds,
                                              params_padded["layer_in"])
    pp = ppmodel(ds_feat, nu, params_padded)              # [n_pad, cp] bf16

    # row gathers in XLA; composing indices avoids the [n, 2c] round trip
    pp_idx = jnp.take(inv, coors_inv_cur)
    id_g = jnp.take(identity, coors_inv_cur, axis=0)      # [P, cp] bf16
    pp_g = jnp.take(pp, pp_idx, axis=0)                   # [P, cp] bf16
    v_g = jnp.take(vfea_p, coors_inv_last, axis=0)        # [P, cp] bf16 (+count)
    idpp_g = jnp.concatenate([id_g, pp_g], axis=1)        # [P, 2cp] K=256 operand
    idpp_g = jnp.pad(idpp_g, ((0, p_pad - p), (0, 0)))
    v_g = jnp.pad(v_g, ((0, p_pad - p), (0, 0)))
    seg_t = jnp.full((1, p_pad), m, jnp.int32)            # padded rows -> junk
    seg_t = seg_t.at[0, :p].set(coors_inv_scale.astype(jnp.int32))

    acc = tail_layer_out_scatter(idpp_g, v_g, seg_t, m_acc, params_padded)
    p_fea = acc[:m, :c]
    v_fea_inv = acc[:m, cp_: cp_ + c]

    new_features = p_fea + v_fea_inv                      # new sparse features
    pts_feat_f = jnp.take(p_fea, coors_inv_scale, axis=0)  # [P, c]
    return pts_feat, new_features, pts_feat_f


# ----------------------------------- main -----------------------------------

if __name__ == "__main__":
    key = jax.random.PRNGKey(0)
    C, N, P, M, SCALE = 32, 256, 512, 64, 2

    k1, k2, k3, k4, k5, kp = jax.random.split(key, 6)
    features = jax.random.normal(k1, (N, C), jnp.float32)
    batch = jax.random.randint(k2, (N, 1), 0, 2, jnp.int32)
    xyz = jax.random.randint(k3, (N, 3), 0, 16, jnp.int32)
    coors = jnp.concatenate([batch, xyz], axis=1)
    coors_inv_cur = jax.random.randint(k4, (P,), 0, N, jnp.int32)
    coors_inv_last = jax.random.randint(k5, (P,), 0, N, jnp.int32)
    coors_inv_scale = jnp.mod(jnp.arange(P, dtype=jnp.int32), M)

    params = pad_params(init_params(kp, C), C)

    fwd = jax.jit(functools.partial(spvblock_forward,
                                    num_scale_voxels=M, scale=SCALE))
    pts_feat, new_feats, pts_feat_f = fwd(
        params, features, coors, coors_inv_cur, coors_inv_last, coors_inv_scale)

    jax.block_until_ready((pts_feat, new_feats, pts_feat_f))
    assert pts_feat.shape == (N, C)
    assert new_feats.shape == (M, C)
    assert pts_feat_f.shape == (P, C)
    assert bool(jnp.all(jnp.isfinite(new_feats)))
    assert bool(jnp.all(jnp.isfinite(pts_feat_f)))
    print("KERNEL_OK")
</pallas_src>

<mosaic_0001>
module attributes {stable_mosaic.version = 11 : i64} {
  func.func @_head_kernel(%arg0: i32, %arg1: memref<1x256xi32, #tpu.memory_space<vmem>>, %arg2: memref<256x128xbf16, #tpu.memory_space<vmem>>, %arg3: memref<128x128xbf16, #tpu.memory_space<vmem>>, %arg4: memref<1x128xf32, #tpu.memory_space<vmem>>, %arg5: memref<256x128xbf16, #tpu.memory_space<vmem>>, %arg6: memref<256x128xbf16, #tpu.memory_space<vmem>>, %arg7: memref<256x128xf32, #tpu.memory_space<vmem>>) attributes {dimension_semantics = [#tpu.dimension_semantics<arbitrary>], iteration_bounds = array<i64: 1>, scalar_prefetch = 0 : i64, scratch_operands = 1 : i64, tpu.core_type = #tpu.core_type<tc>, window_params = [{transform_indices = @transform_0, window_bounds = array<i64: 1, 256>}, {transform_indices = @transform_1, window_bounds = array<i64: 256, 128>}, {pipeline_mode = #tpu.pipeline_mode<synchronous>, transform_indices = @transform_2, window_bounds = array<i64: 128, 128>}, {pipeline_mode = #tpu.pipeline_mode<synchronous>, transform_indices = @transform_3, window_bounds = array<i64: 1, 128>}, {transform_indices = @transform_4, window_bounds = array<i64: 256, 128>}, {pipeline_mode = #tpu.pipeline_mode<synchronous>, transform_indices = @transform_5, window_bounds = array<i64: 256, 128>}]} {
    %c0_i32 = arith.constant 0 : i32
    %0 = arith.cmpi eq, %arg0, %c0_i32 : i32
    %1 = arith.extui %0 : i1 to i32
    %c0_i32_0 = arith.constant 0 : i32
    %2 = arith.cmpi ne, %1, %c0_i32_0 : i32
    scf.if %2 {
      %cst_19 = arith.constant 0.000000e+00 : f32
      %30 = vector.broadcast %cst_19 : f32 to vector<256x128xf32>
      %c0_20 = arith.constant 0 : index
      %c0_21 = arith.constant 0 : index
      %31 = vector.load %arg7[%c0_20, %c0_21] : memref<256x128xf32, #tpu.memory_space<vmem>>, vector<256x128xf32>
      tpu.vector_store %arg7[%c0_20, %c0_21], %30 {strides = array<i32>} : memref<256x128xf32, #tpu.memory_space<vmem>>, vector<256x128xf32>,
      %cst_22 = arith.constant 0.000000e+00 : bf16
      %32 = vector.broadcast %cst_22 : bf16 to vector<256x128xbf16>
      %c0_23 = arith.constant 0 : index
      %c0_24 = arith.constant 0 : index
      %33 = vector.load %arg6[%c0_23, %c0_24] : memref<256x128xbf16, #tpu.memory_space<vmem>>, vector<256x128xbf16>
      tpu.vector_store %arg6[%c0_23, %c0_24], %32 {strides = array<i32>} : memref<256x128xbf16, #tpu.memory_space<vmem>>, vector<256x128xbf16>,
    } else {
    }
    %c0 = arith.constant 0 : index
    %c0_1 = arith.constant 0 : index
    %3 = vector.load %arg2[%c0, %c0_1] : memref<256x128xbf16, #tpu.memory_space<vmem>>, vector<256x128xbf16>
    %c0_2 = arith.constant 0 : index
    %c0_3 = arith.constant 0 : index
    %4 = vector.load %arg3[%c0_2, %c0_3] : memref<128x128xbf16, #tpu.memory_space<vmem>>, vector<128x128xbf16>
    %cst = arith.constant dense<0.000000e+00> : vector<256x128xf32>
    %5 = tpu.matmul %3, %4, %cst {dimension_numbers = #tpu.dot_dimension_numbers<[1], [0], [0], [1], [0, 0, 1, 1], [], []>} : vector<256x128xbf16>, vector<128x128xbf16>, vector<256x128xf32> -> vector<256x128xf32>
    %c0_4 = arith.constant 0 : index
    %c0_5 = arith.constant 0 : index
    %6 = vector.load %arg4[%c0_4, %c0_5] : memref<1x128xf32, #tpu.memory_space<vmem>>, vector<1x128xf32>
    %7 = vector.broadcast %6 : vector<1x128xf32> to vector<256x128xf32>
    %8 = arith.addf %5, %7 : vector<256x128xf32>
    %cst_6 = arith.constant 0.000000e+00 : f32
    %9 = vector.broadcast %cst_6 : f32 to vector<256x128xf32>
    %10 = arith.cmpf ogt, %8, %9 : vector<256x128xf32>
    %cst_7 = arith.constant 1.000000e-01 : f32
    %11 = vector.broadcast %cst_7 : f32 to vector<256x128xf32>
    %12 = arith.mulf %11, %8 : vector<256x128xf32>
    %13 = arith.select %10, %8, %12 : vector<256x128xi1>, vector<256x128xf32>
    %14 = arith.truncf %13 : vector<256x128xf32> to vector<256x128xbf16>
    %c0_8 = arith.constant 0 : index
    %c0_9 = arith.constant 0 : index
    %15 = vector.load %arg5[%c0_8, %c0_9] : memref<256x128xbf16, #tpu.memory_space<vmem>>, vector<256x128xbf16>
    tpu.vector_store %arg5[%c0_8, %c0_9], %14 {strides = array<i32>} : memref<256x128xbf16, #tpu.memory_space<vmem>>, vector<256x128xbf16>,
    %c0_10 = arith.constant 0 : index
    %c0_11 = arith.constant 0 : index
    %16 = vector.load %arg1[%c0_10, %c0_11] : memref<1x256xi32, #tpu.memory_space<vmem>>, vector<1x256xi32>
    %17 = tpu.iota {dimensions = array<i32: 0>} : vector<256x256xi32>
    %18 = vector.broadcast %16 : vector<1x256xi32> to vector<256x256xi32>
    %19 = arith.cmpi eq, %17, %18 : vector<256x256xi32>
    %20 = arith.extui %19 : vector<256x256xi1> to vector<256x256xi32>
    %21 = arith.sitofp %20 : vector<256x256xi32> to vector<256x256xf32>
    %22 = arith.truncf %21 : vector<256x256xf32> to vector<256x256xbf16>
    %c0_12 = arith.constant 0 : index
    %c0_13 = arith.constant 0 : index
    %23 = vector.load %arg7[%c0_12, %c0_13] : memref<256x128xf32, #tpu.memory_space<vmem>>, vector<256x128xf32>
    %cst_14 = arith.constant dense<0.000000e+00> : vector<256x128xf32>
    %24 = tpu.matmul %22, %3, %cst_14 {dimension_numbers = #tpu.dot_dimension_numbers<[1], [0], [0], [1], [0, 0, 1, 1], [], []>} : vector<256x256xbf16>, vector<256x128xbf16>, vector<256x128xf32> -> vector<256x128xf32>
    %25 = arith.addf %23, %24 : vector<256x128xf32>
    %c0_15 = arith.constant 0 : index
    %c0_16 = arith.constant 0 : index
    %26 = vector.load %arg7[%c0_15, %c0_16] : memref<256x128xf32, #tpu.memory_space<vmem>>, vector<256x128xf32>
    tpu.vector_store %arg7[%c0_15, %c0_16], %25 {strides = array<i32>} : memref<256x128xf32, #tpu.memory_space<vmem>>, vector<256x128xf32>,
    %c0_i32_17 = arith.constant 0 : i32
    %27 = arith.cmpi eq, %arg0, %c0_i32_17 : i32
    %28 = arith.extui %27 : i1 to i32
    %c0_i32_18 = arith.constant 0 : i32
    %29 = arith.cmpi ne, %28, %c0_i32_18 : i32
    scf.if %29 {
      %c0_19 = arith.constant 0 : index
      %c0_20 = arith.constant 0 : index
      %30 = vector.load %arg7[%c0_19, %c0_20] : memref<256x128xf32, #tpu.memory_space<vmem>>, vector<256x128xf32>
      %31 = vector.extract_strided_slice %30 {offsets = [0, 127], sizes = [256, 1], strides = [1, 1]} : vector<256x128xf32> to vector<256x1xf32>
      %cst_21 = arith.constant 1.000000e+00 : f32
      %32 = vector.broadcast %cst_21 : f32 to vector<256x1xf32>
      %33 = arith.maximumf %31, %32 : vector<256x1xf32>
      %34 = vector.broadcast %33 : vector<256x1xf32> to vector<256x128xf32>
      %35 = arith.divf %30, %34 : vector<256x128xf32>
      %36 = arith.truncf %35 : vector<256x128xf32> to vector<256x128xbf16>
      %c0_22 = arith.constant 0 : index
      %c0_23 = arith.constant 0 : index
      %37 = vector.load %arg6[%c0_22, %c0_23] : memref<256x128xbf16, #tpu.memory_space<vmem>>, vector<256x128xbf16>
      tpu.vector_store %arg6[%c0_22, %c0_23], %36 {strides = array<i32>} : memref<256x128xbf16, #tpu.memory_space<vmem>>, vector<256x128xbf16>,
    } else {
    }
    return
  }
  func.func @transform_0(%arg0: i32) -> (i32, i32) {
    %c0_i32 = arith.constant 0 : i32
    %c0_i32_0 = arith.constant 0 : i32
    return %c0_i32, %arg0 : i32, i32
  }
  func.func @transform_1(%arg0: i32) -> (i32, i32) {
    %c0_i32 = arith.constant 0 : i32
    %c0_i32_0 = arith.constant 0 : i32
    return %arg0, %c0_i32 : i32, i32
  }
  func.func @transform_2(%arg0: i32) -> (i32, i32) {
    %c0_i32 = arith.constant 0 : i32
    %c0_i32_0 = arith.constant 0 : i32
    %c0_i32_1 = arith.constant 0 : i32
    return %c0_i32, %c0_i32_0 : i32, i32
  }
  func.func @transform_3(%arg0: i32) -> (i32, i32) {
    %c0_i32 = arith.constant 0 : i32
    %c0_i32_0 = arith.constant 0 : i32
    %c0_i32_1 = arith.constant 0 : i32
    return %c0_i32, %c0_i32_0 : i32, i32
  }
  func.func @transform_4(%arg0: i32) -> (i32, i32) {
    %c0_i32 = arith.constant 0 : i32
    %c0_i32_0 = arith.constant 0 : i32
    return %arg0, %c0_i32 : i32, i32
  }
  func.func @transform_5(%arg0: i32) -> (i32, i32) {
    %c0_i32 = arith.constant 0 : i32
    %c0_i32_0 = arith.constant 0 : i32
    %c0_i32_1 = arith.constant 0 : i32
    return %c0_i32, %c0_i32_0 : i32, i32
  }
}

module attributes {stable_mosaic.version = 11 : i64} {
  func.func @_pp1_kernel(%arg0: i32, %arg1: memref<1xi32, #tpu.memory_space<smem>>, %arg2: memref<256x128xbf16, #tpu.memory_space<vmem>>, %arg3: memref<128x128xbf16, #tpu.memory_space<vmem>>, %arg4: memref<1x128xf32, #tpu.memory_space<vmem>>, %arg5: memref<256x128xbf16, #tpu.memory_space<vmem>>, %arg6: memref<8x128xf32, #tpu.memory_space<vmem>>) attributes {dimension_semantics = [#tpu.dimension_semantics<arbitrary>], iteration_bounds = array<i64: 1>, scalar_prefetch = 0 : i64, scratch_operands = 0 : i64, tpu.core_type = #tpu.core_type<tc>, window_params = [{transform_indices = @transform_0, window_bounds = array<i64: 1>}, {transform_indices = @transform_1, window_bounds = array<i64: 256, 128>}, {pipeline_mode = #tpu.pipeline_mode<synchronous>, transform_indices = @transform_2, window_bounds = array<i64: 128, 128>}, {pipeline_mode = #tpu.pipeline_mode<synchronous>, transform_indices = @transform_3, window_bounds = array<i64: 1, 128>}, {transform_indices = @transform_4, window_bounds = array<i64: 256, 128>}, {pipeline_mode = #tpu.pipeline_mode<synchronous>, transform_indices = @transform_5, window_bounds = array<i64: 8, 128>}]} {
    %c0_i32 = arith.constant 0 : i32
    %0 = arith.cmpi eq, %arg0, %c0_i32 : i32
    %1 = arith.extui %0 : i1 to i32
    %c0_i32_0 = arith.constant 0 : i32
    %2 = arith.cmpi ne, %1, %c0_i32_0 : i32
    scf.if %2 {
      %cst = arith.constant 0.000000e+00 : f32
      %12 = vector.broadcast %cst : f32 to vector<8x128xf32>
      %c0_4 = arith.constant 0 : index
      %c0_5 = arith.constant 0 : index
      %13 = vector.load %arg6[%c0_4, %c0_5] : memref<8x128xf32, #tpu.memory_space<vmem>>, vector<8x128xf32>
      tpu.vector_store %arg6[%c0_4, %c0_5], %12 {strides = array<i32>} : memref<8x128xf32, #tpu.memory_space<vmem>>, vector<8x128xf32>,
    } else {
    }
    %c0 = arith.constant 0 : index
    %3 = memref.load %arg1[%c0] : memref<1xi32, #tpu.memory_space<smem>>
    %c256_i32 = arith.constant 256 : i32
    %4 = arith.muli %arg0, %c256_i32 : i32
    %5 = arith.cmpi slt, %4, %3 : i32
    %6 = arith.extui %5 : i1 to i32
    %c0_i32_1 = arith.constant 0 : i32
    %7 = arith.cmpi ne, %6, %c0_i32_1 : i32
    scf.if %7 {
      %c0_4 = arith.constant 0 : index
      %c0_5 = arith.constant 0 : index
      %12 = vector.load %arg2[%c0_4, %c0_5] : memref<256x128xbf16, #tpu.memory_space<vmem>>, vector<256x128xbf16>
      %c0_6 = arith.constant 0 : index
      %c0_7 = arith.constant 0 : index
      %13 = vector.load %arg3[%c0_6, %c0_7] : memref<128x128xbf16, #tpu.memory_space<vmem>>, vector<128x128xbf16>
      %cst = arith.constant dense<0.000000e+00> : vector<256x128xf32>
      %14 = tpu.matmul %12, %13, %cst {dimension_numbers = #tpu.dot_dimension_numbers<[1], [0], [0], [1], [0, 0, 1, 1], [], []>} : vector<256x128xbf16>, vector<128x128xbf16>, vector<256x128xf32> -> vector<256x128xf32>
      %c0_8 = arith.constant 0 : index
      %c0_9 = arith.constant 0 : index
      %15 = vector.load %arg4[%c0_8, %c0_9] : memref<1x128xf32, #tpu.memory_space<vmem>>, vector<1x128xf32>
      %16 = vector.broadcast %15 : vector<1x128xf32> to vector<256x128xf32>
      %17 = arith.addf %14, %16 : vector<256x128xf32>
      %cst_10 = arith.constant 0.000000e+00 : f32
      %18 = vector.broadcast %cst_10 : f32 to vector<256x128xf32>
      %19 = arith.cmpf ogt, %17, %18 : vector<256x128xf32>
      %cst_11 = arith.constant 1.000000e-01 : f32
      %20 = vector.broadcast %cst_11 : f32 to vector<256x128xf32>
      %21 = arith.mulf %20, %17 : vector<256x128xf32>
      %22 = arith.select %19, %17, %21 : vector<256x128xi1>, vector<256x128xf32>
      %23 = arith.truncf %22 : vector<256x128xf32> to vector<256x128xbf16>
      %c0_12 = arith.constant 0 : index
      %c0_13 = arith.constant 0 : index
      %24 = vector.load %arg5[%c0_12, %c0_13] : memref<256x128xbf16, #tpu.memory_space<vmem>>, vector<256x128xbf16>
      tpu.vector_store %arg5[%c0_12, %c0_13], %23 {strides = array<i32>} : memref<256x128xbf16, #tpu.memory_space<vmem>>, vector<256x128xbf16>,
      %c256_i32_14 = arith.constant 256 : i32
      %25 = arith.muli %arg0, %c256_i32_14 : i32
      %26 = tpu.iota {dimensions = array<i32: 0>} : vector<256x1xi32>
      %27 = vector.broadcast %25 : i32 to vector<256x1xi32>
      %28 = arith.addi %27, %26 : vector<256x1xi32>
      %29 = vector.broadcast %3 : i32 to vector<256x1xi32>
      %30 = arith.cmpi slt, %28, %29 : vector<256x1xi32>
      %31 = arith.extui %30 : vector<256x1xi1> to vector<256x1xi32>
      %32 = arith.sitofp %31 : vector<256x1xi32> to vector<256x1xf32>
      %33 = vector.broadcast %32 : vector<256x1xf32> to vector<256x128xf32>
      %34 = arith.mulf %22, %33 : vector<256x128xf32>
      %cst_15 = arith.constant dense<0.000000e+00> : vector<128xf32>
      %35 = vector.multi_reduction <add>, %34, %cst_15 [0] : vector<256x128xf32> to vector<128xf32>
      %36 = vector.shape_cast %35 : vector<128xf32> to vector<1x128xf32>
      %37 = arith.mulf %34, %22 : vector<256x128xf32>
      %cst_16 = arith.constant dense<0.000000e+00> : vector<128xf32>
      %38 = vector.multi_reduction <add>, %37, %cst_16 [0] : vector<256x128xf32> to vector<128xf32>
      %39 = vector.shape_cast %38 : vector<128xf32> to vector<1x128xf32>
      %40 = tpu.iota {dimensions = array<i32: 0>} : vector<8x128xi32>
      %c0_17 = arith.constant 0 : index
      %c0_18 = arith.constant 0 : index
      %41 = vector.load %arg6[%c0_17, %c0_18] : memref<8x128xf32, #tpu.memory_space<vmem>>, vector<8x128xf32>
      %c0_i32_19 = arith.constant 0 : i32
      %42 = vector.broadcast %c0_i32_19 : i32 to vector<8x128xi32>
      %43 = arith.cmpi eq, %40, %42 : vector<8x128xi32>
      %c1_i32 = arith.constant 1 : i32
      %44 = vector.broadcast %c1_i32 : i32 to vector<8x128xi32>
      %45 = arith.cmpi eq, %40, %44 : vector<8x128xi32>
      %cst_20 = arith.constant 0.000000e+00 : f32
      %46 = vector.shape_cast %39 : vector<1x128xf32> to vector<1x128xf32>
      %47 = vector.broadcast %46 : vector<1x128xf32> to vector<8x128xf32>
      %48 = vector.broadcast %cst_20 : f32 to vector<8x128xf32>
      %49 = arith.select %45, %47, %48 : vector<8x128xi1>, vector<8x128xf32>
      %50 = vector.shape_cast %36 : vector<1x128xf32> to vector<1x128xf32>
      %51 = vector.broadcast %50 : vector<1x128xf32> to vector<8x128xf32>
      %52 = arith.select %43, %51, %49 : vector<8x128xi1>, vector<8x128xf32>
      %53 = arith.addf %41, %52 : vector<8x128xf32>
      %c0_21 = arith.constant 0 : index
      %c0_22 = arith.constant 0 : index
      %54 = vector.load %arg6[%c0_21, %c0_22] : memref<8x128xf32, #tpu.memory_space<vmem>>, vector<8x128xf32>
      tpu.vector_store %arg6[%c0_21, %c0_22], %53 {strides = array<i32>} : memref<8x128xf32, #tpu.memory_space<vmem>>, vector<8x128xf32>,
    } else {
    }
    %c256_i32_2 = arith.constant 256 : i32
    %8 = arith.muli %arg0, %c256_i32_2 : i32
    %9 = arith.cmpi sge, %8, %3 : i32
    %10 = arith.extui %9 : i1 to i32
    %c0_i32_3 = arith.constant 0 : i32
    %11 = arith.cmpi ne, %10, %c0_i32_3 : i32
    scf.if %11 {
      %cst = arith.constant 0.000000e+00 : bf16
      %12 = vector.broadcast %cst : bf16 to vector<256x128xbf16>
      %c0_4 = arith.constant 0 : index
      %c0_5 = arith.constant 0 : index
      %13 = vector.load %arg5[%c0_4, %c0_5] : memref<256x128xbf16, #tpu.memory_space<vmem>>, vector<256x128xbf16>
      tpu.vector_store %arg5[%c0_4, %c0_5], %12 {strides = array<i32>} : memref<256x128xbf16, #tpu.memory_space<vmem>>, vector<256x128xbf16>,
    } else {
    }
    return
  }
  func.func @transform_0(%arg0: i32) -> i32 {
    %c0_i32 = arith.constant 0 : i32
    %c0_i32_0 = arith.constant 0 : i32
    return %c0_i32 : i32
  }
  func.func @transform_1(%arg0: i32) -> (i32, i32) {
    %c0_i32 = arith.constant 0 : i32
    %c0_i32_0 = arith.constant 0 : i32
    return %arg0, %c0_i32 : i32, i32
  }
  func.func @transform_2(%arg0: i32) -> (i32, i32) {
    %c0_i32 = arith.constant 0 : i32
    %c0_i32_0 = arith.constant 0 : i32
    %c0_i32_1 = arith.constant 0 : i32
    return %c0_i32, %c0_i32_0 : i32, i32
  }
  func.func @transform_3(%arg0: i32) -> (i32, i32) {
    %c0_i32 = arith.constant 0 : i32
    %c0_i32_0 = arith.constant 0 : i32
    %c0_i32_1 = arith.constant 0 : i32
    return %c0_i32, %c0_i32_0 : i32, i32
  }
  func.func @transform_4(%arg0: i32) -> (i32, i32) {
    %c0_i32 = arith.constant 0 : i32
    %c0_i32_0 = arith.constant 0 : i32
    return %arg0, %c0_i32 : i32, i32
  }
  func.func @transform_5(%arg0: i32) -> (i32, i32) {
    %c0_i32 = arith.constant 0 : i32
    %c0_i32_0 = arith.constant 0 : i32
    %c0_i32_1 = arith.constant 0 : i32
    return %c0_i32, %c0_i32_0 : i32, i32
  }
}

module attributes {stable_mosaic.version = 11 : i64} {
  func.func @_pp2_kernel(%arg0: i32, %arg1: memref<1xi32, #tpu.memory_space<smem>>, %arg2: memref<256x128xbf16, #tpu.memory_space<vmem>>, %arg3: memref<8x128xf32, #tpu.memory_space<vmem>>, %arg4: memref<1x128xf32, #tpu.memory_space<vmem>>, %arg5: memref<1x128xf32, #tpu.memory_space<vmem>>, %arg6: memref<128x128xbf16, #tpu.memory_space<vmem>>, %arg7: memref<1x128xf32, #tpu.memory_space<vmem>>, %arg8: memref<256x128xbf16, #tpu.memory_space<vmem>>, %arg9: memref<8x128xf32, #tpu.memory_space<vmem>>) attributes {dimension_semantics = [#tpu.dimension_semantics<arbitrary>], iteration_bounds = array<i64: 1>, scalar_prefetch = 0 : i64, scratch_operands = 0 : i64, tpu.core_type = #tpu.core_type<tc>, window_params = [{transform_indices = @transform_0, window_bounds = array<i64: 1>}, {transform_indices = @transform_1, window_bounds = array<i64: 256, 128>}, {pipeline_mode = #tpu.pipeline_mode<synchronous>, transform_indices = @transform_2, window_bounds = array<i64: 8, 128>}, {pipeline_mode = #tpu.pipeline_mode<synchronous>, transform_indices = @transform_3, window_bounds = array<i64: 1, 128>}, {pipeline_mode = #tpu.pipeline_mode<synchronous>, transform_indices = @transform_4, window_bounds = array<i64: 1, 128>}, {pipeline_mode = #tpu.pipeline_mode<synchronous>, transform_indices = @transform_5, window_bounds = array<i64: 128, 128>}, {pipeline_mode = #tpu.pipeline_mode<synchronous>, transform_indices = @transform_6, window_bounds = array<i64: 1, 128>}, {transform_indices = @transform_7, window_bounds = array<i64: 256, 128>}, {pipeline_mode = #tpu.pipeline_mode<synchronous>, transform_indices = @transform_8, window_bounds = array<i64: 8, 128>}]} {
    %c0_i32 = arith.constant 0 : i32
    %0 = arith.cmpi eq, %arg0, %c0_i32 : i32
    %1 = arith.extui %0 : i1 to i32
    %c0_i32_0 = arith.constant 0 : i32
    %2 = arith.cmpi ne, %1, %c0_i32_0 : i32
    scf.if %2 {
      %cst = arith.constant 0.000000e+00 : f32
      %12 = vector.broadcast %cst : f32 to vector<8x128xf32>
      %c0_4 = arith.constant 0 : index
      %c0_5 = arith.constant 0 : index
      %13 = vector.load %arg9[%c0_4, %c0_5] : memref<8x128xf32, #tpu.memory_space<vmem>>, vector<8x128xf32>
      tpu.vector_store %arg9[%c0_4, %c0_5], %12 {strides = array<i32>} : memref<8x128xf32, #tpu.memory_space<vmem>>, vector<8x128xf32>,
    } else {
    }
    %c0 = arith.constant 0 : index
    %3 = memref.load %arg1[%c0] : memref<1xi32, #tpu.memory_space<smem>>
    %c256_i32 = arith.constant 256 : i32
    %4 = arith.muli %arg0, %c256_i32 : i32
    %5 = arith.cmpi slt, %4, %3 : i32
    %6 = arith.extui %5 : i1 to i32
    %c0_i32_1 = arith.constant 0 : i32
    %7 = arith.cmpi ne, %6, %c0_i32_1 : i32
    scf.if %7 {
      %12 = arith.sitofp %3 : i32 to f32
      %cst = arith.constant 1.000000e+00 : f32
      %13 = arith.maximumf %12, %cst : f32
      %c0_4 = arith.constant 0 : index
      %c0_5 = arith.constant 0 : index
      %14 = vector.load %arg3[%c0_4, %c0_5] : memref<8x128xf32, #tpu.memory_space<vmem>>, vector<1x128xf32>
      %15 = vector.broadcast %13 : f32 to vector<1x128xf32>
      %16 = arith.divf %14, %15 : vector<1x128xf32>
      %c1 = arith.constant 1 : index
      %c0_6 = arith.constant 0 : index
      %17 = vector.load %arg3[%c1, %c0_6] : memref<8x128xf32, #tpu.memory_space<vmem>>, vector<1x128xf32>
      %18 = vector.broadcast %13 : f32 to vector<1x128xf32>
      %19 = arith.divf %17, %18 : vector<1x128xf32>
      %20 = arith.mulf %16, %16 : vector<1x128xf32>
      %21 = arith.subf %19, %20 : vector<1x128xf32>
      %cst_7 = arith.constant 0.000000e+00 : f32
      %22 = vector.broadcast %cst_7 : f32 to vector<1x128xf32>
      %23 = arith.maximumf %21, %22 : vector<1x128xf32>
      %c0_8 = arith.constant 0 : index
      %c0_9 = arith.constant 0 : index
      %24 = vector.load %arg2[%c0_8, %c0_9] : memref<256x128xbf16, #tpu.memory_space<vmem>>, vector<256x128xbf16>
      %25 = arith.extf %24 : vector<256x128xbf16> to vector<256x128xf32>
      %26 = vector.broadcast %16 : vector<1x128xf32> to vector<256x128xf32>
      %27 = arith.subf %25, %26 : vector<256x128xf32>
      %cst_10 = arith.constant 9.99999974E-6 : f32
      %28 = vector.broadcast %cst_10 : f32 to vector<1x128xf32>
      %29 = arith.addf %23, %28 : vector<1x128xf32>
      %30 = math.rsqrt %29 : vector<1x128xf32>
      %31 = vector.broadcast %30 : vector<1x128xf32> to vector<256x128xf32>
      %32 = arith.mulf %27, %31 : vector<256x128xf32>
      %c0_11 = arith.constant 0 : index
      %c0_12 = arith.constant 0 : index
      %33 = vector.load %arg4[%c0_11, %c0_12] : memref<1x128xf32, #tpu.memory_space<vmem>>, vector<1x128xf32>
      %34 = vector.broadcast %33 : vector<1x128xf32> to vector<256x128xf32>
      %35 = arith.mulf %32, %34 : vector<256x128xf32>
      %c0_13 = arith.constant 0 : index
      %c0_14 = arith.constant 0 : index
      %36 = vector.load %arg5[%c0_13, %c0_14] : memref<1x128xf32, #tpu.memory_space<vmem>>, vector<1x128xf32>
      %37 = vector.broadcast %36 : vector<1x128xf32> to vector<256x128xf32>
      %38 = arith.addf %35, %37 : vector<256x128xf32>
      %39 = arith.truncf %38 : vector<256x128xf32> to vector<256x128xbf16>
      %c0_15 = arith.constant 0 : index
      %c0_16 = arith.constant 0 : index
      %40 = vector.load %arg6[%c0_15, %c0_16] : memref<128x128xbf16, #tpu.memory_space<vmem>>, vector<128x128xbf16>
      %cst_17 = arith.constant dense<0.000000e+00> : vector<256x128xf32>
      %41 = tpu.matmul %39, %40, %cst_17 {dimension_numbers = #tpu.dot_dimension_numbers<[1], [0], [0], [1], [0, 0, 1, 1], [], []>} : vector<256x128xbf16>, vector<128x128xbf16>, vector<256x128xf32> -> vector<256x128xf32>
      %c0_18 = arith.constant 0 : index
      %c0_19 = arith.constant 0 : index
      %42 = vector.load %arg7[%c0_18, %c0_19] : memref<1x128xf32, #tpu.memory_space<vmem>>, vector<1x128xf32>
      %43 = vector.broadcast %42 : vector<1x128xf32> to vector<256x128xf32>
      %44 = arith.addf %41, %43 : vector<256x128xf32>
      %cst_20 = arith.constant 0.000000e+00 : f32
      %45 = vector.broadcast %cst_20 : f32 to vector<256x128xf32>
      %46 = arith.cmpf ogt, %44, %45 : vector<256x128xf32>
      %cst_21 = arith.constant 1.000000e-01 : f32
      %47 = vector.broadcast %cst_21 : f32 to vector<256x128xf32>
      %48 = arith.mulf %47, %44 : vector<256x128xf32>
      %49 = arith.select %46, %44, %48 : vector<256x128xi1>, vector<256x128xf32>
      %50 = arith.truncf %49 : vector<256x128xf32> to vector<256x128xbf16>
      %c0_22 = arith.constant 0 : index
      %c0_23 = arith.constant 0 : index
      %51 = vector.load %arg8[%c0_22, %c0_23] : memref<256x128xbf16, #tpu.memory_space<vmem>>, vector<256x128xbf16>
      tpu.vector_store %arg8[%c0_22, %c0_23], %50 {strides = array<i32>} : memref<256x128xbf16, #tpu.memory_space<vmem>>, vector<256x128xbf16>,
      %c256_i32_24 = arith.constant 256 : i32
      %52 = arith.muli %arg0, %c256_i32_24 : i32
      %53 = tpu.iota {dimensions = array<i32: 0>} : vector<256x1xi32>
      %54 = vector.broadcast %52 : i32 to vector<256x1xi32>
      %55 = arith.addi %54, %53 : vector<256x1xi32>
      %56 = vector.broadcast %3 : i32 to vector<256x1xi32>
      %57 = arith.cmpi slt, %55, %56 : vector<256x1xi32>
      %58 = arith.extui %57 : vector<256x1xi1> to vector<256x1xi32>
      %59 = arith.sitofp %58 : vector<256x1xi32> to vector<256x1xf32>
      %60 = vector.broadcast %59 : vector<256x1xf32> to vector<256x128xf32>
      %61 = arith.mulf %49, %60 : vector<256x128xf32>
      %cst_25 = arith.constant dense<0.000000e+00> : vector<128xf32>
      %62 = vector.multi_reduction <add>, %61, %cst_25 [0] : vector<256x128xf32> to vector<128xf32>
      %63 = vector.shape_cast %62 : vector<128xf32> to vector<1x128xf32>
      %64 = arith.mulf %61, %49 : vector<256x128xf32>
      %cst_26 = arith.constant dense<0.000000e+00> : vector<128xf32>
      %65 = vector.multi_reduction <add>, %64, %cst_26 [0] : vector<256x128xf32> to vector<128xf32>
      %66 = vector.shape_cast %65 : vector<128xf32> to vector<1x128xf32>
      %67 = tpu.iota {dimensions = array<i32: 0>} : vector<8x128xi32>
      %c0_27 = arith.constant 0 : index
      %c0_28 = arith.constant 0 : index
      %68 = vector.load %arg9[%c0_27, %c0_28] : memref<8x128xf32, #tpu.memory_space<vmem>>, vector<8x128xf32>
      %c0_i32_29 = arith.constant 0 : i32
      %69 = vector.broadcast %c0_i32_29 : i32 to vector<8x128xi32>
      %70 = arith.cmpi eq, %67, %69 : vector<8x128xi32>
      %c1_i32 = arith.constant 1 : i32
      %71 = vector.broadcast %c1_i32 : i32 to vector<8x128xi32>
      %72 = arith.cmpi eq, %67, %71 : vector<8x128xi32>
      %cst_30 = arith.constant 0.000000e+00 : f32
      %73 = vector.shape_cast %66 : vector<1x128xf32> to vector<1x128xf32>
      %74 = vector.broadcast %73 : vector<1x128xf32> to vector<8x128xf32>
      %75 = vector.broadcast %cst_30 : f32 to vector<8x128xf32>
      %76 = arith.select %72, %74, %75 : vector<8x128xi1>, vector<8x128xf32>
      %77 = vector.shape_cast %63 : vector<1x128xf32> to vector<1x128xf32>
      %78 = vector.broadcast %77 : vector<1x128xf32> to vector<8x128xf32>
      %79 = arith.select %70, %78, %76 : vector<8x128xi1>, vector<8x128xf32>
      %80 = arith.addf %68, %79 : vector<8x128xf32>
      %c0_31 = arith.constant 0 : index
      %c0_32 = arith.constant 0 : index
      %81 = vector.load %arg9[%c0_31, %c0_32] : memref<8x128xf32, #tpu.memory_space<vmem>>, vector<8x128xf32>
      tpu.vector_store %arg9[%c0_31, %c0_32], %80 {strides = array<i32>} : memref<8x128xf32, #tpu.memory_space<vmem>>, vector<8x128xf32>,
    } else {
    }
    %c256_i32_2 = arith.constant 256 : i32
    %8 = arith.muli %arg0, %c256_i32_2 : i32
    %9 = arith.cmpi sge, %8, %3 : i32
    %10 = arith.extui %9 : i1 to i32
    %c0_i32_3 = arith.constant 0 : i32
    %11 = arith.cmpi ne, %10, %c0_i32_3 : i32
    scf.if %11 {
      %cst = arith.constant 0.000000e+00 : bf16
      %12 = vector.broadcast %cst : bf16 to vector<256x128xbf16>
      %c0_4 = arith.constant 0 : index
      %c0_5 = arith.constant 0 : index
      %13 = vector.load %arg8[%c0_4, %c0_5] : memref<256x128xbf16, #tpu.memory_space<vmem>>, vector<256x128xbf16>
      tpu.vector_store %arg8[%c0_4, %c0_5], %12 {strides = array<i32>} : memref<256x128xbf16, #tpu.memory_space<vmem>>, vector<256x128xbf16>,
    } else {
    }
    return
  }
  func.func @transform_0(%arg0: i32) -> i32 {
    %c0_i32 = arith.constant 0 : i32
    %c0_i32_0 = arith.constant 0 : i32
    return %c0_i32 : i32
  }
  func.func @transform_1(%arg0: i32) -> (i32, i32) {
    %c0_i32 = arith.constant 0 : i32
    %c0_i32_0 = arith.constant 0 : i32
    return %arg0, %c0_i32 : i32, i32
  }
  func.func @transform_2(%arg0: i32) -> (i32, i32) {
    %c0_i32 = arith.constant 0 : i32
    %c0_i32_0 = arith.constant 0 : i32
    %c0_i32_1 = arith.constant 0 : i32
    return %c0_i32, %c0_i32_0 : i32, i32
  }
  func.func @transform_3(%arg0: i32) -> (i32, i32) {
    %c0_i32 = arith.constant 0 : i32
    %c0_i32_0 = arith.constant 0 : i32
    %c0_i32_1 = arith.constant 0 : i32
    return %c0_i32, %c0_i32_0 : i32, i32
  }
  func.func @transform_4(%arg0: i32) -> (i32, i32) {
    %c0_i32 = arith.constant 0 : i32
    %c0_i32_0 = arith.constant 0 : i32
    %c0_i32_1 = arith.constant 0 : i32
    return %c0_i32, %c0_i32_0 : i32, i32
  }
  func.func @transform_5(%arg0: i32) -> (i32, i32) {
    %c0_i32 = arith.constant 0 : i32
    %c0_i32_0 = arith.constant 0 : i32
    %c0_i32_1 = arith.constant 0 : i32
    return %c0_i32, %c0_i32_0 : i32, i32
  }
  func.func @transform_6(%arg0: i32) -> (i32, i32) {
    %c0_i32 = arith.constant 0 : i32
    %c0_i32_0 = arith.constant 0 : i32
    %c0_i32_1 = arith.constant 0 : i32
    return %c0_i32, %c0_i32_0 : i32, i32
  }
  func.func @transform_7(%arg0: i32) -> (i32, i32) {
    %c0_i32 = arith.constant 0 : i32
    %c0_i32_0 = arith.constant 0 : i32
    return %arg0, %c0_i32 : i32, i32
  }
  func.func @transform_8(%arg0: i32) -> (i32, i32) {
    %c0_i32 = arith.constant 0 : i32
    %c0_i32_0 = arith.constant 0 : i32
    %c0_i32_1 = arith.constant 0 : i32
    return %c0_i32, %c0_i32_0 : i32, i32
  }
}

module attributes {stable_mosaic.version = 11 : i64} {
  func.func @_pp3_kernel(%arg0: i32, %arg1: memref<1xi32, #tpu.memory_space<smem>>, %arg2: memref<256x128xbf16, #tpu.memory_space<vmem>>, %arg3: memref<8x128xf32, #tpu.memory_space<vmem>>, %arg4: memref<1x128xf32, #tpu.memory_space<vmem>>, %arg5: memref<1x128xf32, #tpu.memory_space<vmem>>, %arg6: memref<128x128xbf16, #tpu.memory_space<vmem>>, %arg7: memref<1x128xf32, #tpu.memory_space<vmem>>, %arg8: memref<256x128xbf16, #tpu.memory_space<vmem>>) attributes {dimension_semantics = [#tpu.dimension_semantics<parallel>], iteration_bounds = array<i64: 1>, scalar_prefetch = 0 : i64, scratch_operands = 0 : i64, tpu.core_type = #tpu.core_type<tc>, window_params = [{transform_indices = @transform_0, window_bounds = array<i64: 1>}, {transform_indices = @transform_1, window_bounds = array<i64: 256, 128>}, {pipeline_mode = #tpu.pipeline_mode<synchronous>, transform_indices = @transform_2, window_bounds = array<i64: 8, 128>}, {pipeline_mode = #tpu.pipeline_mode<synchronous>, transform_indices = @transform_3, window_bounds = array<i64: 1, 128>}, {pipeline_mode = #tpu.pipeline_mode<synchronous>, transform_indices = @transform_4, window_bounds = array<i64: 1, 128>}, {pipeline_mode = #tpu.pipeline_mode<synchronous>, transform_indices = @transform_5, window_bounds = array<i64: 128, 128>}, {pipeline_mode = #tpu.pipeline_mode<synchronous>, transform_indices = @transform_6, window_bounds = array<i64: 1, 128>}, {transform_indices = @transform_7, window_bounds = array<i64: 256, 128>}]} {
    %c0 = arith.constant 0 : index
    %0 = memref.load %arg1[%c0] : memref<1xi32, #tpu.memory_space<smem>>
    %c256_i32 = arith.constant 256 : i32
    %1 = arith.muli %arg0, %c256_i32 : i32
    %2 = arith.cmpi slt, %1, %0 : i32
    %3 = arith.extui %2 : i1 to i32
    %c0_i32 = arith.constant 0 : i32
    %4 = arith.cmpi ne, %3, %c0_i32 : i32
    scf.if %4 {
      %9 = arith.sitofp %0 : i32 to f32
      %cst = arith.constant 1.000000e+00 : f32
      %10 = arith.maximumf %9, %cst : f32
      %c0_2 = arith.constant 0 : index
      %c0_3 = arith.constant 0 : index
      %11 = vector.load %arg3[%c0_2, %c0_3] : memref<8x128xf32, #tpu.memory_space<vmem>>, vector<1x128xf32>
      %12 = vector.broadcast %10 : f32 to vector<1x128xf32>
      %13 = arith.divf %11, %12 : vector<1x128xf32>
      %c1 = arith.constant 1 : index
      %c0_4 = arith.constant 0 : index
      %14 = vector.load %arg3[%c1, %c0_4] : memref<8x128xf32, #tpu.memory_space<vmem>>, vector<1x128xf32>
      %15 = vector.broadcast %10 : f32 to vector<1x128xf32>
      %16 = arith.divf %14, %15 : vector<1x128xf32>
      %17 = arith.mulf %13, %13 : vector<1x128xf32>
      %18 = arith.subf %16, %17 : vector<1x128xf32>
      %cst_5 = arith.constant 0.000000e+00 : f32
      %19 = vector.broadcast %cst_5 : f32 to vector<1x128xf32>
      %20 = arith.maximumf %18, %19 : vector<1x128xf32>
      %c0_6 = arith.constant 0 : index
      %c0_7 = arith.constant 0 : index
      %21 = vector.load %arg2[%c0_6, %c0_7] : memref<256x128xbf16, #tpu.memory_space<vmem>>, vector<256x128xbf16>
      %22 = arith.extf %21 : vector<256x128xbf16> to vector<256x128xf32>
      %23 = vector.broadcast %13 : vector<1x128xf32> to vector<256x128xf32>
      %24 = arith.subf %22, %23 : vector<256x128xf32>
      %cst_8 = arith.constant 9.99999974E-6 : f32
      %25 = vector.broadcast %cst_8 : f32 to vector<1x128xf32>
      %26 = arith.addf %20, %25 : vector<1x128xf32>
      %27 = math.rsqrt %26 : vector<1x128xf32>
      %28 = vector.broadcast %27 : vector<1x128xf32> to vector<256x128xf32>
      %29 = arith.mulf %24, %28 : vector<256x128xf32>
      %c0_9 = arith.constant 0 : index
      %c0_10 = arith.constant 0 : index
      %30 = vector.load %arg4[%c0_9, %c0_10] : memref<1x128xf32, #tpu.memory_space<vmem>>, vector<1x128xf32>
      %31 = vector.broadcast %30 : vector<1x128xf32> to vector<256x128xf32>
      %32 = arith.mulf %29, %31 : vector<256x128xf32>
      %c0_11 = arith.constant 0 : index
      %c0_12 = arith.constant 0 : index
      %33 = vector.load %arg5[%c0_11, %c0_12] : memref<1x128xf32, #tpu.memory_space<vmem>>, vector<1x128xf32>
      %34 = vector.broadcast %33 : vector<1x128xf32> to vector<256x128xf32>
      %35 = arith.addf %32, %34 : vector<256x128xf32>
      %36 = arith.truncf %35 : vector<256x128xf32> to vector<256x128xbf16>
      %c0_13 = arith.constant 0 : index
      %c0_14 = arith.constant 0 : index
      %37 = vector.load %arg6[%c0_13, %c0_14] : memref<128x128xbf16, #tpu.memory_space<vmem>>, vector<128x128xbf16>
      %cst_15 = arith.constant dense<0.000000e+00> : vector<256x128xf32>
      %38 = tpu.matmul %36, %37, %cst_15 {dimension_numbers = #tpu.dot_dimension_numbers<[1], [0], [0], [1], [0, 0, 1, 1], [], []>} : vector<256x128xbf16>, vector<128x128xbf16>, vector<256x128xf32> -> vector<256x128xf32>
      %c0_16 = arith.constant 0 : index
      %c0_17 = arith.constant 0 : index
      %39 = vector.load %arg7[%c0_16, %c0_17] : memref<1x128xf32, #tpu.memory_space<vmem>>, vector<1x128xf32>
      %40 = vector.broadcast %39 : vector<1x128xf32> to vector<256x128xf32>
      %41 = arith.addf %38, %40 : vector<256x128xf32>
      %cst_18 = arith.constant 0.000000e+00 : f32
      %42 = vector.broadcast %cst_18 : f32 to vector<256x128xf32>
      %43 = arith.cmpf ogt, %41, %42 : vector<256x128xf32>
      %cst_19 = arith.constant 1.000000e-01 : f32
      %44 = vector.broadcast %cst_19 : f32 to vector<256x128xf32>
      %45 = arith.mulf %44, %41 : vector<256x128xf32>
      %46 = arith.select %43, %41, %45 : vector<256x128xi1>, vector<256x128xf32>
      %47 = arith.truncf %46 : vector<256x128xf32> to vector<256x128xbf16>
      %c0_20 = arith.constant 0 : index
      %c0_21 = arith.constant 0 : index
      %48 = vector.load %arg8[%c0_20, %c0_21] : memref<256x128xbf16, #tpu.memory_space<vmem>>, vector<256x128xbf16>
      tpu.vector_store %arg8[%c0_20, %c0_21], %47 {strides = array<i32>} : memref<256x128xbf16, #tpu.memory_space<vmem>>, vector<256x128xbf16>,
    } else {
    }
    %c256_i32_0 = arith.constant 256 : i32
    %5 = arith.muli %arg0, %c256_i32_0 : i32
    %6 = arith.cmpi sge, %5, %0 : i32
    %7 = arith.extui %6 : i1 to i32
    %c0_i32_1 = arith.constant 0 : i32
    %8 = arith.cmpi ne, %7, %c0_i32_1 : i32
    scf.if %8 {
      %cst = arith.constant 0.000000e+00 : bf16
      %9 = vector.broadcast %cst : bf16 to vector<256x128xbf16>
      %c0_2 = arith.constant 0 : index
      %c0_3 = arith.constant 0 : index
      %10 = vector.load %arg8[%c0_2, %c0_3] : memref<256x128xbf16, #tpu.memory_space<vmem>>, vector<256x128xbf16>
      tpu.vector_store %arg8[%c0_2, %c0_3], %9 {strides = array<i32>} : memref<256x128xbf16, #tpu.memory_space<vmem>>, vector<256x128xbf16>,
    } else {
    }
    return
  }
  func.func @transform_0(%arg0: i32) -> i32 {
    %c0_i32 = arith.constant 0 : i32
    %c0_i32_0 = arith.constant 0 : i32
    return %c0_i32 : i32
  }
  func.func @transform_1(%arg0: i32) -> (i32, i32) {
    %c0_i32 = arith.constant 0 : i32
    %c0_i32_0 = arith.constant 0 : i32
    return %arg0, %c0_i32 : i32, i32
  }
  func.func @transform_2(%arg0: i32) -> (i32, i32) {
    %c0_i32 = arith.constant 0 : i32
    %c0_i32_0 = arith.constant 0 : i32
    %c0_i32_1 = arith.constant 0 : i32
    return %c0_i32, %c0_i32_0 : i32, i32
  }
  func.func @transform_3(%arg0: i32) -> (i32, i32) {
    %c0_i32 = arith.constant 0 : i32
    %c0_i32_0 = arith.constant 0 : i32
    %c0_i32_1 = arith.constant 0 : i32
    return %c0_i32, %c0_i32_0 : i32, i32
  }
  func.func @transform_4(%arg0: i32) -> (i32, i32) {
    %c0_i32 = arith.constant 0 : i32
    %c0_i32_0 = arith.constant 0 : i32
    %c0_i32_1 = arith.constant 0 : i32
    return %c0_i32, %c0_i32_0 : i32, i32
  }
  func.func @transform_5(%arg0: i32) -> (i32, i32) {
    %c0_i32 = arith.constant 0 : i32
    %c0_i32_0 = arith.constant 0 : i32
    %c0_i32_1 = arith.constant 0 : i32
    return %c0_i32, %c0_i32_0 : i32, i32
  }
  func.func @transform_6(%arg0: i32) -> (i32, i32) {
    %c0_i32 = arith.constant 0 : i32
    %c0_i32_0 = arith.constant 0 : i32
    %c0_i32_1 = arith.constant 0 : i32
    return %c0_i32, %c0_i32_0 : i32, i32
  }
  func.func @transform_7(%arg0: i32) -> (i32, i32) {
    %c0_i32 = arith.constant 0 : i32
    %c0_i32_0 = arith.constant 0 : i32
    return %arg0, %c0_i32 : i32, i32
  }
}

module attributes {stable_mosaic.version = 11 : i64} {
  func.func @_tail_kernel(%arg0: i32, %arg1: memref<1x256xi32, #tpu.memory_space<vmem>>, %arg2: memref<256x256xbf16, #tpu.memory_space<vmem>>, %arg3: memref<256x128xbf16, #tpu.memory_space<vmem>>, %arg4: memref<256x128xbf16, #tpu.memory_space<vmem>>, %arg5: memref<1x128xf32, #tpu.memory_space<vmem>>, %arg6: memref<128x128xbf16, #tpu.memory_space<vmem>>, %arg7: memref<1x128xf32, #tpu.memory_space<vmem>>, %arg8: memref<72x256xf32, #tpu.memory_space<vmem>>) attributes {dimension_semantics = [#tpu.dimension_semantics<arbitrary>], iteration_bounds = array<i64: 2>, scalar_prefetch = 0 : i64, scratch_operands = 0 : i64, tpu.core_type = #tpu.core_type<tc>, window_params = [{transform_indices = @transform_0, window_bounds = array<i64: 1, 256>}, {transform_indices = @transform_1, window_bounds = array<i64: 256, 256>}, {transform_indices = @transform_2, window_bounds = array<i64: 256, 128>}, {pipeline_mode = #tpu.pipeline_mode<synchronous>, transform_indices = @transform_3, window_bounds = array<i64: 256, 128>}, {pipeline_mode = #tpu.pipeline_mode<synchronous>, transform_indices = @transform_4, window_bounds = array<i64: 1, 128>}, {pipeline_mode = #tpu.pipeline_mode<synchronous>, transform_indices = @transform_5, window_bounds = array<i64: 128, 128>}, {pipeline_mode = #tpu.pipeline_mode<synchronous>, transform_indices = @transform_6, window_bounds = array<i64: 1, 128>}, {pipeline_mode = #tpu.pipeline_mode<synchronous>, transform_indices = @transform_7, window_bounds = array<i64: 72, 256>}]} {
    %c0_i32 = arith.constant 0 : i32
    %0 = arith.cmpi eq, %arg0, %c0_i32 : i32
    %1 = arith.extui %0 : i1 to i32
    %c0_i32_0 = arith.constant 0 : i32
    %2 = arith.cmpi ne, %1, %c0_i32_0 : i32
    scf.if %2 {
      %cst_23 = arith.constant 0.000000e+00 : f32
      %37 = vector.broadcast %cst_23 : f32 to vector<72x256xf32>
      %c0_24 = arith.constant 0 : index
      %c0_25 = arith.constant 0 : index
      %38 = vector.load %arg8[%c0_24, %c0_25] : memref<72x256xf32, #tpu.memory_space<vmem>>, vector<72x256xf32>
      tpu.vector_store %arg8[%c0_24, %c0_25], %37 {strides = array<i32>} : memref<72x256xf32, #tpu.memory_space<vmem>>, vector<72x256xf32>,
    } else {
    }
    %c0 = arith.constant 0 : index
    %c0_1 = arith.constant 0 : index
    %3 = vector.load %arg2[%c0, %c0_1] : memref<256x256xbf16, #tpu.memory_space<vmem>>, vector<256x256xbf16>
    %c0_2 = arith.constant 0 : index
    %c0_3 = arith.constant 0 : index
    %4 = vector.load %arg4[%c0_2, %c0_3] : memref<256x128xbf16, #tpu.memory_space<vmem>>, vector<256x128xbf16>
    %cst = arith.constant dense<0.000000e+00> : vector<256x128xf32>
    %5 = tpu.matmul %3, %4, %cst {dimension_numbers = #tpu.dot_dimension_numbers<[1], [0], [0], [1], [0, 0, 1, 1], [], []>} : vector<256x256xbf16>, vector<256x128xbf16>, vector<256x128xf32> -> vector<256x128xf32>
    %c0_4 = arith.constant 0 : index
    %c0_5 = arith.constant 0 : index
    %6 = vector.load %arg5[%c0_4, %c0_5] : memref<1x128xf32, #tpu.memory_space<vmem>>, vector<1x128xf32>
    %7 = vector.broadcast %6 : vector<1x128xf32> to vector<256x128xf32>
    %8 = arith.addf %5, %7 : vector<256x128xf32>
    %cst_6 = arith.constant 0.000000e+00 : f32
    %9 = vector.broadcast %cst_6 : f32 to vector<256x128xf32>
    %10 = arith.cmpf ogt, %8, %9 : vector<256x128xf32>
    %cst_7 = arith.constant 1.000000e-01 : f32
    %11 = vector.broadcast %cst_7 : f32 to vector<256x128xf32>
    %12 = arith.mulf %11, %8 : vector<256x128xf32>
    %13 = arith.select %10, %8, %12 : vector<256x128xi1>, vector<256x128xf32>
    %14 = arith.truncf %13 : vector<256x128xf32> to vector<256x128xbf16>
    %c0_8 = arith.constant 0 : index
    %c0_9 = arith.constant 0 : index
    %15 = vector.load %arg6[%c0_8, %c0_9] : memref<128x128xbf16, #tpu.memory_space<vmem>>, vector<128x128xbf16>
    %cst_10 = arith.constant dense<0.000000e+00> : vector<256x128xf32>
    %16 = tpu.matmul %14, %15, %cst_10 {dimension_numbers = #tpu.dot_dimension_numbers<[1], [0], [0], [1], [0, 0, 1, 1], [], []>} : vector<256x128xbf16>, vector<128x128xbf16>, vector<256x128xf32> -> vector<256x128xf32>
    %c0_11 = arith.constant 0 : index
    %c0_12 = arith.constant 0 : index
    %17 = vector.load %arg7[%c0_11, %c0_12] : memref<1x128xf32, #tpu.memory_space<vmem>>, vector<1x128xf32>
    %18 = vector.broadcast %17 : vector<1x128xf32> to vector<256x128xf32>
    %19 = arith.addf %16, %18 : vector<256x128xf32>
    %c0_13 = arith.constant 0 : index
    %c0_14 = arith.constant 0 : index
    %20 = vector.load %arg1[%c0_13, %c0_14] : memref<1x256xi32, #tpu.memory_space<vmem>>, vector<1x256xi32>
    %21 = tpu.iota {dimensions = array<i32: 0>} : vector<72x256xi32>
    %22 = vector.broadcast %20 : vector<1x256xi32> to vector<72x256xi32>
    %23 = arith.cmpi eq, %21, %22 : vector<72x256xi32>
    %24 = arith.extui %23 : vector<72x256xi1> to vector<72x256xi32>
    %25 = arith.sitofp %24 : vector<72x256xi32> to vector<72x256xf32>
    %26 = arith.truncf %25 : vector<72x256xf32> to vector<72x256xbf16>
    %27 = arith.truncf %19 : vector<256x128xf32> to vector<256x128xbf16>
    %c0_15 = arith.constant 0 : index
    %c0_16 = arith.constant 0 : index
    %28 = vector.load %arg3[%c0_15, %c0_16] : memref<256x128xbf16, #tpu.memory_space<vmem>>, vector<256x128xbf16>
    %29 = tpu.concatenate %27, %28 in 1 : vector<256x128xbf16>, vector<256x128xbf16> -> vector<256x256xbf16>
    %c0_17 = arith.constant 0 : index
    %c0_18 = arith.constant 0 : index
    %30 = vector.load %arg8[%c0_17, %c0_18] : memref<72x256xf32, #tpu.memory_space<vmem>>, vector<72x256xf32>
    %cst_19 = arith.constant dense<0.000000e+00> : vector<72x256xf32>
    %31 = tpu.matmul %26, %29, %cst_19 {dimension_numbers = #tpu.dot_dimension_numbers<[1], [0], [0], [1], [0, 0, 1, 1], [], []>} : vector<72x256xbf16>, vector<256x256xbf16>, vector<72x256xf32> -> vector<72x256xf32>
    %32 = arith.addf %30, %31 : vector<72x256xf32>
    %c0_20 = arith.constant 0 : index
    %c0_21 = arith.constant 0 : index
    %33 = vector.load %arg8[%c0_20, %c0_21] : memref<72x256xf32, #tpu.memory_space<vmem>>, vector<72x256xf32>
    tpu.vector_store %arg8[%c0_20, %c0_21], %32 {strides = array<i32>} : memref<72x256xf32, #tpu.memory_space<vmem>>, vector<72x256xf32>,
    %c1_i32 = arith.constant 1 : i32
    %34 = arith.cmpi eq, %arg0, %c1_i32 : i32
    %35 = arith.extui %34 : i1 to i32
    %c0_i32_22 = arith.constant 0 : i32
    %36 = arith.cmpi ne, %35, %c0_i32_22 : i32
    scf.if %36 {
      %c0_23 = arith.constant 0 : index
      %c0_24 = arith.constant 0 : index
      %37 = vector.load %arg8[%c0_23, %c0_24] : memref<72x256xf32, #tpu.memory_space<vmem>>, vector<72x256xf32>
      %38 = vector.extract_strided_slice %37 {offsets = [0, 255], sizes = [72, 1], strides = [1, 1]} : vector<72x256xf32> to vector<72x1xf32>
      %cst_25 = arith.constant 1.000000e+00 : f32
      %39 = vector.broadcast %cst_25 : f32 to vector<72x1xf32>
      %40 = arith.maximumf %38, %39 : vector<72x1xf32>
      %41 = vector.broadcast %40 : vector<72x1xf32> to vector<72x256xf32>
      %42 = arith.divf %37, %41 : vector<72x256xf32>
      %c0_26 = arith.constant 0 : index
      %c0_27 = arith.constant 0 : index
      %43 = vector.load %arg8[%c0_26, %c0_27] : memref<72x256xf32, #tpu.memory_space<vmem>>, vector<72x256xf32>
      tpu.vector_store %arg8[%c0_26, %c0_27], %42 {strides = array<i32>} : memref<72x256xf32, #tpu.memory_space<vmem>>, vector<72x256xf32>,
    } else {
    }
    return
  }
  func.func @transform_0(%arg0: i32) -> (i32, i32) {
    %c0_i32 = arith.constant 0 : i32
    %c0_i32_0 = arith.constant 0 : i32
    return %c0_i32, %arg0 : i32, i32
  }
  func.func @transform_1(%arg0: i32) -> (i32, i32) {
    %c0_i32 = arith.constant 0 : i32
    %c0_i32_0 = arith.constant 0 : i32
    return %arg0, %c0_i32 : i32, i32
  }
  func.func @transform_2(%arg0: i32) -> (i32, i32) {
    %c0_i32 = arith.constant 0 : i32
    %c0_i32_0 = arith.constant 0 : i32
    return %arg0, %c0_i32 : i32, i32
  }
  func.func @transform_3(%arg0: i32) -> (i32, i32) {
    %c0_i32 = arith.constant 0 : i32
    %c0_i32_0 = arith.constant 0 : i32
    %c0_i32_1 = arith.constant 0 : i32
    return %c0_i32, %c0_i32_0 : i32, i32
  }
  func.func @transform_4(%arg0: i32) -> (i32, i32) {
    %c0_i32 = arith.constant 0 : i32
    %c0_i32_0 = arith.constant 0 : i32
    %c0_i32_1 = arith.constant 0 : i32
    return %c0_i32, %c0_i32_0 : i32, i32
  }
  func.func @transform_5(%arg0: i32) -> (i32, i32) {
    %c0_i32 = arith.constant 0 : i32
    %c0_i32_0 = arith.constant 0 : i32
    %c0_i32_1 = arith.constant 0 : i32
    return %c0_i32, %c0_i32_0 : i32, i32
  }
  func.func @transform_6(%arg0: i32) -> (i32, i32) {
    %c0_i32 = arith.constant 0 : i32
    %c0_i32_0 = arith.constant 0 : i32
    %c0_i32_1 = arith.constant 0 : i32
    return %c0_i32, %c0_i32_0 : i32, i32
  }
  func.func @transform_7(%arg0: i32) -> (i32, i32) {
    %c0_i32 = arith.constant 0 : i32
    %c0_i32_0 = arith.constant 0 : i32
    %c0_i32_1 = arith.constant 0 : i32
    return %c0_i32, %c0_i32_0 : i32, i32
  }
}

</mosaic_0001>

<bundles_post_ra>
// kernel: spvblock_forward.6
= control target key start
LH: loop header
LB: loop body
LE: loop exit
PB: predicated region body
PF: predicated region fallthrough
CT: control target
= control target key end

     0   :  { %v1335_v0 = vmov 0.0   ;;  %s1936_s0 = inlined_call_operand.<no memory space> [shape: s32[1], index: 0, kind: input, shape index: {}]   ;;  %s1937_s1 = inlined_call_operand.vmem [shape: bf16[256,128], index: 1, kind: input, shape index: {}]   ;;  %s1938_s2 = inlined_call_operand.vmem [shape: bf16[128,128], index: 2, kind: input, shape index: {}]   ;;  %s1939_s3 = inlined_call_operand.vmem [shape: f32[1,128], index: 3, kind: input, shape index: {}]   ;;  %s1940_s4 = inlined_call_operand.vmem [shape: bf16[256,128], index: 4, kind: output, shape index: {0}]   ;;  %s1941_s5 = inlined_call_operand.vmem [shape: f32[8,128], index: 5, kind: output, shape index: {1}]  }
   0x1   :  { %25 = vst [vmem:[%s1941_s5] sm:$0xff] %v1335_v0  ;;  %p1001_p0 = scmp.le.s32.totalorder %s1936_s0, 0 }
   0x3   :  { %31 = sbr.rel (%p1001_p0) target bundleno = 349 (0x15d), region = 25 }
   0xa   :  { %v1311_v1 = vld [vmem:[%s1938_s2] sm:$0xff]   ;;  %v1312_v2 = vld [vmem:[%s1938_s2 + $0x8] sm:$0xff]   ;;  %v1313_v3 = vld [vmem:[%s1938_s2 + $0x10] sm:$0xff]   ;;  %v648_v25 = vlaneseq  ;;  %v1452_v28 = vstv %s1936_s0  ;;  %v1942_v39 = vmov 0.0  }
   0xb   :  { %1244 = vmatprep.subr.bf16.mxu0 %v1311_v1  ;;  %1292 = vmatprep.subr.bf16.mxu1 %v1311_v1  ;;  %v1314_v4 = vld [vmem:[%s1938_s2 + $0x18] sm:$0xff]   ;;  %v1319_v5 = vld [vmem:[%s1937_s1] sm:$0xff]   ;;  %v1316_v7 = vld [vmem:[%s1938_s2 + $0x28] sm:$0xff]  }
   0xc   :  { %1245 = vmatpush3.bf16.msra.mxu0 %v1311_v1  ;;  %1300 = vmatpush3.bf16.msra.mxu1 %v1311_v1  ;;  %v1315_v6 = vld [vmem:[%s1938_s2 + $0x20] sm:$0xff]   ;;  %v1317_v9 = vld [vmem:[%s1938_s2 + $0x30] sm:$0xff]   ;;  %v1318_v10 = vld [vmem:[%s1938_s2 + $0x38] sm:$0xff]   ;;  %v1446_v26 = vshrl.u32 %v648_v25, 7 }
   0xd   :  { %1246 = vmatprep.subr.bf16.mxu0 %v1312_v2  ;;  %1293 = vmatprep.subr.bf16.mxu1 %v1312_v2  ;;  %v1327_v8 = vld [vmem:[%s1937_s1 + $0x40] sm:$0xff]   ;;  %v1320_v11 = vld [vmem:[%s1937_s1 + $0x8] sm:$0xff]   ;;  %v1321_v13 = vld [vmem:[%s1937_s1 + $0x10] sm:$0xff]  }
   0xe   :  { %1260 = vmatprep.mubr.bf16.mxu0 %v1319_v5  ;;  %1276 = vmatprep.mubr.bf16.mxu1 %v1327_v8  ;;  %v1328_v12 = vld [vmem:[%s1937_s1 + $0x48] sm:$0xff]   ;;  %v1329_v14 = vld [vmem:[%s1937_s1 + $0x50] sm:$0xff]   ;;  %v1322_v15 = vld [vmem:[%s1937_s1 + $0x18] sm:$0xff]   ;;  %1946 = vst [vmem:[#allocation3_spill] sm:$0xff] %v1446_v26  ;;  %v651_v27 = vadd.s32 16, %v1446_v26  ;;  %v652_v29 = vadd.s32 24, %v1446_v26  ;;  %vm715_vm1 = vcmp.lt.s32.totalorder %v1446_v26, %v1452_v28 }
   0xf   :  { %v1330_v16 = vld [vmem:[%s1937_s1 + $0x58] sm:$0xff]   ;;  %v1323_v17 = vld [vmem:[%s1937_s1 + $0x20] sm:$0xff]   ;;  %v1324_v19 = vld [vmem:[%s1937_s1 + $0x28] sm:$0xff]   ;;  %v650_v30 = vadd.s32 8, %v1446_v26  ;;  %v655_v31 = vadd.s32 48, %v1446_v26  ;;  %v653_v32 = vadd.s32 32, %v1446_v26 }
  0x10   :  { %1247 = vmatpush3.bf16.msra.mxu0 %v1312_v2  ;;  %1301 = vmatpush3.bf16.msra.mxu1 %v1312_v2  ;;  %v1331_v18 = vld [vmem:[%s1937_s1 + $0x60] sm:$0xff]   ;;  %v1332_v20 = vld [vmem:[%s1937_s1 + $0x68] sm:$0xff]   ;;  %v1325_v21 = vld [vmem:[%s1937_s1 + $0x30] sm:$0xff]   ;;  %vm717_vm0 = vcmp.lt.s32.totalorder %v651_v27, %v1452_v28  ;;  %v656_v33 = vadd.s32 56, %v1446_v26  ;;  %v654_v34 = vadd.s32 40, %v1446_v26  ;;  %v659_v35 = vadd.s32 80, %v1446_v26 }
  0x11   :  { %1248 = vmatprep.subr.bf16.mxu0 %v1313_v3  ;;  %1294 = vmatprep.subr.bf16.mxu1 %v1313_v3  ;;  %v1333_v22 = vld [vmem:[%s1937_s1 + $0x70] sm:$0xff]   ;;  %v1326_v23 = vld [vmem:[%s1937_s1 + $0x38] sm:$0xff]   ;;  %v657_v36 = vadd.s32 64, %v1446_v26  ;;  %v660_v37 = vadd.s32 88, %v1446_v26  ;;  %v658_v38 = vadd.s32 72, %v1446_v26  ;;  %v1468_v40 = vsel %vm717_vm0, 1.0, %v1942_v39 }
  0x12   :  { %v1334_v24 = vld [vmem:[%s1937_s1 + $0x78] sm:$0xff]   ;;  %v1471_v41 = vsel %vm715_vm1, 1.0, %v1942_v39  ;;  %vm718_vm2 = vcmp.lt.s32.totalorder %v652_v29, %v1452_v28  ;;  %vm716_vm3 = vcmp.lt.s32.totalorder %v650_v30, %v1452_v28  ;;  %vm721_vm4 = vcmp.lt.s32.totalorder %v655_v31, %v1452_v28 }
  0x13   :  { %vm719_vm5 = vcmp.lt.s32.totalorder %v653_v32, %v1452_v28  ;;  %vm722_vm6 = vcmp.lt.s32.totalorder %v656_v33, %v1452_v28  ;;  %vm720_vm7 = vcmp.lt.s32.totalorder %v654_v34, %v1452_v28  ;;  %vm725_vm8 = vcmp.lt.s32.totalorder %v659_v35, %v1452_v28 }
  0x14   :  { %1249 = vmatpush3.bf16.msra.mxu0 %v1313_v3  ;;  %1302 = vmatpush3.bf16.msra.mxu1 %v1313_v3  ;;  %vm723_vm9 = vcmp.lt.s32.totalorder %v657_v36, %v1452_v28  ;;  %vm726_vm10 = vcmp.lt.s32.totalorder %v660_v37, %v1452_v28  ;;  %vm724_vm11 = vcmp.lt.s32.totalorder %v658_v38, %v1452_v28  ;;  %v663_v42 = vadd.s32 112, %v1446_v26 }
  0x15   :  { %1250 = vmatprep.subr.bf16.mxu0 %v1314_v4  ;;  %1295 = vmatprep.subr.bf16.mxu1 %v1314_v4  ;;  %v661_v43 = vadd.s32 96, %v1446_v26  ;;  %v667_v44 = vadd.s32 144, %v1446_v26  ;;  %v664_v45 = vadd.s32 120, %v1446_v26  ;;  %v665_v46 = vadd.s32 128, %v1446_v26 }
  0x16   :  { %v662_v47 = vadd.s32 104, %v1446_v26  ;;  %v1492_v48 = vsel %vm718_vm2, 1.0, %v1942_v39  ;;  %v1497_v49 = vsel %vm716_vm3, 1.0, %v1942_v39  ;;  %v1502_v50 = vsel %vm721_vm4, 1.0, %v1942_v39 }
  0x17   :  { %v1507_v51 = vsel %vm719_vm5, 1.0, %v1942_v39  ;;  %v1512_v52 = vsel %vm722_vm6, 1.0, %v1942_v39  ;;  %v1517_v53 = vsel %vm720_vm7, 1.0, %v1942_v39  ;;  %v1522_v54 = vsel %vm725_vm8, 1.0, %v1942_v39 }
  0x18   :  { %1251 = vmatpush3.bf16.msra.mxu0 %v1314_v4  ;;  %1303 = vmatpush3.bf16.msra.mxu1 %v1314_v4  ;;  %v1527_v55 = vsel %vm723_vm9, 1.0, %v1942_v39  ;;  %v1532_v56 = vsel %vm726_vm10, 1.0, %v1942_v39  ;;  %v1537_v57 = vsel %vm724_vm11, 1.0, %v1942_v39  ;;  %vm729_vm12 = vcmp.lt.s32.totalorder %v663_v42, %v1452_v28 }
  0x19   :  { %1252 = vmatprep.subr.bf16.mxu0 %v1315_v6  ;;  %1296 = vmatprep.subr.bf16.mxu1 %v1315_v6  ;;  %vm727_vm13 = vcmp.lt.s32.totalorder %v661_v43, %v1452_v28  ;;  %vm733_vm14 = vcmp.lt.s32.totalorder %v667_v44, %v1452_v28  ;;  %vm730_vm15 = vcmp.lt.s32.totalorder %v664_v45, %v1452_v28  ;;  %v668_v58 = vadd.s32 152, %v1446_v26 }
  0x1a   :  { %vm731_vm0 = vcmp.lt.s32.totalorder %v665_v46, %v1452_v28  ;;  %vm728_vm1 = vcmp.lt.s32.totalorder %v662_v47, %v1452_v28  ;;  %v666_v59 = vadd.s32 136, %v1446_v26  ;;  %v671_v60 = vadd.s32 176, %v1446_v26 }
  0x1b   :  { %v669_v61 = vadd.s32 160, %v1446_v26  ;;  %v672_v62 = vadd.s32 184, %v1446_v26  ;;  %v670_v63 = vadd.s32 168, %v1446_v26  ;;  %v675_v0 = vadd.s32 208, %v1446_v26 }
  0x1c   :  { %1253 = vmatpush3.bf16.msra.mxu0 %v1315_v6  ;;  %1304 = vmatpush3.bf16.msra.mxu1 %v1315_v6  ;;  %v673_v1 = vadd.s32 192, %v1446_v26  ;;  %v1554_v2 = vsel %vm729_vm12, 1.0, %v1942_v39  ;;  %v1557_v3 = vsel %vm727_vm13, 1.0, %v1942_v39  ;;  %v676_v4 = vadd.s32 216, %v1446_v26 }
  0x1d   :  { %1254 = vmatprep.subr.bf16.mxu0 %v1316_v7  ;;  %1297 = vmatprep.subr.bf16.mxu1 %v1316_v7  ;;  %v674_v5 = vadd.s32 200, %v1446_v26  ;;  %v1564_v6 = vsel %vm733_vm14, 1.0, %v1942_v39  ;;  %v1574_v8 = vsel %vm731_vm0, 1.0, %v1942_v39  ;;  %vm734_vm2 = vcmp.lt.s32.totalorder %v668_v58, %v1452_v28 }
  0x1e   :  { %vm732_vm3 = vcmp.lt.s32.totalorder %v666_v59, %v1452_v28  ;;  %vm737_vm4 = vcmp.lt.s32.totalorder %v671_v60, %v1452_v28  ;;  %vm735_vm5 = vcmp.lt.s32.totalorder %v669_v61, %v1452_v28  ;;  %vm738_vm6 = vcmp.lt.s32.totalorder %v672_v62, %v1452_v28 }
  0x1f   :  { %vm736_vm7 = vcmp.lt.s32.totalorder %v670_v63, %v1452_v28  ;;  %vm741_vm8 = vcmp.lt.s32.totalorder %v675_v0, %v1452_v28  ;;  %vm739_vm9 = vcmp.lt.s32.totalorder %v673_v1, %v1452_v28  ;;  %vm742_vm10 = vcmp.lt.s32.totalorder %v676_v4, %v1452_v28 }
  0x20   :  { %1255 = vmatpush3.bf16.msra.mxu0 %v1316_v7  ;;  %1305 = vmatpush3.bf16.msra.mxu1 %v1316_v7  ;;  %v1569_v7 = vsel %vm730_vm15, 1.0, %v1942_v39  ;;  %vm740_vm11 = vcmp.lt.s32.totalorder %v674_v5, %v1452_v28  ;;  %v1626_v27 = vsel %vm742_vm10, 1.0, %v1942_v39  ;;  %v1634_v30 = vadd.s32 248, %v1446_v26 }
  0x21   :  { %1256 = vmatprep.subr.bf16.mxu0 %v1317_v9  ;;  %1298 = vmatprep.subr.bf16.mxu1 %v1317_v9  ;;  %1947 = vst [vmem:[#allocation4_spill] sm:$0xff] %v1626_v27  ;;  %v1631_v29 = vsel %vm740_vm11, 1.0, %v1942_v39  ;;  %v1646_v42 = vadd.s32 232, %v1446_v26 }
  0x24   :  { %1257 = vmatpush3.bf16.msra.mxu0 %v1317_v9  ;;  %1306 = vmatpush3.bf16.msra.mxu1 %v1317_v9  ;;  %v1579_v9 = vsel %vm728_vm1, 1.0, %v1942_v39 }
  0x25   :  { %1258 = vmatprep.subr.bf16.mxu0 %v1318_v10  ;;  %1299 = vmatprep.subr.bf16.mxu1 %v1318_v10 }
  0x28   :  { %1259 = vmatpush3.bf16.msra.mxu0 %v1318_v10  ;;  %1307 = vmatpush3.bf16.msra.mxu1 %v1318_v10  ;;  %v1592_v10 = vld [vmem:[%s1939_s3] ss:$0 sm:$0xff] }
  0x2b   :  { %1261 = vmatmul.mubr.bf16.vlgmr.msra.gmra.mrb[0].mxu0 %v1320_v11  ;;  %1277 = vmatmul.mubr.bf16.vlgmr.msra.gmra.mrb[0].mxu1 %v1328_v12  ;;  %v679_v11 = vadd.s32 240, %v1446_v26  ;;  %v677_v12 = vadd.s32 224, %v1446_v26 }
  0x2c   :  { %1264 = vmatprep.mubr.bf16.mxu0 %v1321_v13  ;;  %1280 = vmatprep.mubr.bf16.mxu1 %v1329_v14  ;;  %v1599_v13 = vsel %vm734_vm2, 1.0, %v1942_v39  ;;  %v1602_v14 = vsel %vm732_vm3, 1.0, %v1942_v39 }
  0x2d   :  { %vm745_vm12 = vcmp.lt.s32.totalorder %v679_v11, %v1452_v28  ;;  %vm743_vm13 = vcmp.lt.s32.totalorder %v677_v12, %v1452_v28 }
  0x2e   :  { %v1651_v58 = vsel %vm745_vm12, 1.0, %v1942_v39  ;;  %v1657_v0 = vsel %vm743_vm13, 1.0, %v1942_v39 }
  0x2f   :  { %1948 = vst [vmem:[#allocation5_spill] sm:$0xff] %v1651_v58  ;;  %1949 = vst [vmem:[#allocation6_spill] sm:$0xff] %v1657_v0 }
  0x33   :  { %1265 = vmatmul.mubr.bf16.gmra.mrb[4].mxu0 %v1322_v15  ;;  %1281 = vmatmul.mubr.bf16.gmra.mrb[4].mxu1 %v1330_v16  ;;  %v1605_v15 = vsel %vm737_vm4, 1.0, %v1942_v39  ;;  %v1608_v16 = vsel %vm735_vm5, 1.0, %v1942_v39 }
  0x34   :  { %1268 = vmatprep.mubr.bf16.mxu0 %v1323_v17  ;;  %1284 = vmatprep.mubr.bf16.mxu1 %v1331_v18 }
  0x3b   :  { %1269 = vmatmul.mubr.bf16.gmra.mrb[8].mxu0 %v1324_v19  ;;  %1285 = vmatmul.mubr.bf16.gmra.mrb[8].mxu1 %v1332_v20  ;;  %v1611_v19 = vsel %vm738_vm6, 1.0, %v1942_v39  ;;  %v1614_v20 = vsel %vm736_vm7, 1.0, %v1942_v39 }
  0x3c   :  { %1272 = vmatprep.mubr.bf16.mxu0 %v1325_v21  ;;  %1288 = vmatprep.mubr.bf16.mxu1 %v1333_v22  ;;  %v1617_v21 = vsel %vm741_vm8, 1.0, %v1942_v39  ;;  %v1620_v22 = vsel %vm739_vm9, 1.0, %v1942_v39 }
  0x43   :  { %1273 = vmatmul.mubr.bf16.gmra.mrb[12].mxu0 %v1326_v23  ;;  %1289 = vmatmul.mubr.bf16.gmra.mrb[12].mxu1 %v1334_v24 }
  0xfe   :  { %v1262_v17 = vpop.f32.mrb[0].mxu0  ;;  %v1278_v18 = vpop.f32.mrb[0].mxu1 }
  0xff   :  { %v274_v23 = vadd.f32 %v1262_v17, %v1592_v10  ;;  %v265_v24 = vpop.f32.mrb[1].mxu0  ;;  %v329_v25 = vpop.f32.mrb[1].mxu1  ;;  %v338_v33 = vadd.f32 %v1278_v18, %v1592_v10 }
 0x100   :  { %v266_v31 = vadd.f32 %v1592_v10, %v265_v24  ;;  %v1263_v32 = vpop.f32.mrb[2].mxu0  ;;  %v1638_v34 = vpop.f32.mrb[2].mxu1  ;;  %v330_v45 = vadd.f32 %v1592_v10, %v329_v25 }
 0x101   :  { %vm394_vm14 = vcmp.gt.f32.partialorder %v274_v23, 0.0  ;;  %v426_v35 = vmul.f32 0.1, %v274_v23  ;;  %v277_v36 = vadd.f32 %v1263_v32, %v1592_v10  ;;  %v268_v37 = vpop.f32.mrb[3].mxu0  ;;  %v1643_v38 = vpop.f32.mrb[3].mxu1  ;;  %vm410_vm2 = vcmp.gt.f32.partialorder %v338_v33, 0.0 }
 0x102   :  { %vm392_vm15 = vcmp.gt.f32.partialorder %v266_v31, 0.0  ;;  %v424_v43 = vmul.f32 0.1, %v266_v31  ;;  %v269_v44 = vadd.f32 %v1592_v10, %v268_v37  ;;  %v442_v61 = vmul.f32 0.1, %v338_v33 }
 0x103   :  { %v458_v46 = vsel %vm394_vm14, %v274_v23, %v426_v35  ;;  %vm395_vm0 = vcmp.gt.f32.partialorder %v277_v36, 0.0  ;;  %v427_v47 = vmul.f32 0.1, %v277_v36  ;;  %vm408_vm3 = vcmp.gt.f32.partialorder %v330_v45, 0.0 }
 0x104   :  { %v456_v59 = vsel %vm392_vm15, %v266_v31, %v424_v43  ;;  %vm393_vm1 = vcmp.gt.f32.partialorder %v269_v44, 0.0  ;;  %v425_v60 = vmul.f32 0.1, %v269_v44  ;;  %v813_v1 = vmul.f32 %v1468_v40, %v458_v46 }
 0x105   :  { %v811_v62 = vmul.f32 %v1471_v41, %v456_v59  ;;  %v459_v63 = vsel %vm395_vm0, %v277_v36, %v427_v47  ;;  %v1672_v35 = vsel %vm410_vm2, %v338_v33, %v442_v61 }
 0x106   :  { %v1133_v4 = vpack.c.bf16 %v459_v63, %v458_v46  ;;  %v457_v5 = vsel %vm393_vm1, %v269_v44, %v425_v60  ;;  %v1266_v11 = vpop.f32.mrb[4].mxu0  ;;  %v1660_v17 = vpop.f32.mrb[4].mxu1  ;;  %v814_v18 = vmul.f32 %v1492_v48, %v459_v63  ;;  %v440_v48 = vmul.f32 0.1, %v330_v45 }
 0x107   :  { %v1128_v23 = vpack.c.bf16 %v457_v5, %v456_v59  ;;  %v812_v41 = vmul.f32 %v1497_v49, %v457_v5  ;;  %v290_v24 = vadd.f32 %v1266_v11, %v1592_v10  ;;  %v281_v25 = vpop.f32.mrb[5].mxu0  ;;  %v1665_v31 = vpop.f32.mrb[5].mxu1  ;;  %v880_v12 = vmul.f32 %v811_v62, %v456_v59 }
 0x108   :  { %1205 = vst [vmem:[%s1940_s4 + $0x8] sm:$0xff] %v1133_v4   ;;  %v282_v40 = vadd.f32 %v1592_v10, %v281_v25  ;;  %v1267_v32 = vpop.f32.mrb[6].mxu0  ;;  %v1674_v36 = vpop.f32.mrb[6].mxu1  ;;  %v882_v61 = vmul.f32 %v813_v1, %v458_v46  ;;  %v883_v4 = vmul.f32 %v814_v18, %v459_v63  ;;  %v1689_v46 = vsel %vm408_vm3, %v330_v45, %v440_v48 }
 0x109   :  { %1129 = vst [vmem:[%s1940_s4] sm:$0xff] %v1128_v23   ;;  %v843_v49 = vadd.f32 %v812_v41, %v811_v62  ;;  %v881_v37 = vmul.f32 %v812_v41, %v457_v5  ;;  %vm398_vm4 = vcmp.gt.f32.partialorder %v290_v24, 0.0  ;;  %v430_v43 = vmul.f32 0.1, %v290_v24  ;;  %v284_v44 = vpop.f32.mrb[7].mxu0  ;;  %v1679_v47 = vpop.f32.mrb[7].mxu1 }
 0x10a   :  { %vm396_vm5 = vcmp.gt.f32.partialorder %v282_v40, 0.0  ;;  %v428_v59 = vmul.f32 0.1, %v282_v40  ;;  %v293_v60 = vadd.f32 %v1267_v32, %v1592_v10  ;;  %v285_v33 = vadd.f32 %v1592_v10, %v284_v44 }
 0x10b   :  { %v844_v11 = vadd.f32 %v843_v49, %v813_v1  ;;  %v912_v25 = vadd.f32 %v881_v37, %v880_v12  ;;  %v462_v39 = vsel %vm398_vm4, %v290_v24, %v430_v43  ;;  %v1686_v32 = vmul.f32 %v1564_v6, %v1672_v35 }
 0x10c   :  { %v460_v26 = vsel %vm396_vm5, %v282_v40, %v428_v59  ;;  %vm399_vm6 = vcmp.gt.f32.partialorder %v293_v60, 0.0  ;;  %v431_v62 = vmul.f32 0.1, %v293_v60  ;;  %vm397_vm7 = vcmp.gt.f32.partialorder %v285_v33, 0.0 }
 0x10d   :  { %v913_v5 = vadd.f32 %v912_v25, %v882_v61  ;;  %v815_v23 = vmul.f32 %v1507_v51, %v460_v26  ;;  %v845_v41 = vadd.f32 %v844_v11, %v814_v18  ;;  %v429_v0 = vmul.f32 0.1, %v285_v33 }
 0x10e   :  { %v463_v58 = vsel %vm399_vm6, %v293_v60, %v431_v62  ;;  %v1270_v27 = vpop.f32.mrb[8].mxu0  ;;  %v1691_v63 = vpop.f32.mrb[8].mxu1  ;;  %v817_v18 = vmul.f32 %v1502_v50, %v462_v39 }
 0x10f   :  { %v846_v1 = vadd.f32 %v845_v41, %v815_v23  ;;  %v884_v24 = vmul.f32 %v815_v23, %v460_v26  ;;  %v914_v12 = vadd.f32 %v913_v5, %v883_v4  ;;  %v1143_v40 = vpack.c.bf16 %v463_v58, %v462_v39  ;;  %v297_v49 = vpop.f32.mrb[9].mxu0  ;;  %v1693_v51 = vpop.f32.mrb[9].mxu1 }
 0x110   :  { %v461_v37 = vsel %vm397_vm7, %v285_v33, %v429_v0  ;;  %v306_v43 = vadd.f32 %v1270_v27, %v1592_v10  ;;  %v298_v6 = vadd.f32 %v1592_v10, %v297_v49  ;;  %v1271_v44 = vpop.f32.mrb[10].mxu0  ;;  %v1698_v59 = vpop.f32.mrb[10].mxu1  ;;  %v818_v27 = vmul.f32 %v1512_v52, %v463_v58 }
 0x111   :  { %v915_v45 = vadd.f32 %v914_v12, %v884_v24  ;;  %1207 = vst [vmem:[%s1940_s4 + $0x18] sm:$0xff] %v1143_v40   ;;  %v1138_v48 = vpack.c.bf16 %v461_v37, %v460_v26  ;;  %v816_v60 = vmul.f32 %v1517_v53, %v461_v37  ;;  %v309_v61 = vadd.f32 %v1271_v44, %v1592_v10  ;;  %v300_v4 = vpop.f32.mrb[11].mxu0  ;;  %v1705_v50 = vpop.f32.mrb[11].mxu1 }
 0x112   :  { %vm402_vm8 = vcmp.gt.f32.partialorder %v306_v43, 0.0  ;;  %v434_v0 = vmul.f32 0.1, %v306_v43  ;;  %vm400_vm9 = vcmp.gt.f32.partialorder %v298_v6, 0.0  ;;  %v432_v25 = vmul.f32 0.1, %v298_v6 }
 0x113   :  { %1206 = vst [vmem:[%s1940_s4 + $0x10] sm:$0xff] %v1138_v48   ;;  %v847_v33 = vadd.f32 %v846_v1, %v816_v60  ;;  %v885_v11 = vmul.f32 %v816_v60, %v461_v37  ;;  %vm403_vm10 = vcmp.gt.f32.partialorder %v309_v61, 0.0  ;;  %v886_v26 = vmul.f32 %v817_v18, %v462_v39 }
 0x114   :  { %v466_v53 = vsel %vm402_vm8, %v306_v43, %v434_v0  ;;  %v435_v62 = vmul.f32 0.1, %v309_v61  ;;  %v301_v5 = vadd.f32 %v1592_v10, %v300_v4  ;;  %v464_v24 = vsel %vm400_vm9, %v298_v6, %v432_v25 }
 0x115   :  { %v848_v23 = vadd.f32 %v847_v33, %v817_v18  ;;  %v916_v41 = vadd.f32 %v915_v45, %v885_v11  ;;  %v821_v52 = vmul.f32 %v1522_v54, %v466_v53  ;;  %v819_v12 = vmul.f32 %v1527_v55, %v464_v24 }
 0x116   :  { %v467_v40 = vsel %vm403_vm10, %v309_v61, %v435_v62  ;;  %vm401_vm11 = vcmp.gt.f32.partialorder %v301_v5, 0.0  ;;  %v433_v49 = vmul.f32 0.1, %v301_v5  ;;  %v1274_v44 = vpop.f32.mrb[12].mxu0  ;;  %v1714_v1 = vpop.f32.mrb[12].mxu1  ;;  %v887_v37 = vmul.f32 %v818_v27, %v463_v58 }
 0x117   :  { %v917_v48 = vadd.f32 %v916_v41, %v886_v26  ;;  %v849_v39 = vadd.f32 %v848_v23, %v818_v27  ;;  %v1153_v43 = vpack.c.bf16 %v467_v40, %v466_v53  ;;  %v313_v60 = vpop.f32.mrb[13].mxu0  ;;  %v1716_v0 = vpop.f32.mrb[13].mxu1  ;;  %v888_v18 = vmul.f32 %v819_v12, %v464_v24 }
 0x118   :  { %v822_v45 = vmul.f32 %v1532_v56, %v467_v40  ;;  %v465_v54 = vsel %vm401_vm11, %v301_v5, %v433_v49  ;;  %v322_v6 = vadd.f32 %v1274_v44, %v1592_v10  ;;  %v1275_v55 = vpop.f32.mrb[14].mxu0  ;;  %v1720_v61 = vpop.f32.mrb[14].mxu1  ;;  %v890_v26 = vmul.f32 %v821_v52, %v466_v53 }
 0x119   :  { %v850_v4 = vadd.f32 %v849_v39, %v819_v12  ;;  %v918_v33 = vadd.f32 %v917_v48, %v887_v37  ;;  %1209 = vst [vmem:[%s1940_s4 + $0x28] sm:$0xff] %v1153_v43   ;;  %v1148_v58 = vpack.c.bf16 %v465_v54, %v464_v24  ;;  %v820_v27 = vmul.f32 %v1537_v57, %v465_v54  ;;  %v316_v11 = vpop.f32.mrb[15].mxu0  ;;  %v1726_v25 = vpop.f32.mrb[15].mxu1 }
 0x11a   :  { %vm406_vm12 = vcmp.gt.f32.partialorder %v322_v6, 0.0  ;;  %v438_v56 = vmul.f32 0.1, %v322_v6  ;;  %v314_v62 = vadd.f32 %v1592_v10, %v313_v60  ;;  %v325_v12 = vadd.f32 %v1275_v55, %v1592_v10 }
 0x11b   :  { %v919_v5 = vadd.f32 %v918_v33, %v888_v18  ;;  %1208 = vst [vmem:[%s1940_s4 + $0x20] sm:$0xff] %v1148_v58   ;;  %v851_v23 = vadd.f32 %v850_v4, %v820_v27  ;;  %v889_v41 = vmul.f32 %v820_v27, %v465_v54  ;;  %v317_v49 = vadd.f32 %v1592_v10, %v316_v11 }
 0x11c   :  { %v470_v24 = vsel %vm406_vm12, %v322_v6, %v438_v56  ;;  %vm404_vm13 = vcmp.gt.f32.partialorder %v314_v62, 0.0  ;;  %v436_v57 = vmul.f32 0.1, %v314_v62  ;;  %v891_v44 = vmul.f32 %v822_v45, %v467_v40 }
 0x11d   :  { %v852_v53 = vadd.f32 %v851_v23, %v821_v52  ;;  %v920_v37 = vadd.f32 %v919_v5, %v889_v41  ;;  %vm407_vm14 = vcmp.gt.f32.partialorder %v325_v12, 0.0  ;;  %v439_v39 = vmul.f32 0.1, %v325_v12 }
 0x11e   :  { %v468_v48 = vsel %vm404_vm13, %v314_v62, %v436_v57  ;;  %vm405_vm15 = vcmp.gt.f32.partialorder %v317_v49, 0.0  ;;  %v437_v43 = vmul.f32 0.1, %v317_v49  ;;  %v825_v18 = vmul.f32 %v1554_v2, %v470_v24 }
 0x11f   :  { %v921_v60 = vadd.f32 %v920_v37, %v890_v26  ;;  %v823_v54 = vmul.f32 %v1557_v3, %v468_v48  ;;  %v853_v4 = vadd.f32 %v852_v53, %v822_v45  ;;  %v471_v55 = vsel %vm407_vm14, %v325_v12, %v439_v39 }
 0x120   :  { %v469_v6 = vsel %vm405_vm15, %v317_v49, %v437_v43  ;;  %v341_v33 = vadd.f32 %v1638_v34, %v1592_v10  ;;  %v333_v52 = vadd.f32 %v1592_v10, %v1643_v38  ;;  %v1163_v11 = vpack.c.bf16 %v471_v55, %v470_v24 }
 0x121   :  { %v854_v40 = vadd.f32 %v853_v4, %v823_v54  ;;  %v892_v58 = vmul.f32 %v823_v54, %v468_v48  ;;  %v922_v27 = vadd.f32 %v921_v60, %v891_v44  ;;  %v826_v56 = vmul.f32 %v1569_v7, %v471_v55 }
 0x122   :  { %v1158_v26 = vpack.c.bf16 %v469_v6, %v468_v48  ;;  %v824_v2 = vmul.f32 %v1579_v9, %v469_v6  ;;  %vm411_vm0 = vcmp.gt.f32.partialorder %v341_v33, 0.0  ;;  %1211 = vst [vmem:[%s1940_s4 + $0x38] sm:$0xff] %v1163_v11   ;;  %v443_v45 = vmul.f32 0.1, %v341_v33 }
 0x123   :  { %v923_v3 = vadd.f32 %v922_v27, %v892_v58  ;;  %vm409_vm1 = vcmp.gt.f32.partialorder %v333_v52, 0.0  ;;  %v441_v34 = vmul.f32 0.1, %v333_v52  ;;  %v827_v38 = vmul.f32 %v1574_v8, %v1689_v46 }
 0x124   :  { %1210 = vst [vmem:[%s1940_s4 + $0x30] sm:$0xff] %v1158_v26   ;;  %v855_v7 = vadd.f32 %v854_v40, %v824_v2  ;;  %v893_v62 = vmul.f32 %v824_v2, %v469_v6  ;;  %v354_v9 = vadd.f32 %v1660_v17, %v1592_v10  ;;  %v894_v5 = vmul.f32 %v825_v18, %v470_v24 }
 0x125   :  { %v475_v23 = vsel %vm411_vm0, %v341_v33, %v443_v45  ;;  %v473_v41 = vsel %vm409_vm1, %v333_v52, %v441_v34  ;;  %v346_v12 = vadd.f32 %v1592_v10, %v1665_v31  ;;  %v357_v8 = vadd.f32 %v1674_v36, %v1592_v10 }
 0x126   :  { %v856_v57 = vadd.f32 %v855_v7, %v825_v18  ;;  %v924_v49 = vadd.f32 %v923_v3, %v893_v62  ;;  %v1173_v44 = vpack.c.bf16 %v475_v23, %v1672_v35  ;;  %v898_v53 = vmul.f32 %v1686_v32, %v1672_v35 }
 0x127   :  { %v895_v37 = vmul.f32 %v826_v56, %v471_v55  ;;  %v1168_v48 = vpack.c.bf16 %v473_v41, %v1689_v46  ;;  %v828_v17 = vmul.f32 %v1602_v14, %v473_v41  ;;  %v446_v39 = vmul.f32 0.1, %v354_v9 }
 0x128   :  { %v925_v24 = vadd.f32 %v924_v49, %v894_v5  ;;  %1213 = vst [vmem:[%s1940_s4 + $0x48] sm:$0xff] %v1173_v44   ;;  %v857_v31 = vadd.f32 %v856_v57, %v826_v56  ;;  %vm412_vm2 = vcmp.gt.f32.partialorder %v346_v12, 0.0  ;;  %v896_v43 = vmul.f32 %v827_v38, %v1689_v46 }
 0x129   :  { %v830_v36 = vmul.f32 %v1599_v13, %v475_v23  ;;  %1212 = vst [vmem:[%s1940_s4 + $0x40] sm:$0xff] %v1168_v48   ;;  %vm414_vm3 = vcmp.gt.f32.partialorder %v354_v9, 0.0  ;;  %v444_v35 = vmul.f32 0.1, %v346_v12  ;;  %vm415_vm4 = vcmp.gt.f32.partialorder %v357_v8, 0.0 }
 0x12a   :  { %v858_v60 = vadd.f32 %v857_v31, %v827_v38  ;;  %v926_v14 = vadd.f32 %v925_v24, %v895_v37  ;;  %v447_v18 = vmul.f32 0.1, %v357_v8  ;;  %v349_v4 = vadd.f32 %v1592_v10, %v1679_v47 }
 0x12b   :  { %v476_v54 = vsel %vm412_vm2, %v346_v12, %v444_v35  ;;  %v370_v55 = vadd.f32 %v1691_v63, %v1592_v10  ;;  %v362_v13 = vadd.f32 %v1592_v10, %v1693_v51  ;;  %v897_v6 = vmul.f32 %v828_v17, %v473_v41 }
 0x12c   :  { %v859_v46 = vadd.f32 %v858_v60, %v828_v17  ;;  %v927_v33 = vadd.f32 %v926_v14, %v896_v43  ;;  %v478_v52 = vsel %vm414_vm3, %v354_v9, %v446_v39  ;;  %v831_v40 = vmul.f32 %v1608_v16, %v476_v54 }
 0x12d   :  { %v479_v58 = vsel %vm415_vm4, %v357_v8, %v447_v18  ;;  %vm413_vm5 = vcmp.gt.f32.partialorder %v349_v4, 0.0  ;;  %v445_v27 = vmul.f32 0.1, %v349_v4  ;;  %v899_v11 = vmul.f32 %v830_v36, %v475_v23 }
 0x12e   :  { %v860_v56 = vadd.f32 %v859_v46, %v1686_v32  ;;  %v928_v26 = vadd.f32 %v927_v33, %v897_v6  ;;  %v1183_v47 = vpack.c.bf16 %v479_v58, %v478_v52  ;;  %vm418_vm6 = vcmp.gt.f32.partialorder %v370_v55, 0.0 }
 0x12f   :  { %v477_v2 = vsel %vm413_vm5, %v349_v4, %v445_v27  ;;  %v450_v63 = vmul.f32 0.1, %v370_v55  ;;  %vm416_vm7 = vcmp.gt.f32.partialorder %v362_v13, 0.0  ;;  %v833_v34 = vmul.f32 %v1605_v15, %v478_v52 }
 0x130   :  { %v929_v3 = vadd.f32 %v928_v26, %v898_v53  ;;  %v861_v51 = vadd.f32 %v860_v56, %v830_v36  ;;  %1215 = vst [vmem:[%s1940_s4 + $0x58] sm:$0xff] %v1183_v47   ;;  %v1178_v45 = vpack.c.bf16 %v477_v2, %v476_v54  ;;  %v832_v16 = vmul.f32 %v1614_v20, %v477_v2 }
 0x131   :  { %v900_v38 = vmul.f32 %v831_v40, %v476_v54  ;;  %v448_v7 = vmul.f32 0.1, %v362_v13  ;;  %v373_v32 = vadd.f32 %v1698_v59, %v1592_v10  ;;  %v834_v5 = vmul.f32 %v1611_v19, %v479_v58  ;;  %v1950_v54 = vld [vmem:[#allocation4_spill] sm:$0xff] }
 0x132   :  { %v862_v62 = vadd.f32 %v861_v51, %v831_v40  ;;  %v930_v9 = vadd.f32 %v929_v3, %v899_v11  ;;  %1214 = vst [vmem:[%s1940_s4 + $0x50] sm:$0xff] %v1178_v45   ;;  %v482_v23 = vsel %vm418_vm6, %v370_v55, %v450_v63  ;;  %v365_v15 = vadd.f32 %v1592_v10, %v1705_v50  ;;  %v1951_v11 = vld [vmem:[#allocation6_spill] sm:$0xff] }
 0x133   :  { %v480_v41 = vsel %vm416_vm7, %v362_v13, %v448_v7  ;;  %vm419_vm8 = vcmp.gt.f32.partialorder %v373_v32, 0.0  ;;  %v451_v20 = vmul.f32 0.1, %v373_v32  ;;  %v901_v49 = vmul.f32 %v832_v16, %v477_v2 }
 0x134   :  { %v931_v12 = vadd.f32 %v930_v9, %v900_v38  ;;  %v863_v57 = vadd.f32 %v862_v62, %v832_v16  ;;  %v835_v59 = vmul.f32 %v1620_v22, %v480_v41  ;;  %vm417_vm9 = vcmp.gt.f32.partialorder %v365_v15, 0.0 }
 0x135   :  { %v483_v44 = vsel %vm419_vm8, %v373_v32, %v451_v20  ;;  %v449_v19 = vmul.f32 0.1, %v365_v15  ;;  %v386_v8 = vadd.f32 %v1714_v1, %v1592_v10  ;;  %v902_v53 = vmul.f32 %v833_v34, %v478_v52 }
 0x136   :  { %v864_v37 = vadd.f32 %v863_v57, %v833_v34  ;;  %v932_v48 = vadd.f32 %v931_v12, %v901_v49  ;;  %v1193_v17 = vpack.c.bf16 %v483_v44, %v482_v23  ;;  %vm746_vm10 = vcmp.lt.s32.totalorder %v1634_v30, %v1452_v28 }
 0x137   :  { %v903_v24 = vmul.f32 %v834_v5, %v479_v58  ;;  %v837_v50 = vmul.f32 %v1617_v21, %v482_v23  ;;  %v481_v31 = vsel %vm417_vm9, %v365_v15, %v449_v19  ;;  %vm744_vm11 = vcmp.lt.s32.totalorder %v1646_v42, %v1452_v28 }
 0x138   :  { %v933_v22 = vadd.f32 %v932_v48, %v902_v53  ;;  %v865_v39 = vadd.f32 %v864_v37, %v834_v5  ;;  %1217 = vst [vmem:[%s1940_s4 + $0x68] sm:$0xff] %v1193_v17   ;;  %v1188_v1 = vpack.c.bf16 %v481_v31, %v480_v41  ;;  %v836_v43 = vmul.f32 %v1631_v29, %v481_v31 }
 0x139   :  { %v904_v36 = vmul.f32 %v835_v59, %v480_v41  ;;  %v454_v35 = vmul.f32 0.1, %v386_v8  ;;  %v378_v60 = vadd.f32 %v1592_v10, %v1716_v0  ;;  %v389_v21 = vadd.f32 %v1720_v61, %v1592_v10 }
 0x13a   :  { %v866_v14 = vadd.f32 %v865_v39, %v835_v59  ;;  %v934_v18 = vadd.f32 %v933_v22, %v903_v24  ;;  %v838_v4 = vmul.f32 %v1950_v54, %v483_v44  ;;  %1216 = vst [vmem:[%s1940_s4 + $0x60] sm:$0xff] %v1188_v1   ;;  %vm422_vm12 = vcmp.gt.f32.partialorder %v386_v8, 0.0  ;;  %v949_v1 = vld [vmem:[%s1941_s5] sm:$0xff] }
 0x13b   :  { %vm420_vm13 = vcmp.gt.f32.partialorder %v378_v60, 0.0  ;;  %v452_v55 = vmul.f32 0.1, %v378_v60  ;;  %vm423_vm14 = vcmp.gt.f32.partialorder %v389_v21, 0.0  ;;  %v455_v29 = vmul.f32 0.1, %v389_v21 }
 0x13c   :  { %v935_v13 = vadd.f32 %v934_v18, %v904_v36  ;;  %v867_v46 = vadd.f32 %v866_v14, %v836_v43  ;;  %v905_v6 = vmul.f32 %v836_v43, %v481_v31  ;;  %v381_v0 = vadd.f32 %v1592_v10, %v1726_v25  ;;  %v1953_v10 = vld [vmem:[#allocation5_spill] sm:$0xff]  ;;  %v1954_v31 = vld [vmem:[#allocation3_spill] sm:$0xff] }
 0x13d   :  { %v906_v61 = vmul.f32 %v837_v50, %v482_v23  ;;  %v486_v33 = vsel %vm422_vm12, %v386_v8, %v454_v35  ;;  %v484_v52 = vsel %vm420_vm13, %v378_v60, %v452_v55  ;;  %v487_v40 = vsel %vm423_vm14, %v389_v21, %v455_v29 }
 0x13e   :  { %v868_v58 = vadd.f32 %v867_v46, %v837_v50  ;;  %v936_v27 = vadd.f32 %v935_v13, %v905_v6  ;;  %v839_v56 = vmul.f32 %v1951_v11, %v484_v52  ;;  %v1203_v26 = vpack.c.bf16 %v487_v40, %v486_v33 }
 0x13f   :  { %vm421_vm15 = vcmp.gt.f32.partialorder %v381_v0, 0.0  ;;  %v453_v47 = vmul.f32 0.1, %v381_v0  ;;  %v1952_v2 = vmov 0.0   ;;  %v907_v3 = vmul.f32 %v838_v4, %v483_v44 }
 0x140   :  { %v1088_v63 = vsel %vm744_vm11, 1.0, %v1952_v2  ;;  %v937_v51 = vadd.f32 %v936_v27, %v906_v61  ;;  %v869_v45 = vadd.f32 %v868_v58, %v838_v4  ;;  %1219 = vst [vmem:[%s1940_s4 + $0x78] sm:$0xff] %v1203_v26   ;;  %v841_v25 = vmul.f32 %v1953_v10, %v486_v33 }
 0x141   :  { %v908_v16 = vmul.f32 %v839_v56, %v484_v52  ;;  %v1090_v34 = vsel %vm746_vm10, 1.0, %v1952_v2  ;;  %v485_v38 = vsel %vm421_vm15, %v381_v0, %v453_v47  ;;  %vm951_vm0 = vcmp.eq.s32.totalorder %v1954_v31, 1 }
 0x142   :  { %v870_v7 = vadd.f32 %v869_v45, %v839_v56  ;;  %v938_v32 = vadd.f32 %v937_v51, %v907_v3  ;;  %v1198_v42 = vpack.c.bf16 %v485_v38, %v484_v52  ;;  %v840_v62 = vmul.f32 %v1088_v63, %v485_v38 }
 0x143   :  { %v842_v5 = vmul.f32 %v1090_v34, %v487_v40  ;;  %v910_v20 = vmul.f32 %v841_v25, %v486_v33  ;;  %vm950_vm1 = vcmp.eq.s32.totalorder %v1954_v31, 0 }
 0x144   :  { %v939_v9 = vadd.f32 %v938_v32, %v908_v16  ;;  %1218 = vst [vmem:[%s1940_s4 + $0x70] sm:$0xff] %v1198_v42   ;;  %v871_v23 = vadd.f32 %v870_v7, %v840_v62  ;;  %v909_v41 = vmul.f32 %v840_v62, %v485_v38 }
 0x145   :  { %v911_v57 = vmul.f32 %v842_v5, %v487_v40 }
 0x146   :  { %v872_v15 = vadd.f32 %v871_v23, %v841_v25  ;;  %v940_v12 = vadd.f32 %v939_v9, %v909_v41 }
 0x148   :  { %v873_v49 = vadd.f32 %v872_v15, %v842_v5  ;;  %v941_v28 = vadd.f32 %v940_v12, %v910_v20 }
 0x14a   :  { %v874_v30 = vrot.slane %v873_v49, 4  ;;  %v942_v59 = vadd.f32 %v941_v28, %v911_v57 }
 0x14c   :  { %v875_v44 = vadd.f32 %v874_v30, %v873_v49  ;;  %v943_v19 = vrot.slane %v942_v59, 4 }
 0x14e   :  { %v876_v8 = vrot.slane %v875_v44, 2  ;;  %v944_v53 = vadd.f32 %v943_v19, %v942_v59 }
 0x150   :  { %v877_v37 = vadd.f32 %v876_v8, %v875_v44  ;;  %v945_v48 = vrot.slane %v944_v53, 2 }
 0x152   :  { %v946_v17 = vadd.f32 %v945_v48, %v944_v53  ;;  %v878_v24 = vrot.slane %v877_v37, 1 }
 0x154   :  { %v947_v50 = vrot.slane %v946_v17, 1  ;;  %v879_v39 = vadd.f32 %v878_v24, %v877_v37 }
 0x156   :  { %v948_v22 = vadd.f32 %v947_v50, %v946_v17 }
 0x158   :  { %v952_v43 = vsel %vm951_vm0, %v948_v22, 0.0 }
 0x159   :  { %v953_v36 = vsel %vm950_vm1, %v879_v39, %v952_v43 }
 0x15a   :  { %v954_v35 = vadd.f32 %v953_v36, %v949_v1 }
 0x15c   :  { %955 = vst [vmem:[%s1941_s5] sm:$0xff] %v954_v35 }
 0x15d PF:  { %p1092_p1 = scmp.gt.s32.totalorder %s1936_s0, 0 }
 0x15e   :  { %v1337_v60 = vmov (!%p1092_p1), 0  }
 0x15f   :  { %959 = sbr.rel (%p1092_p1) target bundleno = 367 (0x16f), region = 29  ;;  %960 = vst [vmem:[%s1940_s4] sm:$0xf] (!%p1092_p1), %v1337_v60  ;;  %961 = vst [vmem:[%s1940_s4 + $0x4] sm:$0xf] (!%p1092_p1), %v1337_v60 }
 0x160   :  { %962 = vst [vmem:[%s1940_s4 + $0x8] sm:$0xf] (!%p1092_p1), %v1337_v60  ;;  %963 = vst [vmem:[%s1940_s4 + $0xc] sm:$0xf] (!%p1092_p1), %v1337_v60 }
 0x161   :  { %964 = vst [vmem:[%s1940_s4 + $0x10] sm:$0xf] (!%p1092_p1), %v1337_v60  ;;  %965 = vst [vmem:[%s1940_s4 + $0x14] sm:$0xf] (!%p1092_p1), %v1337_v60 }
 0x162   :  { %966 = vst [vmem:[%s1940_s4 + $0x18] sm:$0xf] (!%p1092_p1), %v1337_v60  ;;  %967 = vst [vmem:[%s1940_s4 + $0x1c] sm:$0xf] (!%p1092_p1), %v1337_v60 }
 0x163   :  { %968 = vst [vmem:[%s1940_s4 + $0x20] sm:$0xf] (!%p1092_p1), %v1337_v60  ;;  %969 = vst [vmem:[%s1940_s4 + $0x24] sm:$0xf] (!%p1092_p1), %v1337_v60 }
 0x164   :  { %970 = vst [vmem:[%s1940_s4 + $0x28] sm:$0xf] (!%p1092_p1), %v1337_v60  ;;  %971 = vst [vmem:[%s1940_s4 + $0x2c] sm:$0xf] (!%p1092_p1), %v1337_v60 }
 0x165   :  { %972 = vst [vmem:[%s1940_s4 + $0x30] sm:$0xf] (!%p1092_p1), %v1337_v60  ;;  %973 = vst [vmem:[%s1940_s4 + $0x34] sm:$0xf] (!%p1092_p1), %v1337_v60 }
 0x166   :  { %974 = vst [vmem:[%s1940_s4 + $0x38] sm:$0xf] %v1337_v60  ;;  %975 = vst [vmem:[%s1940_s4 + $0x3c] sm:$0xf] %v1337_v60 }
 0x167   :  { %976 = vst [vmem:[%s1940_s4 + $0x40] sm:$0xf] %v1337_v60  ;;  %977 = vst [vmem:[%s1940_s4 + $0x44] sm:$0xf] %v1337_v60 }
 0x168   :  { %978 = vst [vmem:[%s1940_s4 + $0x48] sm:$0xf] %v1337_v60  ;;  %979 = vst [vmem:[%s1940_s4 + $0x4c] sm:$0xf] %v1337_v60 }
 0x169   :  { %980 = vst [vmem:[%s1940_s4 + $0x50] sm:$0xf] %v1337_v60  ;;  %981 = vst [vmem:[%s1940_s4 + $0x54] sm:$0xf] %v1337_v60 }
 0x16a   :  { %982 = vst [vmem:[%s1940_s4 + $0x58] sm:$0xf] %v1337_v60  ;;  %983 = vst [vmem:[%s1940_s4 + $0x5c] sm:$0xf] %v1337_v60 }
 0x16b   :  { %984 = vst [vmem:[%s1940_s4 + $0x60] sm:$0xf] %v1337_v60  ;;  %985 = vst [vmem:[%s1940_s4 + $0x64] sm:$0xf] %v1337_v60 }
 0x16c   :  { %986 = vst [vmem:[%s1940_s4 + $0x68] sm:$0xf] %v1337_v60  ;;  %987 = vst [vmem:[%s1940_s4 + $0x6c] sm:$0xf] %v1337_v60 }
 0x16d   :  { %988 = vst [vmem:[%s1940_s4 + $0x70] sm:$0xf] %v1337_v60  ;;  %989 = vst [vmem:[%s1940_s4 + $0x74] sm:$0xf] %v1337_v60 }
 0x16e   :  { %990 = vst [vmem:[%s1940_s4 + $0x78] sm:$0xf] %v1337_v60  ;;  %991 = vst [vmem:[%s1940_s4 + $0x7c] sm:$0xf] %v1337_v60 }
 0x16f PF:  {}

// kernel: spvblock_forward.5
= control target key start
LH: loop header
LB: loop body
LE: loop exit
PB: predicated region body
PF: predicated region fallthrough
CT: control target
= control target key end

     0   :  { %v705_v13 = vlaneseq  ;;  %v2450_v37 = vmov 1.0|1.0   ;;  %s3481_s2 = inlined_call_operand.vmem [shape: bf16[128,128], index: 2, kind: input, shape index: {}]   ;;  %s3482_s1 = inlined_call_operand.vmem [shape: bf16[256,128], index: 1, kind: input, shape index: {}]   ;;  %s3483_s0 = inlined_call_operand.vmem [shape: s32[1,256], index: 0, kind: input, shape index: {}]   ;;  %s3484_s3 = inlined_call_operand.vmem [shape: f32[1,128], index: 3, kind: input, shape index: {}]   ;;  %s3485_s4 = inlined_call_operand.vmem [shape: bf16[256,128], index: 4, kind: output, shape index: {0}]   ;;  %s3486_s5 = inlined_call_operand.vmem [shape: bf16[256,128], index: 5, kind: output, shape index: {1}]  }
   0x1   :  { %v2362_v0 = vld [vmem:[%s3481_s2] sm:$0xff]   ;;  %v2365_v3 = vld [vmem:[%s3481_s2 + $0x8] sm:$0xff]   ;;  %v2368_v6 = vld [vmem:[%s3481_s2 + $0x10] sm:$0xff]  }
   0x2   :  { %v2489_v1 = vld [vmem:[%s3482_s1 + $0x40] sm:$0xff]   ;;  %2293 = vmatprep.subr.bf16.mxu0 %v2362_v0  ;;  %v2504_v4 = vld [vmem:[%s3482_s1 + $0x48] sm:$0xff]   ;;  %v2519_v7 = vld [vmem:[%s3482_s1 + $0x50] sm:$0xff]   ;;  %v2560_v17 = vshrl.u32 %v705_v13, 7  ;;  %v3535_v13 = vmov 0 }
   0x3   :  { %v2494_v2 = vld [vmem:[%s3482_s1] sm:$0xff]   ;;  %2341 = vmatprep.subr.bf16.mxu1 %v2489_v1  ;;  %2294 = vmatpush3.bf16.msra.mxu0 %v2362_v0  ;;  %v2510_v5 = vld [vmem:[%s3482_s1 + $0x8] sm:$0xff]   ;;  %v2525_v8 = vld [vmem:[%s3482_s1 + $0x10] sm:$0xff]  }
   0x4   :  { %2349 = vmatpush3.bf16.msra.mxu1 %v2494_v2  ;;  %2309 = vmatprep.mubr.bf16.mxu0 %v2494_v2  ;;  %v2371_v9 = vld [vmem:[%s3481_s2 + $0x18] sm:$0xff]   ;;  %v2374_v12 = vld [vmem:[%s3481_s2 + $0x20] sm:$0xff]   ;;  %v2377_v16 = vld [vmem:[%s3481_s2 + $0x28] sm:$0xff]   ;;  %v740_v21 = vsub.s32 0, %v2560_v17  ;;  %v744_v23 = vsub.s32 1, %v2560_v17  ;;  %v714_v24 = vadd.s32 64, %v2560_v17 }
   0x5   :  { %2295 = vmatprep.subr.bf16.mxu0 %v2365_v3  ;;  %2342 = vmatprep.subr.bf16.mxu1 %v2504_v4  ;;  %v2534_v10 = vld [vmem:[%s3482_s1 + $0x58] sm:$0xff]   ;;  %v2549_v14 = vld [vmem:[%s3482_s1 + $0x60] sm:$0xff]   ;;  %v2566_v18 = vld [vmem:[%s3482_s1 + $0x68] sm:$0xff]   ;;  %v715_v25 = vadd.s32 72, %v2560_v17  ;;  %v2610_v32 = vadd.s32 80, %v2560_v17  ;;  %v2613_v33 = vadd.s32 88, %v2560_v17 }
   0x6   :  { %v2539_v11 = vld [vmem:[%s3482_s1 + $0x18] sm:$0xff]   ;;  %v2554_v15 = vld [vmem:[%s3482_s1 + $0x20] sm:$0xff]   ;;  %v2571_v19 = vld [vmem:[%s3482_s1 + $0x28] sm:$0xff]   ;;  %v2624_v35 = vadd.s32 96, %v2560_v17  ;;  %v2627_v36 = vadd.s32 104, %v2560_v17  ;;  %v2634_v38 = vadd.s32 112, %v2560_v17 }
   0x7   :  { %2296 = vmatpush3.bf16.msra.mxu0 %v2365_v3  ;;  %v2380_v20 = vld [vmem:[%s3481_s2 + $0x30] sm:$0xff]   ;;  %v2383_v27 = vld [vmem:[%s3481_s2 + $0x38] sm:$0xff]   ;;  %v704_v28 = vld [vmem:[%s3483_s0] sm:$0x3]  ;;  %v2637_v39 = vadd.s32 120, %v2560_v17  ;;  %v2644_v40 = vadd.s32 128, %v2560_v17 }
   0x8   :  { %2350 = vmatpush3.bf16.msra.mxu1 %v2510_v5  ;;  %2297 = vmatprep.subr.bf16.mxu0 %v2368_v6  ;;  %v2582_v22 = vld [vmem:[%s3482_s1 + $0x70] sm:$0xff]   ;;  %v2603_v29 = vld [vmem:[%s3482_s1 + $0x78] sm:$0xff]   ;;  %v2605_v30 = vrot.slane %v704_v28, %v740_v21  ;;  %v2607_v31 = vrot.slane %v704_v28, %v744_v23  ;;  %v2647_v41 = vadd.s32 136, %v2560_v17  ;;  %v2650_v42 = vadd.s32 8, %v2560_v17 }
   0x9   :  { %2343 = vmatprep.subr.bf16.mxu1 %v2519_v7  ;;  %v2591_v26 = vld [vmem:[%s3482_s1 + $0x30] sm:$0xff]   ;;  %v2621_v34 = vld [vmem:[%s3482_s1 + $0x38] sm:$0xff]   ;;  %v2653_v43 = vadd.s32 192, %v2560_v17  ;;  %v2656_v44 = vadd.s32 200, %v2560_v17  ;;  %v2659_v45 = vadd.s32 16, %v2560_v17  ;;  %v2666_v46 = vadd.s32 24, %v2560_v17 }
   0xa   :  { %vm763_vm0 = vcmp.eq.s32.totalorder %v714_v24, %v2607_v31  ;;  %vm765_vm1 = vcmp.eq.s32.totalorder %v715_v25, %v2607_v31  ;;  %vm762_vm3 = vcmp.eq.s32.totalorder %v714_v24, %v2605_v30  ;;  %vm764_vm4 = vcmp.eq.s32.totalorder %v715_v25, %v2605_v30 }
   0xb   :  { %2298 = vmatpush3.bf16.msra.mxu0 %v2368_v6  ;;  %vm1823_vm2 = vmpackc.low %vm765_vm1, %vm763_vm0  ;;  %vm767_vm5 = vcmp.eq.s32.totalorder %v2610_v32, %v2607_v31  ;;  %vm769_vm6 = vcmp.eq.s32.totalorder %v2613_v33, %v2607_v31  ;;  %v2669_v47 = vadd.s32 208, %v2560_v17  ;;  %v2672_v48 = vadd.s32 216, %v2560_v17 }
   0xc   :  { %2351 = vmatpush3.bf16.msra.mxu1 %v2525_v8  ;;  %2299 = vmatprep.subr.bf16.mxu0 %v2371_v9  ;;  %vm1825_vm7 = vmpackc.low %vm764_vm4, %vm762_vm3  ;;  %v2675_v49 = vadd.s32 32, %v2560_v17  ;;  %v2688_v51 = vadd.s32 40, %v2560_v17  ;;  %v2691_v52 = vadd.s32 224, %v2560_v17  ;;  %v2694_v53 = vadd.s32 232, %v2560_v17 }
   0xd   :  { %2344 = vmatprep.subr.bf16.mxu1 %v2534_v10  ;;  %1824 = vmatprep.mubr.msk.bf16.mxu1 %vm1823_vm2, %v2450_v37  ;;  %vm2683_vm8 = vmpackc.low %vm769_vm6, %vm767_vm5  ;;  %v2697_v54 = vadd.s32 48, %v2560_v17  ;;  %vm766_vm9 = vcmp.eq.s32.totalorder %v2610_v32, %v2605_v30  ;;  %vm768_vm10 = vcmp.eq.s32.totalorder %v2613_v33, %v2605_v30  ;;  %vm771_vm11 = vcmp.eq.s32.totalorder %v2624_v35, %v2607_v31 }
   0xe   :  { %v2707_v55 = vadd.s32 56, %v2560_v17  ;;  %vm773_vm12 = vcmp.eq.s32.totalorder %v2627_v36, %v2607_v31  ;;  %vm770_vm13 = vcmp.eq.s32.totalorder %v2624_v35, %v2605_v30  ;;  %vm772_vm14 = vcmp.eq.s32.totalorder %v2627_v36, %v2605_v30  ;;  %vm2765_vm1 = vmpackc.low %vm768_vm10, %vm766_vm9 }
   0xf   :  { %2300 = vmatpush3.bf16.msra.mxu0 %v2371_v9  ;;  %v2718_v56 = vadd.s32 240, %v2560_v17  ;;  %vm775_vm15 = vcmp.eq.s32.totalorder %v2634_v38, %v2607_v31  ;;  %vm777_vm0 = vcmp.eq.s32.totalorder %v2637_v39, %v2607_v31  ;;  %v2731_v57 = vadd.s32 248, %v2560_v17  ;;  %vm2784_vm9 = vmpackc.low %vm773_vm12, %vm771_vm11 }
  0x10   :  { %2352 = vmatpush3.bf16.msra.mxu1 %v2539_v11  ;;  %2301 = vmatprep.subr.bf16.mxu0 %v2374_v12  ;;  %vm795_vm2 = vcmp.eq.s32.totalorder %v2653_v43, %v2607_v31  ;;  %vm797_vm3 = vcmp.eq.s32.totalorder %v2656_v44, %v2607_v31  ;;  %vm800_vm5 = vcmp.eq.s32.totalorder %v2672_v48, %v2605_v30  ;;  %vm2815_vm11 = vmpackc.low %vm772_vm14, %vm770_vm13  ;;  %v3523_v9 = vmov 0 }
  0x11   :  { %2345 = vmatprep.subr.bf16.mxu1 %v2549_v14  ;;  %vm2835_vm13 = vmpackc.low %vm777_vm0, %vm775_vm15  ;;  %vm776_vm6 = vcmp.eq.s32.totalorder %v2637_v39, %v2605_v30  ;;  %vm779_vm0 = vcmp.eq.s32.totalorder %v2644_v40, %v2607_v31  ;;  %vm3499_vm14 = vcmp.eq.s32.totalorder %v2560_v17, %v2605_v30  ;;  %vm3500_vm10 = vcmp.eq.s32.totalorder %v2650_v42, %v2605_v30 }
  0x12   :  { %vm2854_vm15 = vmpackc.low %vm797_vm3, %vm795_vm2  ;;  %vm3503_vm2 = vcmp.eq.s32.totalorder %v2653_v43, %v2605_v30  ;;  %vm3504_vm3 = vcmp.eq.s32.totalorder %v2656_v44, %v2605_v30  ;;  %v725_v21 = vadd.s32 152, %v2560_v17  ;;  %v3551_v23 = vmov 0 }
  0x13   :  { %2302 = vmatpush3.bf16.msra.mxu0 %v2374_v12  ;;  %vm2868_vm12 = vmpackc.low %vm3500_vm10, %vm3499_vm14  ;;  %vm3509_vm10 = vcmp.eq.s32.totalorder %v2659_v45, %v2607_v31  ;;  %v3531_v12 = vmov 0  ;;  %v3555_v24 = vmov 0  ;;  %v727_v25 = vadd.s32 168, %v2560_v17 }
  0x14   :  { %2353 = vmatpush3.bf16.msra.mxu1 %v2554_v15  ;;  %2303 = vmatprep.subr.bf16.mxu0 %v2377_v16  ;;  %vm2878_vm4 = vmpackc.low %vm3504_vm3, %vm3503_vm2 }
  0x15   :  { %2346 = vmatprep.subr.bf16.mxu1 %v2566_v18 }
  0x17   :  { %2304 = vmatpush3.bf16.msra.mxu0 %v2377_v16  ;;  %v3543_v16 = vmov 0 }
  0x18   :  { %2354 = vmatpush3.bf16.msra.mxu1 %v2571_v19  ;;  %2305 = vmatprep.subr.bf16.mxu0 %v2380_v20 }
  0x19   :  { %2347 = vmatprep.subr.bf16.mxu1 %v2582_v22 }
  0x1b   :  { %2306 = vmatpush3.bf16.msra.mxu0 %v2380_v20  ;;  %v724_v20 = vadd.s32 144, %v2560_v17 }
  0x1c   :  { %2355 = vmatpush3.bf16.msra.mxu1 %v2591_v26  ;;  %2307 = vmatprep.subr.bf16.mxu0 %v2383_v27 }
  0x1d   :  { %2348 = vmatprep.subr.bf16.mxu1 %v2603_v29 }
  0x1f   :  { %2308 = vmatpush3.bf16.msra.mxu0 %v2383_v27 }
  0x20   :  { %2356 = vmatpush3.bf16.msra.mxu1 %v2621_v34  ;;  %2181 = vmatprep.subr.bf16.mxu0 %v2489_v1 }
  0x22   :  { %2310 = vmatmul.mubr.bf16.vlgmr.msra.gmra.mrb[0].mxu0 %v2510_v5 }
  0x23   :  { %1826 = vmatmul.mubr.msk.bf16.vlgmr.msra.gmra.mrb[0].mxu1 %vm1825_vm7, %v2450_v37  ;;  %2182 = vmatpush3.bf16.msra.mxu0 %v2494_v2 }
  0x24   :  { %2313 = vmatprep.mubr.bf16.mxu0 %v2525_v8  ;;  %1828 = vmatprep.mubr.msk.bf16.mxu1 %vm2683_vm8, %v2450_v37  ;;  %vm753_vm8 = vcmp.eq.s32.totalorder %v2666_v46, %v2607_v31 }
  0x25   :  { %2183 = vmatprep.subr.bf16.mxu0 %v2504_v4  ;;  %vm2893_vm14 = vmpackc.low %vm753_vm8, %vm3509_vm10  ;;  %vm3518_vm8 = vcmp.eq.s32.totalorder %v2669_v47, %v2607_v31  ;;  %vm3522_vm10 = vcmp.eq.s32.totalorder %v2669_v47, %v2605_v30 }
  0x27   :  { %2184 = vmatpush3.bf16.msra.mxu0 %v2510_v5 }
  0x28   :  { %2185 = vmatprep.subr.bf16.mxu0 %v2519_v7 }
  0x2a   :  { %2314 = vmatmul.mubr.bf16.gmra.mrb[4].mxu0 %v2539_v11 }
  0x2b   :  { %1830 = vmatmul.mubr.msk.bf16.gmra.mrb[4].mxu1 %vm2765_vm1, %v2450_v37  ;;  %2317 = vmatprep.mubr.bf16.mxu0 %v2554_v15  ;;  %vm781_vm1 = vcmp.eq.s32.totalorder %v2647_v41, %v2607_v31 }
  0x2c   :  { %1832 = vmatprep.mubr.msk.bf16.mxu1 %vm2784_vm9, %v2450_v37  ;;  %2186 = vmatpush3.bf16.msra.mxu0 %v2525_v8  ;;  %vm774_vm9 = vcmp.eq.s32.totalorder %v2634_v38, %v2605_v30  ;;  %vm2897_vm2 = vmpackc.low %vm781_vm1, %vm779_vm0  ;;  %vm3519_vm1 = vcmp.eq.s32.totalorder %v2672_v48, %v2607_v31 }
  0x2d   :  { %2187 = vmatprep.subr.bf16.mxu0 %v2534_v10  ;;  %vm2882_vm7 = vmpackc.low %vm776_vm6, %vm774_vm9  ;;  %vm3514_vm6 = vcmp.eq.s32.totalorder %v2659_v45, %v2605_v30  ;;  %vm3515_vm9 = vcmp.eq.s32.totalorder %v2666_v46, %v2605_v30 }
  0x2e   :  { %vm2908_vm3 = vmpackc.low %vm3515_vm9, %vm3514_vm6  ;;  %vm3526_vm9 = vcmp.eq.s32.totalorder %v2688_v51, %v2607_v31 }
  0x2f   :  { %vm2919_vm0 = vmpackc.low %vm3519_vm1, %vm3518_vm8 }
  0x30   :  { %2188 = vmatpush3.bf16.msra.mxu0 %v2539_v11  ;;  %vm2933_vm6 = vmpackc.low %vm800_vm5, %vm3522_vm10  ;;  %v3527_v11 = vmov 0  ;;  %vm3529_vm5 = vcmp.eq.s32.totalorder %v2675_v49, %v2605_v30  ;;  %vm3533_vm10 = vcmp.eq.s32.totalorder %v2691_v52, %v2607_v31 }
  0x31   :  { %2189 = vmatprep.subr.bf16.mxu0 %v2549_v14  ;;  %v3524_v9 = vsel %vm2933_vm6, 4294967295, %v3523_v9  ;;  %vm3538_vm6 = vcmp.eq.s32.totalorder %v2694_v53, %v2605_v30 }
  0x32   :  { %2318 = vmatmul.mubr.bf16.gmra.mrb[8].mxu0 %v2571_v19 }
  0x33   :  { %1834 = vmatmul.mubr.msk.bf16.gmra.mrb[8].mxu1 %vm2815_vm11, %v2450_v37  ;;  %2321 = vmatprep.mubr.bf16.mxu0 %v2591_v26  ;;  %vm3525_vm11 = vcmp.eq.s32.totalorder %v2675_v49, %v2607_v31 }
  0x34   :  { %1836 = vmatprep.mubr.msk.bf16.mxu1 %vm2835_vm13, %v2450_v37  ;;  %2190 = vmatpush3.bf16.msra.mxu0 %v2554_v15  ;;  %vm2947_vm8 = vmpackc.low %vm3526_vm9, %vm3525_vm11  ;;  %vm3530_vm13 = vcmp.eq.s32.totalorder %v2688_v51, %v2605_v30  ;;  %vm3534_vm11 = vcmp.eq.s32.totalorder %v2694_v53, %v2607_v31  ;;  %v3539_v15 = vmov 0 }
  0x35   :  { %v3528_v11 = vsel %vm2947_vm8, 4294967295, %v3527_v11  ;;  %2191 = vmatprep.subr.bf16.mxu0 %v2566_v18  ;;  %vm2958_vm1 = vmpackc.low %vm3530_vm13, %vm3529_vm5  ;;  %vm3537_vm8 = vcmp.eq.s32.totalorder %v2691_v52, %v2605_v30  ;;  %vm3541_vm13 = vcmp.eq.s32.totalorder %v2697_v54, %v2607_v31 }
  0x36   :  { %v3532_v12 = vsel %vm2958_vm1, 4294967295, %v3531_v12  ;;  %vm2968_vm9 = vmpackc.low %vm3534_vm11, %vm3533_vm10  ;;  %vm3542_vm10 = vcmp.eq.s32.totalorder %v2707_v55, %v2607_v31 }
  0x37   :  { %v3536_v13 = vsel %vm2968_vm9, 4294967295, %v3535_v13  ;;  %vm2978_vm5 = vmpackc.low %vm3538_vm6, %vm3537_vm8  ;;  %vm3545_vm6 = vcmp.eq.s32.totalorder %v2697_v54, %v2605_v30  ;;  %vm3546_vm8 = vcmp.eq.s32.totalorder %v2707_v55, %v2605_v30  ;;  %vm749_vm9 = vcmp.eq.s32.totalorder %v2650_v42, %v2607_v31 }
  0x38   :  { %v3540_v15 = vsel %vm2978_vm5, 4294967295, %v3539_v15  ;;  %2192 = vmatpush3.bf16.msra.mxu0 %v2571_v19  ;;  %vm2989_vm11 = vmpackc.low %vm3542_vm10, %vm3541_vm13  ;;  %v3547_v19 = vmov 0  ;;  %vm3549_vm13 = vcmp.eq.s32.totalorder %v2718_v56, %v2607_v31  ;;  %vm3550_vm10 = vcmp.eq.s32.totalorder %v2731_v57, %v2607_v31 }
  0x39   :  { %v3544_v16 = vsel %vm2989_vm11, 4294967295, %v3543_v16  ;;  %2193 = vmatprep.subr.bf16.mxu0 %v2582_v22  ;;  %vm3000_vm5 = vmpackc.low %vm3546_vm8, %vm3545_vm6  ;;  %vm3553_vm6 = vcmp.eq.s32.totalorder %v2718_v56, %v2605_v30  ;;  %vm3554_vm8 = vcmp.eq.s32.totalorder %v2731_v57, %v2605_v30 }
  0x3a   :  { %v3548_v19 = vsel %vm3000_vm5, 4294967295, %v3547_v19  ;;  %2322 = vmatmul.mubr.bf16.gmra.mrb[12].mxu0 %v2621_v34  ;;  %vm3013_vm11 = vmpackc.low %vm3550_vm10, %vm3549_vm13  ;;  %vm780_vm13 = vcmp.eq.s32.totalorder %v2647_v41, %v2605_v30  ;;  %vm783_vm10 = vcmp.eq.s32.totalorder %v724_v20, %v2607_v31 }
  0x3b   :  { %v3552_v23 = vsel %vm3013_vm11, 4294967295, %v3551_v23  ;;  %1838 = vmatmul.mubr.msk.bf16.gmra.mrb[12].mxu1 %vm2882_vm7, %v2450_v37  ;;  %2325 = vmatprep.mubr.bf16.mxu0 %v2489_v1  ;;  %vm3027_vm5 = vmpackc.low %vm3554_vm8, %vm3553_vm6  ;;  %vm778_vm7 = vcmp.eq.s32.totalorder %v2644_v40, %v2605_v30  ;;  %vm785_vm6 = vcmp.eq.s32.totalorder %v725_v21, %v2607_v31  ;;  %v726_v1 = vadd.s32 160, %v2560_v17 }
  0x3c   :  { %v3556_v24 = vsel %vm3027_vm5, 4294967295, %v3555_v24  ;;  %1840 = vmatprep.mubr.msk.bf16.mxu1 %vm2897_vm2, %v2450_v37  ;;  %2194 = vmatpush3.bf16.msra.mxu0 %v2591_v26  ;;  %vm1841_vm8 = vmpackc.low %vm780_vm13, %vm778_vm7  ;;  %vm782_vm2 = vcmp.eq.s32.totalorder %v724_v20, %v2605_v30  ;;  %vm784_vm11 = vcmp.eq.s32.totalorder %v725_v21, %v2605_v30  ;;  %vm789_vm13 = vcmp.eq.s32.totalorder %v727_v25, %v2607_v31 }
  0x3d   :  { %2195 = vmatprep.subr.bf16.mxu0 %v2603_v29  ;;  %vm1843_vm5 = vmpackc.low %vm785_vm6, %vm783_vm10  ;;  %vm787_vm7 = vcmp.eq.s32.totalorder %v726_v1, %v2607_v31  ;;  %v729_v26 = vadd.s32 184, %v2560_v17 }
  0x3e   :  { %vm1845_vm10 = vmpackc.low %vm784_vm11, %vm782_vm2 }
  0x3f   :  { %vm1847_vm6 = vmpackc.low %vm789_vm13, %vm787_vm7  ;;  %vm793_vm11 = vcmp.eq.s32.totalorder %v729_v26, %v2607_v31 }
  0x40   :  { %2196 = vmatpush3.bf16.msra.mxu0 %v2621_v34 }
  0x42   :  { %2326 = vmatmul.mubr.bf16.gmra.mrb[16].mxu0 %v2504_v4  ;;  %v728_v4 = vadd.s32 176, %v2560_v17 }
  0x43   :  { %1842 = vmatmul.mubr.msk.bf16.gmra.mrb[16].mxu1 %vm1841_vm8, %v2450_v37  ;;  %2329 = vmatprep.mubr.bf16.mxu0 %v2519_v7  ;;  %vm788_vm8 = vcmp.eq.s32.totalorder %v727_v25, %v2605_v30  ;;  %v2451_v7 = vmov 127  }
  0x44   :  { %1844 = vmatprep.mubr.msk.bf16.mxu1 %vm1843_vm5, %v2450_v37  ;;  %vm786_vm5 = vcmp.eq.s32.totalorder %v726_v1, %v2605_v30  ;;  %vm791_vm1 = vcmp.eq.s32.totalorder %v728_v4, %v2607_v31  ;;  %vm790_vm13 = vcmp.eq.s32.totalorder %v728_v4, %v2605_v30  ;;  %2360 = vset.pattern.permute.xlu0 %v2451_v7 }
  0x45   :  { %vm1849_vm2 = vmpackc.low %vm788_vm8, %vm786_vm5  ;;  %vm3564_vm8 = vnez %v3548_v19  ;;  %2361 = vset.pattern.permute.xlu1 %v2451_v7 }
  0x46   :  { %vm1851_vm7 = vmpackc.low %vm793_vm11, %vm791_vm1  ;;  %vm3565_vm11 = vnez %v3556_v24 }
  0x4a   :  { %2330 = vmatmul.mubr.bf16.gmra.mrb[20].mxu0 %v2534_v10  ;;  %v3124_v10 = vld [vmem:[%s3484_s3] ss:$0 sm:$0xff] }
  0x4b   :  { %1846 = vmatmul.mubr.msk.bf16.gmra.mrb[20].mxu1 %vm1845_vm10, %v2450_v37  ;;  %2333 = vmatprep.mubr.bf16.mxu0 %v2549_v14  ;;  %vm792_vm10 = vcmp.eq.s32.totalorder %v729_v26, %v2605_v30 }
  0x4c   :  { %1848 = vmatprep.mubr.msk.bf16.mxu1 %vm1847_vm6, %v2450_v37  ;;  %vm747_vm6 = vcmp.eq.s32.totalorder %v2560_v17, %v2607_v31  ;;  %vm1853_vm5 = vmpackc.low %vm792_vm10, %vm790_vm13 }
  0x4d   :  { %vm1807_vm1 = vmpackc.low %vm749_vm9, %vm747_vm6  ;;  %vm3563_vm9 = vnez %v3552_v23 }
  0x52   :  { %2334 = vmatmul.mubr.bf16.gmra.mrb[24].mxu0 %v2566_v18 }
  0x53   :  { %1850 = vmatmul.mubr.msk.bf16.gmra.mrb[24].mxu1 %vm1849_vm2, %v2450_v37  ;;  %2337 = vmatprep.mubr.bf16.mxu0 %v2582_v22 }
  0x54   :  { %1852 = vmatprep.mubr.msk.bf16.mxu1 %vm1851_vm7, %v2450_v37 }
  0x5a   :  { %2338 = vmatmul.mubr.bf16.gmra.mrb[28].mxu0 %v2603_v29 }
  0x5b   :  { %1854 = vmatmul.mubr.msk.bf16.gmra.mrb[28].mxu1 %vm1853_vm5, %v2450_v37  ;;  %1808 = vmatprep.mubr.msk.bf16.mxu0 %vm1807_vm1, %v2450_v37 }
  0x5c   :  { %1856 = vmatprep.mubr.msk.bf16.mxu1 %vm2854_vm15, %v2450_v37  ;;  %vm3557_vm15 = vnez %v3524_v9 }
  0x62   :  { %1810 = vmatmul.mubr.msk.bf16.vlgmr.msra.gmra.mrb[32].mxu0 %vm2868_vm12, %v2450_v37  ;;  %vm3558_vm12 = vnez %v3528_v11 }
  0x63   :  { %1858 = vmatmul.mubr.msk.bf16.gmra.mrb[32].mxu1 %vm2878_vm4, %v2450_v37  ;;  %1812 = vmatprep.mubr.msk.bf16.mxu0 %vm2893_vm14, %v2450_v37  ;;  %vm3559_vm4 = vnez %v3536_v13  ;;  %vm3560_vm14 = vnez %v3532_v12 }
  0x64   :  { %1860 = vmatprep.mubr.msk.bf16.mxu1 %vm2919_vm0, %v2450_v37  ;;  %vm3561_vm0 = vnez %v3540_v15 }
  0x6a   :  { %1814 = vmatmul.mubr.msk.bf16.gmra.mrb[36].mxu0 %vm2908_vm3, %v2450_v37  ;;  %vm3562_vm3 = vnez %v3544_v16 }
  0x6b   :  { %1862 = vmatmul.mubr.msk.bf16.gmra.mrb[36].mxu1 %vm3557_vm15, %v2450_v37  ;;  %1816 = vmatprep.mubr.msk.bf16.mxu0 %vm3558_vm12, %v2450_v37 }
  0x6c   :  { %1864 = vmatprep.mubr.msk.bf16.mxu1 %vm3559_vm4, %v2450_v37 }
  0x72   :  { %1818 = vmatmul.mubr.msk.bf16.gmra.mrb[40].mxu0 %vm3560_vm14, %v2450_v37 }
  0x73   :  { %1866 = vmatmul.mubr.msk.bf16.gmra.mrb[40].mxu1 %vm3561_vm0, %v2450_v37  ;;  %1820 = vmatprep.mubr.msk.bf16.mxu0 %vm3562_vm3, %v2450_v37 }
  0x74   :  { %1868 = vmatprep.mubr.msk.bf16.mxu1 %vm3563_vm9, %v2450_v37 }
  0x7a   :  { %1822 = vmatmul.mubr.msk.bf16.gmra.mrb[44].mxu0 %vm3564_vm8, %v2450_v37 }
  0x7b   :  { %1870 = vmatmul.mubr.msk.bf16.gmra.mrb[44].mxu1 %vm3565_vm11, %v2450_v37 }
  0xf5   :  { %v2311_v14 = vpop.f32.mrb[0].mxu0 }
  0xf6   :  { %v330_v17 = vadd.f32 %v2311_v14, %v3124_v10  ;;  %v2221_v18 = vpop.f32.mrb[0].mxu1  ;;  %v321_v22 = vpop.f32.mrb[1].mxu0 }
  0xf7   :  { %v322_v27 = vadd.f32 %v3124_v10, %v321_v22  ;;  %v2222_v28 = vpop.f32.mrb[1].mxu1  ;;  %v2312_v29 = vpop.f32.mrb[2].mxu0 }
  0xf8   :  { %v482_v30 = vmul.f32 0.1, %v330_v17  ;;  %v3128_v31 = vadd.f32 %v2222_v28, %v2221_v18  ;;  %v333_v32 = vadd.f32 %v2312_v29, %v3124_v10  ;;  %v2224_v33 = vpop.f32.mrb[2].mxu1  ;;  %v324_v34 = vpop.f32.mrb[3].mxu0  ;;  %vm450_vm2 = vcmp.gt.f32.partialorder %v330_v17, 0.0 }
  0xf9   :  { %v480_v35 = vmul.f32 0.1, %v322_v27  ;;  %v325_v36 = vadd.f32 %v3124_v10, %v324_v34  ;;  %v2225_v37 = vpop.f32.mrb[3].mxu1  ;;  %vm448_vm7 = vcmp.gt.f32.partialorder %v322_v27, 0.0  ;;  %v2452_v29 = vmov 0  }
  0xfa   :  { %vm451_vm13 = vcmp.gt.f32.partialorder %v333_v32, 0.0  ;;  %v483_v38 = vmul.f32 0.1, %v333_v32  ;;  %v3132_v39 = vadd.f32 %v2225_v37, %v2224_v33  ;;  %v1270_v41 = vmax.f32 %v3128_v31, 1.0  ;;  %64 = vst [vmem:[%s3486_s5 + $0x20] sm:$0xf] %v2452_v29 }
  0xfb   :  { %vm449_vm10 = vcmp.gt.f32.partialorder %v325_v36, 0.0  ;;  %v481_v40 = vmul.f32 0.1, %v325_v36  ;;  %v514_v42 = vsel %vm450_vm2, %v330_v17, %v482_v30  ;;  %v512_v45 = vsel %vm448_vm7, %v322_v27, %v480_v35  ;;  %65 = vst [vmem:[%s3486_s5 + $0x24] sm:$0xf] %v2452_v29  ;;  %56 = vst [vmem:[%s3486_s5] sm:$0xf] %v2452_v29 }
  0xfc   :  { %v515_v43 = vsel %vm451_vm13, %v333_v32, %v483_v38  ;;  %v1271_v44 = vmax.f32 %v3132_v39, 1.0  ;;  %1336 = vperm.xlu0 %2360, %v1270_v41   ;;  %57 = vst [vmem:[%s3486_s5 + $0x4] sm:$0xf] %v2452_v29  ;;  %58 = vst [vmem:[%s3486_s5 + $0x8] sm:$0xf] %v2452_v29 }
  0xfd   :  { %v1975_v46 = vpack.c.bf16 %v515_v43, %v514_v42  ;;  %v513_v47 = vsel %vm449_vm10, %v325_v36, %v481_v40  ;;  %v2315_v48 = vpop.f32.mrb[4].mxu0  ;;  %59 = vst [vmem:[%s3486_s5 + $0xc] sm:$0xf] %v2452_v29  ;;  %60 = vst [vmem:[%s3486_s5 + $0x10] sm:$0xf] %v2452_v29 }
  0xfe   :  { %v1970_v49 = vpack.c.bf16 %v513_v47, %v512_v45  ;;  %v346_v50 = vadd.f32 %v2315_v48, %v3124_v10  ;;  %v2227_v51 = vpop.f32.mrb[4].mxu1  ;;  %1341 = vperm.xlu1 %2361, %v1271_v44   ;;  %v337_v52 = vpop.f32.mrb[5].mxu0  ;;  %61 = vst [vmem:[%s3486_s5 + $0x14] sm:$0xf] %v2452_v29  ;;  %62 = vst [vmem:[%s3486_s5 + $0x18] sm:$0xf] %v2452_v29 }
  0xff   :  { %2127 = vst [vmem:[%s3485_s4 + $0x8] sm:$0xff] %v1975_v46   ;;  %v338_v53 = vadd.f32 %v3124_v10, %v337_v52  ;;  %v2228_v54 = vpop.f32.mrb[5].mxu1  ;;  %v2316_v55 = vpop.f32.mrb[6].mxu0  ;;  %63 = vst [vmem:[%s3486_s5 + $0x1c] sm:$0xf] %v2452_v29 }
 0x100   :  { %1971 = vst [vmem:[%s3485_s4] sm:$0xff] %v1970_v49   ;;  %v486_v56 = vmul.f32 0.1, %v346_v50  ;;  %v3144_v57 = vadd.f32 %v2228_v54, %v2227_v51  ;;  %v349_v58 = vadd.f32 %v2316_v55, %v3124_v10  ;;  %v2230_v59 = vpop.f32.mrb[6].mxu1  ;;  %v340_v60 = vpop.f32.mrb[7].mxu0  ;;  %vm454_vm6 = vcmp.gt.f32.partialorder %v346_v50, 0.0 }
 0x101   :  { %v484_v61 = vmul.f32 0.1, %v338_v53  ;;  %v341_v62 = vadd.f32 %v3124_v10, %v340_v60  ;;  %v2231_v63 = vpop.f32.mrb[7].mxu1  ;;  %vm452_vm5 = vcmp.gt.f32.partialorder %v338_v53, 0.0  ;;  %66 = vst [vmem:[%s3486_s5 + $0x28] sm:$0xf] %v2452_v29 }
 0x102   :  { %v1272_v0 = vmax.f32 %v3144_v57, 1.0  ;;  %vm455_vm1 = vcmp.gt.f32.partialorder %v349_v58, 0.0  ;;  %v487_v2 = vmul.f32 0.1, %v349_v58  ;;  %v3149_v5 = vadd.f32 %v2231_v63, %v2230_v59  ;;  %67 = vst [vmem:[%s3486_s5 + $0x2c] sm:$0xf] %v2452_v29 }
 0x103   :  { %vm453_vm15 = vcmp.gt.f32.partialorder %v341_v62, 0.0  ;;  %v485_v3 = vmul.f32 0.1, %v341_v62  ;;  %v518_v6 = vsel %vm454_vm6, %v346_v50, %v486_v56  ;;  %v516_v9 = vsel %vm452_vm5, %v338_v53, %v484_v61  ;;  %68 = vst [vmem:[%s3486_s5 + $0x30] sm:$0xf] %v2452_v29 }
 0x104   :  { %v519_v8 = vsel %vm455_vm1, %v349_v58, %v487_v2  ;;  %1346 = vperm.xlu0 %2360, %v1272_v0   ;;  %v1273_v13 = vmax.f32 %v3149_v5, 1.0  ;;  %69 = vst [vmem:[%s3486_s5 + $0x34] sm:$0xf] %v2452_v29  ;;  %70 = vst [vmem:[%s3486_s5 + $0x38] sm:$0xf] %v2452_v29 }
 0x105   :  { %v1985_v11 = vpack.c.bf16 %v519_v8, %v518_v6  ;;  %v517_v12 = vsel %vm453_vm15, %v341_v62, %v485_v3  ;;  %v2319_v15 = vpop.f32.mrb[8].mxu0  ;;  %71 = vst [vmem:[%s3486_s5 + $0x3c] sm:$0xf] %v2452_v29  ;;  %72 = vst [vmem:[%s3486_s5 + $0x40] sm:$0xf] %v2452_v29 }
 0x106   :  { %v1980_v16 = vpack.c.bf16 %v517_v12, %v516_v9  ;;  %v362_v19 = vadd.f32 %v2319_v15, %v3124_v10  ;;  %v2233_v20 = vpop.f32.mrb[8].mxu1  ;;  %v353_v21 = vpop.f32.mrb[9].mxu0  ;;  %1351 = vperm.xlu1 %2361, %v1273_v13   ;;  %73 = vst [vmem:[%s3486_s5 + $0x44] sm:$0xf] %v2452_v29  ;;  %74 = vst [vmem:[%s3486_s5 + $0x48] sm:$0xf] %v2452_v29 }
 0x107   :  { %2129 = vst [vmem:[%s3485_s4 + $0x18] sm:$0xff] %v1985_v11   ;;  %v354_v23 = vadd.f32 %v3124_v10, %v353_v21  ;;  %v2234_v24 = vpop.f32.mrb[9].mxu1  ;;  %v2320_v1 = vpop.f32.mrb[10].mxu0  ;;  %75 = vst [vmem:[%s3486_s5 + $0x4c] sm:$0xf] %v2452_v29 }
 0x108   :  { %2128 = vst [vmem:[%s3485_s4 + $0x10] sm:$0xff] %v1980_v16   ;;  %v490_v25 = vmul.f32 0.1, %v362_v19  ;;  %v3160_v4 = vadd.f32 %v2234_v24, %v2233_v20  ;;  %v365_v26 = vadd.f32 %v2320_v1, %v3124_v10  ;;  %v2236_v7 = vpop.f32.mrb[10].mxu1  ;;  %v356_v14 = vpop.f32.mrb[11].mxu0  ;;  %vm458_vm12 = vcmp.gt.f32.partialorder %v362_v19, 0.0 }
 0x109   :  { %v488_v17 = vmul.f32 0.1, %v354_v23  ;;  %v357_v18 = vadd.f32 %v3124_v10, %v356_v14  ;;  %v2237_v22 = vpop.f32.mrb[11].mxu1  ;;  %vm456_vm4 = vcmp.gt.f32.partialorder %v354_v23, 0.0  ;;  %76 = vst [vmem:[%s3486_s5 + $0x50] sm:$0xf] %v2452_v29 }
 0x10a   :  { %v1274_v27 = vmax.f32 %v3160_v4, 1.0  ;;  %vm459_vm14 = vcmp.gt.f32.partialorder %v365_v26, 0.0  ;;  %v491_v28 = vmul.f32 0.1, %v365_v26  ;;  %77 = vst [vmem:[%s3486_s5 + $0x54] sm:$0xf] %v2452_v29  ;;  %v3261_v32 = vadd.f32 %v2237_v22, %v2236_v7 }
 0x10b   :  { %78 = vst [vmem:[%s3486_s5 + $0x58] sm:$0xf] %v2452_v29  ;;  %79 = vst [vmem:[%s3486_s5 + $0x5c] sm:$0xf] %v2452_v29  ;;  %vm457_vm0 = vcmp.gt.f32.partialorder %v357_v18, 0.0  ;;  %v522_v33 = vsel %vm458_vm12, %v362_v19, %v490_v25  ;;  %v520_v35 = vsel %vm456_vm4, %v354_v23, %v488_v17 }
 0x10c   :  { %80 = vst [vmem:[%s3486_s5 + $0x60] sm:$0xf] %v2452_v29  ;;  %81 = vst [vmem:[%s3486_s5 + $0x64] sm:$0xf] %v2452_v29  ;;  %v489_v30 = vmul.f32 0.1, %v357_v18  ;;  %v523_v34 = vsel %vm459_vm14, %v365_v26, %v491_v28  ;;  %1356 = vperm.xlu0 %2360, %v1274_v27  }
 0x10d   :  { %82 = vst [vmem:[%s3486_s5 + $0x68] sm:$0xf] %v2452_v29  ;;  %83 = vst [vmem:[%s3486_s5 + $0x6c] sm:$0xf] %v2452_v29  ;;  %v1995_v36 = vpack.c.bf16 %v523_v34, %v522_v33  ;;  %v1275_v38 = vmax.f32 %v3261_v32, 1.0  ;;  %v2323_v40 = vpop.f32.mrb[12].mxu0 }
 0x10e   :  { %84 = vst [vmem:[%s3486_s5 + $0x70] sm:$0xf] %v2452_v29  ;;  %85 = vst [vmem:[%s3486_s5 + $0x74] sm:$0xf] %v2452_v29  ;;  %v521_v37 = vsel %vm457_vm0, %v357_v18, %v489_v30  ;;  %v378_v42 = vadd.f32 %v2323_v40, %v3124_v10  ;;  %v2239_v43 = vpop.f32.mrb[12].mxu1  ;;  %v369_v44 = vpop.f32.mrb[13].mxu0 }
 0x10f   :  { %86 = vst [vmem:[%s3486_s5 + $0x78] sm:$0xf] %v2452_v29  ;;  %87 = vst [vmem:[%s3486_s5 + $0x7c] sm:$0xf] %v2452_v29  ;;  %v1990_v41 = vpack.c.bf16 %v521_v37, %v520_v35  ;;  %1361 = vperm.xlu1 %2361, %v1275_v38   ;;  %v370_v45 = vadd.f32 %v3124_v10, %v369_v44  ;;  %v2240_v46 = vpop.f32.mrb[13].mxu1  ;;  %v2324_v47 = vpop.f32.mrb[14].mxu0 }
 0x110   :  { %2131 = vst [vmem:[%s3485_s4 + $0x28] sm:$0xff] %v1995_v36   ;;  %v494_v48 = vmul.f32 0.1, %v378_v42  ;;  %v3275_v49 = vadd.f32 %v2240_v46, %v2239_v43  ;;  %v381_v50 = vadd.f32 %v2324_v47, %v3124_v10  ;;  %v2242_v51 = vpop.f32.mrb[14].mxu1  ;;  %v372_v52 = vpop.f32.mrb[15].mxu0  ;;  %vm462_vm3 = vcmp.gt.f32.partialorder %v378_v42, 0.0 }
 0x111   :  { %2130 = vst [vmem:[%s3485_s4 + $0x20] sm:$0xff] %v1990_v41   ;;  %v492_v53 = vmul.f32 0.1, %v370_v45  ;;  %v373_v54 = vadd.f32 %v3124_v10, %v372_v52  ;;  %v2243_v55 = vpop.f32.mrb[15].mxu1  ;;  %vm460_vm9 = vcmp.gt.f32.partialorder %v370_v45, 0.0 }
 0x112   :  { %v1276_v56 = vmax.f32 %v3275_v49, 1.0  ;;  %vm463_vm8 = vcmp.gt.f32.partialorder %v381_v50, 0.0  ;;  %v495_v58 = vmul.f32 0.1, %v381_v50  ;;  %v3280_v60 = vadd.f32 %v2243_v55, %v2242_v51 }
 0x113   :  { %vm461_vm11 = vcmp.gt.f32.partialorder %v373_v54, 0.0  ;;  %v493_v59 = vmul.f32 0.1, %v373_v54  ;;  %v526_v61 = vsel %vm462_vm3, %v378_v42, %v494_v48  ;;  %v524_v63 = vsel %vm460_vm9, %v370_v45, %v492_v53 }
 0x114   :  { %v527_v62 = vsel %vm463_vm8, %v381_v50, %v495_v58  ;;  %1366 = vperm.xlu0 %2360, %v1276_v56   ;;  %v1277_v3 = vmax.f32 %v3280_v60, 1.0 }
 0x115   :  { %v2005_v0 = vpack.c.bf16 %v527_v62, %v526_v61  ;;  %v525_v2 = vsel %vm461_vm11, %v373_v54, %v493_v59  ;;  %v2327_v6 = vpop.f32.mrb[16].mxu0 }
 0x116   :  { %v2000_v8 = vpack.c.bf16 %v525_v2, %v524_v63  ;;  %v394_v9 = vadd.f32 %v2327_v6, %v3124_v10  ;;  %v2245_v11 = vpop.f32.mrb[16].mxu1  ;;  %v385_v12 = vpop.f32.mrb[17].mxu0  ;;  %1371 = vperm.xlu1 %2361, %v1277_v3  }
 0x117   :  { %2133 = vst [vmem:[%s3485_s4 + $0x38] sm:$0xff] %v2005_v0   ;;  %v386_v13 = vadd.f32 %v3124_v10, %v385_v12  ;;  %v2246_v15 = vpop.f32.mrb[17].mxu1  ;;  %v2328_v16 = vpop.f32.mrb[18].mxu0 }
 0x118   :  { %2132 = vst [vmem:[%s3485_s4 + $0x30] sm:$0xff] %v2000_v8   ;;  %v498_v19 = vmul.f32 0.1, %v394_v9  ;;  %v3291_v20 = vadd.f32 %v2246_v15, %v2245_v11  ;;  %v397_v21 = vadd.f32 %v2328_v16, %v3124_v10  ;;  %v2248_v23 = vpop.f32.mrb[18].mxu1  ;;  %v388_v24 = vpop.f32.mrb[19].mxu0  ;;  %vm466_vm2 = vcmp.gt.f32.partialorder %v394_v9, 0.0 }
 0x119   :  { %v496_v1 = vmul.f32 0.1, %v386_v13  ;;  %v389_v25 = vadd.f32 %v3124_v10, %v388_v24  ;;  %v2249_v26 = vpop.f32.mrb[19].mxu1  ;;  %vm464_vm7 = vcmp.gt.f32.partialorder %v386_v13, 0.0 }
 0x11a   :  { %v1278_v7 = vmax.f32 %v3291_v20, 1.0  ;;  %vm467_vm13 = vcmp.gt.f32.partialorder %v397_v21, 0.0  ;;  %v499_v14 = vmul.f32 0.1, %v397_v21  ;;  %v3296_v18 = vadd.f32 %v2249_v26, %v2248_v23 }
 0x11b   :  { %vm465_vm10 = vcmp.gt.f32.partialorder %v389_v25, 0.0  ;;  %v497_v17 = vmul.f32 0.1, %v389_v25  ;;  %v530_v22 = vsel %vm466_vm2, %v394_v9, %v498_v19  ;;  %v528_v28 = vsel %vm464_vm7, %v386_v13, %v496_v1 }
 0x11c   :  { %v531_v27 = vsel %vm467_vm13, %v397_v21, %v499_v14  ;;  %1376 = vperm.xlu0 %2360, %v1278_v7   ;;  %v1279_v33 = vmax.f32 %v3296_v18, 1.0 }
 0x11d   :  { %v2015_v29 = vpack.c.bf16 %v531_v27, %v530_v22  ;;  %v529_v30 = vsel %vm465_vm10, %v389_v25, %v497_v17  ;;  %v2331_v34 = vpop.f32.mrb[20].mxu0 }
 0x11e   :  { %v2010_v35 = vpack.c.bf16 %v529_v30, %v528_v28  ;;  %v410_v36 = vadd.f32 %v2331_v34, %v3124_v10  ;;  %v2251_v37 = vpop.f32.mrb[20].mxu1  ;;  %v401_v38 = vpop.f32.mrb[21].mxu0  ;;  %1381 = vperm.xlu1 %2361, %v1279_v33  }
 0x11f   :  { %2135 = vst [vmem:[%s3485_s4 + $0x48] sm:$0xff] %v2015_v29   ;;  %v402_v40 = vadd.f32 %v3124_v10, %v401_v38  ;;  %v2252_v41 = vpop.f32.mrb[21].mxu1  ;;  %v2332_v42 = vpop.f32.mrb[22].mxu0 }
 0x120   :  { %2134 = vst [vmem:[%s3485_s4 + $0x40] sm:$0xff] %v2010_v35   ;;  %v502_v43 = vmul.f32 0.1, %v410_v36  ;;  %v3307_v44 = vadd.f32 %v2252_v41, %v2251_v37  ;;  %v413_v45 = vadd.f32 %v2332_v42, %v3124_v10  ;;  %v2254_v46 = vpop.f32.mrb[22].mxu1  ;;  %v404_v47 = vpop.f32.mrb[23].mxu0  ;;  %vm470_vm6 = vcmp.gt.f32.partialorder %v410_v36, 0.0 }
 0x121   :  { %v500_v48 = vmul.f32 0.1, %v402_v40  ;;  %v405_v50 = vadd.f32 %v3124_v10, %v404_v47  ;;  %v2255_v51 = vpop.f32.mrb[23].mxu1  ;;  %vm468_vm5 = vcmp.gt.f32.partialorder %v402_v40, 0.0 }
 0x122   :  { %v1280_v52 = vmax.f32 %v3307_v44, 1.0  ;;  %vm471_vm1 = vcmp.gt.f32.partialorder %v413_v45, 0.0  ;;  %v503_v53 = vmul.f32 0.1, %v413_v45  ;;  %v3312_v55 = vadd.f32 %v2255_v51, %v2254_v46 }
 0x123   :  { %vm469_vm15 = vcmp.gt.f32.partialorder %v405_v50, 0.0  ;;  %v501_v54 = vmul.f32 0.1, %v405_v50  ;;  %v534_v56 = vsel %vm470_vm6, %v410_v36, %v502_v43  ;;  %v532_v59 = vsel %vm468_vm5, %v402_v40, %v500_v48 }
 0x124   :  { %v535_v58 = vsel %vm471_vm1, %v413_v45, %v503_v53  ;;  %1386 = vperm.xlu0 %2360, %v1280_v52   ;;  %v1281_v63 = vmax.f32 %v3312_v55, 1.0 }
 0x125   :  { %v2025_v61 = vpack.c.bf16 %v535_v58, %v534_v56  ;;  %v533_v62 = vsel %vm469_vm15, %v405_v50, %v501_v54  ;;  %v2335_v0 = vpop.f32.mrb[24].mxu0 }
 0x126   :  { %v2020_v2 = vpack.c.bf16 %v533_v62, %v532_v59  ;;  %v426_v3 = vadd.f32 %v2335_v0, %v3124_v10  ;;  %v2257_v6 = vpop.f32.mrb[24].mxu1  ;;  %v417_v8 = vpop.f32.mrb[25].mxu0  ;;  %1391 = vperm.xlu1 %2361, %v1281_v63  }
 0x127   :  { %2137 = vst [vmem:[%s3485_s4 + $0x58] sm:$0xff] %v2025_v61   ;;  %v418_v9 = vadd.f32 %v3124_v10, %v417_v8  ;;  %v2258_v11 = vpop.f32.mrb[25].mxu1  ;;  %v2336_v12 = vpop.f32.mrb[26].mxu0 }
 0x128   :  { %2136 = vst [vmem:[%s3485_s4 + $0x50] sm:$0xff] %v2020_v2   ;;  %v506_v13 = vmul.f32 0.1, %v426_v3  ;;  %v3323_v15 = vadd.f32 %v2258_v11, %v2257_v6  ;;  %v429_v16 = vadd.f32 %v2336_v12, %v3124_v10  ;;  %v2260_v19 = vpop.f32.mrb[26].mxu1  ;;  %v420_v21 = vpop.f32.mrb[27].mxu0  ;;  %vm474_vm12 = vcmp.gt.f32.partialorder %v426_v3, 0.0 }
 0x129   :  { %v504_v23 = vmul.f32 0.1, %v418_v9  ;;  %v421_v24 = vadd.f32 %v3124_v10, %v420_v21  ;;  %v2261_v1 = vpop.f32.mrb[27].mxu1  ;;  %vm472_vm4 = vcmp.gt.f32.partialorder %v418_v9, 0.0 }
 0x12a   :  { %v1282_v25 = vmax.f32 %v3323_v15, 1.0  ;;  %vm475_vm14 = vcmp.gt.f32.partialorder %v429_v16, 0.0  ;;  %v507_v26 = vmul.f32 0.1, %v429_v16  ;;  %v3328_v14 = vadd.f32 %v2261_v1, %v2260_v19 }
 0x12b   :  { %vm473_vm0 = vcmp.gt.f32.partialorder %v421_v24, 0.0  ;;  %v505_v7 = vmul.f32 0.1, %v421_v24  ;;  %v538_v17 = vsel %vm474_vm12, %v426_v3, %v506_v13  ;;  %v536_v27 = vsel %vm472_vm4, %v418_v9, %v504_v23 }
 0x12c   :  { %v539_v22 = vsel %vm475_vm14, %v429_v16, %v507_v26  ;;  %1396 = vperm.xlu0 %2360, %v1282_v25   ;;  %v1283_v30 = vmax.f32 %v3328_v14, 1.0 }
 0x12d   :  { %v2035_v28 = vpack.c.bf16 %v539_v22, %v538_v17  ;;  %v537_v29 = vsel %vm473_vm0, %v421_v24, %v505_v7  ;;  %v2339_v33 = vpop.f32.mrb[28].mxu0 }
 0x12e   :  { %v2030_v34 = vpack.c.bf16 %v537_v29, %v536_v27  ;;  %v442_v35 = vadd.f32 %v2339_v33, %v3124_v10  ;;  %v2263_v36 = vpop.f32.mrb[28].mxu1  ;;  %v433_v37 = vpop.f32.mrb[29].mxu0  ;;  %1401 = vperm.xlu1 %2361, %v1283_v30  }
 0x12f   :  { %2139 = vst [vmem:[%s3485_s4 + $0x68] sm:$0xff] %v2035_v28   ;;  %v434_v38 = vadd.f32 %v3124_v10, %v433_v37  ;;  %v2264_v40 = vpop.f32.mrb[29].mxu1  ;;  %v2340_v41 = vpop.f32.mrb[30].mxu0 }
 0x130   :  { %2138 = vst [vmem:[%s3485_s4 + $0x60] sm:$0xff] %v2030_v34   ;;  %v510_v42 = vmul.f32 0.1, %v442_v35  ;;  %v3339_v43 = vadd.f32 %v2264_v40, %v2263_v36  ;;  %v445_v45 = vadd.f32 %v2340_v41, %v3124_v10  ;;  %v2266_v46 = vpop.f32.mrb[30].mxu1  ;;  %v436_v47 = vpop.f32.mrb[31].mxu0  ;;  %vm478_vm3 = vcmp.gt.f32.partialorder %v442_v35, 0.0 }
 0x131   :  { %v508_v48 = vmul.f32 0.1, %v434_v38  ;;  %v437_v50 = vadd.f32 %v3124_v10, %v436_v47  ;;  %v2267_v51 = vpop.f32.mrb[31].mxu1  ;;  %vm476_vm9 = vcmp.gt.f32.partialorder %v434_v38, 0.0 }
 0x132   :  { %v1284_v52 = vmax.f32 %v3339_v43, 1.0  ;;  %vm479_vm8 = vcmp.gt.f32.partialorder %v445_v45, 0.0  ;;  %v511_v53 = vmul.f32 0.1, %v445_v45  ;;  %v3344_v56 = vadd.f32 %v2267_v51, %v2266_v46 }
 0x133   :  { %vm477_vm11 = vcmp.gt.f32.partialorder %v437_v50, 0.0  ;;  %v509_v54 = vmul.f32 0.1, %v437_v50  ;;  %v542_v58 = vsel %vm478_vm3, %v442_v35, %v510_v42  ;;  %v540_v61 = vsel %vm476_vm9, %v434_v38, %v508_v48 }
 0x134   :  { %v543_v59 = vsel %vm479_vm8, %v445_v45, %v511_v53  ;;  %1406 = vperm.xlu0 %2360, %v1284_v52   ;;  %v1285_v0 = vmax.f32 %v3344_v56, 1.0 }
 0x135   :  { %v2045_v62 = vpack.c.bf16 %v543_v59, %v542_v58  ;;  %v541_v63 = vsel %vm477_vm11, %v437_v50, %v509_v54  ;;  %v2197_v2 = vpop.f32.mrb[32].mxu0 }
 0x136   :  { %v2040_v10 = vpack.c.bf16 %v541_v63, %v540_v61  ;;  %v2269_v3 = vpop.f32.mrb[32].mxu1  ;;  %v2198_v6 = vpop.f32.mrb[33].mxu0  ;;  %1411 = vperm.xlu1 %2361, %v1285_v0  }
 0x137   :  { %2141 = vst [vmem:[%s3485_s4 + $0x78] sm:$0xff] %v2045_v62   ;;  %v3350_v8 = vadd.f32 %v2198_v6, %v2197_v2  ;;  %v2270_v9 = vpop.f32.mrb[33].mxu1  ;;  %v2200_v11 = vpop.f32.mrb[34].mxu0 }
 0x138   :  { %2140 = vst [vmem:[%s3485_s4 + $0x70] sm:$0xff] %v2040_v10   ;;  %v3355_v12 = vadd.f32 %v2270_v9, %v2269_v3  ;;  %v2272_v13 = vpop.f32.mrb[34].mxu1  ;;  %v2201_v16 = vpop.f32.mrb[35].mxu0 }
 0x139   :  { %v1262_v19 = vmax.f32 %v3350_v8, 1.0  ;;  %v3358_v21 = vadd.f32 %v2201_v16, %v2200_v11  ;;  %v2273_v23 = vpop.f32.mrb[35].mxu1 }
 0x13a   :  { %v3360_v24 = vadd.f32 %v2273_v23, %v2272_v13  ;;  %v1286_v25 = vmax.f32 %v3355_v12, 1.0 }
 0x13b   :  { %1296 = vperm.xlu0 %2360, %v1262_v19   ;;  %v1263_v34 = vmax.f32 %v3358_v21, 1.0 }
 0x13c   :  { %v1287_v1 = vmax.f32 %v3360_v24, 1.0 }
 0x13d   :  { %v2203_v26 = vpop.f32.mrb[36].mxu0 }
 0x13e   :  { %1421 = vperm.xlu1 %2361, %v1287_v1   ;;  %v2204_v7 = vpop.f32.mrb[37].mxu0  ;;  %v2275_v17 = vpop.f32.mrb[36].mxu1 }
 0x13f   :  { %v3364_v22 = vadd.f32 %v2204_v7, %v2203_v26  ;;  %v2206_v27 = vpop.f32.mrb[38].mxu0  ;;  %1416 = vperm.xlu0 %2360, %v1286_v25   ;;  %v2276_v28 = vpop.f32.mrb[37].mxu1 }
 0x140   :  { %v2207_v29 = vpop.f32.mrb[39].mxu0  ;;  %v3366_v30 = vadd.f32 %v2276_v28, %v2275_v17  ;;  %v2278_v33 = vpop.f32.mrb[38].mxu1 }
 0x141   :  { %v1264_v35 = vmax.f32 %v3364_v22, 1.0  ;;  %v3370_v36 = vadd.f32 %v2207_v29, %v2206_v27  ;;  %v2279_v37 = vpop.f32.mrb[39].mxu1 }
 0x142   :  { %v3372_v38 = vadd.f32 %v2279_v37, %v2278_v33  ;;  %v1288_v40 = vmax.f32 %v3366_v30, 1.0 }
 0x143   :  { %1306 = vperm.xlu1 %2361, %v1264_v35   ;;  %1301 = vperm.xlu0 %2360, %v1263_v34   ;;  %v1265_v41 = vmax.f32 %v3370_v36, 1.0 }
 0x144   :  { %v1289_v54 = vmax.f32 %v3372_v38, 1.0 }
 0x145   :  { %v2209_v42 = vpop.f32.mrb[40].mxu0 }
 0x146   :  { %v2210_v45 = vpop.f32.mrb[41].mxu0  ;;  %v2281_v46 = vpop.f32.mrb[40].mxu1 }
 0x147   :  { %v3376_v47 = vadd.f32 %v2210_v45, %v2209_v42  ;;  %v2212_v48 = vpop.f32.mrb[42].mxu0  ;;  %1311 = vperm.xlu1 %2361, %v1265_v41   ;;  %1426 = vperm.xlu0 %2360, %v1288_v40   ;;  %v2282_v50 = vpop.f32.mrb[41].mxu1 }
 0x148   :  { %v2213_v51 = vpop.f32.mrb[43].mxu0  ;;  %v3378_v52 = vadd.f32 %v2282_v50, %v2281_v46  ;;  %v2284_v53 = vpop.f32.mrb[42].mxu1 }
 0x149   :  { %v1266_v58 = vmax.f32 %v3376_v47, 1.0  ;;  %v3382_v59 = vadd.f32 %v2213_v51, %v2212_v48  ;;  %v2285_v61 = vpop.f32.mrb[43].mxu1 }
 0x14a   :  { %v3384_v62 = vadd.f32 %v2285_v61, %v2284_v53  ;;  %v1290_v63 = vmax.f32 %v3378_v52, 1.0 }
 0x14b   :  { %1431 = vperm.xlu1 %2361, %v1289_v54   ;;  %1316 = vperm.xlu0 %2360, %v1266_v58   ;;  %v1267_v0 = vmax.f32 %v3382_v59, 1.0 }
 0x14c   :  { %v1291_v23 = vmax.f32 %v3384_v62, 1.0 }
 0x14d   :  { %v2215_v2 = vpop.f32.mrb[44].mxu0 }
 0x14e   :  { %v2216_v10 = vpop.f32.mrb[45].mxu0  ;;  %v2287_v3 = vpop.f32.mrb[44].mxu1 }
 0x14f   :  { %v3388_v6 = vadd.f32 %v2216_v10, %v2215_v2  ;;  %v2218_v9 = vpop.f32.mrb[46].mxu0  ;;  %1321 = vperm.xlu1 %2361, %v1267_v0   ;;  %1436 = vperm.xlu0 %2360, %v1290_v63   ;;  %v2288_v11 = vpop.f32.mrb[45].mxu1 }
 0x150   :  { %v2219_v13 = vpop.f32.mrb[47].mxu0  ;;  %v3390_v16 = vadd.f32 %v2288_v11, %v2287_v3  ;;  %v2290_v19 = vpop.f32.mrb[46].mxu1 }
 0x151   :  { %v1268_v1 = vmax.f32 %v3388_v6, 1.0  ;;  %v3394_v25 = vadd.f32 %v2219_v13, %v2218_v9  ;;  %v2291_v26 = vpop.f32.mrb[47].mxu1 }
 0x152   :  { %v3396_v7 = vadd.f32 %v2291_v26, %v2290_v19  ;;  %v1292_v17 = vmax.f32 %v3390_v16, 1.0 }
 0x153   :  { %1441 = vperm.xlu1 %2361, %v1291_v23   ;;  %1326 = vperm.xlu0 %2360, %v1268_v1   ;;  %v1269_v27 = vmax.f32 %v3394_v25, 1.0 }
 0x154   :  { %v1293_v28 = vmax.f32 %v3396_v7, 1.0 }
 0x157   :  { %1331 = vperm.xlu1 %2361, %v1269_v27   ;;  %1446 = vperm.xlu0 %2360, %v1292_v17  }
 0x15b   :  { %1451 = vperm.xlu1 %2361, %v1293_v28  }
 0x17b   :  { %v1337_v29 = vpop.permute.xlu0 %1336 }
 0x17c   :  { %2386 = vrcp.f32 %v1337_v29 }
 0x17d   :  { %v1342_v33 = vpop.permute.xlu1 %1341 }
 0x17e   :  { %2388 = vrcp.f32 %v1342_v33 }
 0x183   :  { %v1347_v34 = vpop.permute.xlu0 %1346 }
 0x184   :  { %2390 = vrcp.f32 %v1347_v34 }
 0x185   :  { %v1352_v35 = vpop.permute.xlu1 %1351 }
 0x186   :  { %v2387_v37 = vpop.eup %2386  ;;  %2392 = vrcp.f32 %v1352_v35 }
 0x187   :  { %v1471_v41 = vmul.f32 %v2387_v37, %v3128_v31 }
 0x188   :  { %v2389_v40 = vpop.eup %2388 }
 0x189   :  { %v1473_v42 = vmul.f32 %v2389_v40, %v3132_v39 }
 0x18b   :  { %v2070_v45 = vpack.c.bf16 %v1473_v42, %v1471_v41  ;;  %v1357_v46 = vpop.permute.xlu0 %1356 }
 0x18c   :  { %2394 = vrcp.f32 %v1357_v46 }
 0x18d   :  { %2145 = vst [vmem:[%s3486_s5 + $0x20] sm:$0xff] %v2070_v45  }
 0x18e   :  { %v1362_v48 = vpop.permute.xlu1 %1361  ;;  %v2391_v50 = vpop.eup %2390 }
 0x18f   :  { %2396 = vrcp.f32 %v1362_v48  ;;  %v1475_v53 = vmul.f32 %v2391_v50, %v3144_v57 }
 0x190   :  { %v2393_v51 = vpop.eup %2392 }
 0x191   :  { %v1477_v54 = vmul.f32 %v2393_v51, %v3149_v5 }
 0x193   :  { %v1367_v58 = vpop.permute.xlu0 %1366  ;;  %v2075_v61 = vpack.c.bf16 %v1477_v54, %v1475_v53 }
 0x194   :  { %2398 = vrcp.f32 %v1367_v58 }
 0x195   :  { %2146 = vst [vmem:[%s3486_s5 + $0x28] sm:$0xff] %v2075_v61   ;;  %v1372_v31 = vpop.permute.xlu1 %1371 }
 0x196   :  { %v2395_v39 = vpop.eup %2394  ;;  %2400 = vrcp.f32 %v1372_v31 }
 0x197   :  { %v1479_v0 = vmul.f32 %v2395_v39, %v3160_v4 }
 0x199   :  { %v2397_v63 = vpop.eup %2396 }
 0x19a   :  { %v1481_v2 = vmul.f32 %v2397_v63, %v3261_v32 }
 0x19b   :  { %v1377_v10 = vpop.permute.xlu0 %1376 }
 0x19c   :  { %v2080_v3 = vpack.c.bf16 %v1481_v2, %v1479_v0  ;;  %2402 = vrcp.f32 %v1377_v10 }
 0x19d   :  { %v1382_v57 = vpop.permute.xlu1 %1381 }
 0x19e   :  { %2147 = vst [vmem:[%s3486_s5 + $0x30] sm:$0xff] %v2080_v3   ;;  %v2399_v5 = vpop.eup %2398  ;;  %2404 = vrcp.f32 %v1382_v57 }
 0x19f   :  { %v1483_v11 = vmul.f32 %v2399_v5, %v3275_v49 }
 0x1a0   :  { %v2401_v9 = vpop.eup %2400 }
 0x1a1   :  { %v1485_v13 = vmul.f32 %v2401_v9, %v3280_v60 }
 0x1a3   :  { %v1387_v19 = vpop.permute.xlu0 %1386  ;;  %v2085_v23 = vpack.c.bf16 %v1485_v13, %v1483_v11 }
 0x1a4   :  { %2406 = vrcp.f32 %v1387_v19 }
 0x1a5   :  { %2148 = vst [vmem:[%s3486_s5 + $0x38] sm:$0xff] %v2085_v23   ;;  %v1392_v4 = vpop.permute.xlu1 %1391 }
 0x1a6   :  { %v2403_v32 = vpop.eup %2402  ;;  %2408 = vrcp.f32 %v1392_v4 }
 0x1a7   :  { %v1487_v26 = vmul.f32 %v2403_v32, %v3291_v20 }
 0x1a8   :  { %v2405_v1 = vpop.eup %2404 }
 0x1a9   :  { %v1489_v17 = vmul.f32 %v2405_v1, %v3296_v18 }
 0x1ab   :  { %v1397_v27 = vpop.permute.xlu0 %1396  ;;  %v2090_v28 = vpack.c.bf16 %v1489_v17, %v1487_v26 }
 0x1ac   :  { %2410 = vrcp.f32 %v1397_v27 }
 0x1ad   :  { %2149 = vst [vmem:[%s3486_s5 + $0x40] sm:$0xff] %v2090_v28   ;;  %v1402_v49 = vpop.permute.xlu1 %1401 }
 0x1ae   :  { %v2407_v60 = vpop.eup %2406  ;;  %2412 = vrcp.f32 %v1402_v49 }
 0x1af   :  { %v1491_v33 = vmul.f32 %v2407_v60, %v3307_v44 }
 0x1b0   :  { %v2409_v29 = vpop.eup %2408 }
 0x1b1   :  { %v1493_v34 = vmul.f32 %v2409_v29, %v3312_v55 }
 0x1b3   :  { %v1407_v35 = vpop.permute.xlu0 %1406  ;;  %v2095_v37 = vpack.c.bf16 %v1493_v34, %v1491_v33 }
 0x1b4   :  { %2414 = vrcp.f32 %v1407_v35 }
 0x1b5   :  { %2150 = vst [vmem:[%s3486_s5 + $0x48] sm:$0xff] %v2095_v37   ;;  %v1412_v20 = vpop.permute.xlu1 %1411 }
 0x1b6   :  { %v2411_v18 = vpop.eup %2410  ;;  %2416 = vrcp.f32 %v1412_v20 }
 0x1b7   :  { %v1495_v41 = vmul.f32 %v2411_v18, %v3323_v15 }
 0x1b8   :  { %v2413_v40 = vpop.eup %2412 }
 0x1b9   :  { %v1497_v42 = vmul.f32 %v2413_v40, %v3328_v14 }
 0x1ba   :  { %v1297_v45 = vpop.permute.xlu0 %1296 }
 0x1bb   :  { %v2100_v46 = vpack.c.bf16 %v1497_v42, %v1495_v41 }
 0x1bd   :  { %v1422_v44 = vpop.permute.xlu1 %1421  ;;  %2151 = vst [vmem:[%s3486_s5 + $0x50] sm:$0xff] %v2100_v46  }
 0x1be   :  { %2418 = vrcp.f32 %v1422_v44  ;;  %v1417_v55 = vpop.permute.xlu0 %1416  ;;  %v2415_v48 = vpop.eup %2414 }
 0x1bf   :  { %2420 = vrcp.f32 %v1417_v55  ;;  %v1499_v51 = vmul.f32 %v2415_v48, %v3339_v43 }
 0x1c0   :  { %v2417_v50 = vpop.eup %2416  ;;  %2422 = vrcp.f32 %v1297_v45 }
 0x1c1   :  { %v1501_v53 = vmul.f32 %v2417_v50, %v3344_v56 }
 0x1c2   :  { %v1307_v15 = vpop.permute.xlu1 %1306  ;;  %v1302_v54 = vpop.permute.xlu0 %1301 }
 0x1c3   :  { %v2105_v14 = vpack.c.bf16 %v1501_v53, %v1499_v51  ;;  %2424 = vrcp.f32 %v1302_v54 }
 0x1c4   :  { %2426 = vrcp.f32 %v1307_v15 }
 0x1c5   :  { %2152 = vst [vmem:[%s3486_s5 + $0x58] sm:$0xff] %v2105_v14  }
 0x1c6   :  { %v1312_v58 = vpop.permute.xlu1 %1311  ;;  %v1427_v61 = vpop.permute.xlu0 %1426 }
 0x1c7   :  { %2428 = vrcp.f32 %v1312_v58 }
 0x1c8   :  { %v2419_v31 = vpop.eup %2418  ;;  %2430 = vrcp.f32 %v1427_v61 }
 0x1c9   :  { %v2421_v39 = vpop.eup %2420  ;;  %v1505_v43 = vmul.f32 %v2419_v31, %v3360_v24 }
 0x1ca   :  { %v1503_v56 = vmul.f32 %v2421_v39, %v3355_v12  ;;  %v1432_v63 = vpop.permute.xlu1 %1431  ;;  %v1317_v0 = vpop.permute.xlu0 %1316 }
 0x1cb   :  { %2432 = vrcp.f32 %v1432_v63  ;;  %v2423_v2 = vpop.eup %2422 }
 0x1cc   :  { %v2110_v10 = vpack.c.bf16 %v1505_v43, %v1503_v56  ;;  %2434 = vrcp.f32 %v1317_v0  ;;  %v1455_v11 = vmul.f32 %v2423_v2, %v3350_v8 }
 0x1cd   :  { %v2425_v3 = vpop.eup %2424 }
 0x1ce   :  { %2153 = vst [vmem:[%s3486_s5 + $0x60] sm:$0xff] %v2110_v10   ;;  %v1322_v57 = vpop.permute.xlu1 %1321  ;;  %v1437_v5 = vpop.permute.xlu0 %1436  ;;  %v1457_v24 = vmul.f32 %v2425_v3, %v3358_v21 }
 0x1cf   :  { %v2427_v9 = vpop.eup %2426  ;;  %2436 = vrcp.f32 %v1322_v57 }
 0x1d0   :  { %v2050_v13 = vpack.c.bf16 %v1457_v24, %v1455_v11  ;;  %2438 = vrcp.f32 %v1437_v5  ;;  %v1459_v19 = vmul.f32 %v2427_v9, %v3364_v22 }
 0x1d1   :  { %v2429_v12 = vpop.eup %2428 }
 0x1d2   :  { %v1461_v23 = vmul.f32 %v2429_v12, %v3370_v36  ;;  %v1442_v4 = vpop.permute.xlu1 %1441  ;;  %v1327_v32 = vpop.permute.xlu0 %1326  ;;  %2051 = vst [vmem:[%s3486_s5] sm:$0xff] %v2050_v13  }
 0x1d3   :  { %v2431_v1 = vpop.eup %2430  ;;  %2440 = vrcp.f32 %v1442_v4 }
 0x1d4   :  { %v2055_v26 = vpack.c.bf16 %v1461_v23, %v1459_v19  ;;  %2442 = vrcp.f32 %v1327_v32  ;;  %v1507_v21 = vmul.f32 %v2431_v1, %v3366_v30 }
 0x1d5   :  { %v2433_v8 = vpop.eup %2432 }
 0x1d6   :  { %2142 = vst [vmem:[%s3486_s5 + $0x8] sm:$0xff] %v2055_v26   ;;  %v1509_v22 = vmul.f32 %v2433_v8, %v3372_v38  ;;  %v1332_v36 = vpop.permute.xlu1 %1331  ;;  %v1447_v17 = vpop.permute.xlu0 %1446 }
 0x1d7   :  { %v2435_v27 = vpop.eup %2434  ;;  %2444 = vrcp.f32 %v1332_v36 }
 0x1d8   :  { %v2115_v28 = vpack.c.bf16 %v1509_v22, %v1507_v21  ;;  %2446 = vrcp.f32 %v1447_v17  ;;  %v1463_v60 = vmul.f32 %v2435_v27, %v3376_v47 }
 0x1d9   :  { %v2437_v49 = vpop.eup %2436 }
 0x1da   :  { %2154 = vst [vmem:[%s3486_s5 + $0x68] sm:$0xff] %v2115_v28   ;;  %v1465_v29 = vmul.f32 %v2437_v49, %v3382_v59  ;;  %v1452_v33 = vpop.permute.xlu1 %1451  ;;  %v2439_v34 = vpop.eup %2438 }
 0x1db   :  { %2448 = vrcp.f32 %v1452_v33  ;;  %v1511_v35 = vmul.f32 %v2439_v34, %v3378_v52 }
 0x1dc   :  { %v2060_v30 = vpack.c.bf16 %v1465_v29, %v1463_v60 }
 0x1dd   :  { %v2441_v38 = vpop.eup %2440 }
 0x1de   :  { %2143 = vst [vmem:[%s3486_s5 + $0x10] sm:$0xff] %v2060_v30   ;;  %v1513_v37 = vmul.f32 %v2441_v38, %v3384_v62  ;;  %v2443_v20 = vpop.eup %2442 }
 0x1df   :  { %v1467_v47 = vmul.f32 %v2443_v20, %v3388_v6 }
 0x1e0   :  { %v2120_v18 = vpack.c.bf16 %v1513_v37, %v1511_v35 }
 0x1e1   :  { %v2445_v40 = vpop.eup %2444 }
 0x1e2   :  { %2155 = vst [vmem:[%s3486_s5 + $0x70] sm:$0xff] %v2120_v18   ;;  %v1469_v59 = vmul.f32 %v2445_v40, %v3394_v25  ;;  %v2447_v41 = vpop.eup %2446 }
 0x1e3   :  { %v1515_v52 = vmul.f32 %v2447_v41, %v3390_v16 }
 0x1e4   :  { %v2065_v42 = vpack.c.bf16 %v1469_v59, %v1467_v47 }
 0x1e5   :  { %v2449_v45 = vpop.eup %2448 }
 0x1e6   :  { %2144 = vst [vmem:[%s3486_s5 + $0x18] sm:$0xff] %v2065_v42   ;;  %v1517_v62 = vmul.f32 %v2449_v45, %v3396_v7 }
 0x1e8   :  { %v2125_v46 = vpack.c.bf16 %v1517_v62, %v1515_v52 }
 0x1ea   :  { %2156 = vst [vmem:[%s3486_s5 + $0x78] sm:$0xff] %v2125_v46  }

// kernel: spvblock_forward.7
= control target key start
LH: loop header
LB: loop body
LE: loop exit
PB: predicated region body
PF: predicated region fallthrough
CT: control target
= control target key end

     0   :  { %v1513_v0 = vmov 0.0   ;;  %s2341_s0 = inlined_call_operand.<no memory space> [shape: s32[1], index: 0, kind: input, shape index: {}]   ;;  %s2342_s1 = inlined_call_operand.vmem [shape: bf16[256,128], index: 1, kind: input, shape index: {}]   ;;  %s2343_s2 = inlined_call_operand.vmem [shape: f32[8,128], index: 2, kind: input, shape index: {}]   ;;  %s2344_s3 = inlined_call_operand.vmem [shape: f32[1,128], index: 3, kind: input, shape index: {}]   ;;  %s2345_s4 = inlined_call_operand.vmem [shape: f32[1,128], index: 4, kind: input, shape index: {}]   ;;  %s2346_s5 = inlined_call_operand.vmem [shape: bf16[128,128], index: 5, kind: input, shape index: {}]   ;;  %s2347_s6 = inlined_call_operand.vmem [shape: f32[1,128], index: 6, kind: input, shape index: {}]   ;;  %s2348_s7 = inlined_call_operand.vmem [shape: bf16[256,128], index: 7, kind: output, shape index: {0}]   ;;  %s2349_s8 = inlined_call_operand.vmem [shape: f32[8,128], index: 8, kind: output, shape index: {1}]  }
   0x1   :  { %34 = vst [vmem:[%s2349_s8] sm:$0xff] %v1513_v0  ;;  %p1125_p0 = scmp.le.s32.totalorder %s2341_s0, 0 }
   0x2   :  { %v1501_v1 = vld [vmem:[%s2346_s5] sm:$0xff] (!%p1125_p0)   ;;  %s41_s13 = scvt.s32.f32 (!%p1125_p0), %s2341_s0  ;;  %v1502_v2 = vld [vmem:[%s2346_s5 + $0x8] sm:$0xff] (!%p1125_p0)   ;;  %s1514_s16 = smov (!%p1125_p0), 1.0   ;;  %v1503_v4 = vld [vmem:[%s2346_s5 + $0x10] sm:$0xff] (!%p1125_p0)   ;;  %v116_v10 = vlaneseq (!%p1125_p0) }
   0x3   :  { %40 = sbr.rel (%p1125_p0) target bundleno = 359 (0x167), region = 37  ;;  %1433 = vmatprep.subr.bf16.mxu0 (!%p1125_p0), %v1501_v1  ;;  %1481 = vmatprep.subr.bf16.mxu1 (!%p1125_p0), %v1501_v1  ;;  %v1504_v5 = vld [vmem:[%s2346_s5 + $0x18] sm:$0xff] (!%p1125_p0)   ;;  %v1505_v6 = vld [vmem:[%s2346_s5 + $0x20] sm:$0xff] (!%p1125_p0)   ;;  %v1506_v13 = vld [vmem:[%s2346_s5 + $0x28] sm:$0xff] (!%p1125_p0)  }
   0x4   :  { %s42_s17 = smax.f32 (!%p1125_p0), %s1514_s16, %s41_s13  ;;  %1434 = vmatpush3.bf16.msra.mxu0 (!%p1125_p0), %v1501_v1  ;;  %1489 = vmatpush3.bf16.msra.mxu1 (!%p1125_p0), %v1501_v1  ;;  %v43_v7 = vld [vmem:[%s2343_s2] sm:$0x1] (!%p1125_p0)  ;;  %v47_v8 = vld [vmem:[%s2343_s2 + $0x1] sm:$0x1] (!%p1125_p0)  ;;  %v1595_v15 = vshrl.u32 (!%p1125_p0), %v116_v10, 7  ;;  %v1507_v17 = vld [vmem:[%s2346_s5 + $0x30] sm:$0xff] (!%p1125_p0)  }
   0x5   :  { %v44_v3 = vstv (!%p1125_p0), %s42_s17  ;;  %1435 = vmatprep.subr.bf16.mxu0 (!%p1125_p0), %v1502_v2  ;;  %1482 = vmatprep.subr.bf16.mxu1 (!%p1125_p0), %v1502_v2  ;;  %v1603_v18 = vld [vmem:[%s2342_s1] sm:$0xff] (!%p1125_p0)   ;;  %v1608_v19 = vld [vmem:[%s2342_s1 + $0x8] sm:$0xff] (!%p1125_p0)   ;;  %v1613_v21 = vld [vmem:[%s2342_s1 + $0x10] sm:$0xff] (!%p1125_p0)  }
   0x6   :  { %1509 = vrcp.f32 (!%p1125_p0), %v44_v3  ;;  %v1618_v22 = vld [vmem:[%s2342_s1 + $0x18] sm:$0xff] (!%p1125_p0)   ;;  %v118_v23 = vsub.s32 (!%p1125_p0), 0, %v1595_v15  ;;  %v1624_v24 = vld [vmem:[%s2342_s1 + $0x20] sm:$0xff] (!%p1125_p0)   ;;  %v1237_v25 = vunpack.c.l.bf16 (!%p1125_p0), %v1603_v18  ;;  %v1238_v26 = vunpack.c.h.bf16 (!%p1125_p0), %v1603_v18  ;;  %v1632_v29 = vld [vmem:[%s2342_s1 + $0x28] sm:$0xff] (!%p1125_p0)  }
   0x7   :  { %v1241_v28 = vunpack.c.l.bf16 (!%p1125_p0), %v1608_v19  ;;  %v1637_v30 = vld [vmem:[%s2342_s1 + $0x30] sm:$0xff] (!%p1125_p0)   ;;  %v1508_v31 = vld [vmem:[%s2346_s5 + $0x38] sm:$0xff] (!%p1125_p0)   ;;  %v1242_v32 = vunpack.c.h.bf16 (!%p1125_p0), %v1608_v19  ;;  %v1245_v33 = vunpack.c.l.bf16 (!%p1125_p0), %v1613_v21  ;;  %v1246_v34 = vunpack.c.h.bf16 (!%p1125_p0), %v1613_v21  ;;  %v1652_v37 = vld [vmem:[%s2342_s1 + $0x40] sm:$0xff] (!%p1125_p0)  }
   0x8   :  { %1436 = vmatpush3.bf16.msra.mxu0 (!%p1125_p0), %v1502_v2  ;;  %1490 = vmatpush3.bf16.msra.mxu1 (!%p1125_p0), %v1502_v2  ;;  %v1249_v35 = vunpack.c.l.bf16 (!%p1125_p0), %v1618_v22  ;;  %v1385_v36 = vld [vmem:[%s2342_s1 + $0x38] sm:$0xff] (!%p1125_p0)   ;;  %v1250_v38 = vunpack.c.h.bf16 (!%p1125_p0), %v1618_v22  ;;  %v1253_v39 = vunpack.c.l.bf16 (!%p1125_p0), %v1624_v24  ;;  %v1254_v40 = vunpack.c.h.bf16 (!%p1125_p0), %v1624_v24  ;;  %v1387_v41 = vld [vmem:[%s2342_s1 + $0x48] sm:$0xff] (!%p1125_p0)   ;;  %v1388_v42 = vld [vmem:[%s2342_s1 + $0x50] sm:$0xff] (!%p1125_p0)  }
   0x9   :  { %1437 = vmatprep.subr.bf16.mxu0 (!%p1125_p0), %v1503_v4  ;;  %1483 = vmatprep.subr.bf16.mxu1 (!%p1125_p0), %v1503_v4  ;;  %v1257_v43 = vunpack.c.l.bf16 (!%p1125_p0), %v1632_v29  ;;  %v1258_v44 = vunpack.c.h.bf16 (!%p1125_p0), %v1632_v29  ;;  %v1261_v45 = vunpack.c.l.bf16 (!%p1125_p0), %v1637_v30  ;;  %v1262_v46 = vunpack.c.h.bf16 (!%p1125_p0), %v1637_v30  ;;  %v1389_v47 = vld [vmem:[%s2342_s1 + $0x58] sm:$0xff] (!%p1125_p0)   ;;  %v1673_v48 = vld [vmem:[%s2342_s1 + $0x60] sm:$0xff] (!%p1125_p0)   ;;  %v1683_v53 = vld [vmem:[%s2342_s1 + $0x68] sm:$0xff] (!%p1125_p0)  }
   0xa   :  { %v1265_v50 = vunpack.c.l.bf16 %v1385_v36  ;;  %v1266_v51 = vunpack.c.h.bf16 %v1385_v36  ;;  %v1269_v52 = vunpack.c.l.bf16 %v1652_v37  ;;  %v1688_v54 = vld [vmem:[%s2342_s1 + $0x70] sm:$0xff]   ;;  %v1270_v55 = vunpack.c.h.bf16 %v1652_v37  ;;  %v1694_v59 = vld [vmem:[%s2342_s1 + $0x78] sm:$0xff]  }
   0xb   :  { %v1273_v56 = vunpack.c.l.bf16 %v1387_v41  ;;  %v1274_v57 = vunpack.c.h.bf16 %v1387_v41  ;;  %v1277_v58 = vunpack.c.l.bf16 %v1388_v42  ;;  %v1278_v60 = vunpack.c.h.bf16 %v1388_v42 }
   0xc   :  { %1438 = vmatpush3.bf16.msra.mxu0 %v1503_v4  ;;  %1491 = vmatpush3.bf16.msra.mxu1 %v1503_v4  ;;  %v1281_v61 = vunpack.c.l.bf16 %v1389_v47  ;;  %v1282_v62 = vunpack.c.h.bf16 %v1389_v47  ;;  %v1285_v63 = vunpack.c.l.bf16 %v1673_v48  ;;  %v1286_v0 = vunpack.c.h.bf16 %v1673_v48 }
   0xd   :  { %1439 = vmatprep.subr.bf16.mxu0 %v1504_v5  ;;  %1484 = vmatprep.subr.bf16.mxu1 %v1504_v5  ;;  %v1289_v1 = vunpack.c.l.bf16 %v1683_v53  ;;  %v1290_v2 = vunpack.c.h.bf16 %v1683_v53  ;;  %v1293_v3 = vunpack.c.l.bf16 %v1688_v54 }
  0x10   :  { %v1510_v9 = vpop.eup %1509  ;;  %1440 = vmatpush3.bf16.msra.mxu0 %v1504_v5  ;;  %1492 = vmatpush3.bf16.msra.mxu1 %v1504_v5  ;;  %v1294_v5 = vunpack.c.h.bf16 %v1688_v54 }
  0x11   :  { %v46_v11 = vmul.f32 %v1510_v9, %v43_v7  ;;  %v48_v12 = vmul.f32 %v1510_v9, %v47_v8  ;;  %1441 = vmatprep.subr.bf16.mxu0 %v1505_v6  ;;  %1485 = vmatprep.subr.bf16.mxu1 %v1505_v6  ;;  %v1298_v7 = vunpack.c.h.bf16 %v1694_v59 }
  0x13   :  { %v49_v14 = vmul.f32 %v46_v11, %v46_v11  ;;  %v1677_v49 = vrot.slane %v46_v11, %v118_v23 }
  0x14   :  { %1442 = vmatpush3.bf16.msra.mxu0 %v1505_v6  ;;  %1493 = vmatpush3.bf16.msra.mxu1 %v1505_v6  ;;  %v1297_v6 = vunpack.c.l.bf16 %v1694_v59 }
  0x15   :  { %v50_v16 = vsub.f32 %v48_v12, %v49_v14  ;;  %1443 = vmatprep.subr.bf16.mxu0 %v1506_v13  ;;  %1486 = vmatprep.subr.bf16.mxu1 %v1506_v13  ;;  %v120_v4 = vsub.f32 %v1237_v25, %v1677_v49  ;;  %v121_v8 = vsub.f32 %v1238_v26, %v1677_v49 }
  0x16   :  { %v122_v9 = vsub.f32 %v1241_v28, %v1677_v49  ;;  %v123_v10 = vsub.f32 %v1242_v32, %v1677_v49  ;;  %v124_v11 = vsub.f32 %v1245_v33, %v1677_v49  ;;  %v125_v12 = vsub.f32 %v1246_v34, %v1677_v49 }
  0x17   :  { %v51_v20 = vmax.f32 %v50_v16, 0.0  ;;  %v127_v14 = vsub.f32 %v1250_v38, %v1677_v49  ;;  %v128_v16 = vsub.f32 %v1253_v39, %v1677_v49  ;;  %v130_v18 = vsub.f32 %v1257_v43, %v1677_v49  ;;  %v1762_v39 = vld [vmem:[%s2345_s4] ss:$0 sm:$0xff] }
  0x18   :  { %1444 = vmatpush3.bf16.msra.mxu0 %v1506_v13  ;;  %1494 = vmatpush3.bf16.msra.mxu1 %v1506_v13  ;;  %v126_v13 = vsub.f32 %v1249_v35, %v1677_v49  ;;  %v131_v19 = vsub.f32 %v1258_v44, %v1677_v49  ;;  %v133_v22 = vsub.f32 %v1262_v46, %v1677_v49 }
  0x19   :  { %v152_v27 = vadd.f32 1e-05, %v51_v20  ;;  %1445 = vmatprep.subr.bf16.mxu0 %v1507_v17  ;;  %1487 = vmatprep.subr.bf16.mxu1 %v1507_v17  ;;  %v132_v20 = vsub.f32 %v1261_v45, %v1677_v49  ;;  %v134_v24 = vsub.f32 %v1265_v50, %v1677_v49  ;;  %v1720_v25 = vsub.f32 %v1266_v51, %v1677_v49 }
  0x1a   :  { %v1723_v26 = vsub.f32 %v1269_v52, %v1677_v49  ;;  %v1730_v28 = vsub.f32 %v1270_v55, %v1677_v49  ;;  %v1733_v29 = vsub.f32 %v1273_v56, %v1677_v49  ;;  %v1736_v30 = vsub.f32 %v1274_v57, %v1677_v49 }
  0x1b   :  { %1511 = vrsqrt.f32 %v152_v27  ;;  %v1744_v32 = vsub.f32 %v1277_v58, %v1677_v49  ;;  %v1750_v33 = vsub.f32 %v1281_v61, %v1677_v49  ;;  %v1753_v34 = vsub.f32 %v1282_v62, %v1677_v49 }
  0x1c   :  { %1446 = vmatpush3.bf16.msra.mxu0 %v1507_v17  ;;  %1495 = vmatpush3.bf16.msra.mxu1 %v1507_v17  ;;  %v129_v17 = vsub.f32 %v1254_v40, %v1677_v49  ;;  %v148_v48 = vsub.f32 %v1293_v3, %v1677_v49 }
  0x1d   :  { %1447 = vmatprep.subr.bf16.mxu0 %v1508_v31  ;;  %1488 = vmatprep.subr.bf16.mxu1 %v1508_v31 }
  0x20   :  { %1448 = vmatpush3.bf16.msra.mxu0 %v1508_v31  ;;  %1496 = vmatpush3.bf16.msra.mxu1 %v1508_v31  ;;  %v1741_v31 = vld [vmem:[%s2344_s3] ss:$0 sm:$0xff] }
  0x25   :  { %v1512_v21 = vpop.eup %1511 }
  0x26   :  { %v1727_v27 = vrot.slane %v1512_v21, %v118_v23  ;;  %v1747_v23 = vsub.f32 %v1278_v60, %v1677_v49 }
  0x28   :  { %v158_v35 = vmul.f32 %v1727_v27, %v120_v4  ;;  %v159_v36 = vmul.f32 %v1727_v27, %v121_v8  ;;  %v160_v37 = vmul.f32 %v1727_v27, %v122_v9  ;;  %v161_v38 = vmul.f32 %v1727_v27, %v123_v10 }
  0x29   :  { %v162_v40 = vmul.f32 %v1727_v27, %v124_v11  ;;  %v163_v41 = vmul.f32 %v1727_v27, %v125_v12  ;;  %v164_v42 = vmul.f32 %v1727_v27, %v126_v13  ;;  %v165_v43 = vmul.f32 %v1727_v27, %v127_v14 }
  0x2a   :  { %v197_v44 = vmul.f32 %v1741_v31, %v158_v35  ;;  %v198_v45 = vmul.f32 %v1741_v31, %v159_v36  ;;  %v199_v46 = vmul.f32 %v1741_v31, %v160_v37  ;;  %v200_v47 = vmul.f32 %v1741_v31, %v161_v38 }
  0x2b   :  { %v201_v50 = vmul.f32 %v1741_v31, %v162_v40  ;;  %v202_v51 = vmul.f32 %v1741_v31, %v163_v41  ;;  %v203_v52 = vmul.f32 %v1741_v31, %v164_v42  ;;  %v204_v55 = vmul.f32 %v1741_v31, %v165_v43 }
  0x2c   :  { %v236_v56 = vadd.f32 %v1762_v39, %v197_v44  ;;  %v237_v57 = vadd.f32 %v1762_v39, %v198_v45  ;;  %v238_v58 = vadd.f32 %v1762_v39, %v199_v46  ;;  %v239_v60 = vadd.f32 %v1762_v39, %v200_v47 }
  0x2d   :  { %v240_v61 = vadd.f32 %v1762_v39, %v201_v50  ;;  %v241_v62 = vadd.f32 %v1762_v39, %v202_v51  ;;  %v242_v4 = vadd.f32 %v1762_v39, %v203_v52  ;;  %v144_v8 = vsub.f32 %v1285_v63, %v1677_v49 }
  0x2e   :  { %v268_v9 = vpack.c.bf16 %v237_v57, %v236_v56  ;;  %v269_v10 = vpack.c.bf16 %v239_v60, %v238_v58  ;;  %v166_v11 = vmul.f32 %v1727_v27, %v128_v16  ;;  %v167_v12 = vmul.f32 %v1727_v27, %v129_v17 }
  0x2f   :  { %v270_v13 = vpack.c.bf16 %v241_v62, %v240_v61  ;;  %v243_v14 = vadd.f32 %v1762_v39, %v204_v55  ;;  %v168_v21 = vmul.f32 %v1727_v27, %v130_v18  ;;  %v169_v35 = vmul.f32 %v1727_v27, %v131_v19 }
  0x30   :  { %1449 = vmatprep.mubr.bf16.mxu0 %v268_v9  ;;  %v205_v36 = vmul.f32 %v1741_v31, %v166_v11  ;;  %v206_v37 = vmul.f32 %v1741_v31, %v167_v12  ;;  %v170_v63 = vmul.f32 %v1727_v27, %v132_v20  ;;  %v171_v38 = vmul.f32 %v1727_v27, %v133_v22 }
  0x31   :  { %1450 = vmatmul.mubr.bf16.vlgmr.msra.gmra.mrb[0].mxu0 %v269_v10  ;;  %v207_v16 = vmul.f32 %v1741_v31, %v168_v21  ;;  %v208_v17 = vmul.f32 %v1741_v31, %v169_v35  ;;  %v172_v40 = vmul.f32 %v1727_v27, %v134_v24  ;;  %v145_v18 = vsub.f32 %v1286_v0, %v1677_v49 }
  0x32   :  { %1453 = vmatprep.mubr.bf16.mxu0 %v270_v13  ;;  %v244_v19 = vadd.f32 %v1762_v39, %v205_v36  ;;  %v245_v41 = vadd.f32 %v1762_v39, %v206_v37  ;;  %v209_v20 = vmul.f32 %v1741_v31, %v170_v63  ;;  %v146_v22 = vsub.f32 %v1289_v1, %v1677_v49 }
  0x33   :  { %v210_v42 = vmul.f32 %v1741_v31, %v171_v38  ;;  %v147_v24 = vsub.f32 %v1290_v2, %v1677_v49  ;;  %v149_v0 = vsub.f32 %v1294_v5, %v1677_v49  ;;  %v271_v43 = vpack.c.bf16 %v243_v14, %v242_v4 }
  0x34   :  { %v246_v44 = vadd.f32 %v1762_v39, %v207_v16  ;;  %v173_v1 = vmul.f32 %v1727_v27, %v1720_v25  ;;  %v174_v45 = vmul.f32 %v1727_v27, %v1723_v26  ;;  %v272_v46 = vpack.c.bf16 %v245_v41, %v244_v19 }
  0x35   :  { %v247_v53 = vadd.f32 %v1762_v39, %v208_v17  ;;  %v211_v2 = vmul.f32 %v1741_v31, %v172_v40  ;;  %v175_v3 = vmul.f32 %v1727_v27, %v1730_v28  ;;  %v248_v54 = vadd.f32 %v1762_v39, %v209_v20 }
  0x36   :  { %v213_v5 = vmul.f32 %v1741_v31, %v174_v45  ;;  %v176_v47 = vmul.f32 %v1727_v27, %v1733_v29  ;;  %v177_v25 = vmul.f32 %v1727_v27, %v1736_v30  ;;  %v249_v26 = vadd.f32 %v1762_v39, %v210_v42 }
  0x37   :  { %v214_v50 = vmul.f32 %v1741_v31, %v175_v3  ;;  %v178_v51 = vmul.f32 %v1727_v27, %v1744_v32  ;;  %v179_v28 = vmul.f32 %v1727_v27, %v1747_v23  ;;  %v180_v29 = vmul.f32 %v1727_v27, %v1750_v33 }
  0x38   :  { %v252_v52 = vadd.f32 %v1762_v39, %v213_v5  ;;  %v215_v55 = vmul.f32 %v1741_v31, %v176_v47  ;;  %v216_v56 = vmul.f32 %v1741_v31, %v177_v25  ;;  %v181_v32 = vmul.f32 %v1727_v27, %v1753_v34 }
  0x39   :  { %1454 = vmatmul.mubr.bf16.gmra.mrb[4].mxu0 %v271_v43  ;;  %v253_v30 = vadd.f32 %v1762_v39, %v214_v50  ;;  %v217_v57 = vmul.f32 %v1741_v31, %v178_v51  ;;  %v218_v58 = vmul.f32 %v1741_v31, %v179_v28  ;;  %v219_v61 = vmul.f32 %v1741_v31, %v180_v29 }
  0x3a   :  { %1457 = vmatprep.mubr.bf16.mxu0 %v272_v46  ;;  %v254_v23 = vadd.f32 %v1762_v39, %v215_v55  ;;  %v255_v60 = vadd.f32 %v1762_v39, %v216_v56  ;;  %v182_v62 = vmul.f32 %v1727_v27, %v144_v8  ;;  %v220_v10 = vmul.f32 %v1741_v31, %v181_v32 }
  0x3b   :  { %v276_v33 = vpack.c.bf16 %v253_v30, %v252_v52  ;;  %v256_v4 = vadd.f32 %v1762_v39, %v217_v57  ;;  %v257_v9 = vadd.f32 %v1762_v39, %v218_v58  ;;  %v212_v11 = vmul.f32 %v1741_v31, %v173_v1 }
  0x3c   :  { %v277_v12 = vpack.c.bf16 %v255_v60, %v254_v23  ;;  %v183_v34 = vmul.f32 %v1727_v27, %v145_v18  ;;  %v221_v13 = vmul.f32 %v1741_v31, %v182_v62  ;;  %v273_v14 = vpack.c.bf16 %v247_v53, %v246_v44 }
  0x3d   :  { %v274_v21 = vpack.c.bf16 %v249_v26, %v248_v54  ;;  %1465 = vmatprep.mubr.bf16.mxu1 %v276_v33  ;;  %v278_v35 = vpack.c.bf16 %v257_v9, %v256_v4  ;;  %v258_v8 = vadd.f32 %v1762_v39, %v219_v61  ;;  %v259_v36 = vadd.f32 %v1762_v39, %v220_v10 }
  0x3e   :  { %1466 = vmatmul.mubr.bf16.vlgmr.msra.gmra.mrb[0].mxu1 %v277_v12  ;;  %v222_v37 = vmul.f32 %v1741_v31, %v183_v34  ;;  %v184_v63 = vmul.f32 %v1727_v27, %v146_v22  ;;  %v185_v38 = vmul.f32 %v1727_v27, %v147_v24  ;;  %v260_v16 = vadd.f32 %v1762_v39, %v221_v13 }
  0x3f   :  { %1469 = vmatprep.mubr.bf16.mxu1 %v278_v35  ;;  %v186_v17 = vmul.f32 %v1727_v27, %v148_v48  ;;  %v187_v40 = vmul.f32 %v1727_v27, %v149_v0  ;;  %v250_v19 = vadd.f32 %v1762_v39, %v211_v2  ;;  %v251_v41 = vadd.f32 %v1762_v39, %v212_v11 }
  0x40   :  { %v261_v18 = vadd.f32 %v1762_v39, %v222_v37  ;;  %v150_v20 = vsub.f32 %v1297_v6, %v1677_v49  ;;  %v279_v22 = vpack.c.bf16 %v259_v36, %v258_v8  ;;  %v223_v42 = vmul.f32 %v1741_v31, %v184_v63 }
  0x41   :  { %1458 = vmatmul.mubr.bf16.gmra.mrb[8].mxu0 %v273_v14  ;;  %v224_v24 = vmul.f32 %v1741_v31, %v185_v38  ;;  %v151_v48 = vsub.f32 %v1298_v7, %v1677_v49  ;;  %v225_v43 = vmul.f32 %v1741_v31, %v186_v17  ;;  %v226_v44 = vmul.f32 %v1741_v31, %v187_v40 }
  0x42   :  { %1461 = vmatprep.mubr.bf16.mxu0 %v274_v21  ;;  %v280_v0 = vpack.c.bf16 %v261_v18, %v260_v16  ;;  %v275_v1 = vpack.c.bf16 %v251_v41, %v250_v19  ;;  %v262_v45 = vadd.f32 %v1762_v39, %v223_v42  ;;  %v188_v46 = vmul.f32 %v1727_v27, %v150_v20  ;;  %v1981_v19 = vld [vmem:[%s2347_s6] ss:$0 sm:$0xff] }
  0x43   :  { %v263_v6 = vadd.f32 %v1762_v39, %v224_v24  ;;  %v189_v53 = vmul.f32 %v1727_v27, %v151_v48  ;;  %v264_v2 = vadd.f32 %v1762_v39, %v225_v43  ;;  %v265_v49 = vadd.f32 %v1762_v39, %v226_v44 }
  0x44   :  { %v227_v7 = vmul.f32 %v1741_v31, %v188_v46  ;;  %v775_v27 = vadd.s32 16, %v1595_v15  ;;  %v1891_v26 = vstv %s2341_s0  ;;  %v774_v50 = vadd.s32 8, %v1595_v15 }
  0x45   :  { %v281_v59 = vpack.c.bf16 %v263_v6, %v262_v45  ;;  %v228_v3 = vmul.f32 %v1741_v31, %v189_v53  ;;  %v282_v54 = vpack.c.bf16 %v265_v49, %v264_v2  ;;  %v776_v31 = vadd.s32 24, %v1595_v15 }
  0x46   :  { %1470 = vmatmul.mubr.bf16.gmra.mrb[4].mxu1 %v279_v22  ;;  %v266_v5 = vadd.f32 %v1762_v39, %v227_v7  ;;  %vm841_vm0 = vcmp.lt.s32.totalorder %v775_v27, %v1891_v26  ;;  %v779_v51 = vadd.s32 48, %v1595_v15  ;;  %v780_v28 = vadd.s32 56, %v1595_v15 }
  0x47   :  { %1473 = vmatprep.mubr.bf16.mxu1 %v280_v0  ;;  %v267_v47 = vadd.f32 %v1762_v39, %v228_v3  ;;  %v777_v39 = vadd.s32 32, %v1595_v15  ;;  %v778_v52 = vadd.s32 40, %v1595_v15  ;;  %vm839_vm1 = vcmp.lt.s32.totalorder %v1595_v15, %v1891_v26 }
  0x48   :  { %v783_v55 = vadd.s32 80, %v1595_v15  ;;  %v1515_v56 = vmov 0.0   ;;  %vm842_vm2 = vcmp.lt.s32.totalorder %v776_v31, %v1891_v26  ;;  %vm840_vm3 = vcmp.lt.s32.totalorder %v774_v50, %v1891_v26 }
  0x49   :  { %1462 = vmatmul.mubr.bf16.gmra.mrb[12].mxu0 %v275_v1  ;;  %v283_v25 = vpack.c.bf16 %v267_v47, %v266_v5  ;;  %v1904_v29 = vsel %vm841_vm0, 1.0, %v1515_v56  ;;  %vm845_vm4 = vcmp.lt.s32.totalorder %v779_v51, %v1891_v26  ;;  %vm843_vm5 = vcmp.lt.s32.totalorder %v777_v39, %v1891_v26 }
  0x4a   :  { %vm846_vm6 = vcmp.lt.s32.totalorder %v780_v28, %v1891_v26  ;;  %v781_v30 = vadd.s32 64, %v1595_v15  ;;  %v1913_v57 = vsel %vm839_vm1, 1.0, %v1515_v56  ;;  %vm844_vm7 = vcmp.lt.s32.totalorder %v778_v52, %v1891_v26 }
  0x4b   :  { %v784_v58 = vadd.s32 88, %v1595_v15  ;;  %v782_v32 = vadd.s32 72, %v1595_v15  ;;  %v1919_v23 = vsel %vm842_vm2, 1.0, %v1515_v56  ;;  %v1922_v60 = vsel %vm840_vm3, 1.0, %v1515_v56 }
  0x4c   :  { %vm849_vm8 = vcmp.lt.s32.totalorder %v783_v55, %v1891_v26  ;;  %v787_v61 = vadd.s32 112, %v1595_v15  ;;  %v1927_v62 = vsel %vm845_vm4, 1.0, %v1515_v56  ;;  %v1930_v33 = vsel %vm843_vm5, 1.0, %v1515_v56 }
  0x4d   :  { %v1933_v4 = vsel %vm846_vm6, 1.0, %v1515_v56  ;;  %v785_v9 = vadd.s32 96, %v1595_v15  ;;  %v1937_v10 = vsel %vm844_vm7, 1.0, %v1515_v56  ;;  %vm847_vm9 = vcmp.lt.s32.totalorder %v781_v30, %v1891_v26 }
  0x4e   :  { %1474 = vmatmul.mubr.bf16.gmra.mrb[8].mxu1 %v281_v59  ;;  %v791_v11 = vadd.s32 144, %v1595_v15  ;;  %v788_v12 = vadd.s32 120, %v1595_v15  ;;  %v1943_v34 = vsel %vm849_vm8, 1.0, %v1515_v56  ;;  %vm850_vm10 = vcmp.lt.s32.totalorder %v784_v58, %v1891_v26 }
  0x4f   :  { %1477 = vmatprep.mubr.bf16.mxu1 %v282_v54  ;;  %vm848_vm11 = vcmp.lt.s32.totalorder %v782_v32, %v1891_v26  ;;  %v789_v13 = vadd.s32 128, %v1595_v15  ;;  %vm853_vm12 = vcmp.lt.s32.totalorder %v787_v61, %v1891_v26  ;;  %v786_v14 = vadd.s32 104, %v1595_v15 }
  0x50   :  { %v792_v21 = vadd.s32 152, %v1595_v15  ;;  %v790_v35 = vadd.s32 136, %v1595_v15  ;;  %v1953_v8 = vsel %vm847_vm9, 1.0, %v1515_v56  ;;  %vm851_vm13 = vcmp.lt.s32.totalorder %v785_v9, %v1891_v26 }
  0x51   :  { %v795_v36 = vadd.s32 176, %v1595_v15  ;;  %v793_v37 = vadd.s32 160, %v1595_v15  ;;  %vm857_vm14 = vcmp.lt.s32.totalorder %v791_v11, %v1891_v26  ;;  %vm854_vm15 = vcmp.lt.s32.totalorder %v788_v12, %v1891_v26 }
  0x52   :  { %v796_v63 = vadd.s32 184, %v1595_v15  ;;  %v794_v38 = vadd.s32 168, %v1595_v15  ;;  %v1963_v16 = vsel %vm850_vm10, 1.0, %v1515_v56  ;;  %v1966_v17 = vsel %vm848_vm11, 1.0, %v1515_v56 }
  0x53   :  { %v1969_v40 = vsel %vm853_vm12, 1.0, %v1515_v56  ;;  %vm855_vm0 = vcmp.lt.s32.totalorder %v789_v13, %v1891_v26  ;;  %v1973_v18 = vsel %vm851_vm13, 1.0, %v1515_v56  ;;  %vm852_vm1 = vcmp.lt.s32.totalorder %v786_v14, %v1891_v26 }
  0x54   :  { %vm858_vm2 = vcmp.lt.s32.totalorder %v792_v21, %v1891_v26  ;;  %vm856_vm3 = vcmp.lt.s32.totalorder %v790_v35, %v1891_v26  ;;  %v1984_v41 = vsel %vm857_vm14, 1.0, %v1515_v56  ;;  %v1987_v20 = vsel %vm854_vm15, 1.0, %v1515_v56 }
  0x55   :  { %vm861_vm4 = vcmp.lt.s32.totalorder %v795_v36, %v1891_v26  ;;  %vm859_vm5 = vcmp.lt.s32.totalorder %v793_v37, %v1891_v26  ;;  %v1992_v22 = vsel %vm855_vm0, 1.0, %v1515_v56  ;;  %vm862_vm6 = vcmp.lt.s32.totalorder %v796_v63, %v1891_v26 }
  0x56   :  { %1478 = vmatmul.mubr.bf16.gmra.mrb[12].mxu1 %v283_v25  ;;  %vm860_vm7 = vcmp.lt.s32.totalorder %v794_v38, %v1891_v26  ;;  %v799_v42 = vadd.s32 208, %v1595_v15  ;;  %v1998_v48 = vsel %vm852_vm1, 1.0, %v1515_v56  ;;  %v2001_v0 = vsel %vm858_vm2, 1.0, %v1515_v56 }
  0x57   :  { %v2004_v43 = vsel %vm856_vm3, 1.0, %v1515_v56  ;;  %v797_v44 = vadd.s32 192, %v1595_v15  ;;  %v2009_v6 = vsel %vm861_vm4, 1.0, %v1515_v56  ;;  %v2012_v46 = vsel %vm859_vm5, 1.0, %v1515_v56 }
  0x58   :  { %v800_v53 = vadd.s32 216, %v1595_v15  ;;  %v2017_v59 = vsel %vm862_vm6, 1.0, %v1515_v56  ;;  %v2020_v7 = vsel %vm860_vm7, 1.0, %v1515_v56  ;;  %v798_v3 = vadd.s32 200, %v1595_v15 }
  0x59   :  { %vm865_vm9 = vcmp.lt.s32.totalorder %v799_v42, %v1891_v26  ;;  %vm863_vm11 = vcmp.lt.s32.totalorder %v797_v44, %v1891_v26 }
  0x5a   :  { %vm866_vm13 = vcmp.lt.s32.totalorder %v800_v53, %v1891_v26  ;;  %vm864_vm15 = vcmp.lt.s32.totalorder %v798_v3, %v1891_v26  ;;  %v2031_v55 = vsel %vm865_vm9, 1.0, %v1515_v56  ;;  %v2034_v30 = vsel %vm863_vm11, 1.0, %v1515_v56 }
  0x5b   :  { %v2038_v11 = vsel %vm866_vm13, 1.0, %v1515_v56  ;;  %v2050_v37 = vsel %vm864_vm15, 1.0, %v1515_v56 }
 0x104   :  { %v1451_v24 = vpop.f32.mrb[0].mxu0 }
 0x105   :  { %v398_v1 = vadd.f32 %v1451_v24, %v1981_v19  ;;  %v389_v45 = vpop.f32.mrb[1].mxu0 }
 0x106   :  { %v390_v2 = vadd.f32 %v1981_v19, %v389_v45  ;;  %v1452_v49 = vpop.f32.mrb[2].mxu0 }
 0x107   :  { %vm518_vm8 = vcmp.gt.f32.partialorder %v398_v1, 0.0  ;;  %v550_v54 = vmul.f32 0.1, %v398_v1  ;;  %v401_v5 = vadd.f32 %v1452_v49, %v1981_v19  ;;  %v392_v47 = vpop.f32.mrb[3].mxu0 }
 0x108   :  { %vm516_vm10 = vcmp.gt.f32.partialorder %v390_v2, 0.0  ;;  %v548_v25 = vmul.f32 0.1, %v390_v2  ;;  %v393_v27 = vadd.f32 %v1981_v19, %v392_v47 }
 0x109   :  { %v582_v31 = vsel %vm518_vm8, %v398_v1, %v550_v54  ;;  %vm519_vm12 = vcmp.gt.f32.partialorder %v401_v5, 0.0  ;;  %v551_v50 = vmul.f32 0.1, %v401_v5 }
 0x10a   :  { %v580_v51 = vsel %vm516_vm10, %v390_v2, %v548_v25  ;;  %vm517_vm14 = vcmp.gt.f32.partialorder %v393_v27, 0.0  ;;  %v549_v39 = vmul.f32 0.1, %v393_v27  ;;  %v937_v58 = vmul.f32 %v1904_v29, %v582_v31 }
 0x10b   :  { %v935_v28 = vmul.f32 %v1913_v57, %v580_v51  ;;  %v583_v52 = vsel %vm519_vm12, %v401_v5, %v551_v50 }
 0x10c   :  { %v1307_v32 = vpack.c.bf16 %v583_v52, %v582_v31  ;;  %v581_v61 = vsel %vm517_vm14, %v393_v27, %v549_v39  ;;  %v1455_v9 = vpop.f32.mrb[4].mxu0  ;;  %v938_v12 = vmul.f32 %v1919_v23, %v583_v52  ;;  %v2053_v23 = vadd.s32 240, %v1595_v15 }
 0x10d   :  { %v1302_v13 = vpack.c.bf16 %v581_v61, %v580_v51  ;;  %v936_v57 = vmul.f32 %v1922_v60, %v581_v61  ;;  %v414_v14 = vadd.f32 %v1455_v9, %v1981_v19  ;;  %v405_v21 = vpop.f32.mrb[5].mxu0  ;;  %v1004_v35 = vmul.f32 %v935_v28, %v580_v51 }
 0x10e   :  { %1394 = vst [vmem:[%s2348_s7 + $0x8] sm:$0xff] %v1307_v32   ;;  %v406_v29 = vadd.f32 %v1981_v19, %v405_v21  ;;  %v1456_v36 = vpop.f32.mrb[6].mxu0  ;;  %v1006_v45 = vmul.f32 %v937_v58, %v582_v31  ;;  %v1007_v53 = vmul.f32 %v938_v12, %v583_v52 }
 0x10f   :  { %1303 = vst [vmem:[%s2348_s7] sm:$0xff] %v1302_v13   ;;  %v967_v60 = vadd.f32 %v936_v57, %v935_v28  ;;  %v1005_v63 = vmul.f32 %v936_v57, %v581_v61  ;;  %vm522_vm0 = vcmp.gt.f32.partialorder %v414_v14, 0.0  ;;  %v554_v38 = vmul.f32 0.1, %v414_v14  ;;  %v408_v42 = vpop.f32.mrb[7].mxu0 }
 0x110   :  { %vm520_vm1 = vcmp.gt.f32.partialorder %v406_v29, 0.0  ;;  %v552_v24 = vmul.f32 0.1, %v406_v29  ;;  %v417_v44 = vadd.f32 %v1456_v36, %v1981_v19  ;;  %v409_v1 = vadd.f32 %v1981_v19, %v408_v42 }
 0x111   :  { %v968_v2 = vadd.f32 %v967_v60, %v937_v58  ;;  %v1036_v49 = vadd.f32 %v1005_v63, %v1004_v35  ;;  %v1467_v3 = vpop.f32.mrb[0].mxu1  ;;  %v586_v54 = vsel %vm522_vm0, %v414_v14, %v554_v38  ;;  %v2068_v58 = vadd.s32 224, %v1595_v15 }
 0x112   :  { %v584_v5 = vsel %vm520_vm1, %v406_v29, %v552_v24  ;;  %vm523_vm2 = vcmp.gt.f32.partialorder %v417_v44, 0.0  ;;  %v555_v47 = vmul.f32 0.1, %v417_v44  ;;  %v2060_v25 = vpop.f32.mrb[1].mxu1  ;;  %vm521_vm3 = vcmp.gt.f32.partialorder %v409_v1, 0.0 }
 0x113   :  { %v1037_v27 = vadd.f32 %v1036_v49, %v1006_v45  ;;  %v939_v50 = vmul.f32 %v1930_v33, %v584_v5  ;;  %v969_v51 = vadd.f32 %v968_v2, %v938_v12  ;;  %v2063_v39 = vpop.f32.mrb[2].mxu1  ;;  %v553_v32 = vmul.f32 0.1, %v409_v1 }
 0x114   :  { %v587_v28 = vsel %vm523_vm2, %v417_v44, %v555_v47  ;;  %v1459_v31 = vpop.f32.mrb[8].mxu0  ;;  %v2065_v52 = vpop.f32.mrb[3].mxu1  ;;  %v2071_v61 = vadd.s32 248, %v1595_v15  ;;  %v941_v12 = vmul.f32 %v1927_v62, %v586_v54  ;;  %v462_v47 = vadd.f32 %v1467_v3, %v1981_v19 }
 0x115   :  { %v970_v9 = vadd.f32 %v969_v51, %v939_v50  ;;  %v1008_v13 = vmul.f32 %v939_v50, %v584_v5  ;;  %v1038_v57 = vadd.f32 %v1037_v27, %v1007_v53  ;;  %v1317_v14 = vpack.c.bf16 %v587_v28, %v586_v54  ;;  %v421_v33 = vpop.f32.mrb[9].mxu0 }
 0x116   :  { %v585_v21 = vsel %vm521_vm3, %v409_v1, %v553_v32  ;;  %v430_v35 = vadd.f32 %v1459_v31, %v1981_v19  ;;  %v422_v29 = vadd.f32 %v1981_v19, %v421_v33  ;;  %v1460_v36 = vpop.f32.mrb[10].mxu0  ;;  %v942_v44 = vmul.f32 %v1933_v4, %v587_v28 }
 0x117   :  { %v1039_v60 = vadd.f32 %v1038_v57, %v1008_v13  ;;  %1396 = vst [vmem:[%s2348_s7 + $0x18] sm:$0xff] %v1317_v14   ;;  %v1312_v63 = vpack.c.bf16 %v585_v21, %v584_v5  ;;  %v940_v38 = vmul.f32 %v1937_v10, %v585_v21  ;;  %v433_v42 = vadd.f32 %v1460_v36, %v1981_v19  ;;  %v424_v24 = vpop.f32.mrb[11].mxu0 }
 0x118   :  { %vm526_vm4 = vcmp.gt.f32.partialorder %v430_v35, 0.0  ;;  %v558_v62 = vmul.f32 0.1, %v430_v35  ;;  %vm524_vm5 = vcmp.gt.f32.partialorder %v422_v29, 0.0  ;;  %v556_v53 = vmul.f32 0.1, %v422_v29 }
 0x119   :  { %1395 = vst [vmem:[%s2348_s7 + $0x10] sm:$0xff] %v1312_v63   ;;  %v971_v1 = vadd.f32 %v970_v9, %v940_v38  ;;  %v1009_v45 = vmul.f32 %v940_v38, %v585_v21  ;;  %vm527_vm6 = vcmp.gt.f32.partialorder %v433_v42, 0.0  ;;  %v2085_v2 = vpop.f32.mrb[4].mxu1  ;;  %v1010_v49 = vmul.f32 %v941_v12, %v586_v54 }
 0x11a   :  { %v559_v10 = vmul.f32 0.1, %v433_v42  ;;  %v425_v5 = vadd.f32 %v1981_v19, %v424_v24  ;;  %v2089_v4 = vpop.f32.mrb[5].mxu1  ;;  %v590_v51 = vsel %vm526_vm4, %v430_v35, %v558_v62  ;;  %v588_v32 = vsel %vm524_vm5, %v422_v29, %v556_v53 }
 0x11b   :  { %v972_v27 = vadd.f32 %v971_v1, %v941_v12  ;;  %v1040_v50 = vadd.f32 %v1039_v60, %v1009_v45  ;;  %v2092_v31 = vpop.f32.mrb[6].mxu1  ;;  %v943_v9 = vmul.f32 %v1953_v8, %v588_v32  ;;  %v1011_v33 = vmul.f32 %v942_v44, %v587_v28 }
 0x11c   :  { %v591_v13 = vsel %vm527_vm6, %v433_v42, %v559_v10  ;;  %vm525_vm7 = vcmp.gt.f32.partialorder %v425_v5, 0.0  ;;  %v557_v57 = vmul.f32 0.1, %v425_v5  ;;  %v1463_v54 = vpop.f32.mrb[12].mxu0  ;;  %v2095_v14 = vpop.f32.mrb[7].mxu1  ;;  %v945_v12 = vmul.f32 %v1943_v34, %v590_v51 }
 0x11d   :  { %v1041_v21 = vadd.f32 %v1040_v50, %v1010_v49  ;;  %v973_v3 = vadd.f32 %v972_v27, %v942_v44  ;;  %v1327_v36 = vpack.c.bf16 %v591_v13, %v590_v51  ;;  %v437_v63 = vpop.f32.mrb[13].mxu0  ;;  %v1012_v60 = vmul.f32 %v943_v9, %v588_v32 }
 0x11e   :  { %v589_v35 = vsel %vm525_vm7, %v425_v5, %v557_v57  ;;  %v446_v29 = vadd.f32 %v1463_v54, %v1981_v19  ;;  %v1464_v38 = vpop.f32.mrb[14].mxu0  ;;  %v946_v44 = vmul.f32 %v1963_v16, %v591_v13  ;;  %v438_v34 = vadd.f32 %v1981_v19, %v437_v63 }
 0x11f   :  { %v974_v24 = vadd.f32 %v973_v3, %v943_v9  ;;  %v1042_v8 = vadd.f32 %v1041_v21, %v1011_v33  ;;  %1398 = vst [vmem:[%s2348_s7 + $0x28] sm:$0xff] %v1327_v36   ;;  %v1322_v42 = vpack.c.bf16 %v589_v35, %v588_v32  ;;  %v944_v28 = vmul.f32 %v1966_v17, %v589_v35  ;;  %v440_v62 = vpop.f32.mrb[15].mxu0 }
 0x120   :  { %vm530_vm8 = vcmp.gt.f32.partialorder %v446_v29, 0.0  ;;  %v2106_v1 = vadd.s32 232, %v1595_v15  ;;  %v562_v10 = vmul.f32 0.1, %v446_v29  ;;  %vm528_vm9 = vcmp.gt.f32.partialorder %v438_v34, 0.0 }
 0x121   :  { %v1043_v45 = vadd.f32 %v1042_v8, %v1012_v60  ;;  %1397 = vst [vmem:[%s2348_s7 + $0x20] sm:$0xff] %v1322_v42   ;;  %v975_v53 = vadd.f32 %v974_v24, %v944_v28  ;;  %v1013_v49 = vmul.f32 %v944_v28, %v589_v35  ;;  %v2111_v5 = vpop.f32.mrb[8].mxu1  ;;  %v560_v17 = vmul.f32 0.1, %v438_v34 }
 0x122   :  { %v566_v27 = vmul.f32 0.1, %v462_v47  ;;  %v449_v16 = vadd.f32 %v1464_v38, %v1981_v19  ;;  %v2114_v50 = vpop.f32.mrb[9].mxu1  ;;  %v1014_v32 = vmul.f32 %v945_v12, %v590_v51  ;;  %vm534_vm10 = vcmp.gt.f32.partialorder %v462_v47, 0.0 }
 0x123   :  { %v976_v9 = vadd.f32 %v975_v53, %v945_v12  ;;  %v1044_v57 = vadd.f32 %v1043_v45, %v1013_v49  ;;  %v2116_v54 = vpop.f32.mrb[10].mxu1  ;;  %v1015_v33 = vmul.f32 %v946_v44, %v591_v13  ;;  %v592_v21 = vsel %vm528_vm9, %v438_v34, %v560_v17 }
 0x124   :  { %vm531_vm11 = vcmp.gt.f32.partialorder %v449_v16, 0.0  ;;  %v563_v3 = vmul.f32 0.1, %v449_v16  ;;  %v2118_v36 = vpop.f32.mrb[11].mxu1  ;;  %v594_v60 = vsel %vm530_vm8, %v446_v29, %v562_v10  ;;  %v947_v35 = vmul.f32 %v1973_v18, %v592_v21 }
 0x125   :  { %v1045_v63 = vadd.f32 %v1044_v57, %v1014_v32  ;;  %v977_v38 = vadd.f32 %v976_v9, %v946_v44  ;;  %v598_v24 = vsel %vm534_vm10, %v462_v47, %v566_v27  ;;  %v454_v51 = vadd.f32 %v1981_v19, %v2060_v25 }
 0x126   :  { %v595_v8 = vsel %vm531_vm11, %v449_v16, %v563_v3  ;;  %v441_v12 = vadd.f32 %v1981_v19, %v440_v62  ;;  %v1016_v13 = vmul.f32 %v947_v35, %v592_v21  ;;  %vm867_vm14 = vcmp.lt.s32.totalorder %v2068_v58, %v1891_v26 }
 0x127   :  { %v978_v42 = vadd.f32 %v977_v38, %v947_v35  ;;  %v1046_v28 = vadd.f32 %v1045_v63, %v1015_v33  ;;  %v1337_v34 = vpack.c.bf16 %v595_v8, %v594_v60  ;;  %vm532_vm12 = vcmp.gt.f32.partialorder %v454_v51, 0.0 }
 0x128   :  { %v564_v45 = vmul.f32 0.1, %v454_v51  ;;  %vm529_vm13 = vcmp.gt.f32.partialorder %v441_v12, 0.0  ;;  %v561_v18 = vmul.f32 0.1, %v441_v12  ;;  %v465_v25 = vadd.f32 %v2063_v39, %v1981_v19 }
 0x129   :  { %v1047_v29 = vadd.f32 %v1046_v28, %v1016_v13  ;;  %1400 = vst [vmem:[%s2348_s7 + $0x38] sm:$0xff] %v1337_v34   ;;  %v457_v47 = vadd.f32 %v1981_v19, %v2065_v52  ;;  %v2134_v62 = vpop.f32.mrb[12].mxu1  ;;  %v949_v44 = vmul.f32 %v1969_v40, %v594_v60  ;;  %v953_v53 = vmul.f32 %v1984_v41, %v598_v24 }
 0x12a   :  { %v596_v49 = vsel %vm532_vm12, %v454_v51, %v564_v45  ;;  %v478_v10 = vadd.f32 %v2085_v2, %v1981_v19  ;;  %v2140_v17 = vpop.f32.mrb[13].mxu1  ;;  %v593_v27 = vsel %vm529_vm13, %v441_v12, %v561_v18  ;;  %vm535_vm15 = vcmp.gt.f32.partialorder %v465_v25, 0.0 }
 0x12b   :  { %v567_v16 = vmul.f32 0.1, %v465_v25  ;;  %v470_v39 = vadd.f32 %v1981_v19, %v2089_v4  ;;  %v2144_v32 = vpop.f32.mrb[14].mxu1  ;;  %v1332_v52 = vpack.c.bf16 %v593_v27, %v592_v21  ;;  %v948_v9 = vmul.f32 %v1998_v48, %v593_v27 }
 0x12c   :  { %vm533_vm0 = vcmp.gt.f32.partialorder %v457_v47, 0.0  ;;  %v565_v40 = vmul.f32 0.1, %v457_v47  ;;  %v2147_v41 = vpop.f32.mrb[15].mxu1  ;;  %v950_v57 = vmul.f32 %v1987_v20, %v595_v8  ;;  %v951_v2 = vmul.f32 %v1992_v22, %v596_v49 }
 0x12d   :  { %v599_v33 = vsel %vm535_vm15, %v465_v25, %v567_v16  ;;  %v2155_v3 = vsel %vm867_vm14, 1.0, %v1515_v56  ;;  %v1018_v4 = vmul.f32 %v949_v44, %v594_v60  ;;  %1399 = vst [vmem:[%s2348_s7 + $0x30] sm:$0xff] %v1332_v52   ;;  %v979_v48 = vadd.f32 %v978_v42, %v948_v9 }
 0x12e   :  { %v1017_v21 = vmul.f32 %v948_v9, %v593_v27  ;;  %v1347_v63 = vpack.c.bf16 %v599_v33, %v598_v24  ;;  %v1022_v35 = vmul.f32 %v953_v53, %v598_v24  ;;  %v597_v38 = vsel %vm533_vm0, %v457_v47, %v565_v40 }
 0x12f   :  { %vm538_vm1 = vcmp.gt.f32.partialorder %v478_v10, 0.0  ;;  %v570_v20 = vmul.f32 0.1, %v478_v10  ;;  %v980_v22 = vadd.f32 %v979_v48, %v949_v44  ;;  %v1342_v58 = vpack.c.bf16 %v597_v38, %v596_v49 }
 0x130   :  { %v1048_v51 = vadd.f32 %v1047_v29, %v1017_v21  ;;  %1402 = vst [vmem:[%s2348_s7 + $0x48] sm:$0xff] %v1347_v63   ;;  %v568_v12 = vmul.f32 0.1, %v470_v39  ;;  %v1019_v60 = vmul.f32 %v950_v57, %v595_v8  ;;  %v1020_v13 = vmul.f32 %v951_v2, %v596_v49 }
 0x131   :  { %vm536_vm2 = vcmp.gt.f32.partialorder %v470_v39, 0.0  ;;  %v481_v42 = vadd.f32 %v2092_v31, %v1981_v19  ;;  %1401 = vst [vmem:[%s2348_s7 + $0x40] sm:$0xff] %v1342_v58   ;;  %v952_v24 = vmul.f32 %v2004_v43, %v597_v38  ;;  %v981_v34 = vadd.f32 %v980_v22, %v950_v57 }
 0x132   :  { %v1049_v28 = vadd.f32 %v1048_v51, %v1018_v4  ;;  %v473_v45 = vadd.f32 %v1981_v19, %v2095_v14  ;;  %v954_v29 = vmul.f32 %v2001_v0, %v599_v33  ;;  %v602_v8 = vsel %vm538_vm1, %v478_v10, %v570_v20 }
 0x133   :  { %vm539_vm3 = vcmp.gt.f32.partialorder %v481_v42, 0.0  ;;  %v571_v18 = vmul.f32 0.1, %v481_v42  ;;  %v982_v25 = vadd.f32 %v981_v34, %v951_v2  ;;  %v600_v31 = vsel %vm536_vm2, %v470_v39, %v568_v12 }
 0x134   :  { %v1050_v47 = vadd.f32 %v1049_v28, %v1019_v60  ;;  %vm537_vm4 = vcmp.gt.f32.partialorder %v473_v45, 0.0  ;;  %v569_v49 = vmul.f32 0.1, %v473_v45  ;;  %v494_v27 = vadd.f32 %v2111_v5, %v1981_v19 }
 0x135   :  { %v603_v44 = vsel %vm539_vm3, %v481_v42, %v571_v18  ;;  %v486_v43 = vadd.f32 %v1981_v19, %v2114_v50  ;;  %v983_v16 = vadd.f32 %v982_v25, %v952_v24  ;;  %v1021_v14 = vmul.f32 %v952_v24, %v597_v38 }
 0x136   :  { %v1051_v52 = vadd.f32 %v1050_v47, %v1020_v13  ;;  %v1357_v0 = vpack.c.bf16 %v603_v44, %v602_v8  ;;  %v1023_v9 = vmul.f32 %v954_v29, %v599_v33  ;;  %v957_v10 = vmul.f32 %v2009_v6, %v602_v8 }
 0x137   :  { %v955_v40 = vmul.f32 %v2012_v46, %v600_v31  ;;  %v601_v57 = vsel %vm537_vm4, %v473_v45, %v569_v49  ;;  %v984_v39 = vadd.f32 %v983_v16, %v953_v53  ;;  %v574_v4 = vmul.f32 0.1, %v494_v27 }
 0x138   :  { %v1052_v2 = vadd.f32 %v1051_v52, %v1021_v14  ;;  %1404 = vst [vmem:[%s2348_s7 + $0x58] sm:$0xff] %v1357_v0   ;;  %v1352_v5 = vpack.c.bf16 %v601_v57, %v600_v31  ;;  %vm542_vm5 = vcmp.gt.f32.partialorder %v494_v27, 0.0  ;;  %vm540_vm6 = vcmp.gt.f32.partialorder %v486_v43, 0.0 }
 0x139   :  { %v572_v50 = vmul.f32 0.1, %v486_v43  ;;  %v497_v48 = vadd.f32 %v2116_v54, %v1981_v19  ;;  %v985_v21 = vadd.f32 %v984_v39, %v954_v29  ;;  %v956_v6 = vmul.f32 %v2020_v7, %v601_v57 }
 0x13a   :  { %v1053_v33 = vadd.f32 %v1052_v2, %v1022_v35  ;;  %1403 = vst [vmem:[%s2348_s7 + $0x50] sm:$0xff] %v1352_v5   ;;  %v489_v46 = vadd.f32 %v1981_v19, %v2118_v36  ;;  %v1024_v53 = vmul.f32 %v955_v40, %v600_v31  ;;  %v958_v63 = vmul.f32 %v2017_v59, %v603_v44 }
 0x13b   :  { %vm543_vm7 = vcmp.gt.f32.partialorder %v497_v48, 0.0  ;;  %v575_v38 = vmul.f32 0.1, %v497_v48  ;;  %v986_v20 = vadd.f32 %v985_v21, %v955_v40  ;;  %v606_v51 = vsel %vm542_vm5, %v494_v27, %v574_v4 }
 0x13c   :  { %v1054_v22 = vadd.f32 %v1053_v33, %v1023_v9  ;;  %v604_v54 = vsel %vm540_vm6, %v486_v43, %v572_v50  ;;  %vm541_vm8 = vcmp.gt.f32.partialorder %v489_v46, 0.0  ;;  %v573_v58 = vmul.f32 0.1, %v489_v46 }
 0x13d   :  { %v607_v35 = vsel %vm543_vm7, %v497_v48, %v575_v38  ;;  %v510_v12 = vadd.f32 %v2134_v62, %v1981_v19  ;;  %v987_v7 = vadd.f32 %v986_v20, %v956_v6  ;;  %v1025_v13 = vmul.f32 %v956_v6, %v601_v57 }
 0x13e   :  { %v1055_v60 = vadd.f32 %v1054_v22, %v1024_v53  ;;  %v1367_v42 = vpack.c.bf16 %v607_v35, %v606_v51  ;;  %vm869_vm9 = vcmp.lt.s32.totalorder %v2053_v23, %v1891_v26  ;;  %v1026_v59 = vmul.f32 %v957_v10, %v602_v8 }
 0x13f   :  { %v1027_v36 = vmul.f32 %v958_v63, %v603_v44  ;;  %v605_v28 = vsel %vm541_vm8, %v489_v46, %v573_v58  ;;  %vm868_vm10 = vcmp.lt.s32.totalorder %v2106_v1, %v1891_v26  ;;  %v988_v24 = vadd.f32 %v987_v7, %v957_v10 }
 0x140   :  { %v1056_v34 = vadd.f32 %v1055_v60, %v1025_v13  ;;  %v959_v45 = vmul.f32 %v2034_v30, %v604_v54  ;;  %1406 = vst [vmem:[%s2348_s7 + $0x68] sm:$0xff] %v1367_v42   ;;  %v1362_v62 = vpack.c.bf16 %v605_v28, %v604_v54  ;;  %v961_v29 = vmul.f32 %v2031_v55, %v606_v51 }
 0x141   :  { %v578_v18 = vmul.f32 0.1, %v510_v12  ;;  %v502_v8 = vadd.f32 %v1981_v19, %v2140_v17  ;;  %v513_v25 = vadd.f32 %v2144_v32, %v1981_v19  ;;  %v989_v31 = vadd.f32 %v988_v24, %v958_v63 }
 0x142   :  { %v1057_v47 = vadd.f32 %v1056_v34, %v1026_v59  ;;  %1405 = vst [vmem:[%s2348_s7 + $0x60] sm:$0xff] %v1362_v62   ;;  %v960_v30 = vmul.f32 %v2050_v37, %v605_v28  ;;  %vm546_vm11 = vcmp.gt.f32.partialorder %v510_v12, 0.0  ;;  %v1028_v27 = vmul.f32 %v959_v45, %v604_v54  ;;  %v1073_v62 = vld [vmem:[%s2349_s8] sm:$0xff] }
 0x143   :  { %vm544_vm12 = vcmp.gt.f32.partialorder %v502_v8, 0.0  ;;  %v576_v44 = vmul.f32 0.1, %v502_v8  ;;  %vm547_vm13 = vcmp.gt.f32.partialorder %v513_v25, 0.0  ;;  %v579_v55 = vmul.f32 0.1, %v513_v25 }
 0x144   :  { %v990_v49 = vadd.f32 %v989_v31, %v959_v45  ;;  %v1058_v43 = vadd.f32 %v1057_v47, %v1027_v36  ;;  %v505_v17 = vadd.f32 %v1981_v19, %v2147_v41  ;;  %v962_v32 = vmul.f32 %v2038_v11, %v607_v35 }
 0x145   :  { %v610_v16 = vsel %vm546_vm11, %v510_v12, %v578_v18  ;;  %v608_v14 = vsel %vm544_vm12, %v502_v8, %v576_v44  ;;  %v611_v52 = vsel %vm547_vm13, %v513_v25, %v579_v55  ;;  %v1029_v10 = vmul.f32 %v960_v30, %v605_v28 }
 0x146   :  { %v1059_v0 = vadd.f32 %v1058_v43, %v1028_v27  ;;  %v991_v9 = vadd.f32 %v990_v49, %v960_v30  ;;  %v1377_v37 = vpack.c.bf16 %v611_v52, %v610_v16  ;;  %vm870_vm14 = vcmp.lt.s32.totalorder %v2071_v61, %v1891_v26 }
 0x147   :  { %vm545_vm15 = vcmp.gt.f32.partialorder %v505_v17, 0.0  ;;  %v577_v40 = vmul.f32 0.1, %v505_v17  ;;  %v1198_v57 = vsel %vm868_vm10, 1.0, %v1515_v56  ;;  %v1030_v19 = vmul.f32 %v961_v29, %v606_v51 }
 0x148   :  { %v992_v41 = vadd.f32 %v991_v9, %v961_v29  ;;  %v1060_v11 = vadd.f32 %v1059_v0, %v1029_v10  ;;  %v963_v39 = vmul.f32 %v2155_v3, %v608_v14  ;;  %1408 = vst [vmem:[%s2348_s7 + $0x78] sm:$0xff] %v1377_v37   ;;  %v1031_v2 = vmul.f32 %v962_v32, %v607_v35 }
 0x149   :  { %v1199_v5 = vsel %vm869_vm9, 1.0, %v1515_v56  ;;  %v609_v4 = vsel %vm545_vm15, %v505_v17, %v577_v40  ;;  %v1200_v3 = vsel %vm870_vm14, 1.0, %v1515_v56  ;;  %vm1075_vm0 = vcmp.eq.s32.totalorder %v1595_v15, 1 }
 0x14a   :  { %v1061_v50 = vadd.f32 %v1060_v11, %v1030_v19  ;;  %v993_v48 = vadd.f32 %v992_v41, %v962_v32  ;;  %v1372_v1 = vpack.c.bf16 %v609_v4, %v608_v14  ;;  %v964_v33 = vmul.f32 %v1198_v57, %v609_v4 }
 0x14b   :  { %v965_v21 = vmul.f32 %v1199_v5, %v610_v16  ;;  %v1032_v46 = vmul.f32 %v963_v39, %v608_v14  ;;  %v966_v63 = vmul.f32 %v1200_v3, %v611_v52  ;;  %vm1074_vm1 = vcmp.eq.s32.totalorder %v1595_v15, 0 }
 0x14c   :  { %v994_v6 = vadd.f32 %v993_v48, %v963_v39  ;;  %v1062_v53 = vadd.f32 %v1061_v50, %v1031_v2  ;;  %1407 = vst [vmem:[%s2348_s7 + $0x70] sm:$0xff] %v1372_v1   ;;  %v1033_v20 = vmul.f32 %v964_v33, %v609_v4 }
 0x14d   :  { %v1034_v22 = vmul.f32 %v965_v21, %v610_v16  ;;  %v1035_v35 = vmul.f32 %v966_v63, %v611_v52 }
 0x14e   :  { %v1063_v23 = vadd.f32 %v1062_v53, %v1032_v46  ;;  %v995_v38 = vadd.f32 %v994_v6, %v964_v33 }
 0x150   :  { %v996_v51 = vadd.f32 %v995_v38, %v965_v21  ;;  %v1064_v54 = vadd.f32 %v1063_v23, %v1033_v20 }
 0x152   :  { %v997_v58 = vadd.f32 %v996_v51, %v966_v63  ;;  %v1065_v12 = vadd.f32 %v1064_v54, %v1034_v22 }
 0x154   :  { %v998_v26 = vrot.slane %v997_v58, 4  ;;  %v1066_v56 = vadd.f32 %v1065_v12, %v1035_v35 }
 0x156   :  { %v999_v61 = vadd.f32 %v998_v26, %v997_v58  ;;  %v1067_v60 = vrot.slane %v1066_v56, 4 }
 0x158   :  { %v1000_v7 = vrot.slane %v999_v61, 2  ;;  %v1068_v13 = vadd.f32 %v1067_v60, %v1066_v56 }
 0x15a   :  { %v1001_v42 = vadd.f32 %v1000_v7, %v999_v61  ;;  %v1069_v59 = vrot.slane %v1068_v13, 2 }
 0x15c   :  { %v1070_v36 = vadd.f32 %v1069_v59, %v1068_v13  ;;  %v1002_v28 = vrot.slane %v1001_v42, 1 }
 0x15e   :  { %v1071_v24 = vrot.slane %v1070_v36, 1  ;;  %v1003_v45 = vadd.f32 %v1002_v28, %v1001_v42 }
 0x160   :  { %v1072_v34 = vadd.f32 %v1071_v24, %v1070_v36 }
 0x162   :  { %v1076_v29 = vsel %vm1075_vm0, %v1072_v34, 0.0 }
 0x163   :  { %v1077_v18 = vsel %vm1074_vm1, %v1003_v45, %v1076_v29 }
 0x164   :  { %v1078_v8 = vadd.f32 %v1077_v18, %v1073_v62 }
 0x166   :  { %1079 = vst [vmem:[%s2349_s8] sm:$0xff] %v1078_v8 }
 0x167 PF:  { %p1202_p1 = scmp.gt.s32.totalorder %s2341_s0, 0 }
 0x168   :  { %v1516_v25 = vmov (!%p1202_p1), 0  }
 0x169   :  { %1083 = sbr.rel (%p1202_p1) target bundleno = 377 (0x179), region = 41  ;;  %1084 = vst [vmem:[%s2348_s7] sm:$0xf] (!%p1202_p1), %v1516_v25  ;;  %1085 = vst [vmem:[%s2348_s7 + $0x4] sm:$0xf] (!%p1202_p1), %v1516_v25 }
 0x16a   :  { %1086 = vst [vmem:[%s2348_s7 + $0x8] sm:$0xf] (!%p1202_p1), %v1516_v25  ;;  %1087 = vst [vmem:[%s2348_s7 + $0xc] sm:$0xf] (!%p1202_p1), %v1516_v25 }
 0x16b   :  { %1088 = vst [vmem:[%s2348_s7 + $0x10] sm:$0xf] (!%p1202_p1), %v1516_v25  ;;  %1089 = vst [vmem:[%s2348_s7 + $0x14] sm:$0xf] (!%p1202_p1), %v1516_v25 }
 0x16c   :  { %1090 = vst [vmem:[%s2348_s7 + $0x18] sm:$0xf] (!%p1202_p1), %v1516_v25  ;;  %1091 = vst [vmem:[%s2348_s7 + $0x1c] sm:$0xf] (!%p1202_p1), %v1516_v25 }
 0x16d   :  { %1092 = vst [vmem:[%s2348_s7 + $0x20] sm:$0xf] (!%p1202_p1), %v1516_v25  ;;  %1093 = vst [vmem:[%s2348_s7 + $0x24] sm:$0xf] (!%p1202_p1), %v1516_v25 }
 0x16e   :  { %1094 = vst [vmem:[%s2348_s7 + $0x28] sm:$0xf] (!%p1202_p1), %v1516_v25  ;;  %1095 = vst [vmem:[%s2348_s7 + $0x2c] sm:$0xf] (!%p1202_p1), %v1516_v25 }
 0x16f   :  { %1096 = vst [vmem:[%s2348_s7 + $0x30] sm:$0xf] (!%p1202_p1), %v1516_v25  ;;  %1097 = vst [vmem:[%s2348_s7 + $0x34] sm:$0xf] (!%p1202_p1), %v1516_v25 }
 0x170   :  { %1098 = vst [vmem:[%s2348_s7 + $0x38] sm:$0xf] %v1516_v25  ;;  %1099 = vst [vmem:[%s2348_s7 + $0x3c] sm:$0xf] %v1516_v25 }
 0x171   :  { %1100 = vst [vmem:[%s2348_s7 + $0x40] sm:$0xf] %v1516_v25  ;;  %1101 = vst [vmem:[%s2348_s7 + $0x44] sm:$0xf] %v1516_v25 }
 0x172   :  { %1102 = vst [vmem:[%s2348_s7 + $0x48] sm:$0xf] %v1516_v25  ;;  %1103 = vst [vmem:[%s2348_s7 + $0x4c] sm:$0xf] %v1516_v25 }
 0x173   :  { %1104 = vst [vmem:[%s2348_s7 + $0x50] sm:$0xf] %v1516_v25  ;;  %1105 = vst [vmem:[%s2348_s7 + $0x54] sm:$0xf] %v1516_v25 }
 0x174   :  { %1106 = vst [vmem:[%s2348_s7 + $0x58] sm:$0xf] %v1516_v25  ;;  %1107 = vst [vmem:[%s2348_s7 + $0x5c] sm:$0xf] %v1516_v25 }
 0x175   :  { %1108 = vst [vmem:[%s2348_s7 + $0x60] sm:$0xf] %v1516_v25  ;;  %1109 = vst [vmem:[%s2348_s7 + $0x64] sm:$0xf] %v1516_v25 }
 0x176   :  { %1110 = vst [vmem:[%s2348_s7 + $0x68] sm:$0xf] %v1516_v25  ;;  %1111 = vst [vmem:[%s2348_s7 + $0x6c] sm:$0xf] %v1516_v25 }
 0x177   :  { %1112 = vst [vmem:[%s2348_s7 + $0x70] sm:$0xf] %v1516_v25  ;;  %1113 = vst [vmem:[%s2348_s7 + $0x74] sm:$0xf] %v1516_v25 }
 0x178   :  { %1114 = vst [vmem:[%s2348_s7 + $0x78] sm:$0xf] %v1516_v25  ;;  %1115 = vst [vmem:[%s2348_s7 + $0x7c] sm:$0xf] %v1516_v25 }
 0x179 PF:  {}

// kernel: spvblock_forward.8
= control target key start
LH: loop header
LB: loop body
LE: loop exit
PB: predicated region body
PF: predicated region fallthrough
CT: control target
= control target key end

     0   :  { %s1682_s0 = inlined_call_operand.<no memory space> [shape: s32[1], index: 0, kind: input, shape index: {}]   ;;  %s1683_s1 = inlined_call_operand.vmem [shape: bf16[256,128], index: 1, kind: input, shape index: {}]   ;;  %s1684_s2 = inlined_call_operand.vmem [shape: f32[8,128], index: 2, kind: input, shape index: {}]   ;;  %s1685_s3 = inlined_call_operand.vmem [shape: f32[1,128], index: 3, kind: input, shape index: {}]   ;;  %s1686_s4 = inlined_call_operand.vmem [shape: f32[1,128], index: 4, kind: input, shape index: {}]   ;;  %s1687_s5 = inlined_call_operand.vmem [shape: bf16[128,128], index: 5, kind: input, shape index: {}]   ;;  %s1688_s6 = inlined_call_operand.vmem [shape: f32[1,128], index: 6, kind: input, shape index: {}]   ;;  %s1689_s7 = inlined_call_operand.vmem [shape: bf16[256,128], index: 7, kind: output, shape index: {}]  }
   0x1   :  { %p806_p0 = scmp.le.s32.totalorder %s1682_s0, 0 }
   0x2   :  { %v1148_v0 = vld [vmem:[%s1687_s5] sm:$0xff] (!%p806_p0)   ;;  %s34_s30 = scvt.s32.f32 (!%p806_p0), %s1682_s0  ;;  %v1149_v1 = vld [vmem:[%s1687_s5 + $0x8] sm:$0xff] (!%p806_p0)   ;;  %s1160_s10 = smov (!%p806_p0), 1.0   ;;  %v1150_v3 = vld [vmem:[%s1687_s5 + $0x10] sm:$0xff] (!%p806_p0)   ;;  %v109_v8 = vlaneseq (!%p806_p0) }
   0x3   :  { %33 = sbr.rel (%p806_p0) target bundleno = 302 (0x12e), region = 33  ;;  %1082 = vmatprep.subr.bf16.mxu0 (!%p806_p0), %v1148_v0  ;;  %1130 = vmatprep.subr.bf16.mxu1 (!%p806_p0), %v1148_v0  ;;  %v1151_v4 = vld [vmem:[%s1687_s5 + $0x18] sm:$0xff] (!%p806_p0)   ;;  %v1152_v5 = vld [vmem:[%s1687_s5 + $0x20] sm:$0xff] (!%p806_p0)   ;;  %v1153_v12 = vld [vmem:[%s1687_s5 + $0x28] sm:$0xff] (!%p806_p0)  }
   0x4   :  { %s35_s11 = smax.f32 (!%p806_p0), %s1160_s10, %s34_s30  ;;  %1083 = vmatpush3.bf16.msra.mxu0 (!%p806_p0), %v1148_v0  ;;  %1138 = vmatpush3.bf16.msra.mxu1 (!%p806_p0), %v1148_v0  ;;  %v36_v6 = vld [vmem:[%s1684_s2] sm:$0x1] (!%p806_p0)  ;;  %v40_v7 = vld [vmem:[%s1684_s2 + $0x1] sm:$0x1] (!%p806_p0)  ;;  %v1232_v13 = vshrl.u32 (!%p806_p0), %v109_v8, 7  ;;  %v1247_v18 = vld [vmem:[%s1683_s1 + $0x8] sm:$0xff] (!%p806_p0)  }
   0x5   :  { %v37_v2 = vstv (!%p806_p0), %s35_s11  ;;  %1084 = vmatprep.subr.bf16.mxu0 (!%p806_p0), %v1149_v1  ;;  %1131 = vmatprep.subr.bf16.mxu1 (!%p806_p0), %v1149_v1  ;;  %v1237_v15 = vld [vmem:[%s1683_s1] sm:$0xff] (!%p806_p0)   ;;  %v1252_v19 = vld [vmem:[%s1683_s1 + $0x48] sm:$0xff] (!%p806_p0)   ;;  %v1154_v20 = vld [vmem:[%s1687_s5 + $0x30] sm:$0xff] (!%p806_p0)   ;;  %v890_v31 = vunpack.c.l.bf16 (!%p806_p0), %v1247_v18  ;;  %v891_v32 = vunpack.c.h.bf16 (!%p806_p0), %v1247_v18 }
   0x6   :  { %1156 = vrcp.f32 (!%p806_p0), %v37_v2  ;;  %v1242_v16 = vld [vmem:[%s1683_s1 + $0x40] sm:$0xff] (!%p806_p0)   ;;  %v886_v21 = vunpack.c.l.bf16 (!%p806_p0), %v1237_v15  ;;  %v111_v22 = vsub.s32 (!%p806_p0), 0, %v1232_v13  ;;  %v1262_v23 = vld [vmem:[%s1683_s1 + $0x10] sm:$0xff] (!%p806_p0)   ;;  %v887_v26 = vunpack.c.h.bf16 (!%p806_p0), %v1237_v15  ;;  %v1275_v29 = vld [vmem:[%s1683_s1 + $0x18] sm:$0xff] (!%p806_p0)  }
   0x7   :  { %v1267_v24 = vld [vmem:[%s1683_s1 + $0x50] sm:$0xff] (!%p806_p0)   ;;  %v918_v27 = vunpack.c.l.bf16 (!%p806_p0), %v1242_v16  ;;  %v919_v28 = vunpack.c.h.bf16 (!%p806_p0), %v1242_v16  ;;  %v1280_v30 = vld [vmem:[%s1683_s1 + $0x58] sm:$0xff] (!%p806_p0)   ;;  %v922_v33 = vunpack.c.l.bf16 (!%p806_p0), %v1252_v19  ;;  %v923_v34 = vunpack.c.h.bf16 (!%p806_p0), %v1252_v19  ;;  %v1289_v35 = vld [vmem:[%s1683_s1 + $0x20] sm:$0xff] (!%p806_p0)  }
   0x8   :  { %1085 = vmatpush3.bf16.msra.mxu0 (!%p806_p0), %v1149_v1  ;;  %1139 = vmatpush3.bf16.msra.mxu1 (!%p806_p0), %v1149_v1  ;;  %v894_v37 = vunpack.c.l.bf16 (!%p806_p0), %v1262_v23  ;;  %v895_v38 = vunpack.c.h.bf16 (!%p806_p0), %v1262_v23  ;;  %v926_v39 = vunpack.c.l.bf16 (!%p806_p0), %v1267_v24  ;;  %v1039_v40 = vld [vmem:[%s1683_s1 + $0x60] sm:$0xff] (!%p806_p0)   ;;  %v1032_v41 = vld [vmem:[%s1683_s1 + $0x28] sm:$0xff] (!%p806_p0)   ;;  %v1155_v42 = vld [vmem:[%s1687_s5 + $0x38] sm:$0xff] (!%p806_p0)   ;;  %v927_v43 = vunpack.c.h.bf16 (!%p806_p0), %v1267_v24 }
   0x9   :  { %1086 = vmatprep.subr.bf16.mxu0 (!%p806_p0), %v1150_v3  ;;  %1132 = vmatprep.subr.bf16.mxu1 (!%p806_p0), %v1150_v3  ;;  %v898_v44 = vunpack.c.l.bf16 (!%p806_p0), %v1275_v29  ;;  %v899_v45 = vunpack.c.h.bf16 (!%p806_p0), %v1275_v29  ;;  %v930_v46 = vunpack.c.l.bf16 (!%p806_p0), %v1280_v30  ;;  %v1040_v47 = vld [vmem:[%s1683_s1 + $0x68] sm:$0xff] (!%p806_p0)   ;;  %v1033_v48 = vld [vmem:[%s1683_s1 + $0x30] sm:$0xff] (!%p806_p0)   ;;  %v931_v50 = vunpack.c.h.bf16 (!%p806_p0), %v1280_v30  ;;  %v1034_v53 = vld [vmem:[%s1683_s1 + $0x38] sm:$0xff] (!%p806_p0)  }
   0xa   :  { %v902_v51 = vunpack.c.l.bf16 %v1289_v35  ;;  %v1041_v52 = vld [vmem:[%s1683_s1 + $0x70] sm:$0xff]   ;;  %v903_v54 = vunpack.c.h.bf16 %v1289_v35  ;;  %v934_v55 = vunpack.c.l.bf16 %v1039_v40  ;;  %v935_v56 = vunpack.c.h.bf16 %v1039_v40  ;;  %v1042_v58 = vld [vmem:[%s1683_s1 + $0x78] sm:$0xff]  }
   0xb   :  { %v906_v57 = vunpack.c.l.bf16 %v1032_v41  ;;  %v907_v59 = vunpack.c.h.bf16 %v1032_v41  ;;  %v938_v60 = vunpack.c.l.bf16 %v1040_v47  ;;  %v939_v61 = vunpack.c.h.bf16 %v1040_v47 }
   0xc   :  { %1087 = vmatpush3.bf16.msra.mxu0 %v1150_v3  ;;  %1140 = vmatpush3.bf16.msra.mxu1 %v1150_v3  ;;  %v910_v62 = vunpack.c.l.bf16 %v1033_v48  ;;  %v911_v63 = vunpack.c.h.bf16 %v1033_v48  ;;  %v942_v0 = vunpack.c.l.bf16 %v1041_v52  ;;  %v943_v1 = vunpack.c.h.bf16 %v1041_v52 }
   0xd   :  { %1088 = vmatprep.subr.bf16.mxu0 %v1151_v4  ;;  %1133 = vmatprep.subr.bf16.mxu1 %v1151_v4  ;;  %v914_v2 = vunpack.c.l.bf16 %v1034_v53  ;;  %v947_v15 = vunpack.c.h.bf16 %v1042_v58 }
  0x10   :  { %v1157_v9 = vpop.eup %1156  ;;  %1089 = vmatpush3.bf16.msra.mxu0 %v1151_v4  ;;  %1141 = vmatpush3.bf16.msra.mxu1 %v1151_v4 }
  0x11   :  { %v39_v10 = vmul.f32 %v1157_v9, %v36_v6  ;;  %v41_v11 = vmul.f32 %v1157_v9, %v40_v7  ;;  %1090 = vmatprep.subr.bf16.mxu0 %v1152_v5  ;;  %1134 = vmatprep.subr.bf16.mxu1 %v1152_v5  ;;  %v946_v6 = vunpack.c.l.bf16 %v1042_v58 }
  0x13   :  { %v42_v14 = vmul.f32 %v39_v10, %v39_v10  ;;  %v112_v49 = vrot.slane %v39_v10, %v111_v22 }
  0x14   :  { %1091 = vmatpush3.bf16.msra.mxu0 %v1152_v5  ;;  %1142 = vmatpush3.bf16.msra.mxu1 %v1152_v5  ;;  %v915_v5 = vunpack.c.h.bf16 %v1034_v53 }
  0x15   :  { %v43_v17 = vsub.f32 %v41_v11, %v42_v14  ;;  %1092 = vmatprep.subr.bf16.mxu0 %v1153_v12  ;;  %1135 = vmatprep.subr.bf16.mxu1 %v1153_v12  ;;  %v113_v3 = vsub.f32 %v886_v21, %v112_v49  ;;  %v114_v4 = vsub.f32 %v887_v26, %v112_v49 }
  0x16   :  { %v129_v7 = vsub.f32 %v918_v27, %v112_v49  ;;  %v130_v8 = vsub.f32 %v919_v28, %v112_v49  ;;  %v115_v9 = vsub.f32 %v890_v31, %v112_v49  ;;  %v116_v10 = vsub.f32 %v891_v32, %v112_v49 }
  0x17   :  { %v44_v25 = vmax.f32 %v43_v17, 0.0  ;;  %v131_v11 = vsub.f32 %v922_v33, %v112_v49  ;;  %v117_v14 = vsub.f32 %v894_v37, %v112_v49  ;;  %v118_v16 = vsub.f32 %v895_v38, %v112_v49  ;;  %v1364_v38 = vld [vmem:[%s1685_s3] ss:$0 sm:$0xff] }
  0x18   :  { %1093 = vmatpush3.bf16.msra.mxu0 %v1153_v12  ;;  %1143 = vmatpush3.bf16.msra.mxu1 %v1153_v12  ;;  %v132_v12 = vsub.f32 %v923_v34, %v112_v49  ;;  %v133_v17 = vsub.f32 %v926_v39, %v112_v49  ;;  %v134_v18 = vsub.f32 %v927_v43, %v112_v49 }
  0x19   :  { %v145_v36 = vadd.f32 1e-05, %v44_v25  ;;  %1094 = vmatprep.subr.bf16.mxu0 %v1154_v20  ;;  %1136 = vmatprep.subr.bf16.mxu1 %v1154_v20  ;;  %v119_v19 = vsub.f32 %v898_v44, %v112_v49  ;;  %v1329_v21 = vsub.f32 %v930_v46, %v112_v49  ;;  %v1331_v23 = vsub.f32 %v931_v50, %v112_v49 }
  0x1a   :  { %v1333_v24 = vsub.f32 %v902_v51, %v112_v49  ;;  %v1335_v25 = vsub.f32 %v903_v54, %v112_v49  ;;  %v1337_v26 = vsub.f32 %v934_v55, %v112_v49  ;;  %v1339_v27 = vsub.f32 %v935_v56, %v112_v49 }
  0x1b   :  { %1158 = vrsqrt.f32 %v145_v36  ;;  %v1341_v28 = vsub.f32 %v906_v57, %v112_v49  ;;  %v1343_v30 = vsub.f32 %v907_v59, %v112_v49  ;;  %v1345_v31 = vsub.f32 %v938_v60, %v112_v49 }
  0x1c   :  { %1095 = vmatpush3.bf16.msra.mxu0 %v1154_v20  ;;  %1144 = vmatpush3.bf16.msra.mxu1 %v1154_v20  ;;  %v1327_v20 = vsub.f32 %v899_v45, %v112_v49  ;;  %v1347_v32 = vsub.f32 %v939_v61, %v112_v49  ;;  %v1349_v33 = vsub.f32 %v910_v62, %v112_v49  ;;  %v1381_v45 = vld [vmem:[%s1686_s4] ss:$0 sm:$0xff] }
  0x1d   :  { %1096 = vmatprep.subr.bf16.mxu0 %v1155_v42  ;;  %1137 = vmatprep.subr.bf16.mxu1 %v1155_v42  ;;  %v1355_v35 = vsub.f32 %v911_v63, %v112_v49  ;;  %v1357_v36 = vsub.f32 %v942_v0, %v112_v49  ;;  %v1359_v37 = vsub.f32 %v943_v1, %v112_v49 }
  0x1e   :  { %v1366_v39 = vsub.f32 %v914_v2, %v112_v49  ;;  %v1368_v40 = vsub.f32 %v915_v5, %v112_v49  ;;  %v1370_v41 = vsub.f32 %v946_v6, %v112_v49  ;;  %v1372_v13 = vsub.f32 %v947_v15, %v112_v49 }
  0x20   :  { %1097 = vmatpush3.bf16.msra.mxu0 %v1155_v42  ;;  %1145 = vmatpush3.bf16.msra.mxu1 %v1155_v42 }
  0x25   :  { %v1159_v29 = vpop.eup %1158 }
  0x26   :  { %v1353_v34 = vrot.slane %v1159_v29, %v111_v22 }
  0x28   :  { %v151_v22 = vmul.f32 %v1353_v34, %v113_v3  ;;  %v152_v42 = vmul.f32 %v1353_v34, %v114_v4  ;;  %v167_v43 = vmul.f32 %v1353_v34, %v129_v7  ;;  %v168_v44 = vmul.f32 %v1353_v34, %v130_v8 }
  0x29   :  { %v153_v46 = vmul.f32 %v1353_v34, %v115_v9  ;;  %v154_v47 = vmul.f32 %v1353_v34, %v116_v10  ;;  %v169_v48 = vmul.f32 %v1353_v34, %v131_v11  ;;  %v170_v49 = vmul.f32 %v1353_v34, %v132_v12 }
  0x2a   :  { %v190_v50 = vmul.f32 %v1364_v38, %v151_v22  ;;  %v191_v51 = vmul.f32 %v1364_v38, %v152_v42  ;;  %v206_v52 = vmul.f32 %v1364_v38, %v167_v43  ;;  %v207_v53 = vmul.f32 %v1364_v38, %v168_v44 }
  0x2b   :  { %v192_v54 = vmul.f32 %v1364_v38, %v153_v46  ;;  %v193_v55 = vmul.f32 %v1364_v38, %v154_v47  ;;  %v208_v56 = vmul.f32 %v1364_v38, %v169_v48  ;;  %v209_v57 = vmul.f32 %v1364_v38, %v170_v49 }
  0x2c   :  { %v229_v58 = vadd.f32 %v1381_v45, %v190_v50  ;;  %v230_v59 = vadd.f32 %v1381_v45, %v191_v51  ;;  %v245_v60 = vadd.f32 %v1381_v45, %v206_v52  ;;  %v246_v61 = vadd.f32 %v1381_v45, %v207_v53 }
  0x2d   :  { %v231_v62 = vadd.f32 %v1381_v45, %v192_v54  ;;  %v232_v63 = vadd.f32 %v1381_v45, %v193_v55  ;;  %v247_v0 = vadd.f32 %v1381_v45, %v208_v56  ;;  %v248_v1 = vadd.f32 %v1381_v45, %v209_v57 }
  0x2e   :  { %v261_v2 = vpack.c.bf16 %v230_v59, %v229_v58  ;;  %v269_v3 = vpack.c.bf16 %v246_v61, %v245_v60  ;;  %v155_v4 = vmul.f32 %v1353_v34, %v117_v14  ;;  %v156_v5 = vmul.f32 %v1353_v34, %v118_v16 }
  0x2f   :  { %v262_v6 = vpack.c.bf16 %v232_v63, %v231_v62  ;;  %v270_v7 = vpack.c.bf16 %v248_v1, %v247_v0  ;;  %v171_v8 = vmul.f32 %v1353_v34, %v133_v17  ;;  %v172_v9 = vmul.f32 %v1353_v34, %v134_v18 }
  0x30   :  { %1098 = vmatprep.mubr.bf16.mxu0 %v261_v2  ;;  %1114 = vmatprep.mubr.bf16.mxu1 %v269_v3  ;;  %v194_v10 = vmul.f32 %v1364_v38, %v155_v4  ;;  %v195_v11 = vmul.f32 %v1364_v38, %v156_v5  ;;  %v157_v12 = vmul.f32 %v1353_v34, %v119_v19 }
  0x31   :  { %1099 = vmatmul.mubr.bf16.vlgmr.msra.gmra.mrb[0].mxu0 %v262_v6  ;;  %1115 = vmatmul.mubr.bf16.vlgmr.msra.gmra.mrb[0].mxu1 %v270_v7  ;;  %v210_v14 = vmul.f32 %v1364_v38, %v171_v8  ;;  %v211_v15 = vmul.f32 %v1364_v38, %v172_v9  ;;  %v158_v16 = vmul.f32 %v1353_v34, %v1327_v20 }
  0x32   :  { %v233_v17 = vadd.f32 %v1381_v45, %v194_v10  ;;  %v234_v18 = vadd.f32 %v1381_v45, %v195_v11  ;;  %v196_v29 = vmul.f32 %v1364_v38, %v157_v12  ;;  %v173_v22 = vmul.f32 %v1353_v34, %v1329_v21 }
  0x33   :  { %v249_v19 = vadd.f32 %v1381_v45, %v210_v14  ;;  %v250_v42 = vadd.f32 %v1381_v45, %v211_v15  ;;  %v197_v43 = vmul.f32 %v1364_v38, %v158_v16  ;;  %v174_v44 = vmul.f32 %v1353_v34, %v1331_v23 }
  0x34   :  { %v263_v46 = vpack.c.bf16 %v234_v18, %v233_v17  ;;  %v235_v20 = vadd.f32 %v1381_v45, %v196_v29  ;;  %v212_v47 = vmul.f32 %v1364_v38, %v173_v22  ;;  %v159_v48 = vmul.f32 %v1353_v34, %v1333_v24 }
  0x35   :  { %v271_v49 = vpack.c.bf16 %v250_v42, %v249_v19  ;;  %v236_v21 = vadd.f32 %v1381_v45, %v197_v43  ;;  %v213_v50 = vmul.f32 %v1364_v38, %v174_v44  ;;  %v160_v51 = vmul.f32 %v1353_v34, %v1335_v25 }
  0x36   :  { %1102 = vmatprep.mubr.bf16.mxu0 %v263_v46  ;;  %v251_v52 = vadd.f32 %v1381_v45, %v212_v47  ;;  %v198_v23 = vmul.f32 %v1364_v38, %v159_v48  ;;  %v175_v53 = vmul.f32 %v1353_v34, %v1337_v26  ;;  %v176_v54 = vmul.f32 %v1353_v34, %v1339_v27 }
  0x37   :  { %1118 = vmatprep.mubr.bf16.mxu1 %v271_v49  ;;  %v264_v24 = vpack.c.bf16 %v236_v21, %v235_v20  ;;  %v252_v55 = vadd.f32 %v1381_v45, %v213_v50  ;;  %v199_v56 = vmul.f32 %v1364_v38, %v160_v51  ;;  %v161_v25 = vmul.f32 %v1353_v34, %v1341_v28 }
  0x38   :  { %v237_v57 = vadd.f32 %v1381_v45, %v198_v23  ;;  %v214_v58 = vmul.f32 %v1364_v38, %v175_v53  ;;  %v215_v59 = vmul.f32 %v1364_v38, %v176_v54  ;;  %v162_v26 = vmul.f32 %v1353_v34, %v1343_v30 }
  0x39   :  { %1103 = vmatmul.mubr.bf16.gmra.mrb[4].mxu0 %v264_v24  ;;  %v272_v27 = vpack.c.bf16 %v252_v55, %v251_v52  ;;  %v238_v60 = vadd.f32 %v1381_v45, %v199_v56  ;;  %v200_v61 = vmul.f32 %v1364_v38, %v161_v25  ;;  %v177_v62 = vmul.f32 %v1353_v34, %v1345_v31 }
  0x3a   :  { %v253_v28 = vadd.f32 %v1381_v45, %v214_v58  ;;  %v254_v63 = vadd.f32 %v1381_v45, %v215_v59  ;;  %v201_v0 = vmul.f32 %v1364_v38, %v162_v26  ;;  %v178_v1 = vmul.f32 %v1353_v34, %v1347_v32 }
  0x3b   :  { %1119 = vmatmul.mubr.bf16.gmra.mrb[4].mxu1 %v272_v27  ;;  %v265_v30 = vpack.c.bf16 %v238_v60, %v237_v57  ;;  %v239_v2 = vadd.f32 %v1381_v45, %v200_v61  ;;  %v216_v3 = vmul.f32 %v1364_v38, %v177_v62  ;;  %v163_v4 = vmul.f32 %v1353_v34, %v1349_v33 }
  0x3c   :  { %v273_v5 = vpack.c.bf16 %v254_v63, %v253_v28  ;;  %v240_v31 = vadd.f32 %v1381_v45, %v201_v0  ;;  %v217_v6 = vmul.f32 %v1364_v38, %v178_v1  ;;  %v164_v7 = vmul.f32 %v1353_v34, %v1355_v35 }
  0x3d   :  { %1106 = vmatprep.mubr.bf16.mxu0 %v265_v30  ;;  %v255_v32 = vadd.f32 %v1381_v45, %v216_v3  ;;  %v202_v8 = vmul.f32 %v1364_v38, %v163_v4  ;;  %v179_v9 = vmul.f32 %v1353_v34, %v1357_v36  ;;  %v180_v10 = vmul.f32 %v1353_v34, %v1359_v37 }
  0x3e   :  { %1122 = vmatprep.mubr.bf16.mxu1 %v273_v5  ;;  %v266_v33 = vpack.c.bf16 %v240_v31, %v239_v2  ;;  %v256_v11 = vadd.f32 %v1381_v45, %v217_v6  ;;  %v203_v12 = vmul.f32 %v1364_v38, %v164_v7  ;;  %v165_v35 = vmul.f32 %v1353_v34, %v1366_v39 }
  0x3f   :  { %v241_v14 = vadd.f32 %v1381_v45, %v202_v8  ;;  %v218_v15 = vmul.f32 %v1364_v38, %v179_v9  ;;  %v219_v16 = vmul.f32 %v1364_v38, %v180_v10  ;;  %v166_v36 = vmul.f32 %v1353_v34, %v1368_v40 }
  0x40   :  { %v274_v17 = vpack.c.bf16 %v256_v11, %v255_v32  ;;  %v242_v37 = vadd.f32 %v1381_v45, %v203_v12  ;;  %v204_v18 = vmul.f32 %v1364_v38, %v165_v35  ;;  %v181_v29 = vmul.f32 %v1353_v34, %v1370_v41 }
  0x41   :  { %1107 = vmatmul.mubr.bf16.gmra.mrb[8].mxu0 %v266_v33  ;;  %v257_v39 = vadd.f32 %v1381_v45, %v218_v15  ;;  %v258_v22 = vadd.f32 %v1381_v45, %v219_v16  ;;  %v205_v19 = vmul.f32 %v1364_v38, %v166_v36  ;;  %v182_v42 = vmul.f32 %v1353_v34, %v1372_v13  ;;  %v1497_v34 = vld [vmem:[%s1688_s6] ss:$0 sm:$0xff] }
  0x42   :  { %v267_v43 = vpack.c.bf16 %v242_v37, %v241_v14  ;;  %v243_v40 = vadd.f32 %v1381_v45, %v204_v18  ;;  %v220_v44 = vmul.f32 %v1364_v38, %v181_v29 }
  0x43   :  { %1123 = vmatmul.mubr.bf16.gmra.mrb[8].mxu1 %v274_v17  ;;  %v275_v46 = vpack.c.bf16 %v258_v22, %v257_v39  ;;  %v244_v20 = vadd.f32 %v1381_v45, %v205_v19  ;;  %v221_v41 = vmul.f32 %v1364_v38, %v182_v42 }
  0x44   :  { %1110 = vmatprep.mubr.bf16.mxu0 %v267_v43  ;;  %v259_v47 = vadd.f32 %v1381_v45, %v220_v44 }
  0x45   :  { %1126 = vmatprep.mubr.bf16.mxu1 %v275_v46  ;;  %v268_v48 = vpack.c.bf16 %v244_v20, %v243_v40  ;;  %v260_v49 = vadd.f32 %v1381_v45, %v221_v41 }
  0x47   :  { %v276_v21 = vpack.c.bf16 %v260_v49, %v259_v47 }
  0x49   :  { %1111 = vmatmul.mubr.bf16.gmra.mrb[12].mxu0 %v268_v48 }
  0x4b   :  { %1127 = vmatmul.mubr.bf16.gmra.mrb[12].mxu1 %v276_v21 }
 0x104   :  { %v1100_v13 = vpop.f32.mrb[0].mxu0  ;;  %v1116_v50 = vpop.f32.mrb[0].mxu1 }
 0x105   :  { %v391_v51 = vadd.f32 %v1100_v13, %v1497_v34  ;;  %v455_v38 = vadd.f32 %v1116_v50, %v1497_v34  ;;  %v382_v52 = vpop.f32.mrb[1].mxu0  ;;  %v446_v23 = vpop.f32.mrb[1].mxu1 }
 0x106   :  { %v383_v53 = vadd.f32 %v1497_v34, %v382_v52  ;;  %v447_v45 = vadd.f32 %v1497_v34, %v446_v23  ;;  %v1101_v54 = vpop.f32.mrb[2].mxu0  ;;  %v1117_v24 = vpop.f32.mrb[2].mxu1 }
 0x107   :  { %vm511_vm0 = vcmp.gt.f32.partialorder %v391_v51, 0.0  ;;  %v543_v55 = vmul.f32 0.1, %v391_v51  ;;  %vm527_vm1 = vcmp.gt.f32.partialorder %v455_v38, 0.0  ;;  %v559_v56 = vmul.f32 0.1, %v455_v38 }
 0x108   :  { %vm509_vm2 = vcmp.gt.f32.partialorder %v383_v53, 0.0  ;;  %v541_v25 = vmul.f32 0.1, %v383_v53  ;;  %vm525_vm3 = vcmp.gt.f32.partialorder %v447_v45, 0.0  ;;  %v557_v57 = vmul.f32 0.1, %v447_v45 }
 0x109   :  { %v394_v58 = vadd.f32 %v1101_v54, %v1497_v34  ;;  %v458_v59 = vadd.f32 %v1117_v24, %v1497_v34  ;;  %v385_v26 = vpop.f32.mrb[3].mxu0  ;;  %v449_v27 = vpop.f32.mrb[3].mxu1  ;;  %v575_v60 = vsel %vm511_vm0, %v391_v51, %v543_v55  ;;  %v591_v61 = vsel %vm527_vm1, %v455_v38, %v559_v56 }
 0x10a   :  { %v386_v62 = vadd.f32 %v1497_v34, %v385_v26  ;;  %v450_v28 = vadd.f32 %v1497_v34, %v449_v27  ;;  %v573_v2 = vsel %vm509_vm2, %v383_v53, %v541_v25  ;;  %v589_v3 = vsel %vm525_vm3, %v447_v45, %v557_v57 }
 0x10b   :  { %vm512_vm4 = vcmp.gt.f32.partialorder %v394_v58, 0.0  ;;  %v544_v63 = vmul.f32 0.1, %v394_v58  ;;  %vm528_vm5 = vcmp.gt.f32.partialorder %v458_v59, 0.0  ;;  %v560_v0 = vmul.f32 0.1, %v458_v59 }
 0x10c   :  { %vm510_vm6 = vcmp.gt.f32.partialorder %v386_v62, 0.0  ;;  %v542_v1 = vmul.f32 0.1, %v386_v62  ;;  %vm526_vm7 = vcmp.gt.f32.partialorder %v450_v28, 0.0  ;;  %v558_v30 = vmul.f32 0.1, %v450_v28 }
 0x10d   :  { %v576_v4 = vsel %vm512_vm4, %v394_v58, %v544_v63  ;;  %v592_v5 = vsel %vm528_vm5, %v458_v59, %v560_v0  ;;  %v1104_v31 = vpop.f32.mrb[4].mxu0 }
 0x10e   :  { %v956_v6 = vpack.c.bf16 %v576_v4, %v575_v60  ;;  %v996_v7 = vpack.c.bf16 %v592_v5, %v591_v61  ;;  %v574_v32 = vsel %vm510_vm6, %v386_v62, %v542_v1  ;;  %v590_v8 = vsel %vm526_vm7, %v450_v28, %v558_v30  ;;  %v1120_v9 = vpop.f32.mrb[4].mxu1  ;;  %v398_v10 = vpop.f32.mrb[5].mxu0 }
 0x10f   :  { %v951_v33 = vpack.c.bf16 %v574_v32, %v573_v2  ;;  %v991_v11 = vpack.c.bf16 %v590_v8, %v589_v3  ;;  %v407_v12 = vadd.f32 %v1104_v31, %v1497_v34  ;;  %v471_v35 = vadd.f32 %v1120_v9, %v1497_v34  ;;  %v462_v14 = vpop.f32.mrb[5].mxu1  ;;  %v1105_v15 = vpop.f32.mrb[6].mxu0 }
 0x110   :  { %1043 = vst [vmem:[%s1689_s7 + $0x8] sm:$0xff] %v956_v6   ;;  %1051 = vst [vmem:[%s1689_s7 + $0x48] sm:$0xff] %v996_v7   ;;  %v399_v16 = vadd.f32 %v1497_v34, %v398_v10  ;;  %v463_v36 = vadd.f32 %v1497_v34, %v462_v14  ;;  %v410_v17 = vadd.f32 %v1105_v15, %v1497_v34  ;;  %v1121_v37 = vpop.f32.mrb[6].mxu1  ;;  %v401_v18 = vpop.f32.mrb[7].mxu0 }
 0x111   :  { %952 = vst [vmem:[%s1689_s7] sm:$0xff] %v951_v33   ;;  %1050 = vst [vmem:[%s1689_s7 + $0x40] sm:$0xff] %v991_v11   ;;  %vm515_vm8 = vcmp.gt.f32.partialorder %v407_v12, 0.0  ;;  %v547_v29 = vmul.f32 0.1, %v407_v12  ;;  %vm531_vm9 = vcmp.gt.f32.partialorder %v471_v35, 0.0  ;;  %v465_v40 = vpop.f32.mrb[7].mxu1  ;;  %v474_v20 = vadd.f32 %v1121_v37, %v1497_v34 }
 0x112   :  { %v563_v39 = vmul.f32 0.1, %v471_v35  ;;  %vm513_vm10 = vcmp.gt.f32.partialorder %v399_v16, 0.0  ;;  %v545_v22 = vmul.f32 0.1, %v399_v16  ;;  %vm529_vm11 = vcmp.gt.f32.partialorder %v463_v36, 0.0 }
 0x113   :  { %v561_v19 = vmul.f32 0.1, %v463_v36  ;;  %v579_v42 = vsel %vm515_vm8, %v407_v12, %v547_v29  ;;  %vm516_vm12 = vcmp.gt.f32.partialorder %v410_v17, 0.0  ;;  %v548_v43 = vmul.f32 0.1, %v410_v17 }
 0x114   :  { %v595_v44 = vsel %vm531_vm9, %v471_v35, %v563_v39  ;;  %v577_v46 = vsel %vm513_vm10, %v399_v16, %v545_v22  ;;  %v402_v41 = vadd.f32 %v1497_v34, %v401_v18  ;;  %v1108_v47 = vpop.f32.mrb[8].mxu0  ;;  %v466_v21 = vadd.f32 %v1497_v34, %v465_v40 }
 0x115   :  { %v593_v48 = vsel %vm529_vm11, %v463_v36, %v561_v19  ;;  %v580_v49 = vsel %vm516_vm12, %v410_v17, %v548_v43  ;;  %v423_v13 = vadd.f32 %v1108_v47, %v1497_v34  ;;  %v414_v50 = vpop.f32.mrb[9].mxu0  ;;  %vm532_vm13 = vcmp.gt.f32.partialorder %v474_v20, 0.0 }
 0x116   :  { %v966_v51 = vpack.c.bf16 %v580_v49, %v579_v42  ;;  %v564_v38 = vmul.f32 0.1, %v474_v20  ;;  %vm514_vm14 = vcmp.gt.f32.partialorder %v402_v41, 0.0  ;;  %v1124_v52 = vpop.f32.mrb[8].mxu1  ;;  %v1109_v23 = vpop.f32.mrb[10].mxu0  ;;  %vm530_vm15 = vcmp.gt.f32.partialorder %v466_v21, 0.0 }
 0x117   :  { %v546_v53 = vmul.f32 0.1, %v402_v41  ;;  %v562_v45 = vmul.f32 0.1, %v466_v21  ;;  %vm519_vm0 = vcmp.gt.f32.partialorder %v423_v13, 0.0  ;;  %v487_v55 = vadd.f32 %v1124_v52, %v1497_v34  ;;  %v478_v25 = vpop.f32.mrb[9].mxu1 }
 0x118   :  { %1045 = vst [vmem:[%s1689_s7 + $0x18] sm:$0xff] %v966_v51   ;;  %v596_v54 = vsel %vm532_vm13, %v474_v20, %v564_v38  ;;  %v551_v24 = vmul.f32 0.1, %v423_v13  ;;  %v415_v56 = vadd.f32 %v1497_v34, %v414_v50  ;;  %v417_v57 = vpop.f32.mrb[11].mxu0  ;;  %v479_v27 = vadd.f32 %v1497_v34, %v478_v25  ;;  %v1125_v60 = vpop.f32.mrb[10].mxu1 }
 0x119   :  { %v1006_v58 = vpack.c.bf16 %v596_v54, %v595_v44  ;;  %v578_v59 = vsel %vm514_vm14, %v402_v41, %v546_v53  ;;  %v594_v26 = vsel %vm530_vm15, %v466_v21, %v562_v45  ;;  %vm535_vm1 = vcmp.gt.f32.partialorder %v487_v55, 0.0  ;;  %v481_v28 = vpop.f32.mrb[11].mxu1 }
 0x11a   :  { %v961_v61 = vpack.c.bf16 %v578_v59, %v577_v46  ;;  %v1001_v62 = vpack.c.bf16 %v594_v26, %v593_v48  ;;  %v583_v63 = vsel %vm519_vm0, %v423_v13, %v551_v24  ;;  %v567_v0 = vmul.f32 0.1, %v487_v55 }
 0x11b   :  { %1053 = vst [vmem:[%s1689_s7 + $0x58] sm:$0xff] %v1006_v58   ;;  %vm517_vm2 = vcmp.gt.f32.partialorder %v415_v56, 0.0  ;;  %v549_v1 = vmul.f32 0.1, %v415_v56  ;;  %v565_v30 = vmul.f32 0.1, %v479_v27  ;;  %v426_v2 = vadd.f32 %v1109_v23, %v1497_v34 }
 0x11c   :  { %1044 = vst [vmem:[%s1689_s7 + $0x10] sm:$0xff] %v961_v61   ;;  %1052 = vst [vmem:[%s1689_s7 + $0x50] sm:$0xff] %v1001_v62   ;;  %v490_v3 = vadd.f32 %v1125_v60, %v1497_v34  ;;  %v418_v4 = vadd.f32 %v1497_v34, %v417_v57  ;;  %v1112_v5 = vpop.f32.mrb[12].mxu0  ;;  %v599_v31 = vsel %vm535_vm1, %v487_v55, %v567_v0  ;;  %vm533_vm3 = vcmp.gt.f32.partialorder %v479_v27, 0.0 }
 0x11d   :  { %v482_v6 = vadd.f32 %v1497_v34, %v481_v28  ;;  %v439_v7 = vadd.f32 %v1112_v5, %v1497_v34  ;;  %v430_v32 = vpop.f32.mrb[13].mxu0  ;;  %v581_v8 = vsel %vm517_vm2, %v415_v56, %v549_v1  ;;  %vm520_vm4 = vcmp.gt.f32.partialorder %v426_v2, 0.0 }
 0x11e   :  { %v552_v9 = vmul.f32 0.1, %v426_v2  ;;  %vm536_vm5 = vcmp.gt.f32.partialorder %v490_v3, 0.0  ;;  %v1128_v10 = vpop.f32.mrb[12].mxu1  ;;  %v1113_v33 = vpop.f32.mrb[14].mxu0  ;;  %vm518_vm6 = vcmp.gt.f32.partialorder %v418_v4, 0.0  ;;  %v597_v35 = vsel %vm533_vm3, %v479_v27, %v565_v30 }
 0x11f   :  { %v568_v11 = vmul.f32 0.1, %v490_v3  ;;  %v550_v12 = vmul.f32 0.1, %v418_v4  ;;  %vm534_vm7 = vcmp.gt.f32.partialorder %v482_v6, 0.0  ;;  %v494_v36 = vpop.f32.mrb[13].mxu1  ;;  %v503_v29 = vadd.f32 %v1128_v10, %v1497_v34 }
 0x120   :  { %v584_v14 = vsel %vm520_vm4, %v426_v2, %v552_v9  ;;  %v566_v15 = vmul.f32 0.1, %v482_v6  ;;  %v555_v16 = vmul.f32 0.1, %v439_v7  ;;  %v1129_v39 = vpop.f32.mrb[14].mxu1  ;;  %v433_v22 = vpop.f32.mrb[15].mxu0  ;;  %v431_v46 = vadd.f32 %v1497_v34, %v430_v32 }
 0x121   :  { %v976_v17 = vpack.c.bf16 %v584_v14, %v583_v63  ;;  %v600_v37 = vsel %vm536_vm5, %v490_v3, %v568_v11  ;;  %v582_v18 = vsel %vm518_vm6, %v418_v4, %v550_v12  ;;  %vm523_vm8 = vcmp.gt.f32.partialorder %v439_v7, 0.0  ;;  %v497_v40 = vpop.f32.mrb[15].mxu1 }
 0x122   :  { %v1016_v19 = vpack.c.bf16 %v600_v37, %v599_v31  ;;  %v971_v42 = vpack.c.bf16 %v582_v18, %v581_v8  ;;  %v598_v43 = vsel %vm534_vm7, %v482_v6, %v566_v15  ;;  %v495_v20 = vadd.f32 %v1497_v34, %v494_v36 }
 0x123   :  { %1047 = vst [vmem:[%s1689_s7 + $0x28] sm:$0xff] %v976_v17   ;;  %v1011_v44 = vpack.c.bf16 %v598_v43, %v597_v35  ;;  %v442_v41 = vadd.f32 %v1113_v33, %v1497_v34  ;;  %v506_v47 = vadd.f32 %v1129_v39, %v1497_v34  ;;  %v434_v48 = vadd.f32 %v1497_v34, %v433_v22 }
 0x124   :  { %1055 = vst [vmem:[%s1689_s7 + $0x68] sm:$0xff] %v1016_v19   ;;  %1046 = vst [vmem:[%s1689_s7 + $0x20] sm:$0xff] %v971_v42   ;;  %v587_v49 = vsel %vm523_vm8, %v439_v7, %v555_v16  ;;  %vm539_vm9 = vcmp.gt.f32.partialorder %v503_v29, 0.0  ;;  %v571_v21 = vmul.f32 0.1, %v503_v29  ;;  %v498_v13 = vadd.f32 %v1497_v34, %v497_v40 }
 0x125   :  { %1054 = vst [vmem:[%s1689_s7 + $0x60] sm:$0xff] %v1011_v44   ;;  %vm521_vm10 = vcmp.gt.f32.partialorder %v431_v46, 0.0  ;;  %v553_v50 = vmul.f32 0.1, %v431_v46  ;;  %vm524_vm11 = vcmp.gt.f32.partialorder %v442_v41, 0.0  ;;  %vm540_vm12 = vcmp.gt.f32.partialorder %v506_v47, 0.0 }
 0x126   :  { %v556_v51 = vmul.f32 0.1, %v442_v41  ;;  %v569_v38 = vmul.f32 0.1, %v495_v20  ;;  %v572_v52 = vmul.f32 0.1, %v506_v47  ;;  %v603_v45 = vsel %vm539_vm9, %v503_v29, %v571_v21 }
 0x127   :  { %vm522_vm13 = vcmp.gt.f32.partialorder %v434_v48, 0.0  ;;  %vm537_vm14 = vcmp.gt.f32.partialorder %v495_v20, 0.0  ;;  %v554_v53 = vmul.f32 0.1, %v434_v48  ;;  %vm538_vm15 = vcmp.gt.f32.partialorder %v498_v13, 0.0 }
 0x128   :  { %v588_v23 = vsel %vm524_vm11, %v442_v41, %v556_v51  ;;  %v604_v24 = vsel %vm540_vm12, %v506_v47, %v572_v52  ;;  %v570_v55 = vmul.f32 0.1, %v498_v13  ;;  %v585_v56 = vsel %vm521_vm10, %v431_v46, %v553_v50 }
 0x129   :  { %v986_v54 = vpack.c.bf16 %v588_v23, %v587_v49  ;;  %v1026_v25 = vpack.c.bf16 %v604_v24, %v603_v45  ;;  %v586_v34 = vsel %vm522_vm13, %v434_v48, %v554_v53  ;;  %v601_v57 = vsel %vm537_vm14, %v495_v20, %v569_v38 }
 0x12a   :  { %v981_v58 = vpack.c.bf16 %v586_v34, %v585_v56  ;;  %v602_v59 = vsel %vm538_vm15, %v498_v13, %v570_v55 }
 0x12b   :  { %1049 = vst [vmem:[%s1689_s7 + $0x38] sm:$0xff] %v986_v54   ;;  %1057 = vst [vmem:[%s1689_s7 + $0x78] sm:$0xff] %v1026_v25   ;;  %v1021_v26 = vpack.c.bf16 %v602_v59, %v601_v57 }
 0x12c   :  { %1048 = vst [vmem:[%s1689_s7 + $0x30] sm:$0xff] %v981_v58  }
 0x12d   :  { %1056 = vst [vmem:[%s1689_s7 + $0x70] sm:$0xff] %v1021_v26  }
 0x12e PF:  { %p851_p1 = scmp.gt.s32.totalorder %s1682_s0, 0 }
 0x12f   :  { %v1161_v27 = vmov (!%p851_p1), 0  }
 0x130   :  { %768 = sbr.rel (%p851_p1) target bundleno = 320 (0x140), region = 37  ;;  %769 = vst [vmem:[%s1689_s7] sm:$0xf] (!%p851_p1), %v1161_v27  ;;  %770 = vst [vmem:[%s1689_s7 + $0x4] sm:$0xf] (!%p851_p1), %v1161_v27 }
 0x131   :  { %771 = vst [vmem:[%s1689_s7 + $0x8] sm:$0xf] (!%p851_p1), %v1161_v27  ;;  %772 = vst [vmem:[%s1689_s7 + $0xc] sm:$0xf] (!%p851_p1), %v1161_v27 }
 0x132   :  { %773 = vst [vmem:[%s1689_s7 + $0x10] sm:$0xf] (!%p851_p1), %v1161_v27  ;;  %774 = vst [vmem:[%s1689_s7 + $0x14] sm:$0xf] (!%p851_p1), %v1161_v27 }
 0x133   :  { %775 = vst [vmem:[%s1689_s7 + $0x18] sm:$0xf] (!%p851_p1), %v1161_v27  ;;  %776 = vst [vmem:[%s1689_s7 + $0x1c] sm:$0xf] (!%p851_p1), %v1161_v27 }
 0x134   :  { %777 = vst [vmem:[%s1689_s7 + $0x20] sm:$0xf] (!%p851_p1), %v1161_v27  ;;  %778 = vst [vmem:[%s1689_s7 + $0x24] sm:$0xf] (!%p851_p1), %v1161_v27 }
 0x135   :  { %779 = vst [vmem:[%s1689_s7 + $0x28] sm:$0xf] (!%p851_p1), %v1161_v27  ;;  %780 = vst [vmem:[%s1689_s7 + $0x2c] sm:$0xf] (!%p851_p1), %v1161_v27 }
 0x136   :  { %781 = vst [vmem:[%s1689_s7 + $0x30] sm:$0xf] (!%p851_p1), %v1161_v27  ;;  %782 = vst [vmem:[%s1689_s7 + $0x34] sm:$0xf] (!%p851_p1), %v1161_v27 }
 0x137   :  { %783 = vst [vmem:[%s1689_s7 + $0x38] sm:$0xf] %v1161_v27  ;;  %784 = vst [vmem:[%s1689_s7 + $0x3c] sm:$0xf] %v1161_v27 }
 0x138   :  { %785 = vst [vmem:[%s1689_s7 + $0x40] sm:$0xf] %v1161_v27  ;;  %786 = vst [vmem:[%s1689_s7 + $0x44] sm:$0xf] %v1161_v27 }
 0x139   :  { %787 = vst [vmem:[%s1689_s7 + $0x48] sm:$0xf] %v1161_v27  ;;  %788 = vst [vmem:[%s1689_s7 + $0x4c] sm:$0xf] %v1161_v27 }
 0x13a   :  { %789 = vst [vmem:[%s1689_s7 + $0x50] sm:$0xf] %v1161_v27  ;;  %790 = vst [vmem:[%s1689_s7 + $0x54] sm:$0xf] %v1161_v27 }
 0x13b   :  { %791 = vst [vmem:[%s1689_s7 + $0x58] sm:$0xf] %v1161_v27  ;;  %792 = vst [vmem:[%s1689_s7 + $0x5c] sm:$0xf] %v1161_v27 }
 0x13c   :  { %793 = vst [vmem:[%s1689_s7 + $0x60] sm:$0xf] %v1161_v27  ;;  %794 = vst [vmem:[%s1689_s7 + $0x64] sm:$0xf] %v1161_v27 }
 0x13d   :  { %795 = vst [vmem:[%s1689_s7 + $0x68] sm:$0xf] %v1161_v27  ;;  %796 = vst [vmem:[%s1689_s7 + $0x6c] sm:$0xf] %v1161_v27 }
 0x13e   :  { %797 = vst [vmem:[%s1689_s7 + $0x70] sm:$0xf] %v1161_v27  ;;  %798 = vst [vmem:[%s1689_s7 + $0x74] sm:$0xf] %v1161_v27 }
 0x13f   :  { %799 = vst [vmem:[%s1689_s7 + $0x78] sm:$0xf] %v1161_v27  ;;  %800 = vst [vmem:[%s1689_s7 + $0x7c] sm:$0xf] %v1161_v27 }
 0x140 PF:  {}

// kernel: spvblock_forward.9
= control target key start
LH: loop header
LB: loop body
LE: loop exit
PB: predicated region body
PF: predicated region fallthrough
CT: control target
= control target key end

     0   :  { %s2178_s24 = smov 0   ;;  %s2800_s0 = inlined_call_operand.vmem [shape: s32[1,512], index: 0, kind: input, shape index: {}]   ;;  %s2801_s1 = inlined_call_operand.vmem [shape: bf16[512,256], index: 1, kind: input, shape index: {}]   ;;  %s2802_s2 = inlined_call_operand.vmem [shape: bf16[512,128], index: 2, kind: input, shape index: {}]   ;;  %s2803_s3 = inlined_call_operand.vmem [shape: bf16[256,128], index: 3, kind: input, shape index: {}]   ;;  %s2804_s4 = inlined_call_operand.vmem [shape: f32[1,128], index: 4, kind: input, shape index: {}]   ;;  %s2805_s5 = inlined_call_operand.vmem [shape: bf16[128,128], index: 5, kind: input, shape index: {}]   ;;  %s2806_s6 = inlined_call_operand.vmem [shape: f32[1,128], index: 6, kind: input, shape index: {}]   ;;  %s2807_s7 = inlined_call_operand.vmem [shape: f32[72,256], index: 7, kind: output, shape index: {}]  }
   0x1 LB: > { %s2184_s25 = sadd.s32 4294967295, %s2133_s24   ;;  %p1700_p0 = scmp.ge.s32.totalorder %s2133_s24, 1  ;;  %s2133_s24 = sphi %s2178_s24, %s17_s24  }
   0x2   : > { %p255_p1 = scmp.lt.s32.totalorder %s2133_s24, 3 }
   0x4   : > { %p256_p2 = pnand %p1700_p0, %p255_p1 }
   0x5   : > { %s1701_s26 = sshll.u32 (!%p256_p2), %s2184_s25, 1  ;;  %s1702_s27 = sshll.u32 (!%p256_p2), %s2184_s25, 5 }
   0x6   : > { %259 = sbr.rel (%p256_p2) target bundleno = 1026 (0x402), region = 48  ;;  %p293_p3 = scmp.lt.s32.totalorder (!%p256_p2), %s1701_s26, 3 }
   0x7   : > { %p298_p4 = scmp.lt.s32.totalorder (!%p256_p2), %s1702_s27, 63  ;;  %p1707_p5 = scmp.ne.s32.totalorder (!%p256_p2), %s2184_s25, 0 }
   0xd   : > { %s2823_s26 = smov (!%p293_p3, %s1701_s26), 3  ;;  %s2825_s27 = smov (!%p298_p4, %s1702_s27), 63 }
   0xe   : > { %s295_s30 = scalar_lea.vmem %s2800_s0, %s2823_s26  ;;  %s1823_s8 = sshll.u32 %s2825_s27, 3  ;;  %v2135_v0 = vmov (!%p1707_p5), 0.0  }
   0xf   : > { %s1706_s9 = sshll.u32 %s2825_s27, 2  ;;  %s2199_s12 = scalar_lea.vmem %s2801_s1, %s1823_s8  ;;  %315 = vst [vmem:[%s2807_s7] sm:$0xff] (!%p1707_p5), %v2135_v0  ;;  %316 = vst [vmem:[%s2807_s7 + $0x8] sm:$0xff] (!%p1707_p5), %v2135_v0 }
  0x10   : > { %s2204_s15 = scalar_lea.vmem %s2802_s2, %s1706_s9  ;;  %314 = sbr.rel (%p1707_p5) target bundleno = 24 (0x18), region = 52  ;;  %317 = vst [vmem:[%s2807_s7 + $0x10] sm:$0xff] (!%p1707_p5), %v2135_v0  ;;  %318 = vst [vmem:[%s2807_s7 + $0x18] sm:$0xff] (!%p1707_p5), %v2135_v0 }
  0x11   : > { %319 = vst [vmem:[%s2807_s7 + $0x20] sm:$0xff] (!%p1707_p5), %v2135_v0  ;;  %320 = vst [vmem:[%s2807_s7 + $0x28] sm:$0xff] (!%p1707_p5), %v2135_v0 }
  0x12   : > { %321 = vst [vmem:[%s2807_s7 + $0x30] sm:$0xff] (!%p1707_p5), %v2135_v0  ;;  %322 = vst [vmem:[%s2807_s7 + $0x38] sm:$0xff] (!%p1707_p5), %v2135_v0 }
  0x13   : > { %323 = vst [vmem:[%s2807_s7 + $0x40] sm:$0xff] (!%p1707_p5), %v2135_v0  ;;  %324 = vst [vmem:[%s2807_s7 + $0x48] sm:$0xff] (!%p1707_p5), %v2135_v0 }
  0x14   : > { %325 = vst [vmem:[%s2807_s7 + $0x50] sm:$0xff] (!%p1707_p5), %v2135_v0  ;;  %326 = vst [vmem:[%s2807_s7 + $0x58] sm:$0xff] (!%p1707_p5), %v2135_v0 }
  0x15   : > { %327 = vst [vmem:[%s2807_s7 + $0x60] sm:$0xff] (!%p1707_p5), %v2135_v0  ;;  %328 = vst [vmem:[%s2807_s7 + $0x68] sm:$0xff] (!%p1707_p5), %v2135_v0 }
  0x16   : > { %329 = vst [vmem:[%s2807_s7 + $0x70] sm:$0xff] (!%p1707_p5), %v2135_v0  ;;  %330 = vst [vmem:[%s2807_s7 + $0x78] sm:$0xff] (!%p1707_p5), %v2135_v0 }
  0x17   : > { %331 = vst [vmem:[%s2807_s7 + $0x80] sm:$0xff] %v2135_v0  ;;  %332 = vst [vmem:[%s2807_s7 + $0x88] sm:$0xff] %v2135_v0 }
  0x18 PF: > { %v2019_v1 = vld [vmem:[%s2803_s3 + $0x40] sm:$0xff]   ;;  %v2021_v3 = vld [vmem:[%s2803_s3 + $0x48] sm:$0xff]   ;;  %v2023_v5 = vld [vmem:[%s2803_s3 + $0x50] sm:$0xff]   ;;  %p1820_p6 = scmp.ne.s32.totalorder %s2184_s25, 1 }
  0x19   : > { %v2020_v2 = vld [vmem:[%s2803_s3] sm:$0xff]   ;;  %1824 = vmatprep.subr.bf16.mxu0 %v2019_v1  ;;  %v2022_v4 = vld [vmem:[%s2803_s3 + $0x8] sm:$0xff]   ;;  %v2024_v6 = vld [vmem:[%s2803_s3 + $0x10] sm:$0xff]  }
  0x1a   : > { %1825 = vmatpush3.bf16.msra.mxu0 %v2020_v2  ;;  %v2025_v7 = vld [vmem:[%s2803_s3 + $0x58] sm:$0xff]   ;;  %v2027_v9 = vld [vmem:[%s2803_s3 + $0x60] sm:$0xff]   ;;  %v2029_v11 = vld [vmem:[%s2803_s3 + $0x68] sm:$0xff]  }
  0x1b   : > { %1826 = vmatprep.subr.bf16.mxu0 %v2021_v3  ;;  %v2026_v8 = vld [vmem:[%s2803_s3 + $0x18] sm:$0xff]   ;;  %v2028_v10 = vld [vmem:[%s2803_s3 + $0x20] sm:$0xff]   ;;  %v2030_v13 = vld [vmem:[%s2803_s3 + $0x28] sm:$0xff]  }
  0x1c   : > { %v2037_v12 = vld [vmem:[%s2199_s12 + $0x4] ss:$8 sps:$4 sm:$0xff]   ;;  %v2031_v14 = vld [vmem:[%s2803_s3 + $0x70] sm:$0xff]   ;;  %v2033_v16 = vld [vmem:[%s2803_s3 + $0x78] sm:$0xff]  }
  0x1d   : > { %692 = vmatprep.mubr.bf16.mxu0 %v2037_v12  ;;  %v2032_v15 = vld [vmem:[%s2803_s3 + $0x30] sm:$0xff]   ;;  %v2034_v17 = vld [vmem:[%s2803_s3 + $0x38] sm:$0xff]   ;;  %v2035_v18 = vld [vmem:[%s2199_s12] ss:$8 sps:$4 sm:$0xff]  }
  0x1e   : > { %1827 = vmatpush3.bf16.msra.mxu0 %v2022_v4  ;;  %v2038_v19 = vld [vmem:[%s2199_s12 + $0x14] ss:$8 sps:$4 sm:$0xff]   ;;  %v2040_v20 = vld [vmem:[%s2199_s12 + $0x10] ss:$8 sps:$4 sm:$0xff]   ;;  %v2041_v21 = vld [vmem:[%s2199_s12 + $0x24] ss:$8 sps:$4 sm:$0xff]  }
  0x1f   : > { %1828 = vmatprep.subr.bf16.mxu0 %v2023_v5  ;;  %v2083_v22 = vld [vmem:[%s2805_s5] sm:$0xff]   ;;  %v2084_v23 = vld [vmem:[%s2805_s5 + $0x8] sm:$0xff]   ;;  %v2085_v24 = vld [vmem:[%s2805_s5 + $0x10] sm:$0xff]  }
  0x20   : > { %1960 = vmatprep.subr.bf16.mxu1 %v2083_v22  ;;  %v2043_v25 = vld [vmem:[%s2199_s12 + $0x20] ss:$8 sps:$4 sm:$0xff]   ;;  %v2044_v26 = vld [vmem:[%s2199_s12 + $0x34] ss:$8 sps:$4 sm:$0xff]   ;;  %v2046_v27 = vld [vmem:[%s2199_s12 + $0x30] ss:$8 sps:$4 sm:$0xff]  }
  0x21   : > { %1961 = vmatpush3.bf16.msra.mxu1 %v2083_v22  ;;  %v2047_v28 = vld [vmem:[%s2199_s12 + $0x44] ss:$8 sps:$4 sm:$0xff]   ;;  %v2049_v29 = vld [vmem:[%s2199_s12 + $0x40] ss:$8 sps:$4 sm:$0xff]   ;;  %v2050_v30 = vld [vmem:[%s2199_s12 + $0x54] ss:$8 sps:$4 sm:$0xff]  }
  0x22   : > { %1829 = vmatpush3.bf16.msra.mxu0 %v2024_v6  ;;  %1962 = vmatprep.subr.bf16.mxu1 %v2084_v23  ;;  %v2052_v31 = vld [vmem:[%s2199_s12 + $0x50] ss:$8 sps:$4 sm:$0xff]   ;;  %v2053_v32 = vld [vmem:[%s2199_s12 + $0x64] ss:$8 sps:$4 sm:$0xff]   ;;  %v2055_v33 = vld [vmem:[%s2199_s12 + $0x60] ss:$8 sps:$4 sm:$0xff]  }
  0x23   : > { %1830 = vmatprep.subr.bf16.mxu0 %v2025_v7  ;;  %v2056_v34 = vld [vmem:[%s2199_s12 + $0x74] ss:$8 sps:$4 sm:$0xff]   ;;  %v2058_v35 = vld [vmem:[%s2199_s12 + $0x70] ss:$8 sps:$4 sm:$0xff]   ;;  %v2059_v36 = vld [vmem:[%s2199_s12 + $0x84] ss:$8 sps:$4 sm:$0xff]  }
  0x24   : > { %v2061_v37 = vld [vmem:[%s2199_s12 + $0x80] ss:$8 sps:$4 sm:$0xff]   ;;  %v2062_v38 = vld [vmem:[%s2199_s12 + $0x94] ss:$8 sps:$4 sm:$0xff]   ;;  %v2064_v39 = vld [vmem:[%s2199_s12 + $0x90] ss:$8 sps:$4 sm:$0xff]  }
  0x25   : > { %1963 = vmatpush3.bf16.msra.mxu1 %v2084_v23  ;;  %v2065_v40 = vld [vmem:[%s2199_s12 + $0xa4] ss:$8 sps:$4 sm:$0xff]   ;;  %v2067_v41 = vld [vmem:[%s2199_s12 + $0xa0] ss:$8 sps:$4 sm:$0xff]   ;;  %v2068_v42 = vld [vmem:[%s2199_s12 + $0xb4] ss:$8 sps:$4 sm:$0xff]  }
  0x26   : > { %1831 = vmatpush3.bf16.msra.mxu0 %v2026_v8  ;;  %1964 = vmatprep.subr.bf16.mxu1 %v2085_v24  ;;  %v2086_v43 = vld [vmem:[%s2805_s5 + $0x18] sm:$0xff]   ;;  %v2071_v45 = vld [vmem:[%s2199_s12 + $0xc4] ss:$8 sps:$4 sm:$0xff]   ;;  %v2073_v48 = vld [vmem:[%s2199_s12 + $0xc0] ss:$8 sps:$4 sm:$0xff]  }
  0x27   : > { %1832 = vmatprep.subr.bf16.mxu0 %v2027_v9  ;;  %v2070_v44 = vld [vmem:[%s2199_s12 + $0xb0] ss:$8 sps:$4 sm:$0xff]   ;;  %v2087_v46 = vld [vmem:[%s2805_s5 + $0x20] sm:$0xff]   ;;  %v2088_v47 = vld [vmem:[%s2805_s5 + $0x28] sm:$0xff]  }
  0x28   : > { %v2074_v49 = vld [vmem:[%s2199_s12 + $0xd4] ss:$8 sps:$4 sm:$0xff]   ;;  %v2076_v52 = vld [vmem:[%s2199_s12 + $0xd0] ss:$8 sps:$4 sm:$0xff]   ;;  %v2077_v53 = vld [vmem:[%s2199_s12 + $0xe4] ss:$8 sps:$4 sm:$0xff]  }
  0x29   : > { %1965 = vmatpush3.bf16.msra.mxu1 %v2085_v24  ;;  %v2089_v50 = vld [vmem:[%s2805_s5 + $0x30] sm:$0xff]   ;;  %v2090_v51 = vld [vmem:[%s2805_s5 + $0x38] sm:$0xff]   ;;  %v2079_v54 = vld [vmem:[%s2199_s12 + $0xe0] ss:$8 sps:$4 sm:$0xff]  }
  0x2a   : > { %1833 = vmatpush3.bf16.msra.mxu0 %v2028_v10  ;;  %1966 = vmatprep.subr.bf16.mxu1 %v2086_v43  ;;  %v2080_v55 = vld [vmem:[%s2199_s12 + $0xf4] ss:$8 sps:$4 sm:$0xff]   ;;  %v2082_v56 = vld [vmem:[%s2199_s12 + $0xf0] ss:$8 sps:$4 sm:$0xff]   ;;  %v2368_v58 = vld [vmem:[%s2804_s4] ss:$0 sm:$0xff] }
  0x2b   : > { %1834 = vmatprep.subr.bf16.mxu0 %v2029_v11 }
  0x2d   : > { %1967 = vmatpush3.bf16.msra.mxu1 %v2086_v43 }
  0x2e   : > { %1835 = vmatpush3.bf16.msra.mxu0 %v2030_v13  ;;  %1968 = vmatprep.subr.bf16.mxu1 %v2087_v46 }
  0x2f   : > { %1836 = vmatprep.subr.bf16.mxu0 %v2031_v14 }
  0x31   : > { %1969 = vmatpush3.bf16.msra.mxu1 %v2087_v46 }
  0x32   : > { %1837 = vmatpush3.bf16.msra.mxu0 %v2032_v15  ;;  %1970 = vmatprep.subr.bf16.mxu1 %v2088_v47 }
  0x33   : > { %1838 = vmatprep.subr.bf16.mxu0 %v2033_v16 }
  0x35   : > { %1971 = vmatpush3.bf16.msra.mxu1 %v2088_v47 }
  0x36   : > { %1839 = vmatpush3.bf16.msra.mxu0 %v2034_v17  ;;  %1972 = vmatprep.subr.bf16.mxu1 %v2089_v50 }
  0x39   : > { %693 = vmatmul.mubr.bf16.vlgmr.msra.gmra.mrb[0].mxu0 %v2035_v18  ;;  %1973 = vmatpush3.bf16.msra.mxu1 %v2089_v50 }
  0x3a   : > { %700 = vmatprep.mubr.bf16.mxu0 %v2038_v19  ;;  %1974 = vmatprep.subr.bf16.mxu1 %v2090_v51 }
  0x3d   : > { %1975 = vmatpush3.bf16.msra.mxu1 %v2090_v51 }
  0x41   : > { %701 = vmatmul.mubr.bf16.gmra.mrb[4].mxu0 %v2040_v20 }
  0x42   : > { %708 = vmatprep.mubr.bf16.mxu0 %v2041_v21 }
  0x49   : > { %709 = vmatmul.mubr.bf16.gmra.mrb[8].mxu0 %v2043_v25 }
  0x4a   : > { %716 = vmatprep.mubr.bf16.mxu0 %v2044_v26 }
  0x51   : > { %717 = vmatmul.mubr.bf16.gmra.mrb[12].mxu0 %v2046_v27 }
  0x52   : > { %724 = vmatprep.mubr.bf16.mxu0 %v2047_v28 }
  0x59   : > { %725 = vmatmul.mubr.bf16.gmra.mrb[16].mxu0 %v2049_v29 }
  0x5a   : > { %732 = vmatprep.mubr.bf16.mxu0 %v2050_v30 }
  0x61   : > { %733 = vmatmul.mubr.bf16.gmra.mrb[20].mxu0 %v2052_v31 }
  0x62   : > { %740 = vmatprep.mubr.bf16.mxu0 %v2053_v32 }
  0x69   : > { %741 = vmatmul.mubr.bf16.gmra.mrb[24].mxu0 %v2055_v33 }
  0x6a   : > { %748 = vmatprep.mubr.bf16.mxu0 %v2056_v34 }
  0x71   : > { %749 = vmatmul.mubr.bf16.gmra.mrb[28].mxu0 %v2058_v35 }
  0x72   : > { %756 = vmatprep.mubr.bf16.mxu0 %v2059_v36 }
  0x79   : > { %757 = vmatmul.mubr.bf16.gmra.mrb[32].mxu0 %v2061_v37 }
  0x7a   : > { %764 = vmatprep.mubr.bf16.mxu0 %v2062_v38 }
  0x81   : > { %765 = vmatmul.mubr.bf16.gmra.mrb[36].mxu0 %v2064_v39 }
  0x82   : > { %772 = vmatprep.mubr.bf16.mxu0 %v2065_v40 }
  0x89   : > { %773 = vmatmul.mubr.bf16.gmra.mrb[40].mxu0 %v2067_v41 }
  0x8a   : > { %780 = vmatprep.mubr.bf16.mxu0 %v2068_v42 }
  0x91   : > { %781 = vmatmul.mubr.bf16.gmra.mrb[44].mxu0 %v2070_v44 }
  0x92   : > { %788 = vmatprep.mubr.bf16.mxu0 %v2071_v45 }
  0x99   : > { %789 = vmatmul.mubr.bf16.gmra.mrb[48].mxu0 %v2073_v48 }
  0x9a   : > { %796 = vmatprep.mubr.bf16.mxu0 %v2074_v49 }
  0xa1   : > { %797 = vmatmul.mubr.bf16.gmra.mrb[52].mxu0 %v2076_v52 }
  0xa2   : > { %804 = vmatprep.mubr.bf16.mxu0 %v2077_v53 }
  0xa9   : > { %805 = vmatmul.mubr.bf16.gmra.mrb[56].mxu0 %v2079_v54 }
  0xaa   : > { %812 = vmatprep.mubr.bf16.mxu0 %v2080_v55 }
  0xb1   : > { %813 = vmatmul.mubr.bf16.gmra.mrb[60].mxu0 %v2082_v56 }
 0x10c   : > { %v1840_v57 = vpop.f32.mrb[0].mxu0 }
 0x10d   : > { %v1841_v59 = vpop.f32.mrb[1].mxu0 }
 0x10e   : > { %v1842_v60 = vadd.f32 %v1841_v59, %v1840_v57  ;;  %v1843_v61 = vpop.f32.mrb[2].mxu0 }
 0x10f   : > { %v1844_v62 = vpop.f32.mrb[3].mxu0 }
 0x110   : > { %v695_v63 = vadd.f32 %v1842_v60, %v2368_v58  ;;  %v1845_v0 = vadd.f32 %v1844_v62, %v1843_v61 }
 0x112   : > { %v698_v1 = vadd.f32 %v1845_v0, %v2368_v58  ;;  %v853_v2 = vmul.f32 0.1, %v695_v63  ;;  %vm821_vm0 = vcmp.gt.f32.partialorder %v695_v63, 0.0 }
 0x114   : > { %v1846_v3 = vpop.f32.mrb[4].mxu0  ;;  %vm822_vm1 = vcmp.gt.f32.partialorder %v698_v1, 0.0  ;;  %v854_v4 = vmul.f32 0.1, %v698_v1  ;;  %v885_v8 = vsel %vm821_vm0, %v695_v63, %v853_v2 }
 0x115   : > { %v1847_v5 = vpop.f32.mrb[5].mxu0 }
 0x116   : > { %v1848_v6 = vadd.f32 %v1847_v5, %v1846_v3  ;;  %v1849_v7 = vpop.f32.mrb[6].mxu0  ;;  %v886_v9 = vsel %vm822_vm1, %v698_v1, %v854_v4 }
 0x117   : > { %v1850_v10 = vpop.f32.mrb[7].mxu0  ;;  %v917_v11 = vpack.c.bf16 %v886_v9, %v885_v8 }
 0x118   : > { %v703_v12 = vadd.f32 %v1848_v6, %v2368_v58  ;;  %v1851_v13 = vadd.f32 %v1850_v10, %v1849_v7 }
 0x119   : > { %1976 = vmatprep.mubr.bf16.mxu1 %v917_v11 }
 0x11a   : > { %v855_v14 = vmul.f32 0.1, %v703_v12  ;;  %v706_v15 = vadd.f32 %v1851_v13, %v2368_v58  ;;  %vm823_vm2 = vcmp.gt.f32.partialorder %v703_v12, 0.0 }
 0x11c   : > { %vm824_vm3 = vcmp.gt.f32.partialorder %v706_v15, 0.0  ;;  %v856_v16 = vmul.f32 0.1, %v706_v15  ;;  %v1852_v17 = vpop.f32.mrb[8].mxu0  ;;  %v887_v21 = vsel %vm823_vm2, %v703_v12, %v855_v14 }
 0x11d   : > { %v1853_v18 = vpop.f32.mrb[9].mxu0 }
 0x11e   : > { %v1854_v19 = vadd.f32 %v1853_v18, %v1852_v17  ;;  %v1855_v20 = vpop.f32.mrb[10].mxu0  ;;  %v888_v22 = vsel %vm824_vm3, %v706_v15, %v856_v16 }
 0x11f   : > { %v1856_v23 = vpop.f32.mrb[11].mxu0  ;;  %v918_v24 = vpack.c.bf16 %v888_v22, %v887_v21 }
 0x120   : > { %v711_v25 = vadd.f32 %v1854_v19, %v2368_v58  ;;  %v1857_v26 = vadd.f32 %v1856_v23, %v1855_v20 }
 0x121   : > { %1977 = vmatmul.mubr.bf16.vlgmr.msra.gmra.mrb[0].mxu1 %v918_v24 }
 0x122   : > { %v857_v27 = vmul.f32 0.1, %v711_v25  ;;  %v714_v28 = vadd.f32 %v1857_v26, %v2368_v58  ;;  %vm825_vm4 = vcmp.gt.f32.partialorder %v711_v25, 0.0 }
 0x124   : > { %vm826_vm5 = vcmp.gt.f32.partialorder %v714_v28, 0.0  ;;  %v858_v29 = vmul.f32 0.1, %v714_v28  ;;  %v1858_v30 = vpop.f32.mrb[12].mxu0  ;;  %v889_v34 = vsel %vm825_vm4, %v711_v25, %v857_v27 }
 0x125   : > { %v1859_v31 = vpop.f32.mrb[13].mxu0 }
 0x126   : > { %v1860_v32 = vadd.f32 %v1859_v31, %v1858_v30  ;;  %v1861_v33 = vpop.f32.mrb[14].mxu0  ;;  %v890_v35 = vsel %vm826_vm5, %v714_v28, %v858_v29 }
 0x127   : > { %v1862_v36 = vpop.f32.mrb[15].mxu0  ;;  %v919_v37 = vpack.c.bf16 %v890_v35, %v889_v34 }
 0x128   : > { %v719_v38 = vadd.f32 %v1860_v32, %v2368_v58  ;;  %v1863_v39 = vadd.f32 %v1862_v36, %v1861_v33 }
 0x129   : > { %1980 = vmatprep.mubr.bf16.mxu1 %v919_v37 }
 0x12a   : > { %v859_v40 = vmul.f32 0.1, %v719_v38  ;;  %v722_v41 = vadd.f32 %v1863_v39, %v2368_v58  ;;  %vm827_vm6 = vcmp.gt.f32.partialorder %v719_v38, 0.0 }
 0x12c   : > { %vm828_vm7 = vcmp.gt.f32.partialorder %v722_v41, 0.0  ;;  %v860_v42 = vmul.f32 0.1, %v722_v41  ;;  %v1864_v43 = vpop.f32.mrb[16].mxu0  ;;  %v891_v47 = vsel %vm827_vm6, %v719_v38, %v859_v40 }
 0x12d   : > { %v1865_v44 = vpop.f32.mrb[17].mxu0 }
 0x12e   : > { %v1866_v45 = vadd.f32 %v1865_v44, %v1864_v43  ;;  %v1867_v46 = vpop.f32.mrb[18].mxu0  ;;  %v892_v48 = vsel %vm828_vm7, %v722_v41, %v860_v42 }
 0x12f   : > { %v1868_v49 = vpop.f32.mrb[19].mxu0  ;;  %v920_v50 = vpack.c.bf16 %v892_v48, %v891_v47 }
 0x130   : > { %v727_v51 = vadd.f32 %v1866_v45, %v2368_v58  ;;  %v1869_v52 = vadd.f32 %v1868_v49, %v1867_v46 }
 0x131   : > { %1981 = vmatmul.mubr.bf16.gmra.mrb[4].mxu1 %v920_v50 }
 0x132   : > { %v861_v53 = vmul.f32 0.1, %v727_v51  ;;  %v730_v54 = vadd.f32 %v1869_v52, %v2368_v58  ;;  %vm829_vm8 = vcmp.gt.f32.partialorder %v727_v51, 0.0 }
 0x134   : > { %vm830_vm9 = vcmp.gt.f32.partialorder %v730_v54, 0.0  ;;  %v862_v55 = vmul.f32 0.1, %v730_v54  ;;  %v1870_v56 = vpop.f32.mrb[20].mxu0  ;;  %v893_v61 = vsel %vm829_vm8, %v727_v51, %v861_v53 }
 0x135   : > { %v1871_v57 = vpop.f32.mrb[21].mxu0 }
 0x136   : > { %v1872_v59 = vadd.f32 %v1871_v57, %v1870_v56  ;;  %v1873_v60 = vpop.f32.mrb[22].mxu0  ;;  %v894_v62 = vsel %vm830_vm9, %v730_v54, %v862_v55 }
 0x137   : > { %v1874_v63 = vpop.f32.mrb[23].mxu0  ;;  %v921_v0 = vpack.c.bf16 %v894_v62, %v893_v61 }
 0x138   : > { %v735_v1 = vadd.f32 %v1872_v59, %v2368_v58  ;;  %v1875_v2 = vadd.f32 %v1874_v63, %v1873_v60 }
 0x139   : > { %1984 = vmatprep.mubr.bf16.mxu1 %v921_v0 }
 0x13a   : > { %v863_v3 = vmul.f32 0.1, %v735_v1  ;;  %v738_v4 = vadd.f32 %v1875_v2, %v2368_v58  ;;  %vm831_vm10 = vcmp.gt.f32.partialorder %v735_v1, 0.0 }
 0x13c   : > { %vm832_vm11 = vcmp.gt.f32.partialorder %v738_v4, 0.0  ;;  %v864_v5 = vmul.f32 0.1, %v738_v4  ;;  %v1876_v6 = vpop.f32.mrb[24].mxu0  ;;  %v895_v10 = vsel %vm831_vm10, %v735_v1, %v863_v3 }
 0x13d   : > { %v1877_v7 = vpop.f32.mrb[25].mxu0 }
 0x13e   : > { %v1878_v8 = vadd.f32 %v1877_v7, %v1876_v6  ;;  %v1879_v9 = vpop.f32.mrb[26].mxu0  ;;  %v896_v11 = vsel %vm832_vm11, %v738_v4, %v864_v5 }
 0x13f   : > { %v1880_v12 = vpop.f32.mrb[27].mxu0  ;;  %v922_v13 = vpack.c.bf16 %v896_v11, %v895_v10 }
 0x140   : > { %v743_v14 = vadd.f32 %v1878_v8, %v2368_v58  ;;  %v1881_v15 = vadd.f32 %v1880_v12, %v1879_v9 }
 0x141   : > { %1985 = vmatmul.mubr.bf16.gmra.mrb[8].mxu1 %v922_v13 }
 0x142   : > { %v865_v16 = vmul.f32 0.1, %v743_v14  ;;  %v746_v17 = vadd.f32 %v1881_v15, %v2368_v58  ;;  %vm833_vm12 = vcmp.gt.f32.partialorder %v743_v14, 0.0 }
 0x144   : > { %vm834_vm13 = vcmp.gt.f32.partialorder %v746_v17, 0.0  ;;  %v866_v18 = vmul.f32 0.1, %v746_v17  ;;  %v1882_v19 = vpop.f32.mrb[28].mxu0  ;;  %v897_v23 = vsel %vm833_vm12, %v743_v14, %v865_v16 }
 0x145   : > { %v1883_v20 = vpop.f32.mrb[29].mxu0 }
 0x146   : > { %v1884_v21 = vadd.f32 %v1883_v20, %v1882_v19  ;;  %v1885_v22 = vpop.f32.mrb[30].mxu0  ;;  %v898_v24 = vsel %vm834_vm13, %v746_v17, %v866_v18 }
 0x147   : > { %v1886_v25 = vpop.f32.mrb[31].mxu0  ;;  %v923_v26 = vpack.c.bf16 %v898_v24, %v897_v23 }
 0x148   : > { %v751_v27 = vadd.f32 %v1884_v21, %v2368_v58  ;;  %v1887_v28 = vadd.f32 %v1886_v25, %v1885_v22 }
 0x149   : > { %1988 = vmatprep.mubr.bf16.mxu1 %v923_v26 }
 0x14a   : > { %v867_v29 = vmul.f32 0.1, %v751_v27  ;;  %v754_v30 = vadd.f32 %v1887_v28, %v2368_v58  ;;  %vm835_vm14 = vcmp.gt.f32.partialorder %v751_v27, 0.0 }
 0x14c   : > { %vm836_vm15 = vcmp.gt.f32.partialorder %v754_v30, 0.0  ;;  %v868_v31 = vmul.f32 0.1, %v754_v30  ;;  %v1888_v32 = vpop.f32.mrb[32].mxu0  ;;  %v899_v36 = vsel %vm835_vm14, %v751_v27, %v867_v29 }
 0x14d   : > { %v1889_v33 = vpop.f32.mrb[33].mxu0 }
 0x14e   : > { %v1890_v34 = vadd.f32 %v1889_v33, %v1888_v32  ;;  %v1891_v35 = vpop.f32.mrb[34].mxu0  ;;  %v900_v37 = vsel %vm836_vm15, %v754_v30, %v868_v31 }
 0x14f   : > { %v1892_v38 = vpop.f32.mrb[35].mxu0  ;;  %v924_v39 = vpack.c.bf16 %v900_v37, %v899_v36 }
 0x150   : > { %v759_v40 = vadd.f32 %v1890_v34, %v2368_v58  ;;  %v1893_v41 = vadd.f32 %v1892_v38, %v1891_v35 }
 0x151   : > { %1989 = vmatmul.mubr.bf16.gmra.mrb[12].mxu1 %v924_v39 }
 0x152   : > { %v869_v42 = vmul.f32 0.1, %v759_v40  ;;  %v762_v43 = vadd.f32 %v1893_v41, %v2368_v58  ;;  %vm837_vm0 = vcmp.gt.f32.partialorder %v759_v40, 0.0 }
 0x154   : > { %vm838_vm1 = vcmp.gt.f32.partialorder %v762_v43, 0.0  ;;  %v870_v44 = vmul.f32 0.1, %v762_v43  ;;  %v1894_v45 = vpop.f32.mrb[36].mxu0  ;;  %v901_v49 = vsel %vm837_vm0, %v759_v40, %v869_v42 }
 0x155   : > { %v1895_v46 = vpop.f32.mrb[37].mxu0 }
 0x156   : > { %v1896_v47 = vadd.f32 %v1895_v46, %v1894_v45  ;;  %v1897_v48 = vpop.f32.mrb[38].mxu0  ;;  %v902_v50 = vsel %vm838_vm1, %v762_v43, %v870_v44  ;;  %v2091_v44 = vld [vmem:[%s2204_s15] sm:$0xff]  }
 0x157   : > { %v1898_v51 = vpop.f32.mrb[39].mxu0  ;;  %v925_v52 = vpack.c.bf16 %v902_v50, %v901_v49  ;;  %1410 = vmatprep.subr.bf16.mxu1 %v2091_v44 }
 0x158   : > { %v767_v53 = vadd.f32 %v1896_v47, %v2368_v58  ;;  %v1899_v54 = vadd.f32 %v1898_v51, %v1897_v48 }
 0x159   : > { %1992 = vmatprep.mubr.bf16.mxu1 %v925_v52 }
 0x15a   : > { %v871_v55 = vmul.f32 0.1, %v767_v53  ;;  %v770_v56 = vadd.f32 %v1899_v54, %v2368_v58  ;;  %vm839_vm2 = vcmp.gt.f32.partialorder %v767_v53, 0.0 }
 0x15c   : > { %vm840_vm3 = vcmp.gt.f32.partialorder %v770_v56, 0.0  ;;  %v872_v57 = vmul.f32 0.1, %v770_v56  ;;  %v1900_v59 = vpop.f32.mrb[40].mxu0  ;;  %v903_v63 = vsel %vm839_vm2, %v767_v53, %v871_v55 }
 0x15d   : > { %v1901_v60 = vpop.f32.mrb[41].mxu0 }
 0x15e   : > { %v1902_v61 = vadd.f32 %v1901_v60, %v1900_v59  ;;  %v1903_v62 = vpop.f32.mrb[42].mxu0  ;;  %v904_v0 = vsel %vm840_vm3, %v770_v56, %v872_v57 }
 0x15f   : > { %v1904_v1 = vpop.f32.mrb[43].mxu0  ;;  %v926_v2 = vpack.c.bf16 %v904_v0, %v903_v63 }
 0x160   : > { %v775_v3 = vadd.f32 %v1902_v61, %v2368_v58  ;;  %v1905_v4 = vadd.f32 %v1904_v1, %v1903_v62 }
 0x161   : > { %1993 = vmatmul.mubr.bf16.gmra.mrb[16].mxu1 %v926_v2 }
 0x162   : > { %v873_v5 = vmul.f32 0.1, %v775_v3  ;;  %v778_v6 = vadd.f32 %v1905_v4, %v2368_v58  ;;  %vm841_vm4 = vcmp.gt.f32.partialorder %v775_v3, 0.0 }
 0x164   : > { %vm842_vm5 = vcmp.gt.f32.partialorder %v778_v6, 0.0  ;;  %v874_v7 = vmul.f32 0.1, %v778_v6  ;;  %v1906_v8 = vpop.f32.mrb[44].mxu0  ;;  %v905_v12 = vsel %vm841_vm4, %v775_v3, %v873_v5 }
 0x165   : > { %v1907_v9 = vpop.f32.mrb[45].mxu0 }
 0x166   : > { %v1908_v10 = vadd.f32 %v1907_v9, %v1906_v8  ;;  %v1909_v11 = vpop.f32.mrb[46].mxu0  ;;  %v906_v13 = vsel %vm842_vm5, %v778_v6, %v874_v7 }
 0x167   : > { %v1910_v14 = vpop.f32.mrb[47].mxu0  ;;  %v927_v15 = vpack.c.bf16 %v906_v13, %v905_v12 }
 0x168   : > { %v783_v16 = vadd.f32 %v1908_v10, %v2368_v58  ;;  %v1911_v17 = vadd.f32 %v1910_v14, %v1909_v11  ;;  %v1166_v14 = vlaneseq }
 0x169   : > { %1996 = vmatprep.mubr.bf16.mxu1 %v927_v15 }
 0x16a   : > { %v875_v18 = vmul.f32 0.1, %v783_v16  ;;  %v786_v19 = vadd.f32 %v1911_v17, %v2368_v58  ;;  %vm843_vm6 = vcmp.gt.f32.partialorder %v783_v16, 0.0  ;;  %v2403_v15 = vshrl.u32 %v1166_v14, 7  ;;  %v1165_v17 = vld [vmem:[%s295_s30] sm:$0x3] }
 0x16c   : > { %vm844_vm7 = vcmp.gt.f32.partialorder %v786_v19, 0.0  ;;  %v876_v20 = vmul.f32 0.1, %v786_v19  ;;  %v1912_v21 = vpop.f32.mrb[48].mxu0  ;;  %v907_v25 = vsel %vm843_vm6, %v783_v16, %v875_v18  ;;  %v1182_v16 = vsub.s32 1, %v2403_v15 }
 0x16d   : > { %v1913_v22 = vpop.f32.mrb[49].mxu0  ;;  %v1178_v18 = vsub.s32 0, %v2403_v15  ;;  %v1173_v44 = vadd.s32 48, %v2403_v15 }
 0x16e   : > { %v1914_v23 = vadd.f32 %v1913_v22, %v1912_v21  ;;  %v1915_v24 = vpop.f32.mrb[50].mxu0  ;;  %v908_v26 = vsel %vm844_vm7, %v786_v19, %v876_v20  ;;  %v2413_v19 = vrot.slane %v1165_v17, %v1182_v16  ;;  %v2136_v21 = vmov 1.0|1.0   ;;  %v1392_v22 = vld [vmem:[%s2807_s7] sm:$0xff] }
 0x16f   : > { %v1916_v27 = vpop.f32.mrb[51].mxu0  ;;  %v928_v28 = vpack.c.bf16 %v908_v26, %v907_v25  ;;  %v2415_v20 = vrot.slane %v1165_v17, %v1178_v18  ;;  %v2433_v26 = vld [vmem:[%s2806_s6] ss:$0 sm:$0xff] }
 0x170   : > { %v791_v29 = vadd.f32 %v1914_v23, %v2368_v58  ;;  %v1917_v30 = vadd.f32 %v1916_v27, %v1915_v24  ;;  %vm1185_vm0 = vcmp.eq.s32.totalorder %v2403_v15, %v2413_v19  ;;  %v1169_v23 = vadd.s32 16, %v2403_v15 }
 0x171   : > { %1997 = vmatmul.mubr.bf16.gmra.mrb[20].mxu1 %v928_v28  ;;  %vm1184_vm4 = vcmp.eq.s32.totalorder %v2403_v15, %v2415_v20  ;;  %v1170_v24 = vadd.s32 24, %v2403_v15 }
 0x172   : > { %v877_v31 = vmul.f32 0.1, %v791_v29  ;;  %v794_v32 = vadd.f32 %v1917_v30, %v2368_v58  ;;  %vm845_vm8 = vcmp.gt.f32.partialorder %v791_v29, 0.0  ;;  %vm1189_vm6 = vcmp.eq.s32.totalorder %v1169_v23, %v2413_v19 }
 0x173   : > { %vm1191_vm7 = vcmp.eq.s32.totalorder %v1170_v24, %v2413_v19 }
 0x174   : > { %vm846_vm9 = vcmp.gt.f32.partialorder %v794_v32, 0.0  ;;  %v878_v33 = vmul.f32 0.1, %v794_v32  ;;  %v1918_v34 = vpop.f32.mrb[52].mxu0  ;;  %v909_v38 = vsel %vm845_vm8, %v791_v29, %v877_v31  ;;  %vm1188_vm8 = vcmp.eq.s32.totalorder %v1169_v23, %v2415_v20  ;;  %v1394_v29 = vld [vmem:[%s2807_s7 + $0x10] sm:$0xff] }
 0x175   : > { %v1919_v35 = vpop.f32.mrb[53].mxu0 }
 0x176   : > { %v1920_v36 = vadd.f32 %v1919_v35, %v1918_v34  ;;  %v1921_v37 = vpop.f32.mrb[54].mxu0  ;;  %v910_v39 = vsel %vm846_vm9, %v794_v32, %v878_v33  ;;  %vm2438_vm9 = vmpackc.low %vm1191_vm7, %vm1189_vm6 }
 0x177   : > { %v1922_v40 = vpop.f32.mrb[55].mxu0  ;;  %v929_v41 = vpack.c.bf16 %v910_v39, %v909_v38  ;;  %v1171_v39 = vadd.s32 32, %v2403_v15 }
 0x178   : > { %v799_v42 = vadd.f32 %v1920_v36, %v2368_v58  ;;  %v1923_v43 = vadd.f32 %v1922_v40, %v1921_v37  ;;  %v2092_v37 = vld [vmem:[%s2204_s15 + $0x8] sm:$0xff]   ;;  %v1172_v40 = vadd.s32 40, %v2403_v15 }
 0x179   : > { %2000 = vmatprep.mubr.bf16.mxu1 %v929_v41  ;;  %v2093_v41 = vld [vmem:[%s2204_s15 + $0x10] sm:$0xff]  }
 0x17a   : > { %v879_v45 = vmul.f32 0.1, %v799_v42  ;;  %v802_v46 = vadd.f32 %v1923_v43, %v2368_v58  ;;  %vm847_vm10 = vcmp.gt.f32.partialorder %v799_v42, 0.0 }
 0x17c   : > { %vm848_vm11 = vcmp.gt.f32.partialorder %v802_v46, 0.0  ;;  %v880_v47 = vmul.f32 0.1, %v802_v46  ;;  %v1924_v48 = vpop.f32.mrb[56].mxu0  ;;  %v911_v52 = vsel %vm847_vm10, %v799_v42, %v879_v45  ;;  %vm1190_vm10 = vcmp.eq.s32.totalorder %v1170_v24, %v2415_v20  ;;  %v2099_v24 = vld [vmem:[%s2204_s15 + $0x40] sm:$0xff]  }
 0x17d   : > { %v1925_v49 = vpop.f32.mrb[57].mxu0  ;;  %v1174_v45 = vadd.s32 56, %v2403_v15 }
 0x17e   : > { %v1926_v50 = vadd.f32 %v1925_v49, %v1924_v48  ;;  %v1927_v51 = vpop.f32.mrb[58].mxu0  ;;  %v912_v53 = vsel %vm848_vm11, %v802_v46, %v880_v47  ;;  %vm2445_vm11 = vmpackc.low %vm1190_vm10, %vm1188_vm8 }
 0x17f   : > { %v1928_v54 = vpop.f32.mrb[59].mxu0  ;;  %v930_v55 = vpack.c.bf16 %v912_v53, %v911_v52  ;;  %vm1198_vm7 = vcmp.eq.s32.totalorder %v1174_v45, %v2415_v20 }
 0x180   : > { %v807_v56 = vadd.f32 %v1926_v50, %v2368_v58  ;;  %v1929_v57 = vadd.f32 %v1928_v54, %v1927_v51 }
 0x181   : > { %2001 = vmatmul.mubr.bf16.gmra.mrb[24].mxu1 %v930_v55 }
 0x182   : > { %v881_v59 = vmul.f32 0.1, %v807_v56  ;;  %v810_v60 = vadd.f32 %v1929_v57, %v2368_v58  ;;  %vm849_vm12 = vcmp.gt.f32.partialorder %v807_v56, 0.0  ;;  %v2094_v57 = vld [vmem:[%s2204_s15 + $0x18] sm:$0xff]  }
 0x184   : > { %vm850_vm13 = vcmp.gt.f32.partialorder %v810_v60, 0.0  ;;  %v882_v61 = vmul.f32 0.1, %v810_v60  ;;  %v1930_v62 = vpop.f32.mrb[60].mxu0  ;;  %v913_v2 = vsel %vm849_vm12, %v807_v56, %v881_v59  ;;  %vm1193_vm12 = vcmp.eq.s32.totalorder %v1171_v39, %v2413_v19 }
 0x185   : > { %v1931_v63 = vpop.f32.mrb[61].mxu0 }
 0x186   : > { %v1932_v0 = vadd.f32 %v1931_v63, %v1930_v62  ;;  %v1933_v1 = vpop.f32.mrb[62].mxu0  ;;  %v914_v3 = vsel %vm850_vm13, %v810_v60, %v882_v61  ;;  %vm1195_vm13 = vcmp.eq.s32.totalorder %v1172_v40, %v2413_v19  ;;  %v2487_v60 = vadd.s32 64, %v2403_v15  ;;  %v2095_v61 = vld [vmem:[%s2204_s15 + $0x20] sm:$0xff]  }
 0x187   : > { %v1934_v4 = vpop.f32.mrb[63].mxu0  ;;  %v931_v5 = vpack.c.bf16 %v914_v3, %v913_v2 }
 0x188   : > { %v815_v6 = vadd.f32 %v1932_v0, %v2368_v58  ;;  %v1935_v7 = vadd.f32 %v1934_v4, %v1933_v1  ;;  %vm1201_vm10 = vcmp.eq.s32.totalorder %v2487_v60, %v2413_v19 }
 0x189   : > { %2004 = vmatprep.mubr.bf16.mxu1 %v931_v5 }
 0x18a   : > { %v883_v8 = vmul.f32 0.1, %v815_v6  ;;  %v818_v9 = vadd.f32 %v1935_v7, %v2368_v58  ;;  %vm851_vm14 = vcmp.gt.f32.partialorder %v815_v6, 0.0  ;;  %v1168_v58 = vadd.s32 8, %v2403_v15  ;;  %v2096_v7 = vld [vmem:[%s2204_s15 + $0x28] sm:$0xff]  }
 0x18c   : > { %vm852_vm15 = vcmp.gt.f32.partialorder %v818_v9, 0.0  ;;  %v884_v10 = vmul.f32 0.1, %v818_v9  ;;  %v915_v11 = vsel %vm851_vm14, %v815_v6, %v883_v8  ;;  %vm1187_vm1 = vcmp.eq.s32.totalorder %v1168_v58, %v2413_v19 }
 0x18d   : > { %vm1186_vm2 = vcmp.eq.s32.totalorder %v1168_v58, %v2415_v20  ;;  %vm1800_vm3 = vmpackc.low %vm1187_vm1, %vm1185_vm0  ;;  %vm1192_vm14 = vcmp.eq.s32.totalorder %v1171_v39, %v2415_v20  ;;  %v2098_v58 = vld [vmem:[%s2204_s15 + $0x38] sm:$0xff]   ;;  %v2101_v39 = vld [vmem:[%s2204_s15 + $0x50] sm:$0xff]  }
 0x18e   : > { %v916_v12 = vsel %vm852_vm15, %v818_v9, %v884_v10  ;;  %vm2424_vm5 = vmpackc.low %vm1186_vm2, %vm1184_vm4  ;;  %vm1194_vm15 = vcmp.eq.s32.totalorder %v1172_v40, %v2415_v20  ;;  %vm1197_vm2 = vcmp.eq.s32.totalorder %v1173_v44, %v2413_v19  ;;  %vm1196_vm4 = vcmp.eq.s32.totalorder %v1173_v44, %v2415_v20  ;;  %v2097_v9 = vld [vmem:[%s2204_s15 + $0x30] sm:$0xff]  }
 0x18f   : > { %v932_v13 = vpack.c.bf16 %v916_v12, %v915_v11  ;;  %vm2459_vm0 = vmpackc.low %vm1195_vm13, %vm1193_vm12  ;;  %vm1200_vm12 = vcmp.eq.s32.totalorder %v2487_v60, %v2415_v20  ;;  %v1395_v20 = vld [vmem:[%s2807_s7 + $0x18] sm:$0xff] }
 0x190   : > { %vm2463_vm1 = vmpackc.low %vm1194_vm15, %vm1192_vm14 }
 0x191   : > { %2005 = vmatmul.mubr.bf16.gmra.mrb[28].mxu1 %v932_v13  ;;  %vm2479_vm8 = vmpackc.low %vm1198_vm7, %vm1196_vm4 }
 0x192   : > { %1801 = vmatprep.mubr.msk.bf16.mxu1 %vm1800_vm3, %v2136_v21  ;;  %vm1199_vm3 = vcmp.eq.s32.totalorder %v1174_v45, %v2413_v19  ;;  %v1393_v19 = vld [vmem:[%s2807_s7 + $0x8] sm:$0xff] }
 0x193   : > { %vm2472_vm6 = vmpackc.low %vm1199_vm3, %vm1197_vm2 }
 0x1f4   : > { %v1978_v25 = vpop.f32.mrb[0].mxu1 }
 0x1f5   : > { %v1038_v27 = vpop.f32.mrb[1].mxu1  ;;  %v1047_v30 = vadd.f32 %v1978_v25, %v2433_v26 }
 0x1f6   : > { %v1979_v28 = vpop.f32.mrb[2].mxu1  ;;  %v1039_v34 = vadd.f32 %v2433_v26, %v1038_v27 }
 0x1f7   : > { %v1050_v31 = vadd.f32 %v1979_v28, %v2433_v26  ;;  %v1041_v32 = vpop.f32.mrb[3].mxu1 }
 0x1f8   : > { %v1042_v35 = vadd.f32 %v2433_v26, %v1041_v32 }
 0x1f9   : > { %v1249_v36 = vpack.c.bf16 %v1050_v31, %v1047_v30 }
 0x1fa   : > { %v1248_v38 = vpack.c.bf16 %v1042_v35, %v1039_v34 }
 0x1fc   : > { %1411 = vmatpush1.bf16.msra.mxu1 %v1248_v38 }
 0x1fd   : > { %1412 = vmatprep.subr.bf16.mxu1 %v2092_v37  ;;  %v2100_v37 = vld [vmem:[%s2204_s15 + $0x48] sm:$0xff]  }
 0x200   : > { %1413 = vmatpush1.bf16.msra.mxu1 %v1249_v36 }
 0x201   : > { %1414 = vmatprep.subr.bf16.mxu1 %v2093_v41 }
 0x204   : > { %v1982_v46 = vpop.f32.mrb[4].mxu1 }
 0x205   : > { %v1054_v47 = vpop.f32.mrb[5].mxu1  ;;  %v1063_v50 = vadd.f32 %v1982_v46, %v2433_v26 }
 0x206   : > { %v1983_v48 = vpop.f32.mrb[6].mxu1  ;;  %v1055_v54 = vadd.f32 %v2433_v26, %v1054_v47 }
 0x207   : > { %v1066_v51 = vadd.f32 %v1983_v48, %v2433_v26  ;;  %v1057_v52 = vpop.f32.mrb[7].mxu1 }
 0x208   : > { %v1058_v55 = vadd.f32 %v2433_v26, %v1057_v52  ;;  %v2102_v52 = vld [vmem:[%s2204_s15 + $0x58] sm:$0xff]  }
 0x209   : > { %v1251_v56 = vpack.c.bf16 %v1066_v51, %v1063_v50 }
 0x20a   : > { %v1250_v59 = vpack.c.bf16 %v1058_v55, %v1055_v54  ;;  %v2103_v55 = vld [vmem:[%s2204_s15 + $0x60] sm:$0xff]  }
 0x20c   : > { %1415 = vmatpush1.bf16.msra.mxu1 %v1250_v59 }
 0x20d   : > { %1416 = vmatprep.subr.bf16.mxu1 %v2094_v57 }
 0x210   : > { %1417 = vmatpush1.bf16.msra.mxu1 %v1251_v56 }
 0x211   : > { %1418 = vmatprep.subr.bf16.mxu1 %v2095_v61 }
 0x214   : > { %v1986_v62 = vpop.f32.mrb[8].mxu1 }
 0x215   : > { %v1070_v63 = vpop.f32.mrb[9].mxu1  ;;  %v1079_v1 = vadd.f32 %v1986_v62, %v2433_v26 }
 0x216   : > { %v1987_v0 = vpop.f32.mrb[10].mxu1  ;;  %v1071_v4 = vadd.f32 %v2433_v26, %v1070_v63 }
 0x217   : > { %v1082_v2 = vadd.f32 %v1987_v0, %v2433_v26  ;;  %v1073_v3 = vpop.f32.mrb[11].mxu1 }
 0x218   : > { %v1074_v5 = vadd.f32 %v2433_v26, %v1073_v3  ;;  %v2104_v3 = vld [vmem:[%s2204_s15 + $0x68] sm:$0xff]  }
 0x219   : > { %v1253_v6 = vpack.c.bf16 %v1082_v2, %v1079_v1 }
 0x21a   : > { %v1252_v8 = vpack.c.bf16 %v1074_v5, %v1071_v4  ;;  %v2105_v5 = vld [vmem:[%s2204_s15 + $0x70] sm:$0xff]  }
 0x21c   : > { %1419 = vmatpush1.bf16.msra.mxu1 %v1252_v8 }
 0x21d   : > { %1420 = vmatprep.subr.bf16.mxu1 %v2096_v7 }
 0x220   : > { %1421 = vmatpush1.bf16.msra.mxu1 %v1253_v6 }
 0x221   : > { %1422 = vmatprep.subr.bf16.mxu1 %v2097_v9 }
 0x224   : > { %v1990_v10 = vpop.f32.mrb[12].mxu1 }
 0x225   : > { %v1086_v11 = vpop.f32.mrb[13].mxu1  ;;  %v1095_v13 = vadd.f32 %v1990_v10, %v2433_v26 }
 0x226   : > { %v1991_v12 = vpop.f32.mrb[14].mxu1  ;;  %v1087_v16 = vadd.f32 %v2433_v26, %v1086_v11 }
 0x227   : > { %v1098_v14 = vadd.f32 %v1991_v12, %v2433_v26  ;;  %v1089_v15 = vpop.f32.mrb[15].mxu1 }
 0x228   : > { %v1090_v17 = vadd.f32 %v2433_v26, %v1089_v15  ;;  %v2106_v15 = vld [vmem:[%s2204_s15 + $0x78] sm:$0xff]  }
 0x229   : > { %v1255_v18 = vpack.c.bf16 %v1098_v14, %v1095_v13 }
 0x22a   : > { %v1254_v23 = vpack.c.bf16 %v1090_v17, %v1087_v16  ;;  %v1396_v17 = vld [vmem:[%s2807_s7 + $0x20] sm:$0xff] }
 0x22c   : > { %1423 = vmatpush1.bf16.msra.mxu1 %v1254_v23  ;;  %v1398_v23 = vld [vmem:[%s2807_s7 + $0x30] sm:$0xff] }
 0x22d   : > { %1424 = vmatprep.subr.bf16.mxu1 %v2098_v58 }
 0x230   : > { %1425 = vmatpush1.bf16.msra.mxu1 %v1255_v18  ;;  %v1397_v18 = vld [vmem:[%s2807_s7 + $0x28] sm:$0xff] }
 0x231   : > { %1426 = vmatprep.subr.bf16.mxu1 %v2099_v24 }
 0x234   : > { %v1994_v25 = vpop.f32.mrb[16].mxu1 }
 0x235   : > { %v1102_v27 = vpop.f32.mrb[17].mxu1  ;;  %v1111_v30 = vadd.f32 %v1994_v25, %v2433_v26 }
 0x236   : > { %v1995_v28 = vpop.f32.mrb[18].mxu1  ;;  %v1103_v34 = vadd.f32 %v2433_v26, %v1102_v27  ;;  %v1399_v27 = vld [vmem:[%s2807_s7 + $0x38] sm:$0xff] }
 0x237   : > { %v1114_v31 = vadd.f32 %v1995_v28, %v2433_v26  ;;  %v1105_v32 = vpop.f32.mrb[19].mxu1 }
 0x238   : > { %v1106_v35 = vadd.f32 %v2433_v26, %v1105_v32 }
 0x239   : > { %v1257_v36 = vpack.c.bf16 %v1114_v31, %v1111_v30 }
 0x23a   : > { %v1256_v38 = vpack.c.bf16 %v1106_v35, %v1103_v34  ;;  %v1400_v35 = vld [vmem:[%s2807_s7 + $0x40] sm:$0xff] }
 0x23c   : > { %1427 = vmatpush1.bf16.msra.mxu1 %v1256_v38  ;;  %v1402_v38 = vld [vmem:[%s2807_s7 + $0x50] sm:$0xff] }
 0x23d   : > { %1428 = vmatprep.subr.bf16.mxu1 %v2100_v37 }
 0x240   : > { %1429 = vmatpush1.bf16.msra.mxu1 %v1257_v36  ;;  %v1401_v36 = vld [vmem:[%s2807_s7 + $0x48] sm:$0xff] }
 0x241   : > { %1430 = vmatprep.subr.bf16.mxu1 %v2101_v39 }
 0x244   : > { %v1998_v40 = vpop.f32.mrb[20].mxu1 }
 0x245   : > { %v1118_v41 = vpop.f32.mrb[21].mxu1  ;;  %v1127_v45 = vadd.f32 %v1998_v40, %v2433_v26 }
 0x246   : > { %v1999_v44 = vpop.f32.mrb[22].mxu1  ;;  %v1119_v48 = vadd.f32 %v2433_v26, %v1118_v41  ;;  %v1403_v41 = vld [vmem:[%s2807_s7 + $0x58] sm:$0xff] }
 0x247   : > { %v1130_v46 = vadd.f32 %v1999_v44, %v2433_v26  ;;  %v1121_v47 = vpop.f32.mrb[23].mxu1 }
 0x248   : > { %v1122_v50 = vadd.f32 %v2433_v26, %v1121_v47 }
 0x249   : > { %v1259_v51 = vpack.c.bf16 %v1130_v46, %v1127_v45 }
 0x24a   : > { %v1258_v54 = vpack.c.bf16 %v1122_v50, %v1119_v48  ;;  %v1404_v50 = vld [vmem:[%s2807_s7 + $0x60] sm:$0xff] }
 0x24c   : > { %1431 = vmatpush1.bf16.msra.mxu1 %v1258_v54  ;;  %v1406_v54 = vld [vmem:[%s2807_s7 + $0x70] sm:$0xff] }
 0x24d   : > { %1432 = vmatprep.subr.bf16.mxu1 %v2102_v52 }
 0x250   : > { %1433 = vmatpush1.bf16.msra.mxu1 %v1259_v51  ;;  %v1405_v51 = vld [vmem:[%s2807_s7 + $0x68] sm:$0xff] }
 0x251   : > { %1434 = vmatprep.subr.bf16.mxu1 %v2103_v55 }
 0x254   : > { %v2002_v56 = vpop.f32.mrb[24].mxu1 }
 0x255   : > { %v1134_v57 = vpop.f32.mrb[25].mxu1  ;;  %v1143_v61 = vadd.f32 %v2002_v56, %v2433_v26 }
 0x256   : > { %v2003_v59 = vpop.f32.mrb[26].mxu1  ;;  %v1135_v0 = vadd.f32 %v2433_v26, %v1134_v57  ;;  %v1407_v57 = vld [vmem:[%s2807_s7 + $0x78] sm:$0xff] }
 0x257   : > { %v1146_v62 = vadd.f32 %v2003_v59, %v2433_v26  ;;  %v1137_v63 = vpop.f32.mrb[27].mxu1 }
 0x258   : > { %v1138_v1 = vadd.f32 %v2433_v26, %v1137_v63 }
 0x259   : > { %v1261_v2 = vpack.c.bf16 %v1146_v62, %v1143_v61 }
 0x25a   : > { %v1260_v4 = vpack.c.bf16 %v1138_v1, %v1135_v0  ;;  %v1408_v1 = vld [vmem:[%s2807_s7 + $0x80] sm:$0xff] }
 0x25c   : > { %1435 = vmatpush1.bf16.msra.mxu1 %v1260_v4 }
 0x25d   : > { %1436 = vmatprep.subr.bf16.mxu1 %v2104_v3 }
 0x260   : > { %1437 = vmatpush1.bf16.msra.mxu1 %v1261_v2  ;;  %v1409_v2 = vld [vmem:[%s2807_s7 + $0x88] sm:$0xff] }
 0x261   : > { %1438 = vmatprep.subr.bf16.mxu1 %v2105_v5 }
 0x264   : > { %v2006_v6 = vpop.f32.mrb[28].mxu1 }
 0x265   : > { %v1150_v7 = vpop.f32.mrb[29].mxu1  ;;  %v1159_v9 = vadd.f32 %v2006_v6, %v2433_v26 }
 0x266   : > { %v2007_v8 = vpop.f32.mrb[30].mxu1  ;;  %v1151_v12 = vadd.f32 %v2433_v26, %v1150_v7 }
 0x267   : > { %v1162_v10 = vadd.f32 %v2007_v8, %v2433_v26  ;;  %v1153_v11 = vpop.f32.mrb[31].mxu1 }
 0x268   : > { %v1154_v13 = vadd.f32 %v2433_v26, %v1153_v11 }
 0x269   : > { %v1263_v14 = vpack.c.bf16 %v1162_v10, %v1159_v9 }
 0x26a   : > { %v1262_v16 = vpack.c.bf16 %v1154_v13, %v1151_v12  ;;  %v2137_v12 = vmov (!%p1820_p6), 127  }
 0x26b   : > { %2108 = vset.pattern.permute.xlu1 (!%p1820_p6), %v2137_v12  ;;  %2107 = vset.pattern.permute.xlu0 (!%p1820_p6), %v2137_v12 }
 0x26c   : > { %1439 = vmatpush1.bf16.msra.mxu1 %v1262_v16 }
 0x26d   : > { %1440 = vmatprep.subr.bf16.mxu1 %v2106_v15 }
 0x270   : > { %1441 = vmatpush1.bf16.msra.mxu1 %v1263_v14 }
 0x273   : > { %1803 = vmatmul.mubr.msk.bf16.vlgmr.msra.gmra.mrb[32].mxu1 %vm2424_vm5, %v2136_v21  ;;  %vm1816_vm5 = vmpackc.low %vm1201_vm10, %vm1201_vm10 }
 0x274   : > { %1805 = vmatprep.mubr.msk.bf16.mxu1 %vm2438_vm9, %v2136_v21  ;;  %vm1818_vm9 = vmpackc.low %vm1200_vm12, %vm1200_vm12 }
 0x27b   : > { %1807 = vmatmul.mubr.msk.bf16.gmra.mrb[36].mxu1 %vm2445_vm11, %v2136_v21 }
 0x27c   : > { %1809 = vmatprep.mubr.msk.bf16.mxu1 %vm2459_vm0, %v2136_v21 }
 0x283   : > { %1811 = vmatmul.mubr.msk.bf16.gmra.mrb[40].mxu1 %vm2463_vm1, %v2136_v21 }
 0x284   : > { %1813 = vmatprep.mubr.msk.bf16.mxu1 %vm2472_vm6, %v2136_v21 }
 0x28b   : > { %1815 = vmatmul.mubr.msk.bf16.gmra.mrb[44].mxu1 %vm2479_vm8, %v2136_v21 }
 0x28c   : > { %1817 = vmatprep.mubr.msk.bf16.mxu1 %vm1816_vm5, %v2136_v21 }
 0x293   : > { %1819 = vmatmul.mubr.msk.bf16.gmra.mrb[48].mxu1 %vm1818_vm9, %v2136_v21 }
 0x346   : > { %v1444_v26 = vpop.f32.mrb[32].mxu1 }
 0x347   : > { %v1491_v33 = vadd.f32 %v1444_v26, %v1392_v22  ;;  %v1446_v42 = vpop.f32.mrb[33].mxu1 }
 0x348   : > { %v1492_v21 = vadd.f32 %v1446_v42, %v1393_v19  ;;  %v1448_v43 = vpop.f32.mrb[34].mxu1 }
 0x349   : > { %1509 = vst [vmem:[%s2807_s7] sm:$0xff] %v1491_v33  ;;  %v1493_v49 = vadd.f32 %v1448_v43, %v1394_v29  ;;  %v1450_v53 = vpop.f32.mrb[35].mxu1 }
 0x34a   : > { %1510 = vst [vmem:[%s2807_s7 + $0x8] sm:$0xff] %v1492_v21  ;;  %v1494_v60 = vadd.f32 %v1450_v53, %v1395_v20 }
 0x34b   : > { %1511 = vst [vmem:[%s2807_s7 + $0x10] sm:$0xff] %v1493_v49 }
 0x34c   : > { %1512 = vst [vmem:[%s2807_s7 + $0x18] sm:$0xff] %v1494_v60 }
 0x34e   : > { %v1454_v58 = vpop.f32.mrb[36].mxu1 }
 0x34f   : > { %v1495_v24 = vadd.f32 %v1454_v58, %v1396_v17  ;;  %v1456_v25 = vpop.f32.mrb[37].mxu1 }
 0x350   : > { %v1496_v28 = vadd.f32 %v1456_v25, %v1397_v18  ;;  %v1458_v30 = vpop.f32.mrb[38].mxu1 }
 0x351   : > { %1513 = vst [vmem:[%s2807_s7 + $0x20] sm:$0xff] %v1495_v24  ;;  %v1497_v31 = vadd.f32 %v1458_v30, %v1398_v23  ;;  %v1460_v32 = vpop.f32.mrb[39].mxu1  ;;  %v1532_v10 = vld [vmem:[%s2807_s7 + $0x8] sm:$0xff] (!%p1820_p6) }
 0x352   : > { %1514 = vst [vmem:[%s2807_s7 + $0x28] sm:$0xff] %v1496_v28  ;;  %v1498_v34 = vadd.f32 %v1460_v32, %v1399_v27  ;;  %v1549_v14 = vmax.f32 (!%p1820_p6), %v1532_v10, 1.0  ;;  %v1531_v27 = vld [vmem:[%s2807_s7] sm:$0xff] (!%p1820_p6) }
 0x353   : > { %1515 = vst [vmem:[%s2807_s7 + $0x30] sm:$0xff] %v1497_v31  ;;  %v1534_v15 = vld [vmem:[%s2807_s7 + $0x18] sm:$0xff] (!%p1820_p6) }
 0x354   : > { %1516 = vst [vmem:[%s2807_s7 + $0x38] sm:$0xff] %v1498_v34  ;;  %1560 = vperm.xlu0 (!%p1820_p6), %2107, %v1549_v14   ;;  %v1550_v22 = vmax.f32 (!%p1820_p6), %v1534_v15, 1.0 }
 0x356   : > { %v1464_v37 = vpop.f32.mrb[40].mxu1 }
 0x357   : > { %v1499_v39 = vadd.f32 %v1464_v37, %v1400_v35  ;;  %v1466_v40 = vpop.f32.mrb[41].mxu1 }
 0x358   : > { %v1500_v44 = vadd.f32 %v1466_v40, %v1401_v36  ;;  %v1468_v45 = vpop.f32.mrb[42].mxu1  ;;  %1565 = vperm.xlu0 (!%p1820_p6), %2107, %v1550_v22   ;;  %v1535_v25 = vld [vmem:[%s2807_s7 + $0x20] sm:$0xff] (!%p1820_p6) }
 0x359   : > { %1517 = vst [vmem:[%s2807_s7 + $0x40] sm:$0xff] %v1499_v39  ;;  %v1501_v46 = vadd.f32 %v1468_v45, %v1402_v38  ;;  %v1470_v47 = vpop.f32.mrb[43].mxu1  ;;  %v1536_v9 = vld [vmem:[%s2807_s7 + $0x28] sm:$0xff] (!%p1820_p6)  ;;  %v1533_v39 = vld [vmem:[%s2807_s7 + $0x10] sm:$0xff] (!%p1820_p6) }
 0x35a   : > { %1518 = vst [vmem:[%s2807_s7 + $0x48] sm:$0xff] %v1500_v44  ;;  %v1502_v48 = vadd.f32 %v1470_v47, %v1403_v41  ;;  %v1551_v13 = vmax.f32 (!%p1820_p6), %v1536_v9, 1.0  ;;  %v1537_v38 = vld [vmem:[%s2807_s7 + $0x30] sm:$0xff] (!%p1820_p6) }
 0x35b   : > { %1519 = vst [vmem:[%s2807_s7 + $0x50] sm:$0xff] %v1501_v46  ;;  %v1538_v11 = vld [vmem:[%s2807_s7 + $0x38] sm:$0xff] (!%p1820_p6) }
 0x35c   : > { %1520 = vst [vmem:[%s2807_s7 + $0x58] sm:$0xff] %v1502_v48  ;;  %1570 = vperm.xlu1 (!%p1820_p6), %2108, %v1551_v13   ;;  %v1552_v16 = vmax.f32 (!%p1820_p6), %v1538_v11, 1.0 }
 0x35e   : > { %v1474_v52 = vpop.f32.mrb[44].mxu1 }
 0x35f   : > { %v1503_v55 = vadd.f32 %v1474_v52, %v1404_v50  ;;  %v1476_v56 = vpop.f32.mrb[45].mxu1 }
 0x360   : > { %v1504_v59 = vadd.f32 %v1476_v56, %v1405_v51  ;;  %v1478_v61 = vpop.f32.mrb[46].mxu1  ;;  %1575 = vperm.xlu1 (!%p1820_p6), %2108, %v1552_v16   ;;  %v1539_v51 = vld [vmem:[%s2807_s7 + $0x40] sm:$0xff] (!%p1820_p6) }
 0x361   : > { %1521 = vst [vmem:[%s2807_s7 + $0x60] sm:$0xff] %v1503_v55  ;;  %v1505_v62 = vadd.f32 %v1478_v61, %v1406_v54  ;;  %v1480_v63 = vpop.f32.mrb[47].mxu1  ;;  %v2689_v26 = vld [vmem:[%s2807_s7 + $0x48] sm:$0xff] (!%p1820_p6) }
 0x362   : > { %1522 = vst [vmem:[%s2807_s7 + $0x68] sm:$0xff] %v1504_v59  ;;  %v1506_v0 = vadd.f32 %v1480_v63, %v1407_v57  ;;  %v1553_v33 = vmax.f32 (!%p1820_p6), %v2689_v26, 1.0  ;;  %v1541_v50 = vld [vmem:[%s2807_s7 + $0x50] sm:$0xff] (!%p1820_p6) }
 0x363   : > { %1523 = vst [vmem:[%s2807_s7 + $0x70] sm:$0xff] %v1505_v62  ;;  %v2684_v19 = vld [vmem:[%s2807_s7 + $0x58] sm:$0xff] (!%p1820_p6) }
 0x364   : > { %1524 = vst [vmem:[%s2807_s7 + $0x78] sm:$0xff] %v1506_v0  ;;  %1530 = sbr.rel (%p1820_p6) target bundleno = 1026 (0x402), region = 56  ;;  %v1554_v29 = vmax.f32 (!%p1820_p6), %v2684_v19, 1.0  ;;  %1580 = vperm.xlu0 (!%p1820_p6), %2107, %v1553_v33  }
 0x366   : > { %v1484_v3 = vpop.f32.mrb[48].mxu1  ;;  %1585 = vperm.xlu1 (!%p1820_p6), %2108, %v1554_v29  }
 0x367   : > { %v1507_v4 = vadd.f32 %v1484_v3, %v1408_v1  ;;  %v1486_v5 = vpop.f32.mrb[49].mxu1 }
 0x368   : > { %v1508_v6 = vadd.f32 %v1486_v5, %v1409_v2  ;;  %v1488_v7 = vpop.f32.mrb[50].mxu1  ;;  %v1543_v62 = vld [vmem:[%s2807_s7 + $0x60] sm:$0xff] (!%p1820_p6) }
 0x369   : > { %1525 = vst [vmem:[%s2807_s7 + $0x80] sm:$0xff] %v1507_v4  ;;  %v1489_v8 = vpop.f32.mrb[51].mxu1  ;;  %v2701_v20 = vld [vmem:[%s2807_s7 + $0x68] sm:$0xff] (!%p1820_p6) }
 0x36a   : > { %1526 = vst [vmem:[%s2807_s7 + $0x88] sm:$0xff] %v1508_v6  ;;  %v1555_v43 = vmax.f32 (!%p1820_p6), %v2701_v20, 1.0  ;;  %v1545_v61 = vld [vmem:[%s2807_s7 + $0x70] sm:$0xff] (!%p1820_p6) }
 0x36b   : > { %v2696_v42 = vld [vmem:[%s2807_s7 + $0x78] sm:$0xff] }
 0x36c   : > { %v1556_v21 = vmax.f32 %v2696_v42, 1.0  ;;  %1590 = vperm.xlu0 %2107, %v1555_v43  }
 0x36e   : > { %1595 = vperm.xlu1 %2108, %v1556_v21  }
 0x370   : > { %v1547_v5 = vld [vmem:[%s2807_s7 + $0x80] sm:$0xff] }
 0x371   : > { %v2708_v49 = vld [vmem:[%s2807_s7 + $0x88] sm:$0xff] }
 0x372   : > { %v1557_v53 = vmax.f32 %v2708_v49, 1.0 }
 0x374   : > { %1600 = vperm.xlu0 %2107, %v1557_v53  }
 0x3d3   : > { %v1561_v17 = vpop.permute.xlu0 %1560 }
 0x3d7   : > { %v1566_v58 = vpop.permute.xlu0 %1565 }
 0x3db   : > { %v1571_v60 = vpop.permute.xlu1 %1570 }
 0x3dc   : > { %2109 = vrcp.f32 %v1571_v60 }
 0x3dd   : > { %2111 = vrcp.f32 %v1561_v17 }
 0x3df   : > { %v1576_v18 = vpop.permute.xlu1 %1575 }
 0x3e0   : > { %2113 = vrcp.f32 %v1576_v18 }
 0x3e1   : > { %2115 = vrcp.f32 %v1566_v58 }
 0x3e3   : > { %v1581_v24 = vpop.permute.xlu0 %1580 }
 0x3e5   : > { %v1586_v23 = vpop.permute.xlu1 %1585 }
 0x3e6   : > { %2117 = vrcp.f32 %v1586_v23  ;;  %v2110_v28 = vpop.eup %2109 }
 0x3e7   : > { %2119 = vrcp.f32 %v1581_v24  ;;  %v2112_v30 = vpop.eup %2111  ;;  %v1610_v31 = vmul.f32 %v2110_v28, %v1535_v25  ;;  %v1611_v32 = vmul.f32 %v2110_v28, %v1536_v9 }
 0x3e8   : > { %v1604_v36 = vmul.f32 %v2112_v30, %v1531_v27  ;;  %v1605_v37 = vmul.f32 %v2112_v30, %v1532_v10 }
 0x3e9   : > { %1634 = vst [vmem:[%s2807_s7 + $0x20] sm:$0xff] %v1610_v31  ;;  %1635 = vst [vmem:[%s2807_s7 + $0x28] sm:$0xff] %v1611_v32 }
 0x3ea   : > { %v2114_v40 = vpop.eup %2113  ;;  %1630 = vst [vmem:[%s2807_s7] sm:$0xff] %v1604_v36  ;;  %1631 = vst [vmem:[%s2807_s7 + $0x8] sm:$0xff] %v1605_v37 }
 0x3eb   : > { %v1591_v35 = vpop.permute.xlu0 %1590  ;;  %v2116_v41 = vpop.eup %2115  ;;  %v1613_v44 = vmul.f32 %v2114_v40, %v1537_v38  ;;  %v1614_v45 = vmul.f32 %v2114_v40, %v1538_v11 }
 0x3ec   : > { %v1607_v47 = vmul.f32 %v2116_v41, %v1533_v39  ;;  %v1608_v48 = vmul.f32 %v2116_v41, %v1534_v15 }
 0x3ed   : > { %v1596_v34 = vpop.permute.xlu1 %1595  ;;  %1636 = vst [vmem:[%s2807_s7 + $0x30] sm:$0xff] %v1613_v44  ;;  %1637 = vst [vmem:[%s2807_s7 + $0x38] sm:$0xff] %v1614_v45 }
 0x3ee   : > { %2121 = vrcp.f32 %v1596_v34  ;;  %1632 = vst [vmem:[%s2807_s7 + $0x10] sm:$0xff] %v1607_v47  ;;  %1633 = vst [vmem:[%s2807_s7 + $0x18] sm:$0xff] %v1608_v48 }
 0x3ef   : > { %2123 = vrcp.f32 %v1591_v35 }
 0x3f0   : > { %v2118_v52 = vpop.eup %2117 }
 0x3f1   : > { %v2120_v54 = vpop.eup %2119  ;;  %v1619_v55 = vmul.f32 %v2118_v52, %v1541_v50  ;;  %v1620_v56 = vmul.f32 %v2118_v52, %v2684_v19 }
 0x3f2   : > { %v1616_v57 = vmul.f32 %v2120_v54, %v1539_v51  ;;  %v1617_v59 = vmul.f32 %v2120_v54, %v2689_v26 }
 0x3f3   : > { %v1601_v46 = vpop.permute.xlu0 %1600  ;;  %1640 = vst [vmem:[%s2807_s7 + $0x50] sm:$0xff] %v1619_v55  ;;  %1641 = vst [vmem:[%s2807_s7 + $0x58] sm:$0xff] %v1620_v56 }
 0x3f4   : > { %2125 = vrcp.f32 %v1601_v46  ;;  %1638 = vst [vmem:[%s2807_s7 + $0x40] sm:$0xff] %v1616_v57  ;;  %1639 = vst [vmem:[%s2807_s7 + $0x48] sm:$0xff] %v1617_v59 }
 0x3f8   : > { %v2122_v63 = vpop.eup %2121 }
 0x3f9   : > { %v2124_v0 = vpop.eup %2123  ;;  %v1625_v1 = vmul.f32 %v2122_v63, %v1545_v61  ;;  %v1626_v2 = vmul.f32 %v2122_v63, %v2696_v42 }
 0x3fa   : > { %v1622_v3 = vmul.f32 %v2124_v0, %v1543_v62  ;;  %v1623_v4 = vmul.f32 %v2124_v0, %v2701_v20 }
 0x3fb   : > { %1644 = vst [vmem:[%s2807_s7 + $0x70] sm:$0xff] %v1625_v1  ;;  %1645 = vst [vmem:[%s2807_s7 + $0x78] sm:$0xff] %v1626_v2 }
 0x3fc   : > { %1642 = vst [vmem:[%s2807_s7 + $0x60] sm:$0xff] %v1622_v3  ;;  %1643 = vst [vmem:[%s2807_s7 + $0x68] sm:$0xff] %v1623_v4 }
 0x3fe   : > { %v2126_v6 = vpop.eup %2125 }
 0x3ff   : > { %v1628_v7 = vmul.f32 %v2126_v6, %v1547_v5  ;;  %v1629_v8 = vmul.f32 %v2126_v6, %v2708_v49 }
 0x401   : > { %1646 = vst [vmem:[%s2807_s7 + $0x80] sm:$0xff] %v1628_v7  ;;  %1647 = vst [vmem:[%s2807_s7 + $0x88] sm:$0xff] %v1629_v8 }
 0x402 PF: > { %s17_s24 = sadd.s32 1, %s2133_s24  }
 0x403   : > { %p14_p7 = scmp.ge.s32.totalorder %s17_s24, 4  }
 0x405   :  { %16 = sbr.rel (!%p14_p7) target bundleno = 1 (0x1), region = 88 }

</bundles_post_ra>
